<compile_context>
chip_gen: v5e
topology: v5e:2x2
jax: 0.10.0
libtpu: 0.0.40
codegen_flags: <defaults>
</compile_context>

<pallas_src>
import math
import functools

import jax
import jax.numpy as jnp
from jax.experimental import pallas as pl
from jax.experimental.pallas import tpu as pltpu


def _round_up(x: int, mult: int) -> int:
    return ((x + mult - 1) // mult) * mult


def _default_trig_dtype():
    """bf16 transcendentals only on chips whose EUP/VPU support bf16 (v6e+)."""
    try:
        kind = jax.devices()[0].device_kind.lower()
    except Exception:
        return jnp.float32
    if "tpu" not in kind:
        return jnp.float32
    if any(old in kind for old in ("v2", "v3", "v4", "v5")):
        return jnp.float32            # v5e and older: no bf16 VPU/EUP
    return jnp.bfloat16               # v6e / v7x and newer


def _default_num_tensorcores():
    """TensorCores one kernel's 'parallel' grid axis is sharded across."""
    try:
        kind = jax.devices()[0].device_kind.lower()
    except Exception:
        return 1
    if "v7" in kind or "7x" in kind:
        return 2                      # v7x: 2 TCs per chip
    return 1                          # v5e / v6e: 1 TC


def _choose_tile(n_cols: int, tile_n: int, num_tc: int):
    """Pick the lane (column) tile, padded column extent and grid-step count."""
    tile_n = max(128, _round_up(tile_n, 128))
    if num_tc <= 1:
        # Single TensorCore: biggest tile (fewest steps); one step if it fits.
        tile = min(tile_n, _round_up(n_cols, 128))
    else:
        # Keep at least `num_tc` steps so every core gets work.
        per_core = _round_up(-(-n_cols // num_tc), 128)
        tile = min(tile_n, max(128, per_core))
    n_pad = _round_up(n_cols, tile)
    steps = n_pad // tile
    if num_tc > 1 and steps % num_tc != 0:
        steps = _round_up(steps, num_tc)      # even split across the cores
        n_pad = steps * tile
    return tile, n_pad, steps


def _reference_forward(x, wr_w, ff_w1, ff_b1, ff_w2, ff_b2, *, pe_dim,
                       gelu_approximate=True):
    """Plain-XLA forward (module semantics); also the small-N fast path."""
    n, g, m = x.shape
    f_dim = ff_w1.shape[1]
    proj = jnp.einsum("ngm,fm->ngf", x.astype(jnp.float32),
                      wr_w.astype(jnp.float32))
    fourier = (1.0 / math.sqrt(f_dim)) * jnp.concatenate(
        [jnp.cos(proj), jnp.sin(proj)], axis=-1)
    h = jax.nn.gelu(fourier @ ff_w1.T.astype(jnp.float32)
                    + ff_b1.astype(jnp.float32),
                    approximate=gelu_approximate)
    y = h @ ff_w2.T.astype(jnp.float32) + ff_b2.astype(jnp.float32)
    return y.reshape(n, pe_dim)[None, :, :]


def _lfpe_kernel(xT_ref, wr_ref, w1c_ref, w1s_ref, b1_ref, w2_ref, b2_ref,
                 yT_ref, *, trig_dtype, gelu_approximate):
    """One lane-dense tile of positions (columns)."""
    xT = xT_ref[...]                                          # (m_pad, tile)

    # Wr projection (Linear, no bias), transposed: projT = Wr @ xT.
    projT = jnp.dot(wr_ref[...], xT,
                    preferred_element_type=jnp.float32)       # (f/2, tile)

    # Fourier features without the concat: split-W1 matmuls.  The 1/sqrt(F)
    # scale is folded into w1c / w1s in the wrapper.  Transcendentals run on
    # the EUP in `trig_dtype` (bf16 on v6e/v7x, f32 on v5e); MXU accumulation
    # stays f32.
    projT_t = projT.astype(trig_dtype)
    cosT = jnp.cos(projT_t).astype(jnp.float32)
    sinT = jnp.sin(projT_t).astype(jnp.float32)
    hT = (jnp.dot(w1c_ref[...], cosT, preferred_element_type=jnp.float32)
          + jnp.dot(w1s_ref[...], sinT, preferred_element_type=jnp.float32)
          + b1_ref[...])                                      # (h, tile)

    # TODO(synk): FeedForward definition not shown in the module; assuming the
    # standard Linear -> GELU -> Linear MLP (tanh-approx GELU by default).
    gT = jax.nn.gelu(hT.astype(trig_dtype),
                     approximate=gelu_approximate).astype(jnp.float32)

    yT = jnp.dot(w2_ref[...], gT,
                 preferred_element_type=jnp.float32) + b2_ref[...]  # (d//g, tile)
    yT_ref[...] = yT.astype(yT_ref.dtype)


def learnable_fourier_pe(x, wr_w, ff_w1, ff_b1, ff_w2, ff_b2, *,
                         positional_groups: int, pe_dim: int,
                         tile_n: int = 2048, min_pallas_n: int = 512,
                         trig_dtype=None, num_tensorcores=None,
                         gelu_approximate: bool = True,
                         out_dtype=jnp.float32):
    """
    x      : (n, g, m) float positions
    wr_w   : (f_dim//2, m)       -- torch Linear weight (out, in), no bias
    ff_w1  : (h_dim, f_dim), ff_b1: (h_dim,)
    ff_w2  : (d//g, h_dim),  ff_b2: (d//g,)
    returns: (1, n, pe_dim) positional encodings (out_dtype)
    """
    n, g, m = x.shape
    assert g == positional_groups
    f_half, m_w = wr_w.shape
    assert m_w == m
    f_dim = 2 * f_half
    h_dim, f_w = ff_w1.shape
    assert f_w == f_dim
    d_out = ff_w2.shape[0]                      # d // g
    assert d_out * g == pe_dim

    N = n * g

    # Small-N fast path: fixed pallas_call + pipeline overhead dominates and
    # most lanes would be padding -- plain XLA wins below ~min_pallas_n.
    if N < min_pallas_n:
        y = _reference_forward(x, wr_w, ff_w1, ff_b1, ff_w2, ff_b2,
                               pe_dim=pe_dim,
                               gelu_approximate=gelu_approximate)
        return y.astype(out_dtype)

    if trig_dtype is None:
        trig_dtype = _default_trig_dtype()
    if num_tensorcores is None:
        num_tensorcores = _default_num_tensorcores()

    tile, N_pad, steps = _choose_tile(N, tile_n, num_tensorcores)
    grid = (steps,)

    scale = 1.0 / math.sqrt(f_dim)
    m_pad = _round_up(m, 8)        # full 8-sublane contraction dim (zero rows)

    # Transposed activations: positions on the 128-lane axis.
    x2d = x.reshape(N, m).astype(jnp.float32)
    xT = jnp.pad(x2d.T, ((0, m_pad - m), (0, N_pad - N)))       # (m_pad, N_pad)

    wr = jnp.pad(wr_w.astype(jnp.float32),
                 ((0, 0), (0, m_pad - m)))                      # (f/2, m_pad)
    w1c = (scale * ff_w1[:, :f_half]).astype(jnp.float32)       # (h, f/2)
    w1s = (scale * ff_w1[:, f_half:]).astype(jnp.float32)       # (h, f/2)
    b1 = ff_b1.reshape(h_dim, 1).astype(jnp.float32)            # (h, 1)
    w2 = ff_w2.astype(jnp.float32)                              # (d//g, h)
    b2 = ff_b2.reshape(d_out, 1).astype(jnp.float32)            # (d//g, 1)

    kernel = functools.partial(_lfpe_kernel, trig_dtype=trig_dtype,
                               gelu_approximate=gelu_approximate)

    yT = pl.pallas_call(
        kernel,
        out_shape=jax.ShapeDtypeStruct((d_out, N_pad), out_dtype),
        grid_spec=pltpu.PrefetchScalarGridSpec(
            num_scalar_prefetch=0,
            grid=grid,
            in_specs=[
                pl.BlockSpec((m_pad, tile), lambda i: (0, i)),      # xT columns
                pl.BlockSpec((f_half, m_pad), lambda i: (0, 0)),    # Wr
                pl.BlockSpec((h_dim, f_half), lambda i: (0, 0)),    # W1 cos half
                pl.BlockSpec((h_dim, f_half), lambda i: (0, 0)),    # W1 sin half
                pl.BlockSpec((h_dim, 1), lambda i: (0, 0)),         # b1
                pl.BlockSpec((d_out, h_dim), lambda i: (0, 0)),     # W2
                pl.BlockSpec((d_out, 1), lambda i: (0, 0)),         # b2
            ],
            out_specs=pl.BlockSpec((d_out, tile), lambda i: (0, i)),
        ),
        compiler_params=pltpu.CompilerParams(
            dimension_semantics=("parallel",)),
    )(xT, wr, w1c, w1s, b1, w2, b2)

    # (d//g, N_pad) -> (N, d//g) -> (n, d) -> (1, n, d).  Kept in the wrapper:
    # at d_out = 16 an in-kernel (N, d_out) store would be lane-masked.  If the
    # consumer can take the (d_out, N) column-major slab, return yT[:, :N].
    y2d = yT[:, :N].T
    return y2d.reshape(n, pe_dim)[None, :, :]


if __name__ == "__main__":
    # Module hyper-parameters (small, consistent with the forward pass).
    positional_groups = 2      # g
    dimension_dim = 4          # m
    fourier_dim = 64           # f_dim (even)
    hidden_dim = 32            # h_dim
    pe_dim = 32                # d  (d // g = 16)
    gamma = 1.0

    n_positions = 384          # N = n*g = 768 -> exercises the Pallas path

    key = jax.random.PRNGKey(0)
    k_x, k_wr, k_w1, k_b1, k_w2, k_b2 = jax.random.split(key, 6)

    # Input positions: (n, g, m)
    x = jax.random.normal(k_x, (n_positions, positional_groups, dimension_dim),
                          dtype=jnp.float32)

    # Parameters.  wr follows the module's init_weights (std = gamma**-2);
    # the FeedForward Linears use torch's default U(-1/sqrt(fan_in), +...).
    wr_w = (gamma ** (-2)) * jax.random.normal(
        k_wr, (fourier_dim // 2, dimension_dim), dtype=jnp.float32)
    bnd1 = 1.0 / math.sqrt(fourier_dim)
    ff_w1 = jax.random.uniform(k_w1, (hidden_dim, fourier_dim),
                               minval=-bnd1, maxval=bnd1, dtype=jnp.float32)
    ff_b1 = jax.random.uniform(k_b1, (hidden_dim,),
                               minval=-bnd1, maxval=bnd1, dtype=jnp.float32)
    bnd2 = 1.0 / math.sqrt(hidden_dim)
    ff_w2 = jax.random.uniform(k_w2, (pe_dim // positional_groups, hidden_dim),
                               minval=-bnd2, maxval=bnd2, dtype=jnp.float32)
    ff_b2 = jax.random.uniform(k_b2, (pe_dim // positional_groups,),
                               minval=-bnd2, maxval=bnd2, dtype=jnp.float32)

    # Plain-JAX reference (same math as the PyTorch forward).
    y_ref = _reference_forward(x, wr_w, ff_w1, ff_b1, ff_w2, ff_b2,
                               pe_dim=pe_dim, gelu_approximate=True)

    # 1) Forced-f32 transcendentals: tight check, valid on every chip gen.
    pe_f32 = learnable_fourier_pe(
        x, wr_w, ff_w1, ff_b1, ff_w2, ff_b2,
        positional_groups=positional_groups, pe_dim=pe_dim,
        trig_dtype=jnp.float32)
    pe_f32 = jax.block_until_ready(pe_f32)
    assert pe_f32.shape == (1, n_positions, pe_dim), pe_f32.shape
    assert jnp.allclose(pe_f32, y_ref, atol=1e-5, rtol=1e-5)

    # 2) Auto-tuned path (bf16 transcendentals on v6e/v7x, f32 on v5e).
    pe_auto = learnable_fourier_pe(
        x, wr_w, ff_w1, ff_b1, ff_w2, ff_b2,
        positional_groups=positional_groups, pe_dim=pe_dim)
    pe_auto = jax.block_until_ready(pe_auto)
    assert pe_auto.shape == (1, n_positions, pe_dim), pe_auto.shape
    assert jnp.allclose(pe_auto, y_ref, atol=5e-3, rtol=5e-2)

    # 3) Small-N fast path (plain XLA dispatch below the Pallas threshold).
    x_small = x[:8]
    pe_small = learnable_fourier_pe(
        x_small, wr_w, ff_w1, ff_b1, ff_w2, ff_b2,
        positional_groups=positional_groups, pe_dim=pe_dim)
    pe_small = jax.block_until_ready(pe_small)
    assert pe_small.shape == (1, 8, pe_dim), pe_small.shape
    assert jnp.allclose(pe_small, y_ref[:, :8], atol=1e-5, rtol=1e-5)

    print("KERNEL_OK")
</pallas_src>

<mosaic_0001>
module attributes {stable_mosaic.version = 11 : i64} {
  func.func @_lfpe_kernel(%arg0: i32, %arg1: memref<8x768xf32, #tpu.memory_space<vmem>>, %arg2: memref<32x8xf32, #tpu.memory_space<vmem>>, %arg3: memref<32x32xf32, #tpu.memory_space<vmem>>, %arg4: memref<32x32xf32, #tpu.memory_space<vmem>>, %arg5: memref<32x1xf32, #tpu.memory_space<vmem>>, %arg6: memref<16x32xf32, #tpu.memory_space<vmem>>, %arg7: memref<16x1xf32, #tpu.memory_space<vmem>>, %arg8: memref<16x768xf32, #tpu.memory_space<vmem>>) attributes {dimension_semantics = [#tpu.dimension_semantics<parallel>], iteration_bounds = array<i64: 1>, scalar_prefetch = 0 : i64, scratch_operands = 0 : i64, tpu.core_type = #tpu.core_type<tc>, window_params = [{transform_indices = @transform_0, window_bounds = array<i64: 8, 768>}, {pipeline_mode = #tpu.pipeline_mode<synchronous>, transform_indices = @transform_1, window_bounds = array<i64: 32, 8>}, {pipeline_mode = #tpu.pipeline_mode<synchronous>, transform_indices = @transform_2, window_bounds = array<i64: 32, 32>}, {pipeline_mode = #tpu.pipeline_mode<synchronous>, transform_indices = @transform_3, window_bounds = array<i64: 32, 32>}, {pipeline_mode = #tpu.pipeline_mode<synchronous>, transform_indices = @transform_4, window_bounds = array<i64: 32, 1>}, {pipeline_mode = #tpu.pipeline_mode<synchronous>, transform_indices = @transform_5, window_bounds = array<i64: 16, 32>}, {pipeline_mode = #tpu.pipeline_mode<synchronous>, transform_indices = @transform_6, window_bounds = array<i64: 16, 1>}, {transform_indices = @transform_7, window_bounds = array<i64: 16, 768>}]} {
    %c0 = arith.constant 0 : index
    %c0_0 = arith.constant 0 : index
    %0 = vector.load %arg1[%c0, %c0_0] : memref<8x768xf32, #tpu.memory_space<vmem>>, vector<8x768xf32>
    %c0_1 = arith.constant 0 : index
    %c0_2 = arith.constant 0 : index
    %1 = vector.load %arg2[%c0_1, %c0_2] : memref<32x8xf32, #tpu.memory_space<vmem>>, vector<32x8xf32>
    %cst = arith.constant dense<0.000000e+00> : vector<32x768xf32>
    %2 = tpu.matmul %1, %0, %cst {dimension_numbers = #tpu.dot_dimension_numbers<[1], [0], [0], [1], [0, 0, 1, 1], [], []>} : vector<32x8xf32>, vector<8x768xf32>, vector<32x768xf32> -> vector<32x768xf32>
    %3 = math.cos %2 : vector<32x768xf32>
    %4 = math.sin %2 : vector<32x768xf32>
    %c0_3 = arith.constant 0 : index
    %c0_4 = arith.constant 0 : index
    %5 = vector.load %arg3[%c0_3, %c0_4] : memref<32x32xf32, #tpu.memory_space<vmem>>, vector<32x32xf32>
    %cst_5 = arith.constant dense<0.000000e+00> : vector<32x768xf32>
    %6 = tpu.matmul %5, %3, %cst_5 {dimension_numbers = #tpu.dot_dimension_numbers<[1], [0], [0], [1], [0, 0, 1, 1], [], []>} : vector<32x32xf32>, vector<32x768xf32>, vector<32x768xf32> -> vector<32x768xf32>
    %c0_6 = arith.constant 0 : index
    %c0_7 = arith.constant 0 : index
    %7 = vector.load %arg4[%c0_6, %c0_7] : memref<32x32xf32, #tpu.memory_space<vmem>>, vector<32x32xf32>
    %cst_8 = arith.constant dense<0.000000e+00> : vector<32x768xf32>
    %8 = tpu.matmul %7, %4, %cst_8 {dimension_numbers = #tpu.dot_dimension_numbers<[1], [0], [0], [1], [0, 0, 1, 1], [], []>} : vector<32x32xf32>, vector<32x768xf32>, vector<32x768xf32> -> vector<32x768xf32>
    %9 = arith.addf %6, %8 : vector<32x768xf32>
    %c0_9 = arith.constant 0 : index
    %c0_10 = arith.constant 0 : index
    %10 = vector.load %arg5[%c0_9, %c0_10] : memref<32x1xf32, #tpu.memory_space<vmem>>, vector<32x1xf32>
    %11 = vector.broadcast %10 : vector<32x1xf32> to vector<32x768xf32>
    %12 = arith.addf %9, %11 : vector<32x768xf32>
    %13 = arith.mulf %12, %12 : vector<32x768xf32>
    %14 = arith.mulf %12, %13 : vector<32x768xf32>
    %cst_11 = arith.constant 4.471500e-02 : f32
    %15 = vector.broadcast %cst_11 : f32 to vector<32x768xf32>
    %16 = arith.mulf %15, %14 : vector<32x768xf32>
    %17 = arith.addf %12, %16 : vector<32x768xf32>
    %cst_12 = arith.constant 0.797884583 : f32
    %18 = vector.broadcast %cst_12 : f32 to vector<32x768xf32>
    %19 = arith.mulf %18, %17 : vector<32x768xf32>
    %20 = math.tanh %19 : vector<32x768xf32>
    %cst_13 = arith.constant 1.000000e+00 : f32
    %21 = vector.broadcast %cst_13 : f32 to vector<32x768xf32>
    %22 = arith.addf %21, %20 : vector<32x768xf32>
    %cst_14 = arith.constant 5.000000e-01 : f32
    %23 = vector.broadcast %cst_14 : f32 to vector<32x768xf32>
    %24 = arith.mulf %23, %22 : vector<32x768xf32>
    %25 = arith.mulf %12, %24 : vector<32x768xf32>
    %c0_15 = arith.constant 0 : index
    %c0_16 = arith.constant 0 : index
    %26 = vector.load %arg6[%c0_15, %c0_16] : memref<16x32xf32, #tpu.memory_space<vmem>>, vector<16x32xf32>
    %cst_17 = arith.constant dense<0.000000e+00> : vector<16x768xf32>
    %27 = tpu.matmul %26, %25, %cst_17 {dimension_numbers = #tpu.dot_dimension_numbers<[1], [0], [0], [1], [0, 0, 1, 1], [], []>} : vector<16x32xf32>, vector<32x768xf32>, vector<16x768xf32> -> vector<16x768xf32>
    %c0_18 = arith.constant 0 : index
    %c0_19 = arith.constant 0 : index
    %28 = vector.load %arg7[%c0_18, %c0_19] : memref<16x1xf32, #tpu.memory_space<vmem>>, vector<16x1xf32>
    %29 = vector.broadcast %28 : vector<16x1xf32> to vector<16x768xf32>
    %30 = arith.addf %27, %29 : vector<16x768xf32>
    %c0_20 = arith.constant 0 : index
    %c0_21 = arith.constant 0 : index
    %31 = vector.load %arg8[%c0_20, %c0_21] : memref<16x768xf32, #tpu.memory_space<vmem>>, vector<16x768xf32>
    tpu.vector_store %arg8[%c0_20, %c0_21], %30 {strides = array<i32>} : memref<16x768xf32, #tpu.memory_space<vmem>>, vector<16x768xf32>,
    return
  }
  func.func @transform_0(%arg0: i32) -> (i32, i32) {
    %c0_i32 = arith.constant 0 : i32
    %c0_i32_0 = arith.constant 0 : i32
    return %c0_i32, %arg0 : i32, i32
  }
  func.func @transform_1(%arg0: i32) -> (i32, i32) {
    %c0_i32 = arith.constant 0 : i32
    %c0_i32_0 = arith.constant 0 : i32
    %c0_i32_1 = arith.constant 0 : i32
    return %c0_i32, %c0_i32_0 : i32, i32
  }
  func.func @transform_2(%arg0: i32) -> (i32, i32) {
    %c0_i32 = arith.constant 0 : i32
    %c0_i32_0 = arith.constant 0 : i32
    %c0_i32_1 = arith.constant 0 : i32
    return %c0_i32, %c0_i32_0 : i32, i32
  }
  func.func @transform_3(%arg0: i32) -> (i32, i32) {
    %c0_i32 = arith.constant 0 : i32
    %c0_i32_0 = arith.constant 0 : i32
    %c0_i32_1 = arith.constant 0 : i32
    return %c0_i32, %c0_i32_0 : i32, i32
  }
  func.func @transform_4(%arg0: i32) -> (i32, i32) {
    %c0_i32 = arith.constant 0 : i32
    %c0_i32_0 = arith.constant 0 : i32
    %c0_i32_1 = arith.constant 0 : i32
    return %c0_i32, %c0_i32_0 : i32, i32
  }
  func.func @transform_5(%arg0: i32) -> (i32, i32) {
    %c0_i32 = arith.constant 0 : i32
    %c0_i32_0 = arith.constant 0 : i32
    %c0_i32_1 = arith.constant 0 : i32
    return %c0_i32, %c0_i32_0 : i32, i32
  }
  func.func @transform_6(%arg0: i32) -> (i32, i32) {
    %c0_i32 = arith.constant 0 : i32
    %c0_i32_0 = arith.constant 0 : i32
    %c0_i32_1 = arith.constant 0 : i32
    return %c0_i32, %c0_i32_0 : i32, i32
  }
  func.func @transform_7(%arg0: i32) -> (i32, i32) {
    %c0_i32 = arith.constant 0 : i32
    %c0_i32_0 = arith.constant 0 : i32
    return %c0_i32, %arg0 : i32, i32
  }
}

</mosaic_0001>

<bundles_post_ra>
// kernel: tpu_custom_call.1
= control target key start
LH: loop header
LB: loop body
LE: loop exit
PB: predicated region body
PF: predicated region fallthrough
CT: control target
= control target key end

     0   :  { %12 = vsyncpa [#allocation3], 0  ;;  %s13598_s0 = inlined_call_operand.vmem [shape: f32[8,768], index: 0, kind: input, shape index: {}]   ;;  %s13599_s1 = inlined_call_operand.vmem [shape: f32[32,8], index: 1, kind: input, shape index: {}]   ;;  %s13600_s2 = inlined_call_operand.vmem [shape: f32[32,32], index: 2, kind: input, shape index: {}]   ;;  %s13601_s3 = inlined_call_operand.hbm [shape: f32[32,32], index: 3, kind: input, shape index: {}]   ;;  %s13602_s4 = inlined_call_operand.vmem [shape: f32[32,1], index: 4, kind: input, shape index: {}]   ;;  %s13603_s5 = inlined_call_operand.hbm [shape: f32[16,32], index: 5, kind: input, shape index: {}]   ;;  %s13604_s6 = inlined_call_operand.vmem [shape: f32[16,1], index: 6, kind: input, shape index: {}]   ;;  %s13605_s7 = inlined_call_operand.hbm [shape: f32[16,768], index: 7, kind: output, shape index: {}]  }
   0x1   :  { %13 = vsyncpa [#allocation6], 0 }
   0x2   :  { %14 = vsyncpa [#allocation4], 0  ;;  %s25_s26 = sshll.u32 %s13601_s3, 4  ;;  %s8884_s27 = smov [#allocation2]   ;;  %s26_s26 = int_to_ptr.hbm [resolvable:$true] %s25_s26 }
   0x3   :  { %s27_s28 = sshll.u32 %s8884_s27, 4  ;;  %s40_s8 = sshll.u32 %s13603_s5, 4  ;;  %s28_s28 = int_to_ptr.vmem [resolvable:$true] %s27_s28  ;;  %s41_s8 = int_to_ptr.hbm [resolvable:$true] %s40_s8 }
   0x4   :  { %s8885_s9 = smov 128   ;;  %s8886_s10 = smov 8  }
   0x5   :  { %33 = dma.hbm_to_vmem [thread:$0]  %s26_s26, 512, %s28_s28, [#allocation3], %s8885_s9, %s8885_s9, %s8886_s10  }
   0x6   :  { %s8887_s11 = smov [#allocation5]  }
   0x7   :  { %s42_s12 = sshll.u32 %s8887_s11, 4  ;;  %s43_s12 = int_to_ptr.vmem [resolvable:$true] %s42_s12 }
   0x8   :  { %48 = dma.hbm_to_vmem [thread:$0]  %s41_s8, 256, %s43_s12, [#allocation6], %s8885_s9, %s8885_s9, %s8886_s10  }
   0x9   :  { %8878 = dma.done.wait [#allocation3], 512  }
   0xa   :  { %8879 = vsyncadd [#allocation3], 4294966784 }
   0xb   :  { %8880 = dma.done.wait [#allocation6], 256  }
   0xc   :  { %8881 = vsyncadd [#allocation6], 4294967040  ;;  %v59_v0 = vld [vmem:[%s13598_s0] sm:$0xff]  ;;  %v60_v1 = vld [vmem:[%s13598_s0 + $0x8] sm:$0xff]  ;;  %vm69_vm0 = vcmask 64512   ;;  %v13627_v10 = vmov 0  }
   0xd   :  { %v65_v2 = vld [vmem:[%s13599_s1] sm:$0xff]  ;;  %97 = vmatpush.msra.mxu0 %v59_v0  ;;  %8735 = vmatpush.msra.mxu2 %v59_v0  ;;  %v68_v3 = vld [vmem:[%s13599_s1 + $0x18] sm:$0xff]  ;;  %v61_v4 = vld [vmem:[%s13598_s0 + $0x10] sm:$0xff]  ;;  %v13625_v27 = vmov 683565275   ;;  %s8493_s25 = sshll.u32 %s13605_s7, 4  ;;  %s8494_s25 = int_to_ptr.hbm [resolvable:$true] %s8493_s25 }
   0xe   :  { %126 = vmatpush.msra.mxu1 %v60_v1  ;;  %8736 = vmatpush.msra.mxu3 %v60_v1  ;;  %v62_v5 = vld [vmem:[%s13598_s0 + $0x18] sm:$0xff]  ;;  %v63_v6 = vld [vmem:[%s13598_s0 + $0x20] sm:$0xff]  ;;  %v64_v7 = vld [vmem:[%s13598_s0 + $0x28] sm:$0xff]  ;;  %v13621_v29 = vmov 2475754826   ;;  %s8896_s26 = smov 768  }
   0xf   :  { %8507 = vmatmul.msk.f32.vlgmr.msra.gmra.mxu0 %vm69_vm0, %v65_v2  ;;  %8510 = vmatmul.msk.f32.vlgmr.msra.gmra.mxu2 %vm69_vm0, %v68_v3  ;;  %v66_v8 = vld [vmem:[%s13599_s1 + $0x8] sm:$0xff]  ;;  %v67_v9 = vld [vmem:[%s13599_s1 + $0x10] sm:$0xff]  ;;  %v13619_v31 = vmov 2131351028   ;;  %v13617_v34 = vmov 2102212464  }
  0x10   :  { %8511 = vmatmul.msk.f32.vlgmr.msra.gmra.mxu1 %vm69_vm0, %v65_v2  ;;  %8514 = vmatmul.msk.f32.vlgmr.msra.gmra.mxu3 %vm69_vm0, %v68_v3  ;;  %v13615_v36 = vmov 920167782   ;;  %v13611_v43 = vmov 1326507024   ;;  %s8897_s27 = smov 48  }
  0x11   :  { %155 = vmatpush.msrb.mxu2 %v61_v4  ;;  %184 = vmatpush.msrb.mxu3 %v62_v5 }
  0x12   :  { %213 = vmatpush.msrb.mxu0 %v63_v6  ;;  %242 = vmatpush.msrb.mxu1 %v64_v7 }
  0x13   :  { %8752 = vset.pattern.permute.xlu1 %v13627_v10  ;;  %8751 = vset.pattern.permute.xlu0 %v13627_v10 }
  0x14   :  { %8753 = vset.pattern.permute.xlu2 %v13627_v10 }
  0x17   :  { %8508 = vmatmul.msk.f32.gmra.mxu0 %vm69_vm0, %v66_v8  ;;  %8515 = vmatmul.msk.f32.vlgmr.msrb.gmra.mxu2 %vm69_vm0, %v65_v2 }
  0x18   :  { %8512 = vmatmul.msk.f32.gmra.mxu1 %vm69_vm0, %v66_v8  ;;  %8519 = vmatmul.msk.f32.vlgmr.msrb.gmra.mxu3 %vm69_vm0, %v65_v2 }
  0x1f   :  { %8509 = vmatmul.msk.f32.gmra.mxu0 %vm69_vm0, %v67_v9  ;;  %8516 = vmatmul.msk.f32.gmra.mxu2 %vm69_vm0, %v66_v8 }
  0x20   :  { %8513 = vmatmul.msk.f32.gmra.mxu1 %vm69_vm0, %v67_v9  ;;  %8520 = vmatmul.msk.f32.gmra.mxu3 %vm69_vm0, %v66_v8 }
  0x27   :  { %8517 = vmatmul.msk.f32.gmra.mxu2 %vm69_vm0, %v67_v9  ;;  %8523 = vmatmul.msk.f32.vlgmr.msrb.gmra.mxu0 %vm69_vm0, %v65_v2 }
  0x28   :  { %8521 = vmatmul.msk.f32.gmra.mxu3 %vm69_vm0, %v67_v9  ;;  %8527 = vmatmul.msk.f32.vlgmr.msrb.gmra.mxu1 %vm69_vm0, %v65_v2 }
  0x2f   :  { %8518 = vmatmul.msk.f32.gmra.mxu2 %vm69_vm0, %v68_v3  ;;  %8524 = vmatmul.msk.f32.gmra.mxu0 %vm69_vm0, %v66_v8 }
  0x30   :  { %8522 = vmatmul.msk.f32.gmra.mxu3 %vm69_vm0, %v68_v3  ;;  %8528 = vmatmul.msk.f32.gmra.mxu1 %vm69_vm0, %v66_v8 }
  0x37   :  { %8525 = vmatmul.msk.f32.gmra.mxu0 %vm69_vm0, %v67_v9 }
  0x38   :  { %8529 = vmatmul.msk.f32.gmra.mxu1 %vm69_vm0, %v67_v9 }
  0x3f   :  { %8526 = vmatmul.msk.f32.gmra.mxu0 %vm69_vm0, %v68_v3 }
  0x40   :  { %8530 = vmatmul.msk.f32.gmra.mxu1 %vm69_vm0, %v68_v3 }
  0x8c   :  { %v9001_v11 = vpop.f32.mrf.mxu0 }
  0x8d   :  { %13862 = vst [vmem:[#allocation11_spill] sm:$0xff] %v9001_v11  ;;  %v259_v12 = vand.u32 2139095040, %v9001_v11  ;;  %v9004_v13 = vpop.f32.mrf.mxu1  ;;  %v13609_v18 = vand.u32 2147483647, %v9001_v11 }
  0x8e   :  { %13863 = vst [vmem:[#allocation12_spill] sm:$0xff] %v9004_v13  ;;  %v413_v14 = vand.u32 2139095040, %v9004_v13  ;;  %v13608_v45 = vand.u32 2147483647, %v9004_v13 }
  0x8f   :  { %v260_v15 = vshrl.u32 %v259_v12, 23  ;;  %v263_v22 = vand.u32 8388607, %v13609_v18 }
  0x90   :  { %v414_v16 = vshrl.u32 %v413_v14, 23  ;;  %v417_v59 = vand.u32 8388607, %v13608_v45 }
  0x91   :  { %v8531_v17 = vadd.s32 4294967169, %v260_v15  ;;  %v264_v33 = vor.u32 8388608, %v263_v22 }
  0x92   :  { %v8534_v19 = vadd.s32 4294967169, %v414_v16  ;;  %v418_v5 = vor.u32 8388608, %v417_v59 }
  0x93   :  { %v266_v20 = vadd.s32 1, %v8531_v17  ;;  %v9049_v54 = vshll.u32 %v264_v33, 8 }
  0x94   :  { %v420_v21 = vadd.s32 1, %v8534_v19  ;;  %v9096_v33 = vshll.u32 %v418_v5, 8 }
  0x95   :  { %vm267_vm1 = vcmp.gt.s32.totalorder %v266_v20, 0  ;;  %v305_v63 = vand.u32 65535, %v9049_v54  ;;  %v306_v6 = vshrl.u32 %v9049_v54, 16 }
  0x96   :  { %v268_v23 = vsel %vm267_vm1, %v266_v20, 0  ;;  %vm421_vm2 = vcmp.gt.s32.totalorder %v420_v21, 0 }
  0x97   :  { %v270_v24 = vand.u32 31, %v268_v23  ;;  %v9010_v25 = vshrl.u32 %v268_v23, 5  ;;  %v422_v41 = vsel %vm421_vm2, %v420_v21, 0 }
  0x98   :  { %v424_v51 = vand.u32 31, %v422_v41 }
  0x99   :  { %v9012_v26 = vsub.s32 32, %v270_v24  ;;  %v273_v28 = vshll.u32 %v13625_v27, %v270_v24  ;;  %v276_v30 = vshll.u32 %v13621_v29, %v270_v24  ;;  %v279_v32 = vshll.u32 %v13619_v31, %v270_v24 }
  0x9a   :  { %v282_v35 = vshll.u32 %v13617_v34, %v270_v24  ;;  %v285_v37 = vshll.u32 %v13615_v36, %v270_v24  ;;  %vm288_vm3 = vcmp.lt.s32.totalorder %v9010_v25, 1  ;;  %vm291_vm4 = vcmp.lt.s32.totalorder %v9010_v25, 4 }
  0x9b   :  { %v274_v38 = vshrl.u32 %v13621_v29, %v9012_v26  ;;  %v277_v39 = vshrl.u32 %v13619_v31, %v9012_v26  ;;  %v280_v40 = vshrl.u32 %v13617_v34, %v9012_v26  ;;  %v283_v42 = vshrl.u32 %v13615_v36, %v9012_v26 }
  0x9c   :  { %v286_v44 = vshrl.u32 %v13611_v43, %v9012_v26  ;;  %vm290_vm5 = vcmp.lt.s32.totalorder %v9010_v25, 3  ;;  %vm289_vm6 = vcmp.lt.s32.totalorder %v9010_v25, 2  ;;  %v9066_v62 = vsub.s32 32, %v424_v51 }
  0x9d   :  { %v9032_v46 = vor.u32 %v274_v38, %v273_v28  ;;  %v9034_v47 = vor.u32 %v277_v39, %v276_v30  ;;  %v9036_v48 = vor.u32 %v280_v40, %v279_v32  ;;  %v284_v49 = vor.u32 %v283_v42, %v282_v35 }
  0x9e   :  { %v287_v50 = vor.u32 %v286_v44, %v285_v37  ;;  %v427_v8 = vshll.u32 %v13625_v27, %v424_v51  ;;  %v428_v9 = vshrl.u32 %v13621_v29, %v9066_v62  ;;  %v430_v14 = vshll.u32 %v13621_v29, %v424_v51 }
  0x9f   :  { %v296_v52 = vsel %vm288_vm3, %v9032_v46, %v9034_v47  ;;  %v300_v53 = vsel %vm288_vm3, %v9034_v47, %v9036_v48  ;;  %v297_v55 = vsel %vm291_vm4, %v284_v49, 920167782  ;;  %v431_v15 = vshrl.u32 %v13619_v31, %v9066_v62 }
  0xa0   :  { %v301_v56 = vsel %vm291_vm4, %v287_v50, 1326507024  ;;  %v298_v57 = vsel %vm290_vm5, %v9036_v48, %v297_v55  ;;  %v433_v19 = vshll.u32 %v13619_v31, %v424_v51  ;;  %v434_v20 = vshrl.u32 %v13617_v34, %v9066_v62 }
  0xa1   :  { %v302_v58 = vsel %vm290_vm5, %v284_v49, %v301_v56  ;;  %v299_v60 = vsel %vm289_vm6, %v296_v52, %v298_v57  ;;  %v436_v24 = vshll.u32 %v13617_v34, %v424_v51  ;;  %v9090_v28 = vshrl.u32 %v422_v41, 5 }
  0xa2   :  { %v303_v61 = vsel %vm289_vm6, %v300_v53, %v302_v58  ;;  %v330_v1 = vshrl.u32 %v299_v60, 16  ;;  %v329_v4 = vand.u32 65535, %v299_v60  ;;  %v9092_v30 = vor.u32 %v428_v9, %v427_v8 }
  0xa3   :  { %v308_v0 = vshrl.u32 %v303_v61, 16  ;;  %v307_v2 = vand.u32 65535, %v303_v61  ;;  %v437_v32 = vshrl.u32 %v13615_v36, %v9066_v62  ;;  %v439_v37 = vshll.u32 %v13615_v36, %v424_v51  ;;  %v9113_v51 = vpop.f32.mrf.mxu2 }
  0xa4   :  { %v9072_v7 = vmul.u32 %v330_v1, %v305_v63  ;;  %v331_v22 = vmul.u32 %v329_v4, %v305_v63  ;;  %v9087_v23 = vmul.u32 %v329_v4, %v306_v6  ;;  %v334_v40 = vmul.u32 %v330_v1, %v306_v6  ;;  %13864 = vst [vmem:[#allocation13_spill] sm:$0xff] %v9113_v51 }
  0xa5   :  { %v9069_v3 = vmul.u32 %v308_v0, %v305_v63  ;;  %v9081_v16 = vmul.u32 %v307_v2, %v306_v6  ;;  %v309_v21 = vmul.u32 %v307_v2, %v305_v63  ;;  %v9102_v42 = vor.u32 %v431_v15, %v430_v14 }
  0xa6   :  { %v335_v17 = vshll.u32 %v9072_v7, 16  ;;  %v337_v41 = vshll.u32 %v9087_v23, 16  ;;  %v9105_v44 = vor.u32 %v434_v20, %v433_v19  ;;  %v438_v49 = vor.u32 %v437_v32, %v436_v24 }
  0xa7   :  { %v313_v12 = vshll.u32 %v9069_v3, 16  ;;  %v315_v38 = vshll.u32 %v9081_v16, 16  ;;  %v440_v50 = vshrl.u32 %v13611_v43, %v9066_v62  ;;  %vm442_vm9 = vcmp.lt.s32.totalorder %v9090_v28, 1 }
  0xa8   :  { %vm339_vm8 = vc.u32 %v331_v22, %v335_v17  ;;  %v9098_v35 = vadd.s32 %v335_v17, %v331_v22  ;;  %vm444_vm10 = vcmp.lt.s32.totalorder %v9090_v28, 3  ;;  %vm443_vm12 = vcmp.lt.s32.totalorder %v9090_v28, 2 }
  0xa9   :  { %vm317_vm7 = vc.u32 %v309_v21, %v313_v12  ;;  %v319_v39 = vadd.s32 %v313_v12, %v309_v21  ;;  %v340_v53 = vsel %vm339_vm8, 1, %v13627_v10  ;;  %v441_v55 = vor.u32 %v440_v50, %v439_v37 }
  0xaa   :  { %v318_v52 = vsel %vm317_vm7, 1, %v13627_v10  ;;  %vm343_vm11 = vc.u32 %v9098_v35, %v337_v41  ;;  %vm445_vm13 = vcmp.lt.s32.totalorder %v9090_v28, 4  ;;  %v312_v56 = vmul.u32 %v308_v0, %v306_v6 }
  0xab   :  { %vm321_vm14 = vc.u32 %v319_v39, %v315_v38  ;;  %v450_v57 = vsel %vm442_vm9, %v9092_v30, %v9102_v42  ;;  %v451_v58 = vsel %vm445_vm13, %v438_v49, 920167782  ;;  %v342_v59 = vadd.s32 %v340_v53, %v334_v40 }
  0xac   :  { %v452_v60 = vsel %vm444_vm10, %v9105_v44, %v451_v58  ;;  %v454_v61 = vsel %vm442_vm9, %v9102_v42, %v9105_v44  ;;  %v3031_v63 = vand.u32 2139095040, %v9113_v51  ;;  %v320_v0 = vadd.s32 %v318_v52, %v312_v56 }
  0xad   :  { %v344_v1 = vsel %vm343_vm11, 1, %v13627_v10  ;;  %v453_v2 = vsel %vm443_vm12, %v450_v57, %v452_v60  ;;  %v455_v4 = vsel %vm445_vm13, %v441_v55, 1326507024  ;;  %v322_v5 = vsel %vm321_vm14, 1, %v13627_v10 }
  0xae   :  { %v456_v6 = vsel %vm444_vm10, %v438_v49, %v455_v4  ;;  %v484_v9 = vshrl.u32 %v453_v2, 16  ;;  %v346_v12 = vadd.s32 %v344_v1, %v342_v59  ;;  %v324_v15 = vadd.s32 %v322_v5, %v320_v0 }
  0xaf   :  { %v457_v8 = vsel %vm443_vm12, %v454_v61, %v456_v6  ;;  %v459_v17 = vand.u32 65535, %v9096_v33  ;;  %v3032_v19 = vshrl.u32 %v3031_v63, 23  ;;  %v336_v20 = vshrl.u32 %v9072_v7, 16 }
  0xb0   :  { %v462_v14 = vshrl.u32 %v457_v8, 16  ;;  %v314_v21 = vshrl.u32 %v9069_v3, 16  ;;  %v483_v38 = vand.u32 65535, %v453_v2  ;;  %v272_v40 = vshrl.u32 %v13625_v27, %v9012_v26 }
  0xb1   :  { %v9145_v22 = vmul.u32 %v484_v9, %v459_v17  ;;  %v347_v24 = vadd.s32 %v346_v12, %v336_v20  ;;  %v8585_v39 = vadd.s32 4294967169, %v3032_v19  ;;  %v338_v49 = vshrl.u32 %v9087_v23, 16 }
  0xb2   :  { %v9147_v32 = vmul.u32 %v462_v14, %v459_v17  ;;  %v325_v37 = vadd.s32 %v324_v15, %v314_v21  ;;  %v461_v50 = vand.u32 65535, %v457_v8  ;;  %v293_v7 = vsel %vm291_vm4, %v9036_v48, 2102212464 }
  0xb3   :  { %v316_v3 = vshrl.u32 %v9081_v16, 16  ;;  %v460_v52 = vshrl.u32 %v9096_v33, 16  ;;  %v489_v53 = vshll.u32 %v9145_v22, 16  ;;  %v348_v55 = vadd.s32 %v347_v24, %v338_v49 }
  0xb4   :  { %v467_v56 = vshll.u32 %v9147_v32, 16  ;;  %v485_v58 = vmul.u32 %v483_v38, %v459_v17  ;;  %v3038_v23 = vadd.s32 1, %v8585_v39  ;;  %v292_v59 = vsel %vm288_vm3, %v272_v40, %v9032_v46 }
  0xb5   :  { %v9159_v57 = vadd.s32 %v325_v37, %v316_v3  ;;  %v9161_v26 = vmul.u32 %v483_v38, %v460_v52  ;;  %v294_v48 = vsel %vm290_vm5, %v9034_v47, %v293_v7  ;;  %v463_v16 = vmul.u32 %v461_v50, %v459_v17 }
  0xb6   :  { %v9169_v60 = vmul.u32 %v461_v50, %v460_v52  ;;  %v9172_v61 = vadd.s32 %v9098_v35, %v337_v41  ;;  %vm493_vm15 = vc.u32 %v485_v58, %v489_v53  ;;  %v9174_v63 = vadd.s32 %v489_v53, %v485_v58 }
  0xb7   :  { %vm3039_vm0 = vcmp.gt.s32.totalorder %v3038_v23, 0  ;;  %v352_v0 = vadd.s32 1, %v348_v55  ;;  %vm471_vm1 = vc.u32 %v463_v16, %v467_v56  ;;  %v473_v1 = vadd.s32 %v467_v56, %v463_v16 }
  0xb8   :  { %vm351_vm2 = vc.u32 %v9159_v57, %v9172_v61  ;;  %v491_v46 = vshll.u32 %v9161_v26, 16  ;;  %v3040_v2 = vsel %vm3039_vm0, %v3038_v23, 0  ;;  %v295_v47 = vsel %vm289_vm6, %v292_v59, %v294_v48 }
  0xb9   :  { %v469_v4 = vshll.u32 %v9169_v60, 16  ;;  %v494_v35 = vsel %vm493_vm15, 1, %v13627_v10  ;;  %v13610_v41 = vand.u32 2147483647, %v9113_v51  ;;  %v472_v5 = vsel %vm471_vm1, 1, %v13627_v10 }
  0xba   :  { %v488_v6 = vmul.u32 %v484_v9, %v460_v52  ;;  %vm497_vm3 = vc.u32 %v9174_v63, %v491_v46  ;;  %v3042_v8 = vand.u32 31, %v3040_v2  ;;  %v353_v12 = vsel %vm351_vm2, %v352_v0, %v348_v55 }
  0xbb   :  { %v466_v15 = vmul.u32 %v462_v14, %v460_v52  ;;  %vm475_vm4 = vc.u32 %v473_v1, %v469_v4  ;;  %v349_v25 = vmul.u32 %v9049_v54, %v295_v47  ;;  %v498_v21 = vsel %vm497_vm3, 1, %v13627_v10 }
  0xbc   :  { %v496_v17 = vadd.s32 %v494_v35, %v488_v6  ;;  %v9189_v19 = vsub.s32 32, %v3042_v8  ;;  %v476_v9 = vsel %vm475_vm4, 1, %v13627_v10  ;;  %v3035_v37 = vand.u32 8388607, %v13610_v41 }
  0xbd   :  { %v474_v20 = vadd.s32 %v472_v5, %v466_v15  ;;  %v9192_v24 = vadd.s32 %v353_v12, %v349_v25  ;;  %v3054_v39 = vshll.u32 %v13617_v34, %v3042_v8  ;;  %v9206_v50 = vshrl.u32 %v3040_v2, 5 }
  0xbe   :  { %v3046_v38 = vshrl.u32 %v13621_v29, %v9189_v19  ;;  %v3049_v14 = vshrl.u32 %v13619_v31, %v9189_v19  ;;  %v3052_v54 = vshrl.u32 %v13617_v34, %v9189_v19  ;;  %v3055_v40 = vshrl.u32 %v13615_v36, %v9189_v19 }
  0xbf   :  { %v500_v49 = vadd.s32 %v498_v21, %v496_v17  ;;  %v3045_v7 = vshll.u32 %v13625_v27, %v3042_v8  ;;  %v3048_v3 = vshll.u32 %v13621_v29, %v3042_v8  ;;  %v478_v52 = vadd.s32 %v476_v9, %v474_v20 }
  0xc0   :  { %v490_v53 = vshrl.u32 %v9145_v22, 16  ;;  %v3051_v55 = vshll.u32 %v13619_v31, %v3042_v8  ;;  %v3056_v56 = vor.u32 %v3055_v40, %v3054_v39  ;;  %v3036_v58 = vor.u32 8388608, %v3035_v37 }
  0xc1   :  { %v9212_v23 = vor.u32 %v3046_v38, %v3045_v7  ;;  %v9214_v59 = vor.u32 %v3049_v14, %v3048_v3  ;;  %v3058_v48 = vshrl.u32 %v13611_v43, %v9189_v19  ;;  %v426_v16 = vshrl.u32 %v13625_v27, %v9066_v62 }
  0xc2   :  { %v468_v0 = vshrl.u32 %v9147_v32, 16  ;;  %v9221_v1 = vor.u32 %v3052_v54, %v3051_v55  ;;  %v3057_v22 = vshll.u32 %v13615_v36, %v3042_v8  ;;  %v355_v2 = vadd.s32 536870912, %v9192_v24 }
  0xc3   :  { %v447_v47 = vsel %vm445_vm13, %v9105_v44, 2102212464  ;;  %v501_v4 = vadd.s32 %v500_v49, %v490_v53  ;;  %vm3063_vm5 = vcmp.lt.s32.totalorder %v9206_v50, 4  ;;  %vm3060_vm6 = vcmp.lt.s32.totalorder %v9206_v50, 1 }
  0xc4   :  { %v479_v35 = vadd.s32 %v478_v52, %v468_v0  ;;  %v3059_v5 = vor.u32 %v3058_v48, %v3057_v22  ;;  %v3069_v62 = vsel %vm3063_vm5, %v3056_v56, 920167782  ;;  %v492_v32 = vshrl.u32 %v9161_v26, 16 }
  0xc5   :  { %vm3062_vm7 = vcmp.lt.s32.totalorder %v9206_v50, 3  ;;  %v3068_v6 = vsel %vm3060_vm6, %v9212_v23, %v9214_v59  ;;  %v9238_v44 = vshll.u32 %v3036_v58, 8  ;;  %v470_v8 = vshrl.u32 %v9169_v60, 16  ;;  %v9254_v60 = vpop.f32.mrf.mxu3 }
  0xc6   :  { %v3070_v12 = vsel %vm3062_vm7, %v9221_v1, %v3069_v62  ;;  %v3072_v15 = vsel %vm3060_vm6, %v9214_v59, %v9221_v1  ;;  %v3073_v25 = vsel %vm3063_vm5, %v3059_v5, 1326507024  ;;  %v446_v17 = vsel %vm442_vm9, %v426_v16, %v9092_v30  ;;  %13865 = vst [vmem:[#allocation14_spill] sm:$0xff] %v9254_v60 }
  0xc7   :  { %v502_v20 = vadd.s32 %v501_v4, %v492_v32  ;;  %vm3061_vm8 = vcmp.lt.s32.totalorder %v9206_v50, 2  ;;  %v9256_v21 = vshrl.u32 %v355_v2, 30  ;;  %v9258_v9 = vadd.s32 %v479_v35, %v470_v8 }
  0xc8   :  { %v3071_v37 = vsel %vm3061_vm8, %v3068_v6, %v3070_v12  ;;  %v3074_v38 = vsel %vm3062_vm7, %v3056_v56, %v3073_v25  ;;  %v448_v14 = vsel %vm444_vm10, %v9102_v42, %v447_v47  ;;  %v9270_v30 = vadd.s32 %v9174_v63, %v491_v46 }
  0xc9   :  { %v3075_v54 = vsel %vm3061_vm8, %v3072_v15, %v3074_v38  ;;  %v3077_v39 = vand.u32 65535, %v9238_v44  ;;  %v3102_v7 = vshrl.u32 %v3071_v37, 16  ;;  %v3185_v3 = vand.u32 2139095040, %v9254_v60 }
  0xca   :  { %v3079_v40 = vand.u32 65535, %v3075_v54  ;;  %v3080_v49 = vshrl.u32 %v3075_v54, 16  ;;  %v506_v52 = vadd.s32 1, %v502_v20  ;;  %v3078_v53 = vshrl.u32 %v9238_v44, 16 }
  0xcb   :  { %v3101_v55 = vand.u32 65535, %v3071_v37  ;;  %v357_v42 = vshll.u32 %v9256_v21, 30  ;;  %v449_v26 = vsel %vm443_vm12, %v446_v17, %v448_v14  ;;  %vm505_vm9 = vc.u32 %v9258_v9, %v9270_v30 }
  0xcc   :  { %v3082_v63 = vmul.u32 %v3080_v49, %v3077_v39  ;;  %v3083_v46 = vmul.u32 %v3079_v40, %v3078_v53  ;;  %v3104_v56 = vmul.u32 %v3102_v7, %v3077_v39  ;;  %v3081_v58 = vmul.u32 %v3079_v40, %v3077_v39 }
  0xcd   :  { %v3186_v16 = vshrl.u32 %v3185_v3, 23  ;;  %v503_v0 = vmul.u32 %v9096_v33, %v449_v26  ;;  %v507_v22 = vsel %vm505_vm9, %v506_v52, %v502_v20  ;;  %v3105_v2 = vmul.u32 %v3101_v55, %v3078_v53 }
  0xce   :  { %v3085_v48 = vshll.u32 %v3082_v63, 16  ;;  %v9284_v47 = vsub.s32 %v9192_v24, %v357_v42  ;;  %v3084_v4 = vmul.u32 %v3080_v49, %v3078_v53  ;;  %v3103_v28 = vmul.u32 %v3101_v55, %v3077_v39 }
  0xcf   :  { %v3087_v35 = vshll.u32 %v3083_v46, 16  ;;  %v3107_v32 = vshll.u32 %v3104_v56, 16  ;;  %v9287_v6 = vadd.s32 %v507_v22, %v503_v0  ;;  %v3106_v12 = vmul.u32 %v3102_v7, %v3078_v53  ;;  %v9319_v22 = vpop.f32.mrf.mxu0 }
  0xd0   :  { %vm3089_vm10 = vc.u32 %v3081_v58, %v3085_v48  ;;  %v3091_v62 = vadd.s32 %v3085_v48, %v3081_v58  ;;  %v8588_v15 = vadd.s32 4294967169, %v3186_v16  ;;  %v3109_v33 = vshll.u32 %v3105_v2, 16  ;;  %13866 = vst [vmem:[#allocation15_spill] sm:$0xff] %v9319_v22 }
  0xd1   :  { %v3090_v5 = vsel %vm3089_vm10, 1, %v13627_v10  ;;  %vm3111_vm12 = vc.u32 %v3103_v28, %v3107_v32  ;;  %v3113_v25 = vadd.s32 %v3107_v32, %v3103_v28  ;;  %v3065_v24 = vsel %vm3063_vm5, %v9221_v1, 2102212464 }
  0xd2   :  { %v3092_v8 = vadd.s32 %v3090_v5, %v3084_v4  ;;  %vm3093_vm11 = vc.u32 %v3091_v62, %v3087_v35  ;;  %v3112_v20 = vsel %vm3111_vm12, 1, %v13627_v10  ;;  %v13607_v37 = vand.u32 2147483647, %v9254_v60 }
  0xd3   :  { %v3094_v17 = vsel %vm3093_vm11, 1, %v13627_v10  ;;  %v3086_v38 = vshrl.u32 %v3082_v63, 16  ;;  %v3114_v54 = vadd.s32 %v3112_v20, %v3106_v12  ;;  %vm3115_vm13 = vc.u32 %v3113_v25, %v3109_v33 }
  0xd4   :  { %v3096_v14 = vadd.s32 %v3094_v17, %v3092_v8  ;;  %v509_v39 = vadd.s32 536870912, %v9287_v6  ;;  %v3044_v40 = vshrl.u32 %v13625_v27, %v9189_v19  ;;  %v3088_v49 = vshrl.u32 %v3083_v46, 16 }
  0xd5   :  { %v3116_v7 = vsel %vm3115_vm13, 1, %v13627_v10  ;;  %v3108_v1 = vshrl.u32 %v3104_v56, 16  ;;  %v3192_v53 = vadd.s32 1, %v8588_v15  ;;  %vm359_vm14 = vcmp.lt.s32.totalorder %v9284_v47, 0 }
  0xd6   :  { %v3097_v3 = vadd.s32 %v3096_v14, %v3086_v38  ;;  %v3118_v52 = vadd.s32 %v3116_v7, %v3114_v54  ;;  %v360_v55 = vsub.s32 0, %v9284_v47  ;;  %v3064_v42 = vsel %vm3060_vm6, %v3044_v40, %v9212_v23 }
  0xd7   :  { %v3066_v26 = vsel %vm3062_vm7, %v9214_v59, %v3065_v24  ;;  %v3110_v63 = vshrl.u32 %v3105_v2, 16  ;;  %vm3193_vm15 = vcmp.gt.s32.totalorder %v3192_v53, 0  ;;  %v9309_v56 = vshrl.u32 %v509_v39, 30 }
  0xd8   :  { %v9307_v19 = vadd.s32 %v3097_v3, %v3088_v49  ;;  %v3119_v46 = vadd.s32 %v3118_v52, %v3108_v1  ;;  %v9311_v58 = vadd.s32 %v3113_v25, %v3109_v33  ;;  %v3189_v48 = vand.u32 8388607, %v13607_v37 }
  0xd9   :  { %v3194_v16 = vsel %vm3193_vm15, %v3192_v53, 0  ;;  %v3067_v23 = vsel %vm3061_vm8, %v3064_v42, %v3066_v26  ;;  %v361_v2 = vsel %vm359_vm14, %v360_v55, %v9284_v47  ;;  %v511_v28 = vshll.u32 %v9309_v56, 30 }
  0xda   :  { %v3120_v0 = vadd.s32 %v3119_v46, %v3110_v63  ;;  %vm3123_vm0 = vc.u32 %v9307_v19, %v9311_v58  ;;  %v3196_v59 = vand.u32 31, %v3194_v16  ;;  %v3121_v35 = vmul.u32 %v9238_v44, %v3067_v23 }
  0xdb   :  { %v3190_v5 = vor.u32 8388608, %v3189_v48  ;;  %v9326_v32 = vshrl.u32 %v3194_v16, 5  ;;  %v1183_v12 = vand.u32 2139095040, %v9319_v22  ;;  %v9340_v49 = vsub.s32 %v9287_v6, %v511_v28 }
  0xdc   :  { %v3124_v4 = vadd.s32 1, %v3120_v0  ;;  %v3197_v62 = vsub.s32 32, %v3196_v59  ;;  %v3199_v8 = vshll.u32 %v13625_v27, %v3196_v59  ;;  %v3202_v25 = vshll.u32 %v13621_v29, %v3196_v59 }
  0xdd   :  { %v3205_v24 = vshll.u32 %v13619_v31, %v3196_v59  ;;  %v3208_v20 = vshll.u32 %v13617_v34, %v3196_v59  ;;  %v3211_v39 = vshll.u32 %v13615_v36, %v3196_v59  ;;  %vm3214_vm1 = vcmp.lt.s32.totalorder %v9326_v32, 1 }
  0xde   :  { %v3125_v50 = vsel %vm3123_vm0, %v3124_v4, %v3120_v0  ;;  %v3200_v33 = vshrl.u32 %v13621_v29, %v3197_v62  ;;  %v3203_v17 = vshrl.u32 %v13619_v31, %v3197_v62  ;;  %v3206_v44 = vshrl.u32 %v13617_v34, %v3197_v62 }
  0xdf   :  { %v3126_v15 = vadd.s32 %v3125_v50, %v3121_v35  ;;  %v3209_v38 = vshrl.u32 %v13615_v36, %v3197_v62  ;;  %v3212_v40 = vshrl.u32 %v13611_v43, %v3197_v62  ;;  %vm3217_vm2 = vcmp.lt.s32.totalorder %v9326_v32, 4 }
  0xe0   :  { %v3201_v54 = vor.u32 %v3200_v33, %v3199_v8  ;;  %v9342_v7 = vor.u32 %v3203_v17, %v3202_v25  ;;  %v3207_v3 = vor.u32 %v3206_v44, %v3205_v24  ;;  %v9346_v53 = vshll.u32 %v3190_v5, 8 }
  0xe1   :  { %v3127_v14 = vadd.s32 536870912, %v3126_v15  ;;  %v3210_v1 = vor.u32 %v3209_v38, %v3208_v20  ;;  %v3213_v52 = vor.u32 %v3212_v40, %v3211_v39  ;;  %vm3216_vm3 = vcmp.lt.s32.totalorder %v9326_v32, 3 }
  0xe2   :  { %v3222_v55 = vsel %vm3214_vm1, %v3201_v54, %v9342_v7  ;;  %v1184_v42 = vshrl.u32 %v1183_v12, 23  ;;  %vm3215_vm4 = vcmp.lt.s32.totalorder %v9326_v32, 2  ;;  %v3226_v46 = vsel %vm3214_vm1, %v9342_v7, %v3207_v3 }
  0xe3   :  { %v3223_v6 = vsel %vm3217_vm2, %v3210_v1, 920167782  ;;  %v9354_v26 = vshrl.u32 %v3127_v14, 30  ;;  %v362_v48 = vclz %v361_v2  ;;  %vm513_vm5 = vcmp.lt.s32.totalorder %v9340_v49, 0 }
  0xe4   :  { %v3224_v63 = vsel %vm3216_vm3, %v3207_v3, %v3223_v6  ;;  %v3227_v23 = vsel %vm3217_vm2, %v3213_v52, 1326507024  ;;  %v514_v0 = vsub.s32 0, %v9340_v49  ;;  %v3231_v4 = vand.u32 65535, %v9346_v53 }
  0xe5   :  { %v3225_v16 = vsel %vm3215_vm4, %v3222_v55, %v3224_v63  ;;  %v3228_v59 = vsel %vm3216_vm3, %v3210_v1, %v3227_v23  ;;  %v3232_v2 = vshrl.u32 %v9346_v53, 16  ;;  %v8549_v50 = vadd.s32 4294967169, %v1184_v42 }
  0xe6   :  { %v3255_v28 = vand.u32 65535, %v3225_v16  ;;  %v3229_v35 = vsel %vm3215_vm4, %v3226_v46, %v3228_v59  ;;  %v3256_v5 = vshrl.u32 %v3225_v16, 16  ;;  %v3129_v8 = vshll.u32 %v9354_v26, 30 }
  0xe7   :  { %v3233_v12 = vand.u32 65535, %v3229_v35  ;;  %v3234_v33 = vshrl.u32 %v3229_v35, 16  ;;  %v9375_v25 = vadd.s32 4294967294, %v362_v48  ;;  %v515_v44 = vsel %vm513_vm5, %v514_v0, %v9340_v49 }
  0xe8   :  { %v3258_v24 = vmul.u32 %v3256_v5, %v3231_v4  ;;  %v3259_v17 = vmul.u32 %v3255_v28, %v3232_v2  ;;  %v3198_v20 = vshrl.u32 %v13625_v27, %v3197_v62  ;;  %v3219_v39 = vsel %vm3217_vm2, %v3207_v3, 2102212464 }
  0xe9   :  { %v3236_v38 = vmul.u32 %v3234_v33, %v3231_v4  ;;  %v3237_v14 = vmul.u32 %v3233_v12, %v3232_v2  ;;  %v3257_v40 = vmul.u32 %v3255_v28, %v3231_v4  ;;  %v1190_v52 = vadd.s32 1, %v8549_v50 }
  0xea   :  { %v3261_v1 = vshll.u32 %v3258_v24, 16  ;;  %v9383_v55 = vsub.s32 %v3126_v15, %v3129_v8  ;;  %v3235_v6 = vmul.u32 %v3233_v12, %v3231_v4  ;;  %v3260_v63 = vmul.u32 %v3256_v5, %v3232_v2 }
  0xeb   :  { %v3239_v42 = vshll.u32 %v3236_v38, 16  ;;  %v3238_v46 = vmul.u32 %v3234_v33, %v3232_v2  ;;  %v3241_v48 = vshll.u32 %v3237_v14, 16  ;;  %v3263_v16 = vshll.u32 %v3259_v17, 16 }
  0xec   :  { %vm3265_vm6 = vc.u32 %v3257_v40, %v3261_v1  ;;  %v3267_v0 = vadd.s32 %v3261_v1, %v3257_v40  ;;  %v516_v59 = vclz %v515_v44  ;;  %vm1191_vm8 = vcmp.gt.s32.totalorder %v1190_v52, 0 }
  0xed   :  { %vm3243_vm7 = vc.u32 %v3235_v6, %v3239_v42  ;;  %v3245_v23 = vadd.s32 %v3239_v42, %v3235_v6  ;;  %v3266_v62 = vsel %vm3265_vm6, 1, %v13627_v10  ;;  %v3218_v15 = vsel %vm3214_vm1, %v3198_v20, %v3201_v54 }
  0xee   :  { %v3244_v3 = vsel %vm3243_vm7, 1, %v13627_v10  ;;  %v3268_v28 = vadd.s32 %v3266_v62, %v3260_v63  ;;  %vm3269_vm10 = vc.u32 %v3267_v0, %v3263_v16  ;;  %vm3131_vm11 = vcmp.lt.s32.totalorder %v9383_v55, 0 }
  0xef   :  { %v3246_v4 = vadd.s32 %v3244_v3, %v3238_v46  ;;  %vm3247_vm9 = vc.u32 %v3245_v23, %v3241_v48  ;;  %v3132_v35 = vsub.s32 0, %v9383_v55  ;;  %v3220_v2 = vsel %vm3216_vm3, %v9342_v7, %v3219_v39 }
  0xf0   :  { %v3248_v5 = vsel %vm3247_vm9, 1, %v13627_v10  ;;  %v3240_v50 = vshrl.u32 %v3236_v38, 16  ;;  %v3270_v12 = vsel %vm3269_vm10, 1, %v13627_v10  ;;  %v1192_v33 = vsel %vm1191_vm8, %v1190_v52, 0 }
  0xf1   :  { %v3250_v8 = vadd.s32 %v3248_v5, %v3246_v4  ;;  %vm8533_vm12 = vcmp.lt.s32.totalorder %v9375_v25, 0  ;;  %v3262_v54 = vshrl.u32 %v3258_v24, 16  ;;  %v3272_v44 = vadd.s32 %v3270_v12, %v3268_v28 }
  0xf2   :  { %v13606_v20 = vand.u32 2147483647, %v9319_v22  ;;  %v8535_v40 = vadd.s32 4294967294, %v516_v59  ;;  %v3242_v1 = vshrl.u32 %v3237_v14, 16  ;;  %v1194_v42 = vand.u32 31, %v1192_v33 }
  0xf3   :  { %v3251_v6 = vadd.s32 %v3250_v8, %v3240_v50  ;;  %v3133_v7 = vsel %vm3131_vm11, %v3132_v35, %v9383_v55  ;;  %v3221_v38 = vsel %vm3215_vm4, %v3218_v15, %v3220_v2  ;;  %v3264_v39 = vshrl.u32 %v3259_v17, 16 }
  0xf4   :  { %v3273_v63 = vadd.s32 %v3272_v44, %v3262_v54  ;;  %v9405_v46 = vadd.s32 %v3267_v0, %v3263_v16  ;;  %v9407_v24 = vsub.s32 32, %v1194_v42  ;;  %v1197_v48 = vshll.u32 %v13625_v27, %v1194_v42 }
  0xf5   :  { %v9403_v52 = vadd.s32 %v3251_v6, %v3242_v1  ;;  %v1187_v23 = vand.u32 8388607, %v13606_v20  ;;  %v9412_v62 = vshrl.u32 %v1192_v33, 5  ;;  %v1200_v59 = vshll.u32 %v13621_v29, %v1194_v42 }
  0xf6   :  { %v3274_v14 = vadd.s32 %v3273_v63, %v3264_v39  ;;  %v3275_v32 = vmul.u32 %v9346_v53, %v3221_v38  ;;  %v1198_v17 = vshrl.u32 %v13621_v29, %v9407_v24  ;;  %v1203_v16 = vshll.u32 %v13619_v31, %v1194_v42 }
  0xf7   :  { %vm3277_vm13 = vc.u32 %v9403_v52, %v9405_v46  ;;  %v3134_v0 = vclz %v3133_v7  ;;  %v1201_v28 = vshrl.u32 %v13619_v31, %v9407_v24  ;;  %v1204_v15 = vshrl.u32 %v13617_v34, %v9407_v24 }
  0xf8   :  { %v3278_v3 = vadd.s32 1, %v3274_v14  ;;  %v9425_v4 = vor.u32 %v1198_v17, %v1197_v48  ;;  %v1206_v53 = vshll.u32 %v13617_v34, %v1194_v42  ;;  %v1207_v35 = vshrl.u32 %v13615_v36, %v9407_v24 }
  0xf9   :  { %v1209_v2 = vshll.u32 %v13615_v36, %v1194_v42  ;;  %v1188_v50 = vor.u32 8388608, %v1187_v23  ;;  %v9431_v8 = vor.u32 %v1201_v28, %v1200_v59  ;;  %vm1212_vm14 = vcmp.lt.s32.totalorder %v9412_v62, 1 }
  0xfa   :  { %v3279_v5 = vsel %vm3277_vm13, %v3278_v3, %v3274_v14  ;;  %v9434_v33 = vor.u32 %v1204_v15, %v1203_v16  ;;  %v1208_v54 = vor.u32 %v1207_v35, %v1206_v53  ;;  %v1210_v44 = vshrl.u32 %v13611_v43, %v9407_v24 }
  0xfb   :  { %v3280_v12 = vadd.s32 %v3279_v5, %v3275_v32  ;;  %v365_v1 = vsel %vm8533_vm12, 0, %v9375_v25  ;;  %v8586_v6 = vadd.s32 4294967294, %v3134_v0  ;;  %vm1214_vm15 = vcmp.lt.s32.totalorder %v9412_v62, 3 }
  0xfc   :  { %vm1215_vm0 = vcmp.lt.s32.totalorder %v9412_v62, 4  ;;  %v1211_v7 = vor.u32 %v1210_v44, %v1209_v2  ;;  %vm1213_vm1 = vcmp.lt.s32.totalorder %v9412_v62, 2  ;;  %v1220_v38 = vsel %vm1212_vm14, %v9425_v4, %v9431_v8 }
  0xfd   :  { %v3281_v42 = vadd.s32 536870912, %v3280_v12  ;;  %vm8536_vm2 = vcmp.lt.s32.totalorder %v8535_v40, 0  ;;  %v1221_v39 = vsel %vm1215_vm0, %v1208_v54, 920167782  ;;  %v1224_v48 = vsel %vm1212_vm14, %v9431_v8, %v9434_v33 }
  0xfe   :  { %v1222_v25 = vsel %vm1214_vm15, %v9434_v33, %v1221_v39  ;;  %v9459_v14 = vshll.u32 %v1188_v50, 8  ;;  %v370_v23 = vsub.s32 4294967266, %v365_v1  ;;  %v1225_v32 = vsel %vm1215_vm0, %v1211_v7, 1326507024 }
  0xff   :  { %v9450_v63 = vshrl.u32 %v3281_v42, 30  ;;  %v1223_v59 = vsel %vm1213_vm1, %v1220_v38, %v1222_v25  ;;  %vm8587_vm3 = vcmp.lt.s32.totalorder %v8586_v6, 0  ;;  %v1226_v16 = vsel %vm1214_vm15, %v1208_v54, %v1225_v32 }
 0x100   :  { %v9468_v0 = vsel %vm8536_vm2, 0, %v8535_v40  ;;  %v1227_v3 = vsel %vm1213_vm1, %v1224_v48, %v1226_v16  ;;  %v1254_v28 = vshrl.u32 %v1223_v59, 16  ;;  %v366_v15 = vsub.s32 32, %v365_v1 }
 0x101   :  { %v3283_v17 = vshll.u32 %v9450_v63, 30  ;;  %v1229_v35 = vand.u32 65535, %v9459_v14  ;;  %v1232_v2 = vshrl.u32 %v1227_v3, 16  ;;  %v350_v5 = vadd.s32 %v9172_v61, %v9159_v57 }
 0x102   :  { %v371_v50 = vadd.s32 127, %v370_v23  ;;  %v3137_v44 = vsel %vm8587_vm3, 0, %v8586_v6  ;;  %v524_v42 = vsub.s32 4294967266, %v9468_v0  ;;  %v1253_v40 = vand.u32 65535, %v1223_v59 }
 0x103   :  { %v9472_v53 = vsub.s32 %v3280_v12, %v3283_v17  ;;  %v9478_v54 = vmul.u32 %v1232_v2, %v1229_v35  ;;  %v9480_v7 = vmul.u32 %v1254_v28, %v1229_v35  ;;  %v1231_v38 = vand.u32 65535, %v1227_v3 }
 0x104   :  { %v368_v39 = vshrl.u32 %v350_v5, %v366_v15  ;;  %v3142_v25 = vsub.s32 4294967266, %v3137_v44  ;;  %v1230_v48 = vshrl.u32 %v9459_v14, 16  ;;  %v367_v32 = vshll.u32 %v9284_v47, %v365_v1 }
 0x105   :  { %v3286_v12 = vsub.s32 0, %v9472_v53  ;;  %v372_v17 = vshll.u32 %v371_v50, 23  ;;  %vm3285_vm4 = vcmp.lt.s32.totalorder %v9472_v53, 0  ;;  %v1237_v57 = vshll.u32 %v9478_v54, 16 }
 0x106   :  { %v525_v61 = vadd.s32 127, %v524_v42  ;;  %v1255_v6 = vmul.u32 %v1253_v40, %v1229_v35  ;;  %v9487_v23 = vmul.u32 %v1253_v40, %v1230_v48  ;;  %v1259_v59 = vshll.u32 %v9480_v7, 16 }
 0x107   :  { %v504_v16 = vadd.s32 %v9270_v30, %v9258_v9  ;;  %v1233_v3 = vmul.u32 %v1231_v38, %v1229_v35  ;;  %v9492_v15 = vmul.u32 %v1231_v38, %v1230_v48  ;;  %v369_v5 = vor.u32 %v368_v39, %v367_v32  ;;  %v9503_v39 = vpop.f32.mrf.mxu1 }
 0x108   :  { %v3143_v20 = vadd.s32 127, %v3142_v25  ;;  %v3287_v47 = vsel %vm3285_vm4, %v3286_v12, %v9472_v53  ;;  %vm1263_vm5 = vc.u32 %v1255_v6, %v1259_v59  ;;  %v520_v1 = vsub.s32 32, %v9468_v0  ;;  %13867 = vst [vmem:[#allocation16_spill] sm:$0xff] %v9503_v39 }
 0x109   :  { %v3138_v50 = vsub.s32 32, %v3137_v44  ;;  %vm1241_vm6 = vc.u32 %v1233_v3, %v1237_v57  ;;  %v1243_v42 = vadd.s32 %v1237_v57, %v1233_v3  ;;  %v373_v40 = vor.u32 4788187, %v372_v17 }
 0x10a   :  { %v526_v37 = vshll.u32 %v525_v61, 23  ;;  %v1261_v45 = vshll.u32 %v9487_v23, 16  ;;  %v9497_v18 = vadd.s32 %v1259_v59, %v1255_v6  ;;  %v3122_v9 = vadd.s32 %v9311_v58, %v9307_v19 }
 0x10b   :  { %v3288_v30 = vclz %v3287_v47  ;;  %v1239_v35 = vshll.u32 %v9492_v15, 16  ;;  %v1264_v38 = vsel %vm1263_vm5, 1, %v13627_v10  ;;  %v3144_v25 = vshll.u32 %v3143_v20, 23 }
 0x10c   :  { %v1242_v12 = vsel %vm1241_vm6, 1, %v13627_v10  ;;  %v1258_v32 = vmul.u32 %v1254_v28, %v1230_v48  ;;  %vm1267_vm7 = vc.u32 %v9497_v18, %v1261_v45  ;;  %v522_v17 = vshrl.u32 %v504_v16, %v520_v1 }
 0x10d   :  { %v3140_v57 = vshrl.u32 %v3122_v9, %v3138_v50  ;;  %v1236_v61 = vmul.u32 %v1232_v2, %v1230_v48  ;;  %vm1245_vm8 = vc.u32 %v1243_v42, %v1239_v35  ;;  %v374_v19 = vand.u32 2147483647, %v373_v40 }
 0x10e   :  { %v521_v58 = vshll.u32 %v9340_v49, %v9468_v0  ;;  %v1266_v6 = vadd.s32 %v1264_v38, %v1258_v32  ;;  %v1337_v59 = vand.u32 2139095040, %v9503_v39  ;;  %v3139_v20 = vshll.u32 %v9383_v55, %v3137_v44 }
 0x10f   :  { %v8589_v3 = vadd.s32 4294967294, %v3288_v30  ;;  %v1244_v47 = vadd.s32 %v1242_v12, %v1236_v61  ;;  %v1268_v28 = vsel %vm1267_vm7, 1, %v13627_v10  ;;  %v527_v41 = vor.u32 4788187, %v526_v37 }
 0x110   :  { %v3145_v43 = vor.u32 4788187, %v3144_v25  ;;  %v1246_v16 = vsel %vm1245_vm8, 1, %v13627_v10  ;;  %v1338_v1 = vshrl.u32 %v1337_v59, 23  ;;  %v376_v2 = vcvt.s32.f32 %v369_v5 }
 0x111   :  { %v523_v48 = vor.u32 %v522_v17, %v521_v58  ;;  %v3141_v50 = vor.u32 %v3140_v57, %v3139_v20  ;;  %v1270_v42 = vadd.s32 %v1268_v28, %v1266_v6  ;;  %v380_v0 = vsub.s32 4, %v9256_v21 }
 0x112   :  { %v8552_v40 = vadd.s32 4294967169, %v1338_v1  ;;  %v9515_v49 = vmul.f32 %v376_v2, %v374_v19  ;;  %vm8590_vm9 = vcmp.lt.s32.totalorder %v8589_v3, 0  ;;  %v1248_v55 = vadd.s32 %v1246_v16, %v1244_v47 }
 0x113   :  { %v528_v44 = vand.u32 2147483647, %v527_v41  ;;  %v3146_v9 = vand.u32 2147483647, %v3145_v43  ;;  %v1260_v30 = vshrl.u32 %v9480_v7, 16  ;;  %v530_v35 = vcvt.s32.f32 %v523_v48 }
 0x114   :  { %v1344_v37 = vadd.s32 1, %v8552_v40  ;;  %v3148_v38 = vcvt.s32.f32 %v3141_v50  ;;  %v1196_v5 = vshrl.u32 %v13625_v27, %v9407_v24  ;;  %v1238_v25 = vshrl.u32 %v9478_v54, 16 }
 0x115   :  { %v9522_v12 = vsel %vm8590_vm9, 0, %v8589_v3  ;;  %v1217_v32 = vsel %vm1215_vm0, %v9434_v33, 2102212464  ;;  %v1271_v17 = vadd.s32 %v1270_v42, %v1260_v30  ;;  %v378_v43 = vxor.u32 2147483648, %v9515_v49 }
 0x116   :  { %vm1345_vm10 = vcmp.gt.s32.totalorder %v1344_v37, 0  ;;  %v1249_v41 = vadd.s32 %v1248_v55, %v1238_v25  ;;  %v13614_v7 = vand.u32 2147483647, %v9503_v39  ;;  %v9529_v61 = vmul.f32 %v530_v35, %v528_v44 }
 0x117   :  { %v1346_v57 = vsel %vm1345_vm10, %v1344_v37, 0  ;;  %v3149_v19 = vmul.f32 %v3148_v38, %v3146_v9  ;;  %v1262_v24 = vshrl.u32 %v9487_v23, 16  ;;  %v3296_v58 = vsub.s32 4294967266, %v9522_v12  ;;  %v9568_v9 = vpop.f32.mrf.mxu2 }
 0x118   :  { %v1348_v54 = vand.u32 31, %v1346_v57  ;;  %v1216_v33 = vsel %vm1212_vm14, %v1196_v5, %v9425_v4  ;;  %v1218_v6 = vsel %vm1214_vm15, %v9431_v8, %v1217_v32  ;;  %v1240_v59 = vshrl.u32 %v9492_v15, 16  ;;  %13868 = vst [vmem:[#allocation17_spill] sm:$0xff] %v9568_v9 }
 0x119   :  { %v1272_v20 = vadd.s32 %v1271_v17, %v1262_v24  ;;  %v1341_v1 = vand.u32 8388607, %v13614_v7  ;;  %v9548_v2 = vshrl.u32 %v1346_v57, 5  ;;  %vm3030_vm11 = vcmp.lt.s32.totalorder %v9113_v51, 0 }
 0x11a   :  { %v9540_v3 = vsub.s32 32, %v1348_v54  ;;  %v1351_v47 = vshll.u32 %v13625_v27, %v1348_v54  ;;  %v1354_v28 = vshll.u32 %v13621_v29, %v1348_v54  ;;  %v9544_v16 = vadd.s32 %v1249_v41, %v1240_v59 }
 0x11b   :  { %v1360_v4 = vshll.u32 %v13617_v34, %v1348_v54  ;;  %v1357_v48 = vshll.u32 %v13619_v31, %v1348_v54  ;;  %v3150_v42 = vxor.u32 2147483648, %v3149_v19  ;;  %v1219_v40 = vsel %vm1213_vm1, %v1216_v33, %v1218_v6 }
 0x11c   :  { %v1352_v8 = vshrl.u32 %v13621_v29, %v9540_v3  ;;  %v1355_v15 = vshrl.u32 %v13619_v31, %v9540_v3  ;;  %v1358_v50 = vshrl.u32 %v13617_v34, %v9540_v3  ;;  %v9564_v55 = vadd.s32 %v9497_v18, %v1261_v45 }
 0x11d   :  { %v1361_v44 = vshrl.u32 %v13615_v36, %v9540_v3  ;;  %v1276_v30 = vadd.s32 1, %v1272_v20  ;;  %v1363_v38 = vshll.u32 %v13615_v36, %v1348_v54  ;;  %v3297_v5 = vadd.s32 127, %v3296_v58 }
 0x11e   :  { %v9570_v37 = vor.u32 %v1352_v8, %v1351_v47  ;;  %v9572_v35 = vor.u32 %v1355_v15, %v1354_v28  ;;  %vm1275_vm12 = vc.u32 %v9544_v16, %v9564_v55  ;;  %v1342_v62 = vor.u32 8388608, %v1341_v1 }
 0x11f   :  { %v1362_v23 = vor.u32 %v1361_v44, %v1360_v4  ;;  %v9577_v18 = vor.u32 %v1358_v50, %v1357_v48  ;;  %v13869_v45 = vmov 1326507024   ;;  %vm1366_vm13 = vcmp.lt.s32.totalorder %v9548_v2, 1 }
 0x120   :  { %v1364_v25 = vshrl.u32 %v13869_v45, %v9540_v3  ;;  %v567_v32 = vand.u32 2139095040, %v9568_v9  ;;  %vm258_vm14 = vcmp.lt.s32.totalorder %v9001_v11, 0  ;;  %v3292_v17 = vsub.s32 32, %v9522_v12 }
 0x121   :  { %v1273_v41 = vmul.u32 %v9459_v14, %v1219_v40  ;;  %vm1368_vm15 = vcmp.lt.s32.totalorder %v9548_v2, 3  ;;  %vm1369_vm0 = vcmp.lt.s32.totalorder %v9548_v2, 4  ;;  %v1277_v57 = vsel %vm1275_vm12, %v1276_v30, %v1272_v20 }
 0x122   :  { %v1365_v24 = vor.u32 %v1364_v25, %v1363_v38  ;;  %vm1367_vm1 = vcmp.lt.s32.totalorder %v9548_v2, 2  ;;  %v1374_v54 = vsel %vm1366_vm13, %v9570_v37, %v9572_v35  ;;  %v3298_v58 = vshll.u32 %v3297_v5, 23 }
 0x123   :  { %v1375_v33 = vsel %vm1369_vm0, %v1362_v23, 920167782  ;;  %v9595_v6 = vshll.u32 %v1342_v62, 8  ;;  %v13613_v14 = vand.u32 2147483647, %v9568_v9  ;;  %v3276_v59 = vadd.s32 %v9405_v46, %v9403_v52 }
 0x124   :  { %v1376_v20 = vsel %vm1368_vm15, %v9577_v18, %v1375_v33  ;;  %v1378_v47 = vsel %vm1366_vm13, %v9572_v35, %v9577_v18  ;;  %v568_v28 = vshrl.u32 %v567_v32, 23  ;;  %v3151_v1 = vsel %vm3030_vm11, %v3150_v42, %v3149_v19 }
 0x125   :  { %v9609_v4 = vadd.s32 %v1277_v57, %v1273_v41  ;;  %v1377_v8 = vsel %vm1367_vm1, %v1374_v54, %v1376_v20  ;;  %v1379_v52 = vsel %vm1369_vm0, %v1365_v24, 1326507024  ;;  %v3294_v46 = vshrl.u32 %v3276_v59, %v3292_v17 }
 0x126   :  { %v1380_v15 = vsel %vm1368_vm15, %v1362_v23, %v1379_v52  ;;  %v1407_v48 = vand.u32 65535, %v1377_v8  ;;  %v1408_v50 = vshrl.u32 %v1377_v8, 16  ;;  %v9617_v40 = vor.u32 4788187, %v3298_v58 }
 0x127   :  { %v1381_v44 = vsel %vm1367_vm1, %v1378_v47, %v1380_v15  ;;  %v1383_v19 = vand.u32 65535, %v9595_v6  ;;  %v571_v42 = vand.u32 8388607, %v13613_v14  ;;  %v1384_v30 = vshrl.u32 %v9595_v6, 16 }
 0x128   :  { %v1385_v38 = vand.u32 65535, %v1381_v44  ;;  %v1386_v5 = vshrl.u32 %v1381_v44, 16  ;;  %v8537_v62 = vadd.s32 4294967169, %v568_v28  ;;  %v13870_v25 = vand.u32 2147483647, %v9113_v51 }
 0x129   :  { %v3293_v32 = vshll.u32 %v9472_v53, %v9522_v12  ;;  %v1279_v17 = vadd.s32 536870912, %v9609_v4  ;;  %v1410_v41 = vmul.u32 %v1408_v50, %v1383_v19  ;;  %v379_v57 = vsel %vm258_vm14, %v378_v43, %v9515_v49 }
 0x12a   :  { %vm9627_vm2 = vcmp.le.f32.partialorder %v13870_v25, 0.7853982  ;;  %v9644_v24 = vsel %vm258_vm14, %v380_v0, %v9256_v21  ;;  %v532_v54 = vxor.u32 2147483648, %v9529_v61  ;;  %v9647_v58 = vmul.u32 %v1407_v48, %v1384_v30 }
 0x12b   :  { %13873 = vst [vmem:[#allocation18_spill] sm:$0xff] %v9644_v24  ;;  %v13874_v53 = vand.u32 2147483647, %v9001_v11  ;;  %v13875_v12 = vmov 0  ;;  %v9658_v49 = vsel %vm9627_vm2, %v9113_v51, %v3151_v1  ;;  %v3295_v43 = vor.u32 %v3294_v46, %v3293_v32 }
 0x12c   :  { %v1388_v33 = vmul.u32 %v1386_v5, %v1383_v19  ;;  %v1389_v59 = vmul.u32 %v1385_v38, %v1384_v30  ;;  %vm412_vm4 = vcmp.lt.s32.totalorder %v9004_v13, 0  ;;  %v3300_v21 = vand.u32 2147483647, %v9617_v40 }
 0x12d   :  { %vm9651_vm3 = vcmp.le.f32.partialorder %v13874_v53, 0.7853982  ;;  %v1413_v0 = vshll.u32 %v1410_v41, 16  ;;  %v572_v20 = vor.u32 8388608, %v571_v42  ;;  %v574_v47 = vadd.s32 1, %v8537_v62 }
 0x12e   :  { %v13876_v12 = vsel %vm9651_vm3, 4294967295, %v13875_v12  ;;  %v9662_v28 = vshrl.u32 %v1279_v17, 30  ;;  %v1387_v8 = vmul.u32 %v1385_v38, %v1383_v19  ;;  %v1391_v52 = vshll.u32 %v1388_v33, 16 }
 0x12f   :  { %13877 = vst [vmem:[#allocation19_spill] sm:$0xff] %v13876_v12  ;;  %v1409_v15 = vmul.u32 %v1407_v48, %v1383_v19  ;;  %v1390_v44 = vmul.u32 %v1386_v5, %v1384_v30  ;;  %v1393_v25 = vshll.u32 %v1389_v59, 16  ;;  %v1412_v53 = vmul.u32 %v1408_v50, %v1384_v30 }
 0x130   :  { %v1415_v1 = vshll.u32 %v9647_v58, 16  ;;  %vm1395_vm5 = vc.u32 %v1387_v8, %v1391_v52  ;;  %v1397_v46 = vadd.s32 %v1391_v52, %v1387_v8  ;;  %vm575_vm7 = vcmp.gt.s32.totalorder %v574_v47, 0  ;;  %v9672_v52 = vpop.f32.mrf.mxu3 }
 0x131   :  { %vm1417_vm6 = vc.u32 %v1409_v15, %v1413_v0  ;;  %v1419_v32 = vadd.s32 %v1413_v0, %v1409_v15  ;;  %v1396_v14 = vsel %vm1395_vm5, 1, %v13627_v10  ;;  %v9667_v42 = vshll.u32 %v572_v20, 8  ;;  %13878 = vst [vmem:[#allocation20_spill] sm:$0xff] %v9672_v52 }
 0x132   :  { %v1418_v40 = vsel %vm1417_vm6, 1, %v13627_v10  ;;  %v1398_v62 = vadd.s32 %v1396_v14, %v1390_v44  ;;  %vm1399_vm8 = vc.u32 %v1397_v46, %v1393_v25  ;;  %v1281_v48 = vshll.u32 %v9662_v28, 30 }
 0x133   :  { %v1420_v38 = vadd.s32 %v1418_v40, %v1412_v53  ;;  %vm1421_vm9 = vc.u32 %v1419_v32, %v1415_v1  ;;  %v1400_v50 = vsel %vm1399_vm8, 1, %v13627_v10  ;;  %v1414_v19 = vshrl.u32 %v1410_v41, 16 }
 0x134   :  { %v1422_v30 = vsel %vm1421_vm9, 1, %v13627_v10  ;;  %v1392_v5 = vshrl.u32 %v1388_v33, 16  ;;  %v1402_v17 = vadd.s32 %v1400_v50, %v1398_v62  ;;  %v576_v8 = vsel %vm575_vm7, %v574_v47, 0 }
 0x135   :  { %v1424_v0 = vadd.s32 %v1422_v30, %v1420_v38  ;;  %v9677_v14 = vsel %vm9651_vm3, %v9001_v11, %v379_v57  ;;  %v3302_v15 = vcvt.s32.f32 %v3295_v43  ;;  %v578_v44 = vand.u32 31, %v576_v8 }
 0x136   :  { %13879 = vst [vmem:[#allocation21_spill] sm:$0xff] %v9677_v14  ;;  %v533_v41 = vsel %vm412_vm4, %v532_v54, %v9529_v61  ;;  %v9685_v33 = vmul.f32 %v9658_v49, %v9658_v49  ;;  %v1403_v47 = vadd.s32 %v1402_v17, %v1392_v5  ;;  %v9692_v57 = vand.u32 65535, %v9667_v42 }
 0x137   :  { %v1425_v25 = vadd.s32 %v1424_v0, %v1414_v19  ;;  %v9687_v53 = vmul.f32 %v3302_v15, %v3300_v21  ;;  %v9689_v46 = vsub.s32 32, %v578_v44  ;;  %v721_v43 = vand.u32 2139095040, %v9672_v52 }
 0x138   :  { %v9696_v40 = vsub.s32 %v9609_v4, %v1281_v48  ;;  %v1350_v61 = vshrl.u32 %v13625_v27, %v9540_v3  ;;  %v1394_v54 = vshrl.u32 %v1389_v59, 16  ;;  %v1416_v62 = vshrl.u32 %v9647_v58, 16 }
 0x139   :  { %v581_v38 = vshll.u32 %v13625_v27, %v578_v44  ;;  %v582_v21 = vshrl.u32 %v13621_v29, %v9689_v46  ;;  %v584_v50 = vshll.u32 %v13621_v29, %v578_v44  ;;  %v585_v19 = vshrl.u32 %v13619_v31, %v9689_v46 }
 0x13a   :  { %v1371_v4 = vsel %vm1369_vm0, %v9577_v18, 2102212464  ;;  %v9710_v48 = vadd.s32 %v1403_v47, %v1394_v54  ;;  %v1426_v3 = vadd.s32 %v1425_v25, %v1416_v62  ;;  %v9712_v59 = vshrl.u32 %v576_v8, 5 }
 0x13b   :  { %v9714_v58 = vor.u32 %v582_v21, %v581_v38  ;;  %v9716_v30 = vor.u32 %v585_v19, %v584_v50  ;;  %v587_v5 = vshll.u32 %v13619_v31, %v578_v44  ;;  %v588_v17 = vshrl.u32 %v13617_v34, %v9689_v46 }
 0x13c   :  { %v13880_v0 = vand.u32 2147483647, %v9004_v13  ;;  %v13881_v15 = vmov 0  ;;  %v590_v18 = vshll.u32 %v13617_v34, %v578_v44  ;;  %v591_v8 = vshrl.u32 %v13615_v36, %v9689_v46 }
 0x13d   :  { %v593_v47 = vshll.u32 %v13615_v36, %v578_v44  ;;  %v594_v25 = vshrl.u32 %v13869_v45, %v9689_v46  ;;  %v1370_v54 = vsel %vm1366_vm13, %v1350_v61, %v9570_v37  ;;  %v1372_v62 = vsel %vm1368_vm15, %v9572_v35, %v1371_v4 }
 0x13e   :  { %vm9723_vm10 = vcmp.le.f32.partialorder %v13880_v0, 0.7853982  ;;  %v9739_v38 = vadd.s32 %v1419_v32, %v1415_v1  ;;  %v9741_v21 = vor.u32 %v588_v17, %v587_v5  ;;  %v592_v50 = vor.u32 %v591_v8, %v590_v18 }
 0x13f   :  { %v13882_v15 = vsel %vm9723_vm10, 4294967295, %v13881_v15  ;;  %v595_v19 = vor.u32 %v594_v25, %v593_v47  ;;  %vm596_vm12 = vcmp.lt.s32.totalorder %v9712_v59, 1  ;;  %v722_v44 = vshrl.u32 %v721_v43, 23 }
 0x140   :  { %13883 = vst [vmem:[#allocation22_spill] sm:$0xff] %v13882_v15  ;;  %vm1429_vm14 = vc.u32 %v9710_v48, %v9739_v38  ;;  %v1430_v0 = vadd.s32 1, %v1426_v3  ;;  %vm599_vm0 = vcmp.lt.s32.totalorder %v9712_v59, 4  ;;  %v604_v37 = vsel %vm596_vm12, %v9714_v58, %v9716_v30 }
 0x141   :  { %vm598_vm13 = vcmp.lt.s32.totalorder %v9712_v59, 3  ;;  %v605_v35 = vsel %vm599_vm0, %v592_v50, 920167782  ;;  %v608_v1 = vsel %vm596_vm12, %v9716_v30, %v9741_v21  ;;  %v609_v32 = vsel %vm599_vm0, %v595_v19, 1326507024 }
 0x142   :  { %v1373_v43 = vsel %vm1367_vm1, %v1370_v54, %v1372_v62  ;;  %vm597_vm15 = vcmp.lt.s32.totalorder %v9712_v59, 2  ;;  %v606_v61 = vsel %vm598_vm13, %v9741_v21, %v605_v35  ;;  %v610_v4 = vsel %vm598_vm13, %v592_v50, %v609_v32 }
 0x143   :  { %v607_v5 = vsel %vm597_vm15, %v604_v37, %v606_v61  ;;  %v611_v17 = vsel %vm597_vm15, %v608_v1, %v610_v4  ;;  %v614_v18 = vshrl.u32 %v9667_v42, 16  ;;  %v8540_v8 = vadd.s32 4294967169, %v722_v44 }
 0x144   :  { %v1284_v2 = vsub.s32 0, %v9696_v40  ;;  %v1431_v47 = vsel %vm1429_vm14, %v1430_v0, %v1426_v3  ;;  %v615_v25 = vand.u32 65535, %v611_v17  ;;  %v616_v54 = vshrl.u32 %v611_v17, 16 }
 0x145   :  { %vm1283_vm1 = vcmp.lt.s32.totalorder %v9696_v40, 0  ;;  %v1427_v62 = vmul.u32 %v9595_v6, %v1373_v43  ;;  %v637_v50 = vand.u32 65535, %v607_v5  ;;  %v638_v19 = vshrl.u32 %v607_v5, 16 }
 0x146   :  { %v9782_v37 = vsel %vm9723_vm10, %v9004_v13, %v533_v41  ;;  %v3164_v35 = vmul.f32 -0.00019511016, %v9685_v33  ;;  %v618_v1 = vmul.u32 %v616_v54, %v9692_v57  ;;  %v619_v0 = vmul.u32 %v615_v25, %v614_v18 }
 0x147   :  { %13884 = vst [vmem:[#allocation23_spill] sm:$0xff] %v9782_v37  ;;  %v9787_v3 = vadd.s32 %v1431_v47, %v1427_v62  ;;  %v640_v32 = vmul.u32 %v638_v19, %v9692_v57  ;;  %v728_v61 = vadd.s32 1, %v8540_v8  ;;  %vm3184_vm5 = vcmp.lt.s32.totalorder %v9254_v60, 0 }
 0x148   :  { %v1285_v6 = vsel %vm1283_vm1, %v1284_v2, %v9696_v40  ;;  %v617_v43 = vmul.u32 %v615_v25, %v9692_v57  ;;  %v621_v41 = vshll.u32 %v618_v1, 16  ;;  %v3304_v5 = vxor.u32 2147483648, %v9687_v53 }
 0x149   :  { %v620_v17 = vmul.u32 %v616_v54, %v614_v18  ;;  %v639_v7 = vmul.u32 %v637_v50, %v9692_v57  ;;  %v641_v47 = vmul.u32 %v637_v50, %v614_v18  ;;  %v623_v62 = vshll.u32 %v619_v0, 16 }
 0x14a   :  { %vm625_vm6 = vc.u32 %v617_v43, %v621_v41  ;;  %v627_v44 = vadd.s32 %v621_v41, %v617_v43  ;;  %v643_v20 = vshll.u32 %v640_v32, 16  ;;  %v1286_v8 = vclz %v1285_v6 }
 0x14b   :  { %v1433_v36 = vadd.s32 536870912, %v9787_v3  ;;  %v626_v2 = vsel %vm625_vm6, 1, %v13627_v10  ;;  %vm729_vm7 = vcmp.gt.s32.totalorder %v728_v61, 0  ;;  %v642_v34 = vmul.u32 %v638_v19, %v614_v18 }
 0x14c   :  { %v628_v25 = vadd.s32 %v626_v2, %v620_v17  ;;  %vm629_vm8 = vc.u32 %v627_v44, %v623_v62  ;;  %vm647_vm9 = vc.u32 %v639_v7, %v643_v20  ;;  %v645_v54 = vshll.u32 %v641_v47, 16 }
 0x14d   :  { %v630_v31 = vsel %vm629_vm8, 1, %v13627_v10  ;;  %v648_v57 = vsel %vm647_vm9, 1, %v13627_v10  ;;  %v649_v50 = vadd.s32 %v643_v20, %v639_v7  ;;  %v622_v29 = vshrl.u32 %v618_v1, 16 }
 0x14e   :  { %v632_v4 = vadd.s32 %v630_v31, %v628_v25  ;;  %v650_v43 = vadd.s32 %v648_v57, %v642_v34  ;;  %v730_v41 = vsel %vm729_vm7, %v728_v61, 0  ;;  %v9800_v6 = vshrl.u32 %v1433_v36, 30 }
 0x14f   :  { %v580_v11 = vshrl.u32 %v13625_v27, %v9689_v46  ;;  %vm651_vm14 = vc.u32 %v649_v50, %v645_v54  ;;  %v13886_v44 = vand.u32 2147483647, %v9672_v52  ;;  %v13887_v19 = vand.u32 2147483647, %v9254_v60 }
 0x150   :  { %13885 = vst [vmem:[#allocation24_spill] sm:$0xff] %v9800_v6  ;;  %v601_v31 = vsel %vm599_vm0, %v9741_v21, 2102212464  ;;  %v633_v34 = vadd.s32 %v632_v4, %v622_v29  ;;  %v652_v36 = vsel %vm651_vm14, 1, %v13627_v10  ;;  %v732_v7 = vand.u32 31, %v730_v41 }
 0x151   :  { %v725_v18 = vand.u32 8388607, %v13886_v44  ;;  %vm9808_vm1 = vcmp.le.f32.partialorder %v13887_v19, 0.7853982  ;;  %v3165_v20 = vadd.f32 0.008332121, %v3164_v35  ;;  %v3305_v46 = vsel %vm3184_vm5, %v3304_v5, %v9687_v53 }
 0x152   :  { %v644_v1 = vshrl.u32 %v640_v32, 16  ;;  %v654_v61 = vadd.s32 %v652_v36, %v650_v43  ;;  %v8550_v62 = vadd.s32 4294967294, %v1286_v8  ;;  %v600_v2 = vsel %vm596_vm12, %v580_v11, %v9714_v58 }
 0x153   :  { %v624_v25 = vshrl.u32 %v619_v0, 16  ;;  %v9822_v57 = vsub.s32 32, %v732_v7  ;;  %v1435_v29 = vshll.u32 %v9800_v6, 30  ;;  %v602_v21 = vsel %vm598_vm13, %v9716_v30, %v601_v31 }
 0x154   :  { %v646_v35 = vshrl.u32 %v641_v47, 16  ;;  %v655_v4 = vadd.s32 %v654_v61, %v644_v1  ;;  %v726_v53 = vor.u32 8388608, %v725_v18  ;;  %v9830_v32 = vshrl.u32 %v730_v41, 5 }
 0x155   :  { %v9828_v44 = vadd.s32 %v633_v34, %v624_v25  ;;  %v13890_v5 = vmov 2475754826   ;;  %v735_v58 = vshll.u32 %v13625_v27, %v732_v7  ;;  %v13891_v43 = vmov 2131351028  }
 0x156   :  { %v736_v8 = vshrl.u32 %v13890_v5, %v9822_v57  ;;  %v656_v11 = vadd.s32 %v655_v4, %v646_v35  ;;  %v738_v0 = vshll.u32 %v13890_v5, %v732_v7  ;;  %v739_v19 = vshrl.u32 %v13891_v43, %v9822_v57 }
 0x157   :  { %v741_v30 = vshll.u32 %v13891_v43, %v732_v7  ;;  %v13892_v47 = vmov 2102212464   ;;  %v13893_v41 = vmov 920167782   ;;  %v9845_v36 = vsub.s32 %v9787_v3, %v1435_v29 }
 0x158   :  { %v742_v31 = vshrl.u32 %v13892_v47, %v9822_v57  ;;  %v744_v18 = vshll.u32 %v13892_v47, %v732_v7  ;;  %v745_v34 = vshrl.u32 %v13893_v41, %v9822_v57  ;;  %v9847_v1 = vadd.s32 %v649_v50, %v645_v54 }
 0x159   :  { %v9849_v61 = vor.u32 %v736_v8, %v735_v58  ;;  %v9851_v25 = vor.u32 %v739_v19, %v738_v0  ;;  %v747_v27 = vshll.u32 %v13893_v41, %v732_v7  ;;  %v748_v10 = vshrl.u32 %v13869_v45, %v9822_v57 }
 0x15a   :  { %v9853_v35 = vor.u32 %v742_v31, %v741_v30  ;;  %v746_v4 = vor.u32 %v745_v34, %v744_v18  ;;  %v3166_v15 = vmul.f32 %v3165_v20, %v9685_v33  ;;  %v9862_v3 = vsel %vm9808_vm1, %v9254_v60, %v3305_v46 }
 0x15b   :  { %vm8551_vm12 = vcmp.lt.s32.totalorder %v8550_v62, 0  ;;  %v660_v54 = vadd.s32 1, %v656_v11  ;;  %v603_v50 = vsel %vm597_vm15, %v600_v2, %v602_v21  ;;  %vm659_vm0 = vc.u32 %v9828_v44, %v9847_v1 }
 0x15c   :  { %v749_v29 = vor.u32 %v748_v10, %v747_v27  ;;  %vm750_vm13 = vcmp.lt.s32.totalorder %v9830_v32, 1  ;;  %v1438_v7 = vsub.s32 0, %v9845_v36  ;;  %vm753_vm6 = vcmp.lt.s32.totalorder %v9830_v32, 4 }
 0x15d   :  { %v758_v20 = vsel %vm750_vm13, %v9849_v61, %v9851_v25  ;;  %v9875_v46 = vshll.u32 %v726_v53, 8  ;;  %vm1437_vm7 = vcmp.lt.s32.totalorder %v9845_v36, 0  ;;  %vm752_vm15 = vcmp.lt.s32.totalorder %v9830_v32, 3 }
 0x15e   :  { %v759_v10 = vsel %vm753_vm6, %v746_v4, 920167782  ;;  %v762_v27 = vsel %vm750_vm13, %v9851_v25, %v9853_v35  ;;  %v661_v59 = vsel %vm659_vm0, %v660_v54, %v656_v11  ;;  %vm751_vm8 = vcmp.lt.s32.totalorder %v9830_v32, 2 }
 0x15f   :  { %v760_v2 = vsel %vm752_vm15, %v9853_v35, %v759_v10  ;;  %v763_v21 = vsel %vm753_vm6, %v749_v29, 1326507024  ;;  %v9892_v53 = vsel %vm8551_vm12, 0, %v8550_v62  ;;  %v657_v8 = vmul.u32 %v9667_v42, %v603_v50 }
 0x160   :  { %v761_v58 = vsel %vm751_vm8, %v758_v20, %v760_v2  ;;  %v764_v11 = vsel %vm752_vm15, %v746_v4, %v763_v21  ;;  %v1439_v0 = vsel %vm1437_vm7, %v1438_v7, %v9845_v36  ;;  %v767_v30 = vand.u32 65535, %v9875_v46 }
 0x161   :  { %v765_v19 = vsel %vm751_vm8, %v762_v27, %v764_v11  ;;  %v792_v31 = vshrl.u32 %v761_v58, 16  ;;  %v9905_v62 = vmul.f32 %v9862_v3, %v9862_v3  ;;  %v9907_v18 = vadd.s32 %v661_v59, %v657_v8 }
 0x162   :  { %v769_v42 = vand.u32 65535, %v765_v19  ;;  %v791_v34 = vand.u32 65535, %v761_v58  ;;  %v13895_v54 = vsub.s32 4, %v9309_v56  ;;  %v768_v50 = vshrl.u32 %v9875_v46, 16 }
 0x163   :  { %13894 = vst [vmem:[#allocation25_spill] sm:$0xff] %v9905_v62  ;;  %v770_v29 = vshrl.u32 %v765_v19, 16  ;;  %v794_v7 = vmul.u32 %v792_v31, %v767_v30  ;;  %v9919_v20 = vmul.f32 %v9677_v14, %v9677_v14  ;;  %v9923_v10 = vmul.f32 %v9782_v37, %v9782_v37 }
 0x164   :  { %v9914_v4 = vsel %vm412_vm4, %v13895_v54, %v9309_v56  ;;  %v1294_v27 = vsub.s32 4294967266, %v9892_v53  ;;  %v1440_v59 = vclz %v1439_v0  ;;  %v13899_v2 = vsub.s32 4, %v9354_v26 }
 0x165   :  { %13896 = vst [vmem:[#allocation26_spill] sm:$0xff] %v9914_v4  ;;  %v3306_v21 = vsub.s32 4, %v9450_v63  ;;  %v772_v8 = vmul.u32 %v770_v29, %v767_v30  ;;  %v9932_v58 = vmul.u32 %v769_v42, %v768_v50  ;;  %v3167_v11 = vadd.f32 -0.16666654, %v3166_v15 }
 0x166   :  { %13897 = vst [vmem:[#allocation27_spill] sm:$0xff] %v9919_v20  ;;  %v3153_v56 = vsel %vm3030_vm11, %v13899_v2, %v9354_v26  ;;  %v3318_v19 = vmul.f32 -0.00019511016, %v9905_v62  ;;  %v663_v54 = vadd.s32 536870912, %v9907_v18  ;;  %v9936_v37 = vmul.u32 %v791_v34, %v768_v50 }
 0x167   :  { %13898 = vst [vmem:[#allocation28_spill] sm:$0xff] %v9923_v10  ;;  %v771_v13 = vmul.u32 %v769_v42, %v767_v30  ;;  %v775_v0 = vshll.u32 %v772_v8, 16  ;;  %v793_v14 = vmul.u32 %v791_v34, %v767_v30  ;;  %v797_v10 = vshll.u32 %v794_v7, 16 }
 0x168   :  { %v1295_v4 = vadd.s32 127, %v1294_v27  ;;  %v8553_v20 = vadd.s32 4294967294, %v1440_v59  ;;  %v774_v12 = vmul.u32 %v770_v29, %v768_v50  ;;  %v796_v26 = vmul.u32 %v792_v31, %v768_v50  ;;  %v9944_v27 = vpop.f32.mrf.mxu0 }
 0x169   :  { %v777_v2 = vshll.u32 %v9932_v58, 16  ;;  %vm779_vm11 = vc.u32 %v771_v13, %v775_v0  ;;  %v781_v24 = vadd.s32 %v775_v0, %v771_v13  ;;  %vm801_vm4 = vc.u32 %v793_v14, %v797_v10  ;;  %13901 = vst [vmem:[#allocation29_spill] sm:$0xff] %v9944_v27 }
 0x16a   :  { %v13900_v15 = vmov 0   ;;  %v799_v52 = vshll.u32 %v9936_v37, 16  ;;  %v803_v9 = vadd.s32 %v797_v10, %v793_v14  ;;  %v9942_v42 = vshrl.u32 %v663_v54, 30 }
 0x16b   :  { %v780_v51 = vsel %vm779_vm11, 1, %v13900_v15  ;;  %v802_v6 = vsel %vm801_vm4, 1, %v13900_v15  ;;  %vm783_vm9 = vc.u32 %v781_v24, %v777_v2  ;;  %v3307_v31 = vsel %vm3184_vm5, %v3306_v21, %v9450_v63 }
 0x16c   :  { %v782_v30 = vadd.s32 %v780_v51, %v774_v12  ;;  %v804_v34 = vadd.s32 %v802_v6, %v796_v26  ;;  %v3319_v13 = vadd.f32 0.008332121, %v3318_v19  ;;  %v784_v50 = vsel %vm783_vm9, 1, %v13900_v15 }
 0x16d   :  { %vm805_vm14 = vc.u32 %v803_v9, %v799_v52  ;;  %v1290_v29 = vsub.s32 32, %v9892_v53  ;;  %v1296_v59 = vshll.u32 %v1295_v4, 23  ;;  %vm8554_vm12 = vcmp.lt.s32.totalorder %v8553_v20, 0 }
 0x16e   :  { %v806_v14 = vsel %vm805_vm14, 1, %v13900_v15  ;;  %v3168_v51 = vmul.f32 %v3167_v11, %v9685_v33  ;;  %v786_v24 = vadd.s32 %v784_v50, %v782_v30  ;;  %v2107_v6 = vand.u32 2139095040, %v9944_v27 }
 0x16f   :  { %v808_v12 = vadd.s32 %v806_v14, %v804_v34  ;;  %v9956_v10 = vsel %vm9627_vm2, 0, %v3153_v56  ;;  %v1274_v63 = vadd.s32 %v9564_v55, %v9544_v16  ;;  %v665_v21 = vshll.u32 %v9942_v42, 30 }
 0x170   :  { %v798_v19 = vshrl.u32 %v794_v7, 16  ;;  %v3320_v4 = vmul.f32 %v3319_v13, %v9905_v62  ;;  %v9962_v54 = vsel %vm8554_vm12, 0, %v8553_v20  ;;  %v776_v0 = vshrl.u32 %v772_v8, 16 }
 0x171   :  { %v2108_v11 = vshrl.u32 %v2107_v6, 23  ;;  %v9966_v26 = vsel %vm9808_vm1, 0, %v3307_v31  ;;  %v1292_v2 = vshrl.u32 %v1274_v63, %v1290_v29  ;;  %v9968_v23 = vor.u32 4788187, %v1296_v59 }
 0x172   :  { %13902 = vst [vmem:[#allocation30_spill] sm:$0xff] %v9966_v26  ;;  %v809_v56 = vadd.s32 %v808_v12, %v798_v19  ;;  %v9970_v30 = vadd.f32 1.0, %v3168_v51  ;;  %v1291_v16 = vshll.u32 %v9696_v40, %v9892_v53  ;;  %v787_v55 = vadd.s32 %v786_v24, %v776_v0 }
 0x173   :  { %v8567_v7 = vadd.s32 4294967169, %v2108_v11  ;;  %v1448_v20 = vsub.s32 4294967266, %v9962_v54  ;;  %v9976_v8 = vsub.s32 %v9907_v18, %v665_v21  ;;  %v755_v17 = vsel %vm753_vm6, %v9853_v35, 2102212464 }
 0x174   :  { %v800_v34 = vshrl.u32 %v9936_v37, 16  ;;  %v3321_v31 = vadd.f32 -0.16666654, %v3320_v4  ;;  %v13903_v13 = vmov 683565275   ;;  %v778_v29 = vshrl.u32 %v9932_v58, 16 }
 0x175   :  { %v734_v50 = vshrl.u32 %v13903_v13, %v9822_v57  ;;  %v2114_v40 = vadd.s32 1, %v8567_v7  ;;  %v9985_v53 = vor.u32 %v1292_v2, %v1291_v16  ;;  %v1298_v59 = vand.u32 2147483647, %v9968_v23 }
 0x176   :  { %v810_v14 = vadd.s32 %v809_v56, %v800_v34  ;;  %v13646_v18 = vand.u32 2147483647, %v9944_v27  ;;  %v756_v37 = vsel %vm752_vm15, %v9851_v25, %v755_v17  ;;  %v9995_v51 = vadd.s32 %v787_v55, %v778_v29 }
 0x177   :  { %v754_v35 = vsel %vm750_vm13, %v734_v50, %v9849_v61  ;;  %vm2115_vm2 = vcmp.gt.s32.totalorder %v2114_v40, 0  ;;  %v1428_v57 = vadd.s32 %v9739_v38, %v9710_v48  ;;  %v1449_v58 = vadd.s32 127, %v1448_v20 }
 0x178   :  { %v668_v24 = vsub.s32 0, %v9976_v8  ;;  %v2116_v12 = vsel %vm2115_vm2, %v2114_v40, 0  ;;  %v1444_v6 = vsub.s32 32, %v9962_v54  ;;  %vm667_vm5 = vcmp.lt.s32.totalorder %v9976_v8, 0 }
 0x179   :  { %v10002_v63 = vadd.s32 %v803_v9, %v799_v52  ;;  %v2118_v61 = vand.u32 31, %v2116_v12  ;;  %v1445_v25 = vshll.u32 %v9845_v36, %v9962_v54  ;;  %v757_v21 = vsel %vm751_vm8, %v754_v35, %v756_v37  ;;  %v10019_v54 = vpop.f32.mrf.mxu1 }
 0x17a   :  { %v814_v19 = vadd.s32 1, %v810_v14  ;;  %v2111_v48 = vand.u32 8388607, %v13646_v18  ;;  %v1450_v52 = vshll.u32 %v1449_v58, 23  ;;  %v669_v0 = vsel %vm667_vm5, %v668_v24, %v9976_v8  ;;  %13904 = vst [vmem:[#allocation31_spill] sm:$0xff] %v10019_v54 }
 0x17b   :  { %vm813_vm1 = vc.u32 %v9995_v51, %v10002_v63  ;;  %v10012_v38 = vsub.s32 32, %v2118_v61  ;;  %v2121_v4 = vshll.u32 %v13903_v13, %v2118_v61  ;;  %v2124_v9 = vshll.u32 %v13890_v5, %v2118_v61 }
 0x17c   :  { %v2127_v36 = vshll.u32 %v13891_v43, %v2118_v61  ;;  %v2130_v32 = vshll.u32 %v13892_v47, %v2118_v61  ;;  %v10021_v11 = vshrl.u32 %v2116_v12, 5  ;;  %v811_v55 = vmul.u32 %v9875_v46, %v757_v21 }
 0x17d   :  { %v2122_v2 = vshrl.u32 %v13890_v5, %v10012_v38  ;;  %v2125_v56 = vshrl.u32 %v13891_v43, %v10012_v38  ;;  %v2128_v16 = vshrl.u32 %v13892_v47, %v10012_v38  ;;  %v815_v7 = vsel %vm813_vm1, %v814_v19, %v810_v14 }
 0x17e   :  { %v2112_v20 = vor.u32 8388608, %v2111_v48  ;;  %v2131_v17 = vshrl.u32 %v13893_v41, %v10012_v38  ;;  %v2133_v29 = vshll.u32 %v13893_v41, %v2118_v61  ;;  %v2261_v40 = vand.u32 2139095040, %v10019_v54 }
 0x17f   :  { %v10032_v34 = vor.u32 %v2122_v2, %v2121_v4  ;;  %v10034_v50 = vor.u32 %v2125_v56, %v2124_v9  ;;  %v1446_v35 = vshrl.u32 %v1428_v57, %v1444_v6  ;;  %v1451_v37 = vor.u32 4788187, %v1450_v52 }
 0x180   :  { %v10038_v58 = vor.u32 %v2128_v16, %v2127_v36  ;;  %v2132_v24 = vor.u32 %v2131_v17, %v2130_v32  ;;  %v10040_v12 = vadd.s32 %v815_v7, %v811_v55  ;;  %v2134_v46 = vshrl.u32 %v13869_v45, %v10012_v38 }
 0x181   :  { %vm2136_vm0 = vcmp.lt.s32.totalorder %v10021_v11, 1  ;;  %vm2138_vm13 = vcmp.lt.s32.totalorder %v10021_v11, 3  ;;  %v670_v14 = vclz %v669_v0  ;;  %vm2137_vm6 = vcmp.lt.s32.totalorder %v10021_v11, 2 }
 0x182   :  { %vm2139_vm7 = vcmp.lt.s32.totalorder %v10021_v11, 4  ;;  %v10048_v61 = vshll.u32 %v2112_v20, 8  ;;  %v2135_v57 = vor.u32 %v2134_v46, %v2133_v29  ;;  %v2144_v6 = vsel %vm2136_vm0, %v10032_v34, %v10034_v50 }
 0x183   :  { %v2145_v21 = vsel %vm2139_vm7, %v2132_v24, 920167782  ;;  %v2262_v19 = vshrl.u32 %v2261_v40, 23  ;;  %v3322_v48 = vmul.f32 %v3321_v31, %v9905_v62  ;;  %v1300_v4 = vcvt.s32.f32 %v9985_v53 }
 0x184   :  { %v2146_v9 = vsel %vm2138_vm13, %v10038_v58, %v2145_v21  ;;  %v2148_v52 = vsel %vm2136_vm0, %v10034_v50, %v10038_v58  ;;  %v1447_v0 = vor.u32 %v1446_v35, %v1445_v25  ;;  %v817_v36 = vadd.s32 536870912, %v10040_v12 }
 0x185   :  { %v2147_v32 = vsel %vm2137_vm6, %v2144_v6, %v2146_v9  ;;  %v2149_v31 = vsel %vm2139_vm7, %v2135_v57, 1326507024  ;;  %v1301_v53 = vmul.f32 %v1300_v4, %v1298_v59  ;;  %v1452_v2 = vand.u32 2147483647, %v1451_v37 }
 0x186   :  { %v2150_v56 = vsel %vm2138_vm13, %v2132_v24, %v2149_v31  ;;  %v2178_v16 = vshrl.u32 %v2147_v32, 16  ;;  %v8538_v55 = vadd.s32 4294967294, %v670_v14  ;;  %v2153_v7 = vand.u32 65535, %v10048_v61 }
 0x187   :  { %v2151_v25 = vsel %vm2137_vm6, %v2148_v52, %v2150_v56  ;;  %v8570_v20 = vadd.s32 4294967169, %v2262_v19  ;;  %vm1182_vm15 = vcmp.lt.s32.totalorder %v9319_v22, 0  ;;  %v2154_v17 = vshrl.u32 %v10048_v61, 16 }
 0x188   :  { %v2155_v29 = vand.u32 65535, %v2151_v25  ;;  %v2156_v40 = vshrl.u32 %v2151_v25, 16  ;;  %v2177_v23 = vand.u32 65535, %v2147_v32  ;;  %v1454_v59 = vcvt.s32.f32 %v1447_v0 }
 0x189   :  { %v10079_v35 = vshrl.u32 %v817_v36, 30  ;;  %v10081_v37 = vmul.u32 %v2178_v16, %v2153_v7  ;;  %v13645_v24 = vand.u32 2147483647, %v10019_v54  ;;  %v10086_v46 = vmul.f32 %v9970_v30, %v9658_v49 }
 0x18a   :  { %v1304_v14 = vsub.s32 4, %v9662_v28  ;;  %v2158_v57 = vmul.u32 %v2156_v40, %v2153_v7  ;;  %v10089_v6 = vmul.u32 %v2155_v29, %v2154_v17  ;;  %v3323_v21 = vadd.f32 1.0, %v3322_v48 }
 0x18b   :  { %13905 = vst [vmem:[#allocation32_spill] sm:$0xff] %v10086_v46  ;;  %v1302_v19 = vxor.u32 2147483648, %v1301_v53  ;;  %v10091_v4 = vmul.f32 %v1454_v59, %v1452_v2  ;;  %v2268_v9 = vadd.s32 1, %v8570_v20  ;;  %vm8539_vm8 = vcmp.lt.s32.totalorder %v8538_v55, 0 }
 0x18c   :  { %v2157_v52 = vmul.u32 %v2155_v29, %v2153_v7  ;;  %v2161_v0 = vshll.u32 %v2158_v57, 16  ;;  %v10093_v36 = vmul.u32 %v2177_v23, %v2154_v17  ;;  %v819_v32 = vshll.u32 %v10079_v35, 30 }
 0x18d   :  { %v2179_v31 = vmul.u32 %v2177_v23, %v2153_v7  ;;  %v2183_v49 = vshll.u32 %v10081_v37, 16  ;;  %v10099_v30 = vand.u32 8388607, %v13645_v24  ;;  %v2163_v48 = vshll.u32 %v10089_v6, 16 }
 0x18e   :  { %vm2165_vm11 = vc.u32 %v2157_v52, %v2161_v0  ;;  %v2167_v2 = vadd.s32 %v2161_v0, %v2157_v52  ;;  %v2182_v56 = vmul.u32 %v2178_v16, %v2154_v17  ;;  %v2160_v25 = vmul.u32 %v2156_v40, %v2154_v17 }
 0x18f   :  { %v2166_v20 = vsel %vm2165_vm11, 1, %v13900_v15  ;;  %vm2187_vm4 = vc.u32 %v2179_v31, %v2183_v49  ;;  %vm2269_vm9 = vcmp.gt.s32.totalorder %v2268_v9, 0  ;;  %v13647_v29 = vshll.u32 %v10093_v36, 16 }
 0x190   :  { %vm2169_vm14 = vc.u32 %v2167_v2, %v2163_v48  ;;  %v2188_v7 = vsel %vm2187_vm4, 1, %v13900_v15  ;;  %v10105_v23 = vadd.s32 %v2183_v49, %v2179_v31  ;;  %v10110_v59 = vsel %vm1182_vm15, %v1304_v14, %v9662_v28 }
 0x191   :  { %13906 = vst [vmem:[#allocation33_spill] sm:$0xff] %v10110_v59  ;;  %v10113_v52 = vsel %vm8539_vm8, 0, %v8538_v55  ;;  %v2168_v16 = vadd.s32 %v2166_v20, %v2160_v25  ;;  %v2190_v17 = vadd.s32 %v2188_v7, %v2182_v56  ;;  %v10116_v40 = vmul.f32 %v3323_v21, %v9862_v3 }
 0x192   :  { %v2170_v0 = vsel %vm2169_vm14, 1, %v13900_v15  ;;  %vm2191_vm12 = vc.u32 %v10105_v23, %v13647_v29  ;;  %v2270_v31 = vsel %vm2269_vm9, %v2268_v9, 0  ;;  %v10124_v49 = vsel %vm1182_vm15, %v1302_v19, %v1301_v53  ;;  %v10136_v53 = vpop.f32.mrf.mxu2 }
 0x193   :  { %13907 = vst [vmem:[#allocation34_spill] sm:$0xff] %v10116_v40  ;;  %v2192_v55 = vsel %vm2191_vm12, 1, %v13900_v15  ;;  %v2272_v14 = vand.u32 31, %v2270_v31  ;;  %v678_v3 = vsub.s32 4294967266, %v10113_v52  ;;  %v10131_v21 = vsub.s32 %v10040_v12, %v819_v32 }
 0x194   :  { %v2266_v2 = vor.u32 8388608, %v10099_v30  ;;  %v2162_v56 = vshrl.u32 %v2158_v57, 16  ;;  %v2172_v9 = vadd.s32 %v2170_v0, %v2168_v16  ;;  %v2194_v25 = vadd.s32 %v2192_v55, %v2190_v17  ;;  %13908 = vst [vmem:[#allocation35_spill] sm:$0xff] %v10136_v53 }
 0x195   :  { %v10134_v20 = vsub.s32 32, %v2272_v14  ;;  %v2184_v19 = vshrl.u32 %v10081_v37, 16  ;;  %v2275_v7 = vshll.u32 %v13903_v13, %v2272_v14  ;;  %v2278_v24 = vshll.u32 %v13890_v5, %v2272_v14 }
 0x196   :  { %v2281_v18 = vshll.u32 %v13891_v43, %v2272_v14  ;;  %v10142_v48 = vshrl.u32 %v2270_v31, 5  ;;  %v2284_v32 = vshll.u32 %v13892_v47, %v2272_v14  ;;  %vm821_vm2 = vcmp.lt.s32.totalorder %v10131_v21, 0 }
 0x197   :  { %v2276_v12 = vshrl.u32 %v13890_v5, %v10134_v20  ;;  %v2279_v57 = vshrl.u32 %v13891_v43, %v10134_v20  ;;  %v2120_v37 = vshrl.u32 %v13903_v13, %v10012_v38  ;;  %v2282_v30 = vshrl.u32 %v13892_v47, %v10134_v20 }
 0x198   :  { %v1491_v16 = vand.u32 2139095040, %v10136_v53  ;;  %v2141_v17 = vsel %vm2139_vm7, %v10038_v58, 2102212464  ;;  %v2173_v0 = vadd.s32 %v2172_v9, %v2162_v56  ;;  %v2195_v31 = vadd.s32 %v2194_v25, %v2184_v19 }
 0x199   :  { %v2285_v55 = vshrl.u32 %v13893_v41, %v10134_v20  ;;  %v10160_v28 = vor.u32 %v2276_v12, %v2275_v7  ;;  %v10162_v29 = vor.u32 %v2279_v57, %v2278_v24  ;;  %v10164_v40 = vor.u32 %v2282_v30, %v2281_v18 }
 0x19a   :  { %v2287_v38 = vshll.u32 %v13893_v41, %v2272_v14  ;;  %v13909_v60 = vand.u32 2147483647, %v9319_v22  ;;  %v13910_v59 = vmov 0  ;;  %v2186_v58 = vshrl.u32 %v10093_v36, 16 }
 0x19b   :  { %v2286_v56 = vor.u32 %v2285_v55, %v2284_v32  ;;  %v2288_v9 = vshrl.u32 %v13869_v45, %v10134_v20  ;;  %vm2290_vm1 = vcmp.lt.s32.totalorder %v10142_v48, 1  ;;  %vm1336_vm7 = vcmp.lt.s32.totalorder %v9503_v39, 0 }
 0x19c   :  { %vm10169_vm5 = vcmp.le.f32.partialorder %v13909_v60, 0.7853982  ;;  %v2164_v18 = vshrl.u32 %v10089_v6, 16  ;;  %vm2292_vm15 = vcmp.lt.s32.totalorder %v10142_v48, 3  ;;  %vm2293_vm8 = vcmp.lt.s32.totalorder %v10142_v48, 4 }
 0x19d   :  { %v13911_v59 = vsel %vm10169_vm5, 4294967295, %v13910_v59  ;;  %v10181_v60 = vshll.u32 %v2266_v2, 8  ;;  %v822_v24 = vsub.s32 0, %v10131_v21  ;;  %v2196_v14 = vadd.s32 %v2195_v31, %v2186_v58 }
 0x19e   :  { %13912 = vst [vmem:[#allocation36_spill] sm:$0xff] %v13911_v59  ;;  %v2289_v25 = vor.u32 %v2288_v9, %v2287_v38  ;;  %vm2291_vm11 = vcmp.lt.s32.totalorder %v10142_v48, 2  ;;  %v10185_v19 = vadd.s32 %v2173_v0, %v2164_v18  ;;  %v2298_v7 = vsel %vm2290_vm1, %v10160_v28, %v10162_v29 }
 0x19f   :  { %v2299_v6 = vsel %vm2293_vm8, %v2286_v56, 920167782  ;;  %v2302_v2 = vsel %vm2290_vm1, %v10162_v29, %v10164_v40  ;;  %v2140_v12 = vsel %vm2136_vm0, %v2120_v37, %v10032_v34  ;;  %v2142_v57 = vsel %vm2138_vm13, %v10034_v50, %v2141_v17 }
 0x1a0   :  { %v2300_v32 = vsel %vm2292_vm15, %v10164_v40, %v2299_v6  ;;  %v2303_v30 = vsel %vm2293_vm8, %v2289_v25, 1326507024  ;;  %v13913_v0 = vshll.u32 %v10093_v36, 16  ;;  %v2307_v50 = vand.u32 65535, %v10181_v60 }
 0x1a1   :  { %v2301_v55 = vsel %vm2291_vm11, %v2298_v7, %v2300_v32  ;;  %v2304_v34 = vsel %vm2292_vm15, %v2286_v56, %v2303_v30  ;;  %v2200_v37 = vadd.s32 1, %v2196_v14  ;;  %v679_v9 = vadd.s32 127, %v678_v3 }
 0x1a2   :  { %v10211_v31 = vadd.s32 %v10105_v23, %v13913_v0  ;;  %v2305_v17 = vsel %vm2291_vm11, %v2302_v2, %v2304_v34  ;;  %v2331_v38 = vand.u32 65535, %v2301_v55  ;;  %v2332_v58 = vshrl.u32 %v2301_v55, 16 }
 0x1a3   :  { %v2309_v36 = vand.u32 65535, %v2305_v17  ;;  %v2310_v23 = vshrl.u32 %v2305_v17, 16  ;;  %v13914_v18 = vand.u32 2147483647, %v9503_v39  ;;  %v13915_v25 = vmov 0 }
 0x1a4   :  { %vm2199_vm0 = vc.u32 %v10185_v19, %v10211_v31  ;;  %v823_v56 = vsel %vm821_vm2, %v822_v24, %v10131_v21  ;;  %v2143_v7 = vsel %vm2137_vm6, %v2140_v12, %v2142_v57  ;;  %v2308_v3 = vshrl.u32 %v10181_v60, 16 }
 0x1a5   :  { %vm10224_vm13 = vcmp.le.f32.partialorder %v13914_v18, 0.7853982  ;;  %v10234_v6 = vmul.u32 %v2332_v58, %v2307_v50  ;;  %v10240_v2 = vsel %vm10169_vm5, %v9319_v22, %v10124_v49  ;;  %v658_v32 = vadd.s32 %v9847_v1, %v9828_v44 }
 0x1a6   :  { %v13916_v25 = vsel %vm10224_vm13, 4294967295, %v13915_v25  ;;  %13918 = vst [vmem:[#allocation38_spill] sm:$0xff] %v10240_v2  ;;  %v10244_v30 = vmul.u32 %v2310_v23, %v2307_v50  ;;  %v1492_v0 = vshrl.u32 %v1491_v16, 23  ;;  %v13919_v11 = vxor.u32 2147483648, %v10091_v4 }
 0x1a7   :  { %13917 = vst [vmem:[#allocation37_spill] sm:$0xff] %v13916_v25  ;;  %v2201_v12 = vsel %vm2199_vm0, %v2200_v37, %v2196_v14  ;;  %v10251_v57 = vmul.u32 %v2309_v36, %v2308_v3  ;;  %v10253_v55 = vmul.u32 %v2331_v38, %v2308_v3  ;;  %v824_v34 = vclz %v823_v56 }
 0x1a8   :  { %v1457_v24 = vsel %vm1336_vm7, %v13919_v11, %v10091_v4  ;;  %v2197_v49 = vmul.u32 %v10048_v61, %v2143_v7  ;;  %v2311_v17 = vmul.u32 %v2309_v36, %v2307_v50  ;;  %v2315_v44 = vshll.u32 %v10244_v30, 16  ;;  %v13921_v36 = vld [vmem:[#allocation17_spill] sm:$0xff] }
 0x1a9   :  { %v13920_v1 = vsub.s32 32, %v10113_v52  ;;  %v680_v18 = vshll.u32 %v679_v9, 23  ;;  %v2333_v22 = vmul.u32 %v2331_v38, %v2307_v50  ;;  %v2337_v59 = vshll.u32 %v10234_v6, 16 }
 0x1aa   :  { %v10260_v26 = vadd.s32 %v2201_v12, %v2197_v49  ;;  %vm2319_vm6 = vc.u32 %v2311_v17, %v2315_v44  ;;  %v2321_v4 = vadd.s32 %v2315_v44, %v2311_v17  ;;  %v8555_v14 = vadd.s32 4294967169, %v1492_v0 }
 0x1ab   :  { %v676_v16 = vshrl.u32 %v658_v32, %v13920_v1  ;;  %v2317_v37 = vshll.u32 %v10251_v57, 16  ;;  %v2339_v56 = vshll.u32 %v10253_v55, 16  ;;  %vm2341_vm4 = vc.u32 %v2333_v22, %v2337_v59  ;;  %v13922_v32 = vld [vmem:[#allocation24_spill] sm:$0xff] }
 0x1ac   :  { %v10264_v61 = vadd.s32 %v2337_v59, %v2333_v22  ;;  %vm566_vm9 = vcmp.lt.s32.totalorder %v13921_v36, 0  ;;  %v8541_v7 = vadd.s32 4294967294, %v824_v34  ;;  %v2320_v9 = vsel %vm2319_vm6, 1, %v13900_v15 }
 0x1ad   :  { %v2336_v50 = vmul.u32 %v2332_v58, %v2308_v3  ;;  %v2342_v38 = vsel %vm2341_vm4, 1, %v13900_v15  ;;  %v1458_v11 = vsub.s32 4, %v13922_v32  ;;  %v2314_v12 = vmul.u32 %v2310_v23, %v2308_v3 }
 0x1ae   :  { %vm2323_vm14 = vc.u32 %v2321_v4, %v2317_v37  ;;  %vm2345_vm12 = vc.u32 %v10264_v61, %v2339_v56  ;;  %v10276_v22 = vsel %vm10224_vm13, %v9503_v39, %v1457_v24  ;;  %v675_v59 = vshll.u32 %v9976_v8, %v10113_v52 }
 0x1af   :  { %13923 = vst [vmem:[#allocation24_spill] sm:$0xff] %v10276_v22  ;;  %v681_v0 = vor.u32 4788187, %v680_v18  ;;  %v2344_v58 = vadd.s32 %v2342_v38, %v2336_v50  ;;  %v2203_v34 = vadd.s32 536870912, %v10260_v26  ;;  %v2322_v49 = vadd.s32 %v2320_v9, %v2314_v12 }
 0x1b0   :  { %v2346_v23 = vsel %vm2345_vm12, 1, %v13900_v15  ;;  %v1498_v3 = vadd.s32 1, %v8555_v14  ;;  %v677_v17 = vor.u32 %v676_v16, %v675_v59  ;;  %vm8542_vm2 = vcmp.lt.s32.totalorder %v8541_v7, 0 }
 0x1b1   :  { %v2324_v44 = vsel %vm2323_vm14, 1, %v13900_v15  ;;  %v13655_v1 = vand.u32 2147483647, %v10136_v53  ;;  %v10286_v24 = vmul.f32 %v10240_v2, %v10240_v2  ;;  %v10291_v8 = vsel %vm1336_vm7, %v1458_v11, %v13922_v32 }
 0x1b2   :  { %13925 = vst [vmem:[#allocation40_spill] sm:$0xff] %v10291_v8  ;;  %v688_v52 = vsub.s32 4, %v9942_v42  ;;  %vm1499_vm0 = vcmp.gt.s32.totalorder %v1498_v3, 0  ;;  %v10296_v16 = vmul.f32 %v10276_v22, %v10276_v22  ;;  %v682_v18 = vand.u32 2147483647, %v681_v0 }
 0x1b3   :  { %13924 = vst [vmem:[#allocation39_spill] sm:$0xff] %v10286_v24  ;;  %v2274_v4 = vshrl.u32 %v13903_v13, %v10134_v20  ;;  %v2348_v14 = vadd.s32 %v2346_v23, %v2344_v58  ;;  %v10300_v37 = vsel %vm8542_vm2, 0, %v8541_v7  ;;  %v10302_v9 = vshrl.u32 %v2203_v34, 30 }
 0x1b4   :  { %13926 = vst [vmem:[#allocation41_spill] sm:$0xff] %v10296_v16  ;;  %v2326_v50 = vadd.s32 %v2324_v44, %v2322_v49  ;;  %v1500_v38 = vsel %vm1499_vm0, %v1498_v3, 0  ;;  %v684_v32 = vcvt.s32.f32 %v677_v17  ;;  %v2295_v11 = vsel %vm2293_vm8, %v10164_v40, 2102212464 }
 0x1b5   :  { %v2338_v12 = vshrl.u32 %v10234_v6, 16  ;;  %v1495_v59 = vand.u32 8388607, %v13655_v1  ;;  %v10313_v20 = vsel %vm566_vm9, %v688_v52, %v9942_v42  ;;  %v812_v7 = vadd.s32 %v10002_v63, %v9995_v51 }
 0x1b6   :  { %13927 = vst [vmem:[#allocation42_spill] sm:$0xff] %v10313_v20  ;;  %v2316_v0 = vshrl.u32 %v10244_v30, 16  ;;  %v1502_v58 = vand.u32 31, %v1500_v38  ;;  %v10318_v34 = vmul.f32 %v684_v32, %v682_v18  ;;  %v832_v40 = vsub.s32 4294967266, %v10300_v37 }
 0x1b7   :  { %v2294_v6 = vsel %vm2290_vm1, %v2274_v4, %v10160_v28  ;;  %v2349_v49 = vadd.s32 %v2348_v14, %v2338_v12  ;;  %v2205_v23 = vshll.u32 %v10302_v9, 30  ;;  %v2296_v42 = vsel %vm2292_vm15, %v10162_v29, %v2295_v11 }
 0x1b8   :  { %v2327_v3 = vadd.s32 %v2326_v50, %v2316_v0  ;;  %v10328_v51 = vsub.s32 32, %v1502_v58  ;;  %v2318_v63 = vshrl.u32 %v10251_v57, 16  ;;  %v2340_v30 = vshrl.u32 %v10253_v55, 16  ;;  %v10352_v0 = vpop.f32.mrf.mxu3 }
 0x1b9   :  { %v1496_v17 = vor.u32 8388608, %v1495_v59  ;;  %v1505_v44 = vshll.u32 %v13903_v13, %v1502_v58  ;;  %v1508_v52 = vshll.u32 %v13890_v5, %v1502_v58  ;;  %v10340_v14 = vshrl.u32 %v1500_v38, 5  ;;  %13928 = vst [vmem:[#allocation43_spill] sm:$0xff] %v10352_v0 }
 0x1ba   :  { %v1506_v28 = vshrl.u32 %v13890_v5, %v10328_v51  ;;  %v1509_v18 = vshrl.u32 %v13891_v43, %v10328_v51  ;;  %v1512_v29 = vshrl.u32 %v13892_v47, %v10328_v51  ;;  %v2350_v4 = vadd.s32 %v2349_v49, %v2340_v30 }
 0x1bb   :  { %v1514_v57 = vshll.u32 %v13892_v47, %v1502_v58  ;;  %v1515_v50 = vshrl.u32 %v13893_v41, %v10328_v51  ;;  %v10345_v32 = vadd.s32 %v2327_v3, %v2318_v63  ;;  %v1511_v59 = vshll.u32 %v13891_v43, %v1502_v58 }
 0x1bc   :  { %v10347_v11 = vor.u32 %v1506_v28, %v1505_v44  ;;  %v10349_v12 = vor.u32 %v1509_v18, %v1508_v52  ;;  %v10355_v1 = vsub.s32 %v10260_v26, %v2205_v23  ;;  %v2297_v38 = vsel %vm2291_vm11, %v2294_v6, %v2296_v42 }
 0x1bd   :  { %v1516_v49 = vor.u32 %v1515_v50, %v1514_v57  ;;  %v1518_v30 = vshrl.u32 %v13869_v45, %v10328_v51  ;;  %v10364_v3 = vadd.s32 %v10264_v61, %v2339_v56  ;;  %v1513_v63 = vor.u32 %v1512_v29, %v1511_v59 }
 0x1be   :  { %v1517_v44 = vshll.u32 %v13893_v41, %v1502_v58  ;;  %v10367_v28 = vshll.u32 %v1496_v17, 8  ;;  %v2354_v52 = vadd.s32 1, %v2350_v4  ;;  %vm1520_vm1 = vcmp.lt.s32.totalorder %v10340_v14, 1 }
 0x1bf   :  { %vm1523_vm7 = vcmp.lt.s32.totalorder %v10340_v14, 4  ;;  %v1645_v26 = vand.u32 2139095040, %v10352_v0  ;;  %vm2353_vm15 = vc.u32 %v10345_v32, %v10364_v3  ;;  %v1528_v55 = vsel %vm1520_vm1, %v10347_v11, %v10349_v12 }
 0x1c0   :  { %v1519_v48 = vor.u32 %v1518_v30, %v1517_v44  ;;  %v1529_v56 = vsel %vm1523_vm7, %v1516_v49, 920167782  ;;  %v828_v61 = vsub.s32 32, %v10300_v37  ;;  %v833_v58 = vadd.s32 127, %v832_v40 }
 0x1c1   :  { %v2351_v6 = vmul.u32 %v10181_v60, %v2297_v38  ;;  %vm1522_vm8 = vcmp.lt.s32.totalorder %v10340_v14, 3  ;;  %vm2207_vm11 = vcmp.lt.s32.totalorder %v10355_v1, 0  ;;  %v2208_v23 = vsub.s32 0, %v10355_v1 }
 0x1c2   :  { %vm1521_vm6 = vcmp.lt.s32.totalorder %v10340_v14, 2  ;;  %v1530_v42 = vsel %vm1522_vm8, %v1513_v63, %v1529_v56  ;;  %v2355_v17 = vsel %vm2353_vm15, %v2354_v52, %v2350_v4  ;;  %v1532_v40 = vsel %vm1520_vm1, %v10349_v12, %v1513_v63 }
 0x1c3   :  { %v1531_v18 = vsel %vm1521_vm6, %v1528_v55, %v1530_v42  ;;  %v1537_v60 = vand.u32 65535, %v10367_v28  ;;  %v1533_v29 = vsel %vm1523_vm7, %v1519_v48, 1326507024  ;;  %v1646_v59 = vshrl.u32 %v1645_v26, 23 }
 0x1c4   :  { %v1561_v57 = vand.u32 65535, %v1531_v18  ;;  %v1562_v50 = vshrl.u32 %v1531_v18, 16  ;;  %v830_v30 = vshrl.u32 %v812_v7, %v828_v61  ;;  %v834_v44 = vshll.u32 %v833_v58, 23 }
 0x1c5   :  { %v1534_v4 = vsel %vm1522_vm8, %v1516_v49, %v1533_v29  ;;  %v10399_v52 = vadd.s32 %v2355_v17, %v2351_v6  ;;  %v1538_v56 = vshrl.u32 %v10367_v28, 16  ;;  %v829_v48 = vshll.u32 %v10131_v21, %v10300_v37 }
 0x1c6   :  { %v1535_v55 = vsel %vm1521_vm6, %v1532_v40, %v1534_v4  ;;  %v1564_v42 = vmul.u32 %v1562_v50, %v1537_v60  ;;  %v2209_v26 = vsel %vm2207_vm11, %v2208_v23, %v10355_v1  ;;  %v1563_v58 = vmul.u32 %v1561_v57, %v1537_v60 }
 0x1c7   :  { %v1539_v7 = vand.u32 65535, %v1535_v55  ;;  %v1540_v61 = vshrl.u32 %v1535_v55, 16  ;;  %v1565_v18 = vmul.u32 %v1561_v57, %v1538_v56  ;;  %v8558_v6 = vadd.s32 4294967169, %v1646_v59 }
 0x1c8   :  { %v1567_v49 = vshll.u32 %v1564_v42, 16  ;;  %v10409_v17 = vor.u32 %v830_v30, %v829_v48  ;;  %v10411_v29 = vor.u32 4788187, %v834_v44  ;;  %v2210_v38 = vclz %v2209_v26 }
 0x1c9   :  { %v1542_v40 = vmul.u32 %v1540_v61, %v1537_v60  ;;  %v1543_v4 = vmul.u32 %v1539_v7, %v1538_v56  ;;  %v2357_v20 = vadd.s32 536870912, %v10399_v52  ;;  %v1504_v21 = vshrl.u32 %v13903_v13, %v10328_v51 }
 0x1ca   :  { %vm1571_vm4 = vc.u32 %v1563_v58, %v1567_v49  ;;  %v1525_v37 = vsel %vm1523_vm7, %v1513_v63, 2102212464  ;;  %v1541_v23 = vmul.u32 %v1539_v7, %v1537_v60  ;;  %v1566_v55 = vmul.u32 %v1562_v50, %v1538_v56 }
 0x1cb   :  { %v1545_v57 = vshll.u32 %v1542_v40, 16  ;;  %v1544_v59 = vmul.u32 %v1540_v61, %v1538_v56  ;;  %v1547_v30 = vshll.u32 %v1543_v4, 16  ;;  %v1569_v48 = vshll.u32 %v1565_v18, 16 }
 0x1cc   :  { %v1652_v44 = vadd.s32 1, %v8558_v6  ;;  %v1572_v26 = vsel %vm1571_vm4, 1, %v13900_v15  ;;  %v1573_v39 = vadd.s32 %v1567_v49, %v1563_v58  ;;  %v1524_v51 = vsel %vm1520_vm1, %v1504_v21, %v10347_v11 }
 0x1cd   :  { %vm1549_vm14 = vc.u32 %v1541_v23, %v1545_v57  ;;  %v1551_v22 = vadd.s32 %v1545_v57, %v1541_v23  ;;  %v1574_v16 = vadd.s32 %v1572_v26, %v1566_v55  ;;  %v13661_v63 = vand.u32 2147483647, %v10352_v0 }
 0x1ce   :  { %v1550_v2 = vsel %vm1549_vm14, 1, %v13900_v15  ;;  %v1526_v60 = vsel %vm1522_vm8, %v10349_v12, %v1525_v37  ;;  %vm1575_vm2 = vc.u32 %v1573_v39, %v1569_v48  ;;  %v10427_v56 = vshrl.u32 %v2357_v20, 30 }
 0x1cf   :  { %v1552_v50 = vadd.s32 %v1550_v2, %v1544_v59  ;;  %vm1553_vm12 = vc.u32 %v1551_v22, %v1547_v30  ;;  %v1568_v61 = vshrl.u32 %v1564_v42, 16  ;;  %v1576_v58 = vsel %vm1575_vm2, 1, %v13900_v15 }
 0x1d0   :  { %v1554_v7 = vsel %vm1553_vm12, 1, %v13900_v15  ;;  %v1546_v11 = vshrl.u32 %v1542_v40, 16  ;;  %v1578_v6 = vadd.s32 %v1576_v58, %v1574_v16  ;;  %vm1653_vm0 = vcmp.gt.s32.totalorder %v1652_v44, 0 }
 0x1d1   :  { %v1556_v49 = vadd.s32 %v1554_v7, %v1552_v50  ;;  %v1527_v21 = vsel %vm1521_vm6, %v1524_v51, %v1526_v60  ;;  %v1570_v23 = vshrl.u32 %v1565_v18, 16  ;;  %v1649_v2 = vand.u32 8388607, %v13661_v63 }
 0x1d2   :  { %v1654_v22 = vsel %vm1653_vm0, %v1652_v44, 0  ;;  %v1548_v12 = vshrl.u32 %v1543_v4, 16  ;;  %v1579_v37 = vadd.s32 %v1578_v6, %v1568_v61  ;;  %v836_v42 = vand.u32 2147483647, %v10411_v29 }
 0x1d3   :  { %v1557_v20 = vadd.s32 %v1556_v49, %v1546_v11  ;;  %v1656_v57 = vand.u32 31, %v1654_v22  ;;  %v838_v55 = vcvt.s32.f32 %v10409_v17  ;;  %v8568_v40 = vadd.s32 4294967294, %v2210_v38 }
 0x1d4   :  { %v2359_v16 = vshll.u32 %v10427_v56, 30  ;;  %v13929_v59 = vand.u32 2147483647, %v13921_v36  ;;  %v13930_v14 = vmov 0  ;;  %v10446_v30 = vadd.s32 %v1573_v39, %v1569_v48 }
 0x1d5   :  { %v10444_v18 = vadd.s32 %v1557_v20, %v1548_v12  ;;  %v1580_v4 = vadd.s32 %v1579_v37, %v1570_v23  ;;  %v10448_v44 = vsub.s32 32, %v1656_v57  ;;  %v1581_v29 = vmul.u32 %v10367_v28, %v1527_v21 }
 0x1d6   :  { %vm10440_vm1 = vcmp.le.f32.partialorder %v13929_v59, 0.7853982  ;;  %v1650_v26 = vor.u32 8388608, %v1649_v2  ;;  %v10451_v17 = vshrl.u32 %v1654_v22, 5  ;;  %v1659_v38 = vshll.u32 %v13903_v13, %v1656_v57 }
 0x1d7   :  { %v13931_v14 = vsel %vm10440_vm1, 4294967295, %v13930_v14  ;;  %vm1583_vm7 = vc.u32 %v10444_v18, %v10446_v30  ;;  %v1584_v51 = vadd.s32 1, %v1580_v4  ;;  %v1662_v60 = vshll.u32 %v13890_v5, %v1656_v57 }
 0x1d8   :  { %13932 = vst [vmem:[#allocation44_spill] sm:$0xff] %v13931_v14  ;;  %v1665_v50 = vshll.u32 %v13891_v43, %v1656_v57  ;;  %v1660_v39 = vshrl.u32 %v13890_v5, %v10448_v44  ;;  %v1663_v48 = vshrl.u32 %v13891_v43, %v10448_v44  ;;  %v1666_v28 = vshrl.u32 %v13892_v47, %v10448_v44 }
 0x1d9   :  { %v1668_v7 = vshll.u32 %v13892_v47, %v1656_v57  ;;  %v1585_v61 = vsel %vm1583_vm7, %v1584_v51, %v1580_v4  ;;  %v1669_v58 = vshrl.u32 %v13893_v41, %v10448_v44  ;;  %v1671_v11 = vshll.u32 %v13893_v41, %v1656_v57 }
 0x1da   :  { %v1672_v49 = vshrl.u32 %v13869_v45, %v10448_v44  ;;  %vm8569_vm15 = vcmp.lt.s32.totalorder %v8568_v40, 0  ;;  %v10470_v6 = vadd.s32 %v1585_v61, %v1581_v29  ;;  %v10472_v21 = vor.u32 %v1660_v39, %v1659_v38 }
 0x1db   :  { %v10474_v23 = vor.u32 %v1663_v48, %v1662_v60  ;;  %v13933_v2 = vxor.u32 2147483648, %v10318_v34  ;;  %v1667_v12 = vor.u32 %v1666_v28, %v1665_v50  ;;  %v1670_v20 = vor.u32 %v1669_v58, %v1668_v7  ;;  %v10519_v48 = vpop.f32.mrf.mxu0 }
 0x1dc   :  { %v1673_v37 = vor.u32 %v1672_v49, %v1671_v11  ;;  %v10481_v57 = vmul.f32 %v838_v55, %v836_v42  ;;  %v10485_v4 = vsub.s32 %v10399_v52, %v2359_v16  ;;  %vm1674_vm8 = vcmp.lt.s32.totalorder %v10451_v17, 1  ;;  %13935 = vst [vmem:[#allocation46_spill] sm:$0xff] %v10519_v48 }
 0x1dd   :  { %v687_v22 = vsel %vm566_vm9, %v13933_v2, %v10318_v34  ;;  %v10488_v29 = vsel %vm8569_vm15, 0, %v8568_v40  ;;  %vm1677_vm11 = vcmp.lt.s32.totalorder %v10451_v17, 4  ;;  %v1682_v34 = vsel %vm1674_vm8, %v10472_v21, %v10474_v23 }
 0x1de   :  { %v10495_v38 = vshll.u32 %v1650_v26, 8  ;;  %v10500_v42 = vsel %vm10440_vm1, %v13921_v36, %v687_v22  ;;  %v1587_v52 = vadd.s32 536870912, %v10470_v6  ;;  %vm1676_vm9 = vcmp.lt.s32.totalorder %v10451_v17, 3 }
 0x1df   :  { %13934 = vst [vmem:[#allocation45_spill] sm:$0xff] %v10500_v42  ;;  %v1683_v55 = vsel %vm1677_vm11, %v1670_v20, 920167782  ;;  %vm1675_vm6 = vcmp.lt.s32.totalorder %v10451_v17, 2  ;;  %v1686_v16 = vsel %vm1674_vm8, %v10474_v23, %v1667_v12  ;;  %v1687_v26 = vsel %vm1677_vm11, %v1673_v37, 1326507024 }
 0x1e0   :  { %v1684_v40 = vsel %vm1676_vm9, %v1667_v12, %v1683_v55  ;;  %v2218_v60 = vsub.s32 4294967266, %v10488_v29  ;;  %v2362_v50 = vsub.s32 0, %v10485_v4  ;;  %v1688_v28 = vsel %vm1676_vm9, %v1670_v20, %v1687_v26 }
 0x1e1   :  { %v1685_v39 = vsel %vm1675_vm6, %v1682_v34, %v1684_v40  ;;  %v1691_v7 = vand.u32 65535, %v10495_v38  ;;  %vm2361_vm4 = vcmp.lt.s32.totalorder %v10485_v4, 0  ;;  %v10525_v11 = vshrl.u32 %v1587_v52, 30 }
 0x1e2   :  { %v1715_v61 = vand.u32 65535, %v1685_v39  ;;  %v1716_v58 = vshrl.u32 %v1685_v39, 16  ;;  %v1689_v49 = vsel %vm1675_vm6, %v1686_v16, %v1688_v28  ;;  %v1692_v2 = vshrl.u32 %v10495_v38, 16 }
 0x1e3   :  { %v1693_v22 = vand.u32 65535, %v1689_v49  ;;  %v1694_v37 = vshrl.u32 %v1689_v49, 16  ;;  %v875_v55 = vand.u32 2139095040, %v10519_v48  ;;  %v2198_v20 = vadd.s32 %v10211_v31, %v10185_v19 }
 0x1e4   :  { %v1718_v34 = vmul.u32 %v1716_v58, %v1691_v7  ;;  %v2214_v40 = vsub.s32 32, %v10488_v29  ;;  %v1719_v52 = vmul.u32 %v1715_v61, %v1692_v2  ;;  %v10536_v39 = vadd.s32 127, %v2218_v60 }
 0x1e5   :  { %v2363_v16 = vsel %vm2361_vm4, %v2362_v50, %v10485_v4  ;;  %v1696_v28 = vmul.u32 %v1694_v37, %v1691_v7  ;;  %v1697_v63 = vmul.u32 %v1693_v22, %v1692_v2  ;;  %v1589_v49 = vshll.u32 %v10525_v11, 30 }
 0x1e6   :  { %v1658_v59 = vshrl.u32 %v13903_v13, %v10448_v44  ;;  %v1717_v51 = vmul.u32 %v1715_v61, %v1691_v7  ;;  %v1721_v36 = vshll.u32 %v1718_v34, 16  ;;  %v1695_v19 = vmul.u32 %v1693_v22, %v1691_v7 }
 0x1e7   :  { %v1699_v31 = vshll.u32 %v1696_v28, 16  ;;  %v1720_v14 = vmul.u32 %v1716_v58, %v1692_v2  ;;  %v876_v24 = vshrl.u32 %v875_v55, 23  ;;  %v1698_v25 = vmul.u32 %v1694_v37, %v1692_v2 }
 0x1e8   :  { %v1723_v26 = vshll.u32 %v1719_v52, 16  ;;  %vm1725_vm14 = vc.u32 %v1717_v51, %v1721_v36  ;;  %v1727_v60 = vadd.s32 %v1721_v36, %v1717_v51  ;;  %v1701_v8 = vshll.u32 %v1697_v63, 16 }
 0x1e9   :  { %vm1703_vm12 = vc.u32 %v1695_v19, %v1699_v31  ;;  %v1705_v50 = vadd.s32 %v1699_v31, %v1695_v19  ;;  %v1726_v46 = vsel %vm1725_vm14, 1, %v13900_v15  ;;  %v1679_v62 = vsel %vm1677_vm11, %v1667_v12, 2102212464 }
 0x1ea   :  { %v1704_v44 = vsel %vm1703_vm12, 1, %v13900_v15  ;;  %v1728_v61 = vadd.s32 %v1726_v46, %v1720_v14  ;;  %vm1729_vm2 = vc.u32 %v1727_v60, %v1723_v26  ;;  %v10547_v7 = vsub.s32 %v10470_v6, %v1589_v49 }
 0x1eb   :  { %v1706_v58 = vadd.s32 %v1704_v44, %v1698_v25  ;;  %vm1707_vm0 = vc.u32 %v1705_v50, %v1701_v8  ;;  %v1730_v2 = vsel %vm1729_vm2, 1, %v13900_v15  ;;  %v1722_v51 = vshrl.u32 %v1718_v34, 16  ;;  %v13936_v50 = vld [vmem:[#allocation20_spill] sm:$0xff] }
 0x1ec   :  { %v1708_v36 = vsel %vm1707_vm0, 1, %v13900_v15  ;;  %v1732_v22 = vadd.s32 %v1730_v2, %v1728_v61  ;;  %v8543_v37 = vadd.s32 4294967169, %v876_v24  ;;  %v1678_v12 = vsel %vm1674_vm8, %v1658_v59, %v10472_v21 }
 0x1ed   :  { %v1680_v46 = vsel %vm1676_vm9, %v10474_v23, %v1679_v62  ;;  %v1700_v14 = vshrl.u32 %v1696_v28, 16  ;;  %v1710_v6 = vadd.s32 %v1708_v36, %v1706_v58  ;;  %v2364_v55 = vclz %v2363_v16 }
 0x1ee   :  { %v1724_v25 = vshrl.u32 %v1719_v52, 16  ;;  %v1733_v8 = vadd.s32 %v1732_v22, %v1722_v51  ;;  %v882_v49 = vadd.s32 1, %v8543_v37  ;;  %v1592_v19 = vsub.s32 0, %v10547_v7 }
 0x1ef   :  { %v1702_v31 = vshrl.u32 %v1697_v63, 16  ;;  %v1711_v34 = vadd.s32 %v1710_v6, %v1700_v14  ;;  %v13669_v24 = vand.u32 2147483647, %v10519_v48  ;;  %vm720_vm7 = vcmp.lt.s32.totalorder %v13936_v50, 0 }
 0x1f0   :  { %vm1591_vm15 = vcmp.lt.s32.totalorder %v10547_v7, 0  ;;  %v1681_v21 = vsel %vm1675_vm6, %v1678_v12, %v1680_v46  ;;  %v1734_v62 = vadd.s32 %v1733_v8, %v1724_v25  ;;  %vm883_vm8 = vcmp.gt.s32.totalorder %v882_v49, 0 }
 0x1f1   :  { %v2220_v23 = vshll.u32 %v10536_v39, 23  ;;  %v10564_v59 = vadd.s32 %v1711_v34, %v1702_v31  ;;  %v10566_v52 = vadd.s32 %v1727_v60, %v1723_v26  ;;  %v884_v16 = vsel %vm883_vm8, %v882_v49, 0 }
 0x1f2   :  { %v2216_v63 = vshrl.u32 %v2198_v20, %v2214_v40  ;;  %v8571_v28 = vadd.s32 4294967294, %v2364_v55  ;;  %v1738_v44 = vadd.s32 1, %v1734_v62  ;;  %v886_v61 = vand.u32 31, %v884_v16 }
 0x1f3   :  { %v1593_v58 = vsel %vm1591_vm15, %v1592_v19, %v10547_v7  ;;  %v1735_v2 = vmul.u32 %v10495_v38, %v1681_v21  ;;  %vm1737_vm11 = vc.u32 %v10564_v59, %v10566_v52  ;;  %v879_v17 = vand.u32 8388607, %v13669_v24  ;;  %v10689_v24 = vpop.f32.mrf.mxu1 }
 0x1f4   :  { %v13937_v39 = vand.u32 2147483647, %v13936_v50  ;;  %v13938_v26 = vmov 0  ;;  %v1739_v20 = vsel %vm1737_vm11, %v1738_v44, %v1734_v62  ;;  %v10580_v40 = vsub.s32 32, %v886_v61  ;;  %13949 = vst [vmem:[#allocation53_spill] sm:$0xff] %v10689_v24 }
 0x1f5   :  { %v889_v60 = vshll.u32 %v13903_v13, %v886_v61  ;;  %v892_v36 = vshll.u32 %v13890_v5, %v886_v61  ;;  %v2221_v38 = vor.u32 4788187, %v2220_v23  ;;  %v10584_v51 = vadd.s32 %v1739_v20, %v1735_v2 }
 0x1f6   :  { %vm10576_vm9 = vcmp.le.f32.partialorder %v13937_v39, 0.7853982  ;;  %v10586_v22 = vshrl.u32 %v884_v16, 5  ;;  %v898_v37 = vshll.u32 %v13892_v47, %v886_v61  ;;  %v890_v12 = vshrl.u32 %v13890_v5, %v10580_v40 }
 0x1f7   :  { %v13939_v26 = vsel %vm10576_vm9, 4294967295, %v13938_v26  ;;  %v893_v46 = vshrl.u32 %v13891_v43, %v10580_v40  ;;  %v895_v14 = vshll.u32 %v13891_v43, %v886_v61  ;;  %v896_v6 = vshrl.u32 %v13892_v47, %v10580_v40 }
 0x1f8   :  { %13940 = vst [vmem:[#allocation47_spill] sm:$0xff] %v13939_v26  ;;  %vm8572_vm6 = vcmp.lt.s32.totalorder %v8571_v28, 0  ;;  %v1594_v55 = vclz %v1593_v58  ;;  %v899_v25 = vshrl.u32 %v13893_v41, %v10580_v40  ;;  %v901_v8 = vshll.u32 %v13893_v41, %v886_v61 }
 0x1f9   :  { %v880_v49 = vor.u32 8388608, %v879_v17  ;;  %v10599_v19 = vor.u32 %v890_v12, %v889_v60  ;;  %v10601_v31 = vor.u32 %v893_v46, %v892_v36  ;;  %v902_v34 = vshrl.u32 %v13869_v45, %v10580_v40 }
 0x1fa   :  { %v13941_v21 = vxor.u32 2147483648, %v10481_v57  ;;  %vm2106_vm4 = vcmp.lt.s32.totalorder %v9944_v27, 0  ;;  %v13942_v23 = vshll.u32 %v10355_v1, %v10488_v29  ;;  %v900_v44 = vor.u32 %v899_v25, %v898_v37 }
 0x1fb   :  { %vm904_vm14 = vcmp.lt.s32.totalorder %v10586_v22, 1  ;;  %v1741_v61 = vadd.s32 536870912, %v10584_v51  ;;  %v10616_v58 = vor.u32 %v896_v6, %v895_v14  ;;  %v903_v2 = vor.u32 %v902_v34, %v901_v8 }
 0x1fc   :  { %v841_v62 = vsel %vm720_vm7, %v13941_v21, %v10481_v57  ;;  %v2217_v16 = vor.u32 %v2216_v63, %v13942_v23  ;;  %vm907_vm12 = vcmp.lt.s32.totalorder %v10586_v22, 4  ;;  %v2222_v17 = vand.u32 2147483647, %v2221_v38 }
 0x1fd   :  { %v10620_v39 = vsel %vm8572_vm6, 0, %v8571_v28  ;;  %v8556_v57 = vadd.s32 4294967294, %v1594_v55  ;;  %vm906_vm2 = vcmp.lt.s32.totalorder %v10586_v22, 3  ;;  %vm905_vm0 = vcmp.lt.s32.totalorder %v10586_v22, 2 }
 0x1fe   :  { %v912_v1 = vsel %vm904_vm14, %v10599_v19, %v10601_v31  ;;  %v913_v29 = vsel %vm907_vm12, %v900_v44, 920167782  ;;  %v10630_v63 = vshll.u32 %v880_v49, 8  ;;  %v10634_v20 = vmul.f32 %v10500_v42, %v10500_v42 }
 0x1ff   :  { %v10639_v28 = vsel %vm10576_vm9, %v13936_v50, %v841_v62  ;;  %v2224_v60 = vcvt.s32.f32 %v2217_v16  ;;  %v2228_v36 = vsub.s32 4, %v10302_v9  ;;  %v10642_v38 = vshrl.u32 %v1741_v61, 30 }
 0x200   :  { %13943 = vst [vmem:[#allocation48_spill] sm:$0xff] %v10634_v20  ;;  %v914_v37 = vsel %vm906_vm2, %v10616_v58, %v913_v29  ;;  %v916_v12 = vsel %vm904_vm14, %v10601_v31, %v10616_v58  ;;  %v917_v46 = vsel %vm907_vm12, %v903_v2, 1326507024  ;;  %v2372_v6 = vsub.s32 4294967266, %v10620_v39 }
 0x201   :  { %13944 = vst [vmem:[#allocation49_spill] sm:$0xff] %v10639_v28  ;;  %v2225_v14 = vmul.f32 %v2224_v60, %v2222_v17  ;;  %v915_v55 = vsel %vm905_vm0, %v912_v1, %v914_v37  ;;  %v918_v25 = vsel %vm906_vm2, %v900_v44, %v917_v46  ;;  %vm8557_vm15 = vcmp.lt.s32.totalorder %v8556_v57, 0 }
 0x202   :  { %v919_v8 = vsel %vm905_vm0, %v916_v12, %v918_v25  ;;  %v921_v49 = vand.u32 65535, %v10630_v63  ;;  %v945_v34 = vand.u32 65535, %v915_v55  ;;  %v922_v21 = vshrl.u32 %v10630_v63, 16 }
 0x203   :  { %v923_v62 = vand.u32 65535, %v919_v8  ;;  %v924_v23 = vshrl.u32 %v919_v8, 16  ;;  %v946_v16 = vshrl.u32 %v915_v55, 16  ;;  %v13945_v61 = vsub.s32 4, %v10079_v35 }
 0x204   :  { %v10671_v44 = vmul.f32 %v10639_v28, %v10639_v28  ;;  %v10676_v17 = vsel %vm2106_vm4, %v2228_v36, %v10302_v9  ;;  %v1743_v1 = vshll.u32 %v10642_v38, 30  ;;  %v2352_v29 = vadd.s32 %v10364_v3, %v10345_v32 }
 0x205   :  { %v10667_v2 = vsel %vm720_vm7, %v13945_v61, %v10079_v35  ;;  %13948 = vst [vmem:[#allocation52_spill] sm:$0xff] %v10676_v17  ;;  %v10681_v60 = vsel %vm8557_vm15, 0, %v8556_v57  ;;  %v926_v37 = vmul.u32 %v924_v23, %v921_v49  ;;  %v10683_v12 = vmul.u32 %v923_v62, %v922_v21 }
 0x206   :  { %13946 = vst [vmem:[#allocation50_spill] sm:$0xff] %v10667_v2  ;;  %v2226_v35 = vxor.u32 2147483648, %v2225_v14  ;;  %v948_v55 = vmul.u32 %v946_v16, %v921_v49  ;;  %v10686_v25 = vmul.u32 %v945_v34, %v922_v21  ;;  %v2368_v8 = vsub.s32 32, %v10620_v39 }
 0x207   :  { %13947 = vst [vmem:[#allocation51_spill] sm:$0xff] %v10671_v44  ;;  %v2373_v9 = vadd.s32 127, %v2372_v6  ;;  %v925_v36 = vmul.u32 %v923_v62, %v921_v49  ;;  %v929_v61 = vshll.u32 %v926_v37, 16  ;;  %v1602_v32 = vsub.s32 4294967266, %v10681_v60 }
 0x208   :  { %v10693_v3 = vsub.s32 %v10584_v51, %v1743_v1  ;;  %v947_v57 = vmul.u32 %v945_v34, %v921_v49  ;;  %v951_v50 = vshll.u32 %v948_v55, 16  ;;  %v928_v28 = vmul.u32 %v924_v23, %v922_v21 }
 0x209   :  { %v931_v46 = vshll.u32 %v10683_v12, 16  ;;  %vm933_vm7 = vc.u32 %v925_v36, %v929_v61  ;;  %v935_v42 = vadd.s32 %v929_v61, %v925_v36  ;;  %v950_v2 = vmul.u32 %v946_v16, %v922_v21 }
 0x20a   :  { %v934_v26 = vsel %vm933_vm7, 1, %v13900_v15  ;;  %v953_v6 = vshll.u32 %v10686_v25, 16  ;;  %v1029_v62 = vand.u32 2139095040, %v10689_v24  ;;  %vm955_vm11 = vc.u32 %v947_v57, %v951_v50 }
 0x20b   :  { %v936_v44 = vadd.s32 %v934_v26, %v928_v28  ;;  %vm937_vm8 = vc.u32 %v935_v42, %v931_v46  ;;  %v957_v20 = vadd.s32 %v951_v50, %v947_v57  ;;  %v2369_v51 = vshll.u32 %v10485_v4, %v10620_v39 }
 0x20c   :  { %v2370_v49 = vshrl.u32 %v2352_v29, %v2368_v8  ;;  %v938_v34 = vsel %vm937_vm8, 1, %v13900_v15  ;;  %v956_v23 = vsel %vm955_vm11, 1, %v13900_v15  ;;  %v2374_v1 = vshll.u32 %v2373_v9, 23 }
 0x20d   :  { %v1598_v36 = vsub.s32 32, %v10681_v60  ;;  %v958_v21 = vadd.s32 %v956_v23, %v950_v2  ;;  %vm959_vm6 = vc.u32 %v957_v20, %v953_v6  ;;  %v1746_v16 = vsub.s32 0, %v10693_v3 }
 0x20e   :  { %v940_v61 = vadd.s32 %v938_v34, %v936_v44  ;;  %v960_v42 = vsel %vm959_vm6, 1, %v13900_v15  ;;  %v1030_v26 = vshrl.u32 %v1029_v62, 23  ;;  %v1603_v50 = vadd.s32 127, %v1602_v32 }
 0x20f   :  { %vm1745_vm15 = vcmp.lt.s32.totalorder %v10693_v3, 0  ;;  %v888_v4 = vshrl.u32 %v13903_v13, %v10580_v40  ;;  %v962_v39 = vadd.s32 %v960_v42, %v958_v21  ;;  %v10711_v28 = vsel %vm2106_vm4, %v2226_v35, %v2225_v14 }
 0x210   :  { %v930_v29 = vshrl.u32 %v926_v37, 16  ;;  %v952_v2 = vshrl.u32 %v948_v55, 16  ;;  %v8546_v46 = vadd.s32 4294967169, %v1030_v26  ;;  %v2371_v8 = vor.u32 %v2370_v49, %v2369_v51 }
 0x211   :  { %v2375_v9 = vor.u32 4788187, %v2374_v1  ;;  %v1582_v44 = vadd.s32 %v10446_v30, %v10444_v18  ;;  %v909_v32 = vsel %vm907_vm12, %v10616_v58, 2102212464  ;;  %v1747_v57 = vsel %vm1745_vm15, %v1746_v16, %v10693_v3 }
 0x212   :  { %v941_v40 = vadd.s32 %v940_v61, %v930_v29  ;;  %v963_v62 = vadd.s32 %v962_v39, %v952_v2  ;;  %v1036_v34 = vadd.s32 1, %v8546_v46  ;;  %v1604_v14 = vshll.u32 %v1603_v50, 23 }
 0x213   :  { %v1600_v23 = vshrl.u32 %v1582_v44, %v1598_v36  ;;  %v908_v37 = vsel %vm904_vm14, %v888_v4, %v10599_v19  ;;  %v13677_v35 = vand.u32 2147483647, %v10689_v24  ;;  %v910_v18 = vsel %vm906_vm2, %v10601_v31, %v909_v32 }
 0x214   :  { %v932_v30 = vshrl.u32 %v10683_v12, 16  ;;  %v954_v58 = vshrl.u32 %v10686_v25, 16  ;;  %vm1037_vm4 = vcmp.gt.s32.totalorder %v1036_v34, 0  ;;  %v2378_v55 = vcvt.s32.f32 %v2371_v8  ;;  %v10736_v25 = vpop.f32.mrf.mxu2 }
 0x215   :  { %v1599_v51 = vshll.u32 %v10547_v7, %v10681_v60  ;;  %v1748_v49 = vclz %v1747_v57  ;;  %v1038_v1 = vsel %vm1037_vm4, %v1036_v34, 0  ;;  %v2376_v36 = vand.u32 2147483647, %v2375_v9  ;;  %13950 = vst [vmem:[#allocation54_spill] sm:$0xff] %v10736_v25 }
 0x216   :  { %v10730_v21 = vadd.s32 %v941_v40, %v932_v30  ;;  %v964_v19 = vadd.s32 %v963_v62, %v954_v58  ;;  %v1040_v16 = vand.u32 31, %v1038_v1  ;;  %v1605_v42 = vor.u32 4788187, %v1604_v14 }
 0x217   :  { %v1601_v61 = vor.u32 %v1600_v23, %v1599_v51  ;;  %v911_v31 = vsel %vm905_vm0, %v908_v37, %v910_v18  ;;  %v10734_v12 = vadd.s32 %v957_v20, %v953_v6  ;;  %v1033_v26 = vand.u32 8388607, %v13677_v35 }
 0x218   :  { %v10740_v7 = vshrl.u32 %v1038_v1, 5  ;;  %v10742_v60 = vsub.s32 32, %v1040_v16  ;;  %v1043_v50 = vshll.u32 %v13903_v13, %v1040_v16  ;;  %v8559_v4 = vadd.s32 4294967294, %v1748_v49 }
 0x219   :  { %v1046_v39 = vshll.u32 %v13890_v5, %v1040_v16  ;;  %v1049_v29 = vshll.u32 %v13891_v43, %v1040_v16  ;;  %v1052_v22 = vshll.u32 %v13892_v47, %v1040_v16  ;;  %vm967_vm14 = vc.u32 %v10730_v21, %v10734_v12 }
 0x21a   :  { %v968_v20 = vadd.s32 1, %v964_v19  ;;  %v1044_v6 = vshrl.u32 %v13890_v5, %v10742_v60  ;;  %v2415_v2 = vand.u32 2139095040, %v10736_v25  ;;  %v1047_v46 = vshrl.u32 %v13891_v43, %v10742_v60 }
 0x21b   :  { %v1050_v8 = vshrl.u32 %v13892_v47, %v10742_v60  ;;  %v1053_v9 = vshrl.u32 %v13893_v41, %v10742_v60  ;;  %v1055_v44 = vshll.u32 %v13893_v41, %v1040_v16  ;;  %v1034_v32 = vor.u32 8388608, %v1033_v26 }
 0x21c   :  { %v10760_v57 = vor.u32 %v1044_v6, %v1043_v50  ;;  %v1056_v40 = vshrl.u32 %v13869_v45, %v10742_v60  ;;  %vm1058_vm12 = vcmp.lt.s32.totalorder %v10740_v7, 1  ;;  %vm8560_vm2 = vcmp.lt.s32.totalorder %v8559_v4, 0 }
 0x21d   :  { %v10765_v62 = vor.u32 %v1047_v46, %v1046_v39  ;;  %v1051_v34 = vor.u32 %v1050_v8, %v1049_v29  ;;  %v1054_v23 = vor.u32 %v1053_v9, %v1052_v22  ;;  %v969_v14 = vsel %vm967_vm14, %v968_v20, %v964_v19 }
 0x21e   :  { %v1057_v37 = vor.u32 %v1056_v40, %v1055_v44  ;;  %vm1060_vm0 = vcmp.lt.s32.totalorder %v10740_v7, 3  ;;  %v2416_v18 = vshrl.u32 %v2415_v2, 23  ;;  %v965_v30 = vmul.u32 %v10630_v63, %v911_v31 }
 0x21f   :  { %vm1059_vm7 = vcmp.lt.s32.totalorder %v10740_v7, 2  ;;  %vm1061_vm8 = vcmp.lt.s32.totalorder %v10740_v7, 4  ;;  %v1066_v58 = vsel %vm1058_vm12, %v10760_v57, %v10765_v62  ;;  %v10778_v51 = vmul.f32 %v2378_v55, %v2376_v36 }
 0x220   :  { %v10780_v49 = vsel %vm8560_vm2, 0, %v8559_v4  ;;  %v1067_v1 = vsel %vm1061_vm8, %v1054_v23, 920167782  ;;  %v10784_v19 = vshll.u32 %v1034_v32, 8  ;;  %v10786_v16 = vadd.s32 %v969_v14, %v965_v30 }
 0x221   :  { %v1068_v63 = vsel %vm1060_vm0, %v1051_v34, %v1067_v1  ;;  %v1070_v31 = vsel %vm1058_vm12, %v10765_v62, %v1051_v34  ;;  %v1071_v55 = vsel %vm1061_vm8, %v1057_v37, 1326507024  ;;  %v1606_v36 = vand.u32 2147483647, %v1605_v42 }
 0x222   :  { %v1608_v26 = vcvt.s32.f32 %v1601_v61  ;;  %v1069_v50 = vsel %vm1059_vm7, %v1066_v58, %v1068_v63  ;;  %v8573_v4 = vadd.s32 4294967169, %v2416_v18  ;;  %v1736_v39 = vadd.s32 %v10566_v52, %v10564_v59 }
 0x223   :  { %v1072_v29 = vsel %vm1060_vm0, %v1054_v23, %v1071_v55  ;;  %v1099_v22 = vand.u32 65535, %v1069_v50  ;;  %v1100_v20 = vshrl.u32 %v1069_v50, 16  ;;  %v1752_v6 = vsub.s32 32, %v10780_v49 }
 0x224   :  { %v1073_v2 = vsel %vm1059_vm7, %v1070_v31, %v1072_v29  ;;  %v1075_v42 = vand.u32 65535, %v10784_v19  ;;  %v13676_v61 = vand.u32 2147483647, %v10736_v25  ;;  %v971_v46 = vadd.s32 536870912, %v10786_v16 }
 0x225   :  { %v1076_v8 = vshrl.u32 %v10784_v19, 16  ;;  %v1077_v9 = vand.u32 65535, %v1073_v2  ;;  %v1078_v59 = vshrl.u32 %v1073_v2, 16  ;;  %v10808_v52 = vmul.f32 %v1608_v26, %v1606_v36 }
 0x226   :  { %v1753_v44 = vshll.u32 %v10693_v3, %v10780_v49  ;;  %v1102_v32 = vmul.u32 %v1100_v20, %v1075_v42  ;;  %v2422_v40 = vadd.s32 1, %v8573_v4  ;;  %v1756_v23 = vsub.s32 4294967266, %v10780_v49 }
 0x227   :  { %v1080_v14 = vmul.u32 %v1078_v59, %v1075_v42  ;;  %v1081_v37 = vmul.u32 %v1077_v9, %v1076_v8  ;;  %v1103_v18 = vmul.u32 %v1099_v22, %v1076_v8  ;;  %v1754_v30 = vshrl.u32 %v1736_v39, %v1752_v6 }
 0x228   :  { %v1101_v58 = vmul.u32 %v1099_v22, %v1075_v42  ;;  %v1105_v1 = vshll.u32 %v1102_v32, 16  ;;  %v10815_v63 = vand.u32 8388607, %v13676_v61  ;;  %v10817_v31 = vshrl.u32 %v971_v46, 30 }
 0x229   :  { %v1042_v55 = vshrl.u32 %v13903_v13, %v10742_v60  ;;  %v1079_v3 = vmul.u32 %v1077_v9, %v1075_v42  ;;  %v1083_v36 = vshll.u32 %v1080_v14, 16  ;;  %v1063_v49 = vsel %vm1061_vm8, %v1051_v34, 2102212464 }
 0x22a   :  { %v1104_v26 = vmul.u32 %v1100_v20, %v1076_v8  ;;  %vm1109_vm11 = vc.u32 %v1101_v58, %v1105_v1  ;;  %vm2423_vm6 = vcmp.gt.s32.totalorder %v2422_v40, 0  ;;  %v1082_v50 = vmul.u32 %v1078_v59, %v1076_v8 }
 0x22b   :  { %v1085_v4 = vshll.u32 %v1081_v37, 16  ;;  %vm1087_vm15 = vc.u32 %v1079_v3, %v1083_v36  ;;  %v1107_v39 = vshll.u32 %v1103_v18, 16  ;;  %v1089_v22 = vadd.s32 %v1083_v36, %v1079_v3 }
 0x22c   :  { %v1088_v29 = vsel %vm1087_vm15, 1, %v13900_v15  ;;  %v1110_v6 = vsel %vm1109_vm11, 1, %v13900_v15  ;;  %v1111_v2 = vadd.s32 %v1105_v1, %v1101_v58  ;;  %v973_v60 = vshll.u32 %v10817_v31, 30 }
 0x22d   :  { %v1090_v42 = vadd.s32 %v1088_v29, %v1082_v50  ;;  %v1112_v46 = vadd.s32 %v1110_v6, %v1104_v26  ;;  %v2424_v9 = vsel %vm2423_vm6, %v2422_v40, 0  ;;  %v1757_v61 = vadd.s32 127, %v1756_v23 }
 0x22e   :  { %v1062_v34 = vsel %vm1058_vm12, %v1042_v55, %v10760_v57  ;;  %vm1091_vm4 = vc.u32 %v1089_v22, %v1085_v4  ;;  %vm1113_vm14 = vc.u32 %v1111_v2, %v1107_v39  ;;  %v1064_v20 = vsel %vm1060_vm0, %v10765_v62, %v1063_v49 }
 0x22f   :  { %v1092_v8 = vsel %vm1091_vm4, 1, %v13900_v15  ;;  %v1106_v59 = vshrl.u32 %v1102_v32, 16  ;;  %v1114_v58 = vsel %vm1113_vm14, 1, %v13900_v15  ;;  %v1084_v1 = vshrl.u32 %v1080_v14, 16 }
 0x230   :  { %v1094_v3 = vadd.s32 %v1092_v8, %v1090_v42  ;;  %v1116_v36 = vadd.s32 %v1114_v58, %v1112_v46  ;;  %v2426_v40 = vand.u32 31, %v2424_v9  ;;  %v10834_v23 = vor.u32 %v1754_v30, %v1753_v44 }
 0x231   :  { %v10837_v26 = vsub.s32 %v10786_v16, %v973_v60  ;;  %v1086_v57 = vshrl.u32 %v1081_v37, 16  ;;  %v2420_v55 = vor.u32 8388608, %v10815_v63  ;;  %v1108_v4 = vshrl.u32 %v1103_v18, 16 }
 0x232   :  { %v1095_v50 = vadd.s32 %v1094_v3, %v1084_v1  ;;  %v1117_v62 = vadd.s32 %v1116_v36, %v1106_v59  ;;  %v10840_v49 = vsub.s32 32, %v2426_v40  ;;  %v1065_v32 = vsel %vm1059_vm7, %v1062_v34, %v1064_v20 }
 0x233   :  { %v10844_v14 = vadd.s32 %v1111_v2, %v1107_v39  ;;  %v10846_v29 = vshrl.u32 %v2424_v9, 5  ;;  %v2429_v44 = vshll.u32 %v13903_v13, %v2426_v40  ;;  %v2432_v18 = vshll.u32 %v13890_v5, %v2426_v40 }
 0x234   :  { %v10849_v30 = vadd.s32 %v1095_v50, %v1086_v57  ;;  %v1118_v16 = vadd.s32 %v1117_v62, %v1108_v4  ;;  %v2430_v37 = vshrl.u32 %v13890_v5, %v10840_v49  ;;  %v2433_v63 = vshrl.u32 %v13891_v43, %v10840_v49 }
 0x235   :  { %v2436_v7 = vshrl.u32 %v13892_v47, %v10840_v49  ;;  %v2438_v39 = vshll.u32 %v13892_v47, %v2426_v40  ;;  %v2439_v22 = vshrl.u32 %v13893_v41, %v10840_v49  ;;  %vm2260_vm12 = vcmp.lt.s32.totalorder %v10019_v54, 0 }
 0x236   :  { %vm1121_vm2 = vc.u32 %v10849_v30, %v10844_v14  ;;  %v1122_v6 = vadd.s32 1, %v1118_v16  ;;  %v10864_v2 = vor.u32 %v2430_v37, %v2429_v44  ;;  %v2435_v60 = vshll.u32 %v13891_v43, %v2426_v40 }
 0x237   :  { %v13951_v42 = vand.u32 2147483647, %v9944_v27  ;;  %v13952_v46 = vmov 0  ;;  %v1758_v9 = vshll.u32 %v1757_v61, 23  ;;  %v1119_v34 = vmul.u32 %v10784_v19, %v1065_v32 }
 0x238   :  { %v10874_v20 = vor.u32 %v2433_v63, %v2432_v18  ;;  %v2440_v8 = vor.u32 %v2439_v22, %v2438_v39  ;;  %v1123_v59 = vsel %vm1121_vm2, %v1122_v6, %v1118_v16  ;;  %v2437_v58 = vor.u32 %v2436_v7, %v2435_v60 }
 0x239   :  { %vm10869_vm0 = vcmp.le.f32.partialorder %v13951_v42, 0.7853982  ;;  %v2441_v1 = vshll.u32 %v13893_v41, %v2426_v40  ;;  %v2442_v3 = vshrl.u32 %v13869_v45, %v10840_v49  ;;  %v976_v36 = vsub.s32 0, %v10837_v26 }
 0x23a   :  { %v13953_v46 = vsel %vm10869_vm0, 4294967295, %v13952_v46  ;;  %v1124_v57 = vadd.s32 %v1123_v59, %v1119_v34  ;;  %vm2444_vm7 = vcmp.lt.s32.totalorder %v10846_v29, 1  ;;  %v10881_v50 = vshll.u32 %v2420_v55, 8 }
 0x23b   :  { %13954 = vst [vmem:[#allocation55_spill] sm:$0xff] %v13953_v46  ;;  %vm975_vm8 = vcmp.lt.s32.totalorder %v10837_v26, 0  ;;  %v2443_v19 = vor.u32 %v2442_v3, %v2441_v1  ;;  %vm2447_vm11 = vcmp.lt.s32.totalorder %v10846_v29, 4  ;;  %v2452_v61 = vsel %vm2444_vm7, %v10864_v2, %v10874_v20 }
 0x23c   :  { %v10889_v40 = vor.u32 4788187, %v1758_v9  ;;  %v1125_v4 = vadd.s32 536870912, %v1124_v57  ;;  %vm2446_vm6 = vcmp.lt.s32.totalorder %v10846_v29, 3  ;;  %v2453_v62 = vsel %vm2447_vm11, %v2440_v8, 920167782 }
 0x23d   :  { %vm13681_vm15 = vcmp.lt.s32.totalorder %v10846_v29, 2  ;;  %v2454_v55 = vsel %vm2446_vm6, %v2437_v58, %v2453_v62  ;;  %v2456_v32 = vsel %vm2444_vm7, %v10874_v20, %v2437_v58  ;;  %v2457_v44 = vsel %vm2447_vm11, %v2443_v19, 1326507024 }
 0x23e   :  { %v977_v16 = vsel %vm975_vm8, %v976_v36, %v10837_v26  ;;  %v10903_v37 = vshrl.u32 %v1125_v4, 30  ;;  %v2455_v18 = vsel %vm13681_vm15, %v2452_v61, %v2454_v55  ;;  %v2458_v63 = vsel %vm2446_vm6, %v2440_v8, %v2457_v44 }
 0x23f   :  { %v2459_v7 = vsel %vm13681_vm15, %v2456_v32, %v2458_v63  ;;  %v2461_v39 = vand.u32 65535, %v10881_v50  ;;  %v2485_v22 = vand.u32 65535, %v2455_v18  ;;  %v2486_v6 = vshrl.u32 %v2455_v18, 16 }
 0x240   :  { %13955 = vst [vmem:[#allocation56_spill] sm:$0xff] %v10903_v37  ;;  %v13956_v60 = vsub.s32 4, %v10427_v56  ;;  %v1127_v9 = vshll.u32 %v10903_v37, 30  ;;  %v2463_v34 = vand.u32 65535, %v2459_v7  ;;  %v2464_v59 = vshrl.u32 %v2459_v7, 16 }
 0x241   :  { %v10924_v8 = vsel %vm10869_vm0, %v9944_v27, %v10711_v28  ;;  %v978_v1 = vclz %v977_v16  ;;  %v2462_v3 = vshrl.u32 %v10881_v50, 16  ;;  %v2488_v36 = vmul.u32 %v2486_v6, %v2461_v39 }
 0x242   :  { %v10917_v42 = vsel %vm2260_vm12, %v13956_v60, %v10427_v56  ;;  %13958 = vst [vmem:[#allocation58_spill] sm:$0xff] %v10924_v8  ;;  %v2380_v19 = vxor.u32 2147483648, %v10778_v51  ;;  %v1610_v61 = vxor.u32 2147483648, %v10808_v52  ;;  %v1762_v56 = vcvt.s32.f32 %v10834_v23 }
 0x243   :  { %13957 = vst [vmem:[#allocation57_spill] sm:$0xff] %v10917_v42  ;;  %v2466_v4 = vmul.u32 %v2464_v59, %v2461_v39  ;;  %v1760_v62 = vand.u32 2147483647, %v10889_v40  ;;  %v2467_v55 = vmul.u32 %v2463_v34, %v2462_v3  ;;  %v2489_v32 = vmul.u32 %v2485_v22, %v2462_v3 }
 0x244   :  { %v2491_v44 = vshll.u32 %v2488_v36, 16  ;;  %v10931_v18 = vsub.s32 %v1124_v57, %v1127_v9  ;;  %v2465_v28 = vmul.u32 %v2463_v34, %v2461_v39  ;;  %v2487_v16 = vmul.u32 %v2485_v22, %v2461_v39  ;;  %v10938_v34 = vpop.f32.mrf.mxu3 }
 0x245   :  { %v2469_v63 = vshll.u32 %v2466_v4, 16  ;;  %v8544_v7 = vadd.s32 4294967294, %v978_v1  ;;  %v2449_v60 = vsel %vm2447_vm11, %v2437_v58, 2102212464  ;;  %v2468_v35 = vmul.u32 %v2464_v59, %v2462_v3  ;;  %13959 = vst [vmem:[#allocation59_spill] sm:$0xff] %v10938_v34 }
 0x246   :  { %v2490_v27 = vmul.u32 %v2486_v6, %v2462_v3  ;;  %v2471_v23 = vshll.u32 %v2467_v55, 16  ;;  %vm2495_vm2 = vc.u32 %v2487_v16, %v2491_v44  ;;  %v2493_v46 = vshll.u32 %v2489_v32, 16 }
 0x247   :  { %vm2473_vm14 = vc.u32 %v2465_v28, %v2469_v63  ;;  %v2475_v42 = vadd.s32 %v2469_v63, %v2465_v28  ;;  %v2496_v57 = vsel %vm2495_vm2, 1, %v13900_v15  ;;  %v2497_v9 = vadd.s32 %v2491_v44, %v2487_v16 }
 0x248   :  { %v2474_v40 = vsel %vm2473_vm14, 1, %v13900_v15  ;;  %v13960_v39 = vand.u32 2147483647, %v10019_v54  ;;  %v13961_v58 = vmov 0  ;;  %v1130_v22 = vsub.s32 0, %v10931_v18 }
 0x249   :  { %v2476_v6 = vadd.s32 %v2474_v40, %v2468_v35  ;;  %vm2477_vm11 = vc.u32 %v2475_v42, %v2471_v23  ;;  %v2498_v59 = vadd.s32 %v2496_v57, %v2490_v27  ;;  %v13964_v1 = vand.u32 2147483647, %v10136_v53 }
 0x24a   :  { %vm10942_vm8 = vcmp.le.f32.partialorder %v13960_v39, 0.7853982  ;;  %v13965_v3 = vmov 0  ;;  %vm1129_vm2 = vcmp.lt.s32.totalorder %v10931_v18, 0  ;;  %v2428_v44 = vshrl.u32 %v13903_v13, %v10840_v49 }
 0x24b   :  { %v13962_v58 = vsel %vm10942_vm8, 4294967295, %v13961_v58  ;;  %vm10949_vm14 = vcmp.le.f32.partialorder %v13964_v1, 0.7853982  ;;  %v2478_v28 = vsel %vm2477_vm11, 1, %v13900_v15  ;;  %vm2499_vm15 = vc.u32 %v2497_v9, %v2493_v46 }
 0x24c   :  { %13963 = vst [vmem:[#allocation60_spill] sm:$0xff] %v13962_v58  ;;  %v13966_v3 = vsel %vm10949_vm14, 4294967295, %v13965_v3  ;;  %v2470_v63 = vshrl.u32 %v2466_v4, 16  ;;  %v2480_v16 = vadd.s32 %v2478_v28, %v2476_v6  ;;  %v2500_v35 = vsel %vm2499_vm15, 1, %v13900_v15 }
 0x24d   :  { %13967 = vst [vmem:[#allocation61_spill] sm:$0xff] %v13966_v3  ;;  %v2569_v27 = vand.u32 2139095040, %v10938_v34  ;;  %v2448_v42 = vsel %vm2444_vm7, %v2428_v44, %v10864_v2  ;;  %v2450_v23 = vsel %vm2446_vm6, %v10874_v20, %v2449_v60  ;;  %v2492_v40 = vshrl.u32 %v2488_v36, 16 }
 0x24e   :  { %v2502_v57 = vadd.s32 %v2500_v35, %v2498_v59  ;;  %vm1644_vm4 = vcmp.lt.s32.totalorder %v10352_v0, 0  ;;  %v1131_v49 = vsel %vm1129_vm2, %v1130_v22, %v10931_v18  ;;  %v2472_v4 = vshrl.u32 %v2467_v55, 16 }
 0x24f   :  { %v2481_v39 = vadd.s32 %v2480_v16, %v2470_v63  ;;  %v2570_v6 = vshrl.u32 %v2569_v27, 23  ;;  %v1763_v1 = vmul.f32 %v1762_v56, %v1760_v62  ;;  %vm8545_vm15 = vcmp.lt.s32.totalorder %v8544_v7, 0 }
 0x250   :  { %v2494_v28 = vshrl.u32 %v2489_v32, 16  ;;  %v2503_v17 = vadd.s32 %v2502_v57, %v2492_v40  ;;  %v2381_v2 = vsel %vm2260_vm12, %v2380_v19, %v10778_v51  ;;  %v10972_v20 = vadd.s32 %v2497_v9, %v2493_v46 }
 0x251   :  { %v10970_v44 = vadd.s32 %v2481_v39, %v2472_v4  ;;  %v8576_v36 = vadd.s32 4294967169, %v2570_v6  ;;  %vm13968_vm7 = vcmp.lt.s32.totalorder %v10136_v53, 0  ;;  %v1132_v55 = vclz %v1131_v49 }
 0x252   :  { %v1611_v60 = vsel %vm13968_vm7, %v1610_v61, %v10808_v52  ;;  %vm13969_vm6 = vcmp.lt.s32.totalorder %v10846_v29, 2  ;;  %v2504_v62 = vadd.s32 %v2503_v17, %v2494_v28  ;;  %v1612_v32 = vsub.s32 4, %v10525_v11 }
 0x253   :  { %v2451_v56 = vsel %vm13969_vm6, %v2448_v42, %v2450_v23  ;;  %v10980_v22 = vsel %vm8545_vm15, 0, %v8544_v7  ;;  %vm2507_vm12 = vc.u32 %v10970_v44, %v10972_v20  ;;  %v2576_v51 = vadd.s32 1, %v8576_v36  ;;  %vm13978_vm15 = vmmov %vm13968_vm7 }
 0x254   :  { %v10986_v46 = vmul.f32 %v10924_v8, %v10924_v8  ;;  %v10991_v52 = vsel %vm10942_vm8, %v10019_v54, %v2381_v2  ;;  %v1764_v29 = vxor.u32 2147483648, %v1763_v1  ;;  %v2508_v19 = vadd.s32 1, %v2504_v62 }
 0x255   :  { %13971 = vst [vmem:[#allocation63_spill] sm:$0xff] %v10991_v52  ;;  %v10996_v17 = vsel %vm10949_vm14, %v10136_v53, %v1611_v60  ;;  %v2505_v61 = vmul.u32 %v10881_v50, %v2451_v56  ;;  %v13682_v7 = vand.u32 2147483647, %v10938_v34  ;;  %vm2577_vm11 = vcmp.gt.s32.totalorder %v2576_v51, 0 }
 0x256   :  { %13970 = vst [vmem:[#allocation62_spill] sm:$0xff] %v10986_v46  ;;  %v13973_v9 = vand.u32 2147483647, %v10352_v0  ;;  %v13974_v59 = vmov 0  ;;  %v986_v63 = vsub.s32 4294967266, %v10980_v22  ;;  %v8547_v16 = vadd.s32 4294967294, %v1132_v55 }
 0x257   :  { %13972 = vst [vmem:[#allocation64_spill] sm:$0xff] %v10996_v17  ;;  %v2509_v35 = vsel %vm2507_vm12, %v2508_v19, %v2504_v62  ;;  %v2578_v27 = vsel %vm2577_vm11, %v2576_v51, 0  ;;  %v11009_v42 = vmul.f32 %v10991_v52, %v10991_v52  ;;  %v11014_v50 = vsel %vm13978_vm15, %v1612_v32, %v10525_v11 }
 0x258   :  { %vm11002_vm2 = vcmp.le.f32.partialorder %v13973_v9, 0.7853982  ;;  %13979 = vst [vmem:[#allocation67_spill] sm:$0xff] %v11014_v50  ;;  %v2510_v23 = vadd.s32 %v2509_v35, %v2505_v61  ;;  %v2580_v40 = vand.u32 31, %v2578_v27  ;;  %v11018_v57 = vmul.f32 %v10996_v17, %v10996_v17 }
 0x259   :  { %v13975_v59 = vsel %vm11002_vm2, 4294967295, %v13974_v59  ;;  %13977 = vst [vmem:[#allocation66_spill] sm:$0xff] %v11009_v42  ;;  %v1765_v49 = vsel %vm1644_vm4, %v1764_v29, %v1763_v1  ;;  %v1766_v4 = vsub.s32 4, %v10642_v38  ;;  %v966_v39 = vadd.s32 %v10734_v12, %v10730_v21  ;;  %v11032_v1 = vpop.f32.mrf.mxu0 }
 0x25a   :  { %13976 = vst [vmem:[#allocation65_spill] sm:$0xff] %v13975_v59  ;;  %v982_v6 = vsub.s32 32, %v10980_v22  ;;  %v2511_v28 = vadd.s32 536870912, %v2510_v23  ;;  %v2573_v11 = vand.u32 8388607, %v13682_v7  ;;  %v11028_v2 = vsub.s32 32, %v2580_v40 }
 0x25b   :  { %13980 = vst [vmem:[#allocation68_spill] sm:$0xff] %v11018_v57  ;;  %v987_v36 = vadd.s32 127, %v986_v63  ;;  %vm8548_vm7 = vcmp.lt.s32.totalorder %v8547_v16, 0  ;;  %v2583_v60 = vshll.u32 %v13903_v13, %v2580_v40  ;;  %v2586_v55 = vshll.u32 %v13890_v5, %v2580_v40 }
 0x25c   :  { %13981 = vst [vmem:[#allocation69_spill] sm:$0xff] %v11032_v1  ;;  %v11034_v56 = vshrl.u32 %v2511_v28, 30  ;;  %v2584_v21 = vshrl.u32 %v13890_v5, %v11028_v2  ;;  %v2587_v12 = vshrl.u32 %v13891_v43, %v11028_v2  ;;  %v2589_v62 = vshll.u32 %v13891_v43, %v2580_v40 }
 0x25d   :  { %v2590_v32 = vshrl.u32 %v13892_v47, %v11028_v2  ;;  %v2592_v51 = vshll.u32 %v13892_v47, %v2580_v40  ;;  %v2593_v29 = vshrl.u32 %v13893_v41, %v11028_v2  ;;  %v2596_v19 = vshrl.u32 %v13869_v45, %v11028_v2 }
 0x25e   :  { %v2574_v61 = vor.u32 8388608, %v2573_v11  ;;  %v11048_v9 = vshrl.u32 %v2578_v27, 5  ;;  %v2595_v63 = vshll.u32 %v13893_v41, %v2580_v40  ;;  %v1799_v35 = vand.u32 2139095040, %v11032_v1 }
 0x25f   :  { %v11052_v28 = vor.u32 %v2584_v21, %v2583_v60  ;;  %v11054_v7 = vor.u32 %v2587_v12, %v2586_v55  ;;  %v11056_v17 = vor.u32 %v2590_v32, %v2589_v62  ;;  %v2594_v53 = vor.u32 %v2593_v29, %v2592_v51 }
 0x260   :  { %v11061_v3 = vsel %vm1644_vm4, %v1766_v4, %v10642_v38  ;;  %v11066_v27 = vsel %vm11002_vm2, %v10352_v0, %v1765_v49  ;;  %v2513_v40 = vshll.u32 %v11034_v56, 30  ;;  %v2597_v11 = vor.u32 %v2596_v19, %v2595_v63 }
 0x261   :  { %13982 = vst [vmem:[#allocation70_spill] sm:$0xff] %v11061_v3  ;;  %v983_v60 = vshll.u32 %v10837_v26, %v10980_v22  ;;  %v984_v55 = vshrl.u32 %v966_v39, %v982_v6  ;;  %v988_v21 = vshll.u32 %v987_v36, 23  ;;  %v11072_v12 = vsel %vm8548_vm7, 0, %v8547_v16 }
 0x262   :  { %13983 = vst [vmem:[#allocation71_spill] sm:$0xff] %v11066_v27  ;;  %vm2598_vm6 = vcmp.lt.s32.totalorder %v11048_v9, 1  ;;  %vm2601_vm4 = vcmp.lt.s32.totalorder %v11048_v9, 4  ;;  %v11076_v38 = vshll.u32 %v2574_v61, 8  ;;  %v1800_v4 = vshrl.u32 %v1799_v35, 23 }
 0x263   :  { %vm13696_vm12 = vcmp.lt.s32.totalorder %v11048_v9, 3  ;;  %v2606_v49 = vsel %vm2598_vm6, %v11052_v28, %v11054_v7  ;;  %v2607_v26 = vsel %vm2601_vm4, %v2594_v53, 920167782  ;;  %v2610_v22 = vsel %vm2598_vm6, %v11054_v7, %v11056_v17 }
 0x264   :  { %v11089_v16 = vsub.s32 %v2510_v23, %v2513_v40  ;;  %vm13694_vm11 = vcmp.lt.s32.totalorder %v11048_v9, 2  ;;  %v2608_v39 = vsel %vm13696_vm12, %v11056_v17, %v2607_v26  ;;  %v2611_v6 = vsel %vm2601_vm4, %v2597_v11, 1326507024 }
 0x265   :  { %v11097_v36 = vor.u32 %v984_v55, %v983_v60  ;;  %v11099_v62 = vor.u32 4788187, %v988_v21  ;;  %v2609_v32 = vsel %vm13694_vm11, %v2606_v49, %v2608_v39  ;;  %v2612_v23 = vsel %vm13696_vm12, %v2594_v53, %v2611_v6 }
 0x266   :  { %v2613_v51 = vsel %vm13694_vm11, %v2610_v22, %v2612_v23  ;;  %v2615_v29 = vand.u32 65535, %v11076_v38  ;;  %v2639_v19 = vand.u32 65535, %v2609_v32  ;;  %v2640_v61 = vshrl.u32 %v2609_v32, 16 }
 0x267   :  { %v1136_v63 = vsub.s32 32, %v11072_v12  ;;  %v2616_v35 = vshrl.u32 %v11076_v38, 16  ;;  %v2617_v40 = vand.u32 65535, %v2613_v51  ;;  %v2618_v11 = vshrl.u32 %v2613_v51, 16 }
 0x268   :  { %v1140_v60 = vsub.s32 4294967266, %v11072_v12  ;;  %v2516_v55 = vsub.s32 0, %v11089_v16  ;;  %v2642_v21 = vmul.u32 %v2640_v61, %v2615_v29  ;;  %v8561_v49 = vadd.s32 4294967169, %v1800_v4 }
 0x269   :  { %v1120_v53 = vadd.s32 %v10844_v14, %v10849_v30  ;;  %vm2515_vm15 = vcmp.lt.s32.totalorder %v11089_v16, 0  ;;  %v2620_v26 = vmul.u32 %v2618_v11, %v2615_v29  ;;  %v2621_v22 = vmul.u32 %v2617_v40, %v2616_v35 }
 0x26a   :  { %v2643_v6 = vmul.u32 %v2639_v19, %v2616_v35  ;;  %v2645_v32 = vshll.u32 %v2642_v21, 16  ;;  %v2619_v59 = vmul.u32 %v2617_v40, %v2615_v29  ;;  %v11121_v3 = vadd.s32 127, %v1140_v60 }
 0x26b   :  { %v11119_v0 = vshrl.u32 %v1120_v53, %v1136_v63  ;;  %v2623_v4 = vshll.u32 %v2620_v26, 16  ;;  %v2517_v14 = vsel %vm2515_vm15, %v2516_v55, %v11089_v16  ;;  %v2641_v30 = vmul.u32 %v2639_v19, %v2615_v29 }
 0x26c   :  { %v1806_v50 = vadd.s32 1, %v8561_v49  ;;  %v2622_v57 = vmul.u32 %v2618_v11, %v2616_v35  ;;  %v2625_v52 = vshll.u32 %v2621_v22, 16  ;;  %v2647_v23 = vshll.u32 %v2643_v6, 16 }
 0x26d   :  { %vm2627_vm7 = vc.u32 %v2619_v59, %v2623_v4  ;;  %v2629_v39 = vadd.s32 %v2623_v4, %v2619_v59  ;;  %vm2649_vm11 = vc.u32 %v2641_v30, %v2645_v32  ;;  %v2651_v8 = vadd.s32 %v2645_v32, %v2641_v30 }
 0x26e   :  { %v2628_v54 = vsel %vm2627_vm7, 1, %v13900_v15  ;;  %v2644_v63 = vmul.u32 %v2640_v61, %v2616_v35  ;;  %v13984_v40 = vand.u32 2147483647, %v11032_v1  ;;  %v2603_v29 = vsel %vm2601_vm4, %v11056_v17, 2102212464 }
 0x26f   :  { %v2630_v51 = vadd.s32 %v2628_v54, %v2622_v57  ;;  %vm2631_vm12 = vc.u32 %v2629_v39, %v2625_v52  ;;  %v2650_v11 = vsel %vm2649_vm11, 1, %v13900_v15  ;;  %vm2653_vm15 = vc.u32 %v2651_v8, %v2647_v23 }
 0x270   :  { %v1803_v60 = vand.u32 8388607, %v13984_v40  ;;  %v2632_v19 = vsel %vm2631_vm12, 1, %v13900_v15  ;;  %v2518_v59 = vclz %v2517_v14  ;;  %v2624_v55 = vshrl.u32 %v2620_v26, 16 }
 0x271   :  { %v2634_v49 = vadd.s32 %v2632_v19, %v2630_v51  ;;  %v2652_v53 = vadd.s32 %v2650_v11, %v2644_v63  ;;  %v2582_v54 = vshrl.u32 %v13903_v13, %v11028_v2  ;;  %v2646_v52 = vshrl.u32 %v2642_v21, 16 }
 0x272   :  { %v2654_v57 = vsel %vm2653_vm15, 1, %v13900_v15  ;;  %vm1807_vm7 = vcmp.gt.s32.totalorder %v1806_v50, 0  ;;  %v2626_v61 = vshrl.u32 %v2621_v22, 16  ;;  %vm13985_vm4 = vcmp.lt.s32.totalorder %v11048_v9, 3 }
 0x273   :  { %v2635_v35 = vadd.s32 %v2634_v49, %v2624_v55  ;;  %v2656_v39 = vadd.s32 %v2654_v57, %v2652_v53  ;;  %v1808_v17 = vsel %vm1807_vm7, %v1806_v50, 0  ;;  %v2602_v32 = vsel %vm2598_vm6, %v2582_v54, %v11052_v28 }
 0x274   :  { %v2604_v26 = vsel %vm13985_vm4, %v11054_v7, %v2603_v29  ;;  %v1804_v51 = vor.u32 8388608, %v1803_v60  ;;  %v1810_v4 = vand.u32 31, %v1808_v17  ;;  %v8574_v14 = vadd.s32 4294967294, %v2518_v59 }
 0x275   :  { %v11141_v2 = vadd.s32 %v2635_v35, %v2626_v61  ;;  %v2648_v21 = vshrl.u32 %v2643_v6, 16  ;;  %v2657_v30 = vadd.s32 %v2656_v39, %v2646_v52  ;;  %v11143_v63 = vadd.s32 %v2651_v8, %v2647_v23  ;;  %v11173_v35 = vpop.f32.mrf.mxu1 }
 0x276   :  { %v11145_v22 = vsub.s32 32, %v1810_v4  ;;  %v1813_v50 = vshll.u32 %v13903_v13, %v1810_v4  ;;  %v1816_v40 = vshll.u32 %v13890_v5, %v1810_v4  ;;  %vm13986_vm6 = vcmp.lt.s32.totalorder %v11048_v9, 2  ;;  %13987 = vst [vmem:[#allocation72_spill] sm:$0xff] %v11173_v35 }
 0x277   :  { %v2605_v28 = vsel %vm13986_vm6, %v2602_v32, %v2604_v26  ;;  %v2658_v19 = vadd.s32 %v2657_v30, %v2648_v21  ;;  %v11151_v7 = vshrl.u32 %v1808_v17, 5  ;;  %v1819_v60 = vshll.u32 %v13891_v43, %v1810_v4 }
 0x278   :  { %vm2661_vm12 = vc.u32 %v11141_v2, %v11143_v63  ;;  %v1814_v8 = vshrl.u32 %v13890_v5, %v11145_v22  ;;  %v1817_v6 = vshrl.u32 %v13891_v43, %v11145_v22  ;;  %v1820_v23 = vshrl.u32 %v13892_v47, %v11145_v22 }
 0x279   :  { %vm8575_vm11 = vcmp.lt.s32.totalorder %v8574_v14, 0  ;;  %v2662_v9 = vadd.s32 1, %v2658_v19  ;;  %v1822_v29 = vshll.u32 %v13892_v47, %v1810_v4  ;;  %v1823_v11 = vshrl.u32 %v13893_v41, %v11145_v22 }
 0x27a   :  { %v2659_v59 = vmul.u32 %v11076_v38, %v2605_v28  ;;  %v11166_v55 = vor.u32 %v1814_v8, %v1813_v50  ;;  %v11168_v49 = vor.u32 %v1817_v6, %v1816_v40  ;;  %v11170_v53 = vshll.u32 %v1804_v51, 8 }
 0x27b   :  { %v2663_v54 = vsel %vm2661_vm12, %v2662_v9, %v2658_v19  ;;  %v1821_v52 = vor.u32 %v1820_v23, %v1819_v60  ;;  %v1824_v57 = vor.u32 %v1823_v11, %v1822_v29  ;;  %v1825_v61 = vshll.u32 %v13893_v41, %v1810_v4 }
 0x27c   :  { %v11175_v39 = vsel %vm8575_vm11, 0, %v8574_v14  ;;  %v2664_v17 = vadd.s32 %v2663_v54, %v2659_v59  ;;  %v1826_v32 = vshrl.u32 %v13869_v45, %v11145_v22  ;;  %vm1828_vm15 = vcmp.lt.s32.totalorder %v11151_v7, 1 }
 0x27d   :  { %vm13699_vm7 = vcmp.lt.s32.totalorder %v11151_v7, 2  ;;  %vm1830_vm4 = vcmp.lt.s32.totalorder %v11151_v7, 3  ;;  %vm1831_vm6 = vcmp.lt.s32.totalorder %v11151_v7, 4  ;;  %v1836_v38 = vsel %vm1828_vm15, %v11166_v55, %v11168_v49 }
 0x27e   :  { %v2665_v26 = vadd.s32 536870912, %v2664_v17  ;;  %v1827_v51 = vor.u32 %v1826_v32, %v1825_v61  ;;  %v1837_v4 = vsel %vm1831_vm6, %v1824_v57, 920167782  ;;  %v1953_v14 = vand.u32 2139095040, %v11173_v35 }
 0x27f   :  { %v1142_v21 = vshll.u32 %v11121_v3, 23  ;;  %v2506_v30 = vadd.s32 %v10972_v20, %v10970_v44  ;;  %v1838_v50 = vsel %vm1830_vm4, %v1821_v52, %v1837_v4  ;;  %v1840_v40 = vsel %vm1828_vm15, %v11168_v49, %v1821_v52 }
 0x280   :  { %v2522_v28 = vsub.s32 32, %v11175_v39  ;;  %v11199_v19 = vshrl.u32 %v2665_v26, 30  ;;  %v1839_v60 = vsel %vm13699_vm7, %v1836_v38, %v1838_v50  ;;  %v1841_v3 = vsel %vm1831_vm6, %v1827_v51, 1326507024 }
 0x281   :  { %v1842_v44 = vsel %vm1830_vm4, %v1824_v57, %v1841_v3  ;;  %v1845_v20 = vand.u32 65535, %v11170_v53  ;;  %v1869_v8 = vand.u32 65535, %v1839_v60  ;;  %v1870_v6 = vshrl.u32 %v1839_v60, 16 }
 0x282   :  { %v13988_v23 = vshll.u32 %v10931_v18, %v11072_v12  ;;  %v2667_v29 = vshll.u32 %v11199_v19, 30  ;;  %v1843_v11 = vsel %vm13699_vm7, %v1840_v40, %v1842_v44  ;;  %v1954_v59 = vshrl.u32 %v1953_v14, 23 }
 0x283   :  { %v1846_v54 = vshrl.u32 %v11170_v53, 16  ;;  %v1847_v61 = vand.u32 65535, %v1843_v11  ;;  %v1848_v57 = vshrl.u32 %v1843_v11, 16  ;;  %v1872_v32 = vmul.u32 %v1870_v6, %v1845_v20 }
 0x284   :  { %v11212_v9 = vor.u32 %v11119_v0, %v13988_v23  ;;  %v11218_v38 = vor.u32 4788187, %v1142_v21  ;;  %v2526_v26 = vsub.s32 4294967266, %v11175_v39  ;;  %v11221_v51 = vsub.s32 %v2664_v17, %v2667_v29 }
 0x285   :  { %v11224_v18 = vshrl.u32 %v2506_v30, %v2522_v28  ;;  %v1850_v12 = vmul.u32 %v1848_v57, %v1845_v20  ;;  %v1851_v4 = vmul.u32 %v1847_v61, %v1846_v54  ;;  %v1873_v50 = vmul.u32 %v1869_v8, %v1846_v54 }
 0x286   :  { %v1812_v14 = vshrl.u32 %v13903_v13, %v11145_v22  ;;  %v1871_v40 = vmul.u32 %v1869_v8, %v1845_v20  ;;  %v1875_v60 = vshll.u32 %v1872_v32, 16  ;;  %v8564_v3 = vadd.s32 4294967169, %v1954_v59 }
 0x287   :  { %v1833_v21 = vsel %vm1831_vm6, %v1821_v52, 2102212464  ;;  %v1849_v44 = vmul.u32 %v1847_v61, %v1845_v20  ;;  %v1853_v23 = vshll.u32 %v1850_v12, 16  ;;  %v1874_v17 = vmul.u32 %v1870_v6, %v1846_v54 }
 0x288   :  { %v2670_v29 = vsub.s32 0, %v11221_v51  ;;  %v1852_v11 = vmul.u32 %v1848_v57, %v1846_v54  ;;  %v1855_v30 = vshll.u32 %v1851_v4, 16  ;;  %vm1879_vm12 = vc.u32 %v1871_v40, %v1875_v60 }
 0x289   :  { %vm1857_vm11 = vc.u32 %v1849_v44, %v1853_v23  ;;  %v1859_v28 = vadd.s32 %v1853_v23, %v1849_v44  ;;  %v1877_v0 = vshll.u32 %v1873_v50, 16  ;;  %v1880_v42 = vsel %vm1879_vm12, 1, %v13900_v15 }
 0x28a   :  { %v1858_v22 = vsel %vm1857_vm11, 1, %v13900_v15  ;;  %v1881_v8 = vadd.s32 %v1875_v60, %v1871_v40  ;;  %v1882_v59 = vadd.s32 %v1880_v42, %v1874_v17  ;;  %v1960_v46 = vadd.s32 1, %v8564_v3 }
 0x28b   :  { %vm2669_vm6 = vcmp.lt.s32.totalorder %v11221_v51, 0  ;;  %v1832_v52 = vsel %vm1828_vm15, %v1812_v14, %v11166_v55  ;;  %v1860_v20 = vadd.s32 %v1858_v22, %v1852_v11  ;;  %vm1861_vm7 = vc.u32 %v1859_v28, %v1855_v30 }
 0x28c   :  { %v1834_v6 = vsel %vm1830_vm4, %v11168_v49, %v1833_v21  ;;  %v1862_v54 = vsel %vm1861_vm7, 1, %v13900_v15  ;;  %vm1883_vm12 = vc.u32 %v1881_v8, %v1877_v0  ;;  %vm1961_vm9 = vcmp.gt.s32.totalorder %v1960_v46, 0 }
 0x28d   :  { %v1854_v61 = vshrl.u32 %v1850_v12, 16  ;;  %v1864_v57 = vadd.s32 %v1862_v54, %v1860_v20  ;;  %v1884_v42 = vsel %vm1883_vm12, 1, %v13900_v15  ;;  %v1962_v40 = vsel %vm1961_vm9, %v1960_v46, 0 }
 0x28e   :  { %v2671_v60 = vsel %vm2669_vm6, %v2670_v29, %v11221_v51  ;;  %v1876_v3 = vshrl.u32 %v1872_v32, 16  ;;  %v1886_v44 = vadd.s32 %v1884_v42, %v1882_v59  ;;  %v1964_v55 = vand.u32 31, %v1962_v40 }
 0x28f   :  { %v2527_v14 = vadd.s32 127, %v2526_v26  ;;  %v1856_v23 = vshrl.u32 %v1851_v4, 16  ;;  %v1865_v17 = vadd.s32 %v1864_v57, %v1854_v61  ;;  %v13989_v11 = vand.u32 2147483647, %v11173_v35 }
 0x290   :  { %vm13990_vm15 = vcmp.lt.s32.totalorder %v11151_v7, 2  ;;  %v1878_v30 = vshrl.u32 %v1873_v50, 16  ;;  %v1887_v12 = vadd.s32 %v1886_v44, %v1876_v3  ;;  %v11247_v28 = vsub.s32 32, %v1964_v55 }
 0x291   :  { %v1957_v49 = vand.u32 8388607, %v13989_v11  ;;  %v1835_v21 = vsel %vm13990_vm15, %v1832_v52, %v1834_v6  ;;  %v2672_v22 = vclz %v2671_v60  ;;  %v11249_v46 = vadd.s32 %v1865_v17, %v1856_v23 }
 0x292   :  { %v11251_v29 = vadd.s32 %v1881_v8, %v1877_v0  ;;  %v1967_v32 = vshll.u32 %v13903_v13, %v1964_v55  ;;  %v1888_v26 = vadd.s32 %v1887_v12, %v1878_v30  ;;  %v1968_v4 = vshrl.u32 %v13890_v5, %v11247_v28 }
 0x293   :  { %v1970_v59 = vshll.u32 %v13890_v5, %v1964_v55  ;;  %v1971_v7 = vshrl.u32 %v13891_v43, %v11247_v28  ;;  %v2528_v50 = vshll.u32 %v2527_v14, 23  ;;  %v11261_v52 = vshrl.u32 %v1962_v40, 5 }
 0x294   :  { %vm1891_vm9 = vc.u32 %v11249_v46, %v11251_v29  ;;  %v1973_v0 = vshll.u32 %v13891_v43, %v1964_v55  ;;  %v1889_v8 = vmul.u32 %v11170_v53, %v1835_v21  ;;  %v1892_v20 = vadd.s32 1, %v1888_v26 }
 0x295   :  { %v1958_v6 = vor.u32 8388608, %v1957_v49  ;;  %v1974_v54 = vshrl.u32 %v13892_v47, %v11247_v28  ;;  %v8577_v61 = vadd.s32 4294967294, %v2672_v22  ;;  %v11267_v57 = vor.u32 %v1968_v4, %v1967_v32 }
 0x296   :  { %v1976_v42 = vshll.u32 %v13892_v47, %v1964_v55  ;;  %v1977_v60 = vshrl.u32 %v13893_v41, %v11247_v28  ;;  %v1893_v3 = vsel %vm1891_vm9, %v1892_v20, %v1888_v26  ;;  %v11272_v40 = vor.u32 %v1971_v7, %v1970_v59 }
 0x297   :  { %v1979_v44 = vshll.u32 %v13893_v41, %v1964_v55  ;;  %v1980_v53 = vshrl.u32 %v13869_v45, %v11247_v28  ;;  %v1894_v14 = vadd.s32 %v1893_v3, %v1889_v8  ;;  %v1975_v23 = vor.u32 %v1974_v54, %v1973_v0 }
 0x298   :  { %v1978_v17 = vor.u32 %v1977_v60, %v1976_v42  ;;  %vm1982_vm7 = vcmp.lt.s32.totalorder %v11261_v52, 1  ;;  %v2523_v11 = vshll.u32 %v11089_v16, %v11175_v39  ;;  %vm13702_vm4 = vcmp.lt.s32.totalorder %v11261_v52, 3 }
 0x299   :  { %v1981_v49 = vor.u32 %v1980_v53, %v1979_v44  ;;  %vm1985_vm11 = vcmp.lt.s32.totalorder %v11261_v52, 4  ;;  %v2529_v21 = vor.u32 4788187, %v2528_v50  ;;  %vm8578_vm6 = vcmp.lt.s32.totalorder %v8577_v61, 0 }
 0x29a   :  { %v1895_v30 = vadd.s32 536870912, %v1894_v14  ;;  %vm13701_vm12 = vcmp.lt.s32.totalorder %v11261_v52, 2  ;;  %v990_v55 = vand.u32 2147483647, %v11099_v62  ;;  %v1990_v12 = vsel %vm1982_vm7, %v11267_v57, %v11272_v40 }
 0x29b   :  { %v1991_v16 = vsel %vm1985_vm11, %v1978_v17, 920167782  ;;  %v11290_v39 = vshll.u32 %v1958_v6, 8  ;;  %v2525_v22 = vor.u32 %v11224_v18, %v2523_v11  ;;  %v1994_v62 = vsel %vm1982_vm7, %v11272_v40, %v1975_v23 }
 0x29c   :  { %v11293_v32 = vshrl.u32 %v1895_v30, 30  ;;  %v1992_v26 = vsel %vm13702_vm4, %v1975_v23, %v1991_v16  ;;  %v1146_v4 = vcvt.s32.f32 %v11212_v9  ;;  %v11301_v59 = vsel %vm8578_vm6, 0, %v8577_v61 }
 0x29d   :  { %v1993_v7 = vsel %vm13701_vm12, %v1990_v12, %v1992_v26  ;;  %v1995_v50 = vsel %vm1985_vm11, %v1981_v49, 1326507024  ;;  %v1144_v18 = vand.u32 2147483647, %v11218_v38  ;;  %v2530_v0 = vand.u32 2147483647, %v2529_v21 }
 0x29e   :  { %13991 = vst [vmem:[#allocation73_spill] sm:$0xff] %v11293_v32  ;;  %v1897_v8 = vshll.u32 %v11293_v32, 30  ;;  %v1996_v20 = vsel %vm13702_vm4, %v1978_v17, %v1995_v50  ;;  %v1999_v9 = vand.u32 65535, %v11290_v39  ;;  %v2023_v54 = vand.u32 65535, %v1993_v7 }
 0x29f   :  { %v1997_v6 = vsel %vm13701_vm12, %v1994_v62, %v1996_v20  ;;  %v2024_v61 = vshrl.u32 %v1993_v7, 16  ;;  %v2532_v42 = vcvt.s32.f32 %v2525_v22  ;;  %v2680_v60 = vsub.s32 4294967266, %v11301_v59 }
 0x2a0   :  { %v2000_v3 = vshrl.u32 %v11290_v39, 16  ;;  %v2001_v44 = vand.u32 65535, %v1997_v6  ;;  %v996_v38 = vsub.s32 4, %v10817_v31  ;;  %v11317_v53 = vsub.s32 %v1894_v14, %v1897_v8 }
 0x2a1   :  { %v2002_v11 = vshrl.u32 %v1997_v6, 16  ;;  %v2026_v49 = vmul.u32 %v2024_v61, %v1999_v9  ;;  %v13992_v17 = vcvt.s32.f32 %v11097_v36  ;;  %v11323_v30 = vmul.f32 %v1146_v4, %v1144_v18 }
 0x2a2   :  { %v11325_v12 = vmul.f32 %v2532_v42, %v2530_v0  ;;  %v2027_v16 = vmul.u32 %v2023_v54, %v2000_v3  ;;  %v2660_v22 = vadd.s32 %v11143_v63, %v11141_v2  ;;  %v2005_v62 = vmul.u32 %v2001_v44, %v2000_v3 }
 0x2a3   :  { %v11321_v21 = vmul.f32 %v13992_v17, %v990_v55  ;;  %v2004_v26 = vmul.u32 %v2002_v11, %v1999_v9  ;;  %v2029_v7 = vshll.u32 %v2026_v49, 16  ;;  %v2681_v50 = vadd.s32 127, %v2680_v60 }
 0x2a4   :  { %v1966_v14 = vshrl.u32 %v13903_v13, %v11247_v28  ;;  %v1987_v36 = vsel %vm1985_vm11, %v1975_v23, 2102212464  ;;  %v2025_v55 = vmul.u32 %v2023_v54, %v1999_v9  ;;  %v1900_v4 = vsub.s32 0, %v11317_v53 }
 0x2a5   :  { %v2003_v18 = vmul.u32 %v2001_v44, %v1999_v9  ;;  %v2006_v0 = vmul.u32 %v2002_v11, %v2000_v3  ;;  %v2007_v8 = vshll.u32 %v2004_v26, 16  ;;  %v2028_v20 = vmul.u32 %v2024_v61, %v2000_v3  ;;  %v11340_v3 = vpop.f32.mrf.mxu2 }
 0x2a6   :  { %v2031_v6 = vshll.u32 %v2027_v16, 16  ;;  %vm2033_vm15 = vc.u32 %v2025_v55, %v2029_v7  ;;  %v2035_v2 = vadd.s32 %v2029_v7, %v2025_v55  ;;  %v2009_v63 = vshll.u32 %v2005_v62, 16  ;;  %13993 = vst [vmem:[#allocation74_spill] sm:$0xff] %v11340_v3 }
 0x2a7   :  { %vm2011_vm9 = vc.u32 %v2003_v18, %v2007_v8  ;;  %v2013_v42 = vadd.s32 %v2007_v8, %v2003_v18  ;;  %v2034_v60 = vsel %vm2033_vm15, 1, %v13900_v15  ;;  %vm1899_vm12 = vcmp.lt.s32.totalorder %v11317_v53, 0 }
 0x2a8   :  { %v2012_v28 = vsel %vm2011_vm9, 1, %v13900_v15  ;;  %v2036_v23 = vadd.s32 %v2034_v60, %v2028_v20  ;;  %vm2037_vm11 = vc.u32 %v2035_v2, %v2031_v6  ;;  %v2676_v9 = vsub.s32 32, %v11301_v59 }
 0x2a9   :  { %v2014_v54 = vadd.s32 %v2012_v28, %v2006_v0  ;;  %vm2015_vm4 = vc.u32 %v2013_v42, %v2009_v63  ;;  %v2038_v61 = vsel %vm2037_vm11, 1, %v13900_v15  ;;  %v1986_v44 = vsel %vm1982_vm7, %v1966_v14, %v11267_v57 }
 0x2aa   :  { %v2016_v11 = vsel %vm2015_vm4, 1, %v13900_v15  ;;  %v2030_v17 = vshrl.u32 %v2026_v49, 16  ;;  %v2040_v7 = vadd.s32 %v2038_v61, %v2036_v23  ;;  %vm13704_vm15 = vcmp.lt.s32.totalorder %v10689_v24, 0 }
 0x2ab   :  { %vm13705_vm9 = vcmp.lt.s32.totalorder %v10736_v25, 0  ;;  %v1901_v55 = vsel %vm1899_vm12, %v1900_v4, %v11317_v53  ;;  %vm13994_vm6 = vcmp.lt.s32.totalorder %v11261_v52, 3  ;;  %v2008_v0 = vshrl.u32 %v2004_v26, 16 }
 0x2ac   :  { %v1988_v18 = vsel %vm13994_vm6, %v11272_v40, %v1987_v36  ;;  %v2018_v8 = vadd.s32 %v2016_v11, %v2014_v54  ;;  %v13995_v20 = vand.u32 2147483647, %v10519_v48  ;;  %v13996_v57 = vmov 0 }
 0x2ad   :  { %v2682_v49 = vshll.u32 %v2681_v50, 23  ;;  %v2032_v14 = vshrl.u32 %v2027_v16, 16  ;;  %v2041_v63 = vadd.s32 %v2040_v7, %v2030_v17  ;;  %v3339_v42 = vand.u32 2139095040, %v11340_v3 }
 0x2ae   :  { %vm11354_vm11 = vcmp.le.f32.partialorder %v13995_v20, 0.7853982  ;;  %v994_v60 = vxor.u32 2147483648, %v11321_v21  ;;  %v2678_v4 = vshrl.u32 %v2660_v22, %v2676_v9  ;;  %v2010_v28 = vshrl.u32 %v2005_v62, 16 }
 0x2af   :  { %v13997_v57 = vsel %vm11354_vm11, 4294967295, %v13996_v57  ;;  %v2019_v23 = vadd.s32 %v2018_v8, %v2008_v0  ;;  %v13999_v40 = vand.u32 2147483647, %v10689_v24  ;;  %v14000_v26 = vmov 0 }
 0x2b0   :  { %13998 = vst [vmem:[#allocation75_spill] sm:$0xff] %v13997_v57  ;;  %v1902_v36 = vclz %v1901_v55  ;;  %vm14003_vm4 = vcmp.lt.s32.totalorder %v11261_v52, 2  ;;  %v2042_v50 = vadd.s32 %v2041_v63, %v2032_v14  ;;  %v3340_v16 = vshrl.u32 %v3339_v42, 23 }
 0x2b1   :  { %vm11362_vm7 = vcmp.le.f32.partialorder %v13999_v40, 0.7853982  ;;  %v1989_v54 = vsel %vm14003_vm4, %v1986_v44, %v1988_v18  ;;  %v1148_v61 = vxor.u32 2147483648, %v11323_v30  ;;  %v2534_v11 = vxor.u32 2147483648, %v11325_v12 }
 0x2b2   :  { %v14001_v26 = vsel %vm11362_vm7, 4294967295, %v14000_v26  ;;  %v11370_v17 = vadd.s32 %v2019_v23, %v2010_v28  ;;  %v11372_v22 = vadd.s32 %v2035_v2, %v2031_v6  ;;  %v2677_v62 = vshll.u32 %v11221_v51, %v11301_v59  ;;  %v11414_v23 = vpop.f32.mrf.mxu3 }
 0x2b3   :  { %14002 = vst [vmem:[#allocation76_spill] sm:$0xff] %v14001_v26  ;;  %v2683_v9 = vor.u32 4788187, %v2682_v49  ;;  %v2046_v7 = vadd.s32 1, %v2042_v50  ;;  %v8591_v0 = vadd.s32 4294967169, %v3340_v16  ;;  %vm14004_vm12 = vcmp.lt.s32.totalorder %v10519_v48, 0  ;;  %v11482_v26 = vpop.f32.mrf.mxu0 }
 0x2b4   :  { %v995_v52 = vsel %vm14004_vm12, %v994_v60, %v11321_v21  ;;  %v2043_v44 = vmul.u32 %v11290_v39, %v1989_v54  ;;  %vm2045_vm6 = vc.u32 %v11370_v17, %v11372_v22  ;;  %v13703_v55 = vand.u32 2147483647, %v11340_v3  ;;  %vm14006_vm4 = vmmov %vm14004_vm12  ;;  %14013 = vst [vmem:[#allocation81_spill] sm:$0xff] %v11414_v23 }
 0x2b5   :  { %v2679_v18 = vor.u32 %v2678_v4, %v2677_v62  ;;  %v8562_v6 = vadd.s32 4294967294, %v1902_v36  ;;  %v2047_v2 = vsel %vm2045_vm6, %v2046_v7, %v2042_v50  ;;  %v3346_v8 = vadd.s32 1, %v8591_v0  ;;  %14017 = vst [vmem:[#allocation85_spill] sm:$0xff] %v11482_v26 }
 0x2b6   :  { %v11385_v51 = vmul.f32 %v11066_v27, %v11066_v27  ;;  %v11392_v59 = vsel %vm14006_vm4, %v996_v38, %v10817_v31  ;;  %v14008_v39 = vand.u32 2147483647, %v10736_v25  ;;  %v14009_v21 = vmov 0 }
 0x2b7   :  { %14007 = vst [vmem:[#allocation78_spill] sm:$0xff] %v11392_v59  ;;  %v2048_v20 = vadd.s32 %v2047_v2, %v2043_v44  ;;  %v1149_v49 = vsel %vm13704_vm15, %v1148_v61, %v11323_v30  ;;  %v2535_v14 = vsel %vm13705_vm9, %v2534_v11, %v11325_v12  ;;  %v2684_v63 = vand.u32 2147483647, %v2683_v9 }
 0x2b8   :  { %14005 = vst [vmem:[#allocation77_spill] sm:$0xff] %v11385_v51  ;;  %vm11396_vm12 = vcmp.le.f32.partialorder %v14008_v39, 0.7853982  ;;  %vm3347_vm6 = vcmp.gt.s32.totalorder %v3346_v8, 0  ;;  %v11409_v31 = vsel %vm11354_vm11, %v10519_v48, %v995_v52  ;;  %v3343_v42 = vand.u32 8388607, %v13703_v55 }
 0x2b9   :  { %v14010_v21 = vsel %vm11396_vm12, 4294967295, %v14009_v21  ;;  %14012 = vst [vmem:[#allocation80_spill] sm:$0xff] %v11409_v31  ;;  %v2049_v38 = vadd.s32 536870912, %v2048_v20  ;;  %v3348_v60 = vsel %vm3347_vm6, %v3346_v8, 0  ;;  %v2686_v28 = vcvt.s32.f32 %v2679_v18 }
 0x2ba   :  { %14011 = vst [vmem:[#allocation79_spill] sm:$0xff] %v14010_v21  ;;  %vm8563_vm4 = vcmp.lt.s32.totalorder %v8562_v6, 0  ;;  %v3350_v30 = vand.u32 31, %v3348_v60  ;;  %v11419_v12 = vsel %vm11362_vm7, %v10689_v24, %v1149_v49  ;;  %v11425_v36 = vsel %vm11396_vm12, %v10736_v25, %v2535_v14 }
 0x2bb   :  { %14014 = vst [vmem:[#allocation82_spill] sm:$0xff] %v11419_v12  ;;  %v11427_v54 = vshrl.u32 %v2049_v38, 30  ;;  %v11429_v50 = vmul.f32 %v2686_v28, %v2684_v63  ;;  %v1890_v61 = vadd.s32 %v11251_v29, %v11249_v46  ;;  %v11434_v62 = vsel %vm8563_vm4, 0, %v8562_v6 }
 0x2bc   :  { %14015 = vst [vmem:[#allocation83_spill] sm:$0xff] %v11425_v36  ;;  %v3351_v11 = vsub.s32 32, %v3350_v30  ;;  %v3344_v7 = vor.u32 8388608, %v3343_v42  ;;  %v3493_v0 = vand.u32 2139095040, %v11414_v23  ;;  %v3353_v52 = vshll.u32 %v13903_v13, %v3350_v30 }
 0x2bd   :  { %14016 = vst [vmem:[#allocation84_spill] sm:$0xff] %v11427_v54  ;;  %v2051_v9 = vshll.u32 %v11427_v54, 30  ;;  %v3356_v18 = vshll.u32 %v13890_v5, %v3350_v30  ;;  %v11442_v8 = vshrl.u32 %v3348_v60, 5  ;;  %v3359_v46 = vshll.u32 %v13891_v43, %v3350_v30 }
 0x2be   :  { %v3354_v44 = vshrl.u32 %v13890_v5, %v3351_v11  ;;  %v3357_v2 = vshrl.u32 %v13891_v43, %v3351_v11  ;;  %v3360_v29 = vshrl.u32 %v13892_v47, %v3351_v11  ;;  %v3362_v6 = vshll.u32 %v13892_v47, %v3350_v30 }
 0x2bf   :  { %v11447_v39 = vsub.s32 %v2048_v20, %v2051_v9  ;;  %v3363_v63 = vshrl.u32 %v13893_v41, %v3351_v11  ;;  %v3365_v28 = vshll.u32 %v13893_v41, %v3350_v30  ;;  %v3366_v60 = vshrl.u32 %v13869_v45, %v3351_v11 }
 0x2c0   :  { %v3355_v49 = vor.u32 %v3354_v44, %v3353_v52  ;;  %v3358_v14 = vor.u32 %v3357_v2, %v3356_v18  ;;  %v3361_v42 = vor.u32 %v3360_v29, %v3359_v46  ;;  %v1906_v4 = vsub.s32 32, %v11434_v62 }
 0x2c1   :  { %v1910_v16 = vsub.s32 4294967266, %v11434_v62  ;;  %v3364_v40 = vor.u32 %v3363_v63, %v3362_v6  ;;  %v11455_v55 = vshll.u32 %v3344_v7, 8  ;;  %v3367_v20 = vor.u32 %v3366_v60, %v3365_v28 }
 0x2c2   :  { %vm3368_vm6 = vcmp.lt.s32.totalorder %v11442_v8, 1  ;;  %vm3371_vm4 = vcmp.lt.s32.totalorder %v11442_v8, 4  ;;  %v3494_v9 = vshrl.u32 %v3493_v0, 23  ;;  %v2054_v52 = vsub.s32 0, %v11447_v39 }
 0x2c3   :  { %vm3370_vm15 = vcmp.lt.s32.totalorder %v11442_v8, 3  ;;  %v3376_v30 = vsel %vm3368_vm6, %v3355_v49, %v3358_v14  ;;  %v3377_v44 = vsel %vm3371_vm4, %v3364_v40, 920167782  ;;  %vm13710_vm9 = vcmp.lt.s32.totalorder %v11442_v8, 2 }
 0x2c4   :  { %v3378_v7 = vsel %vm3370_vm15, %v3361_v42, %v3377_v44  ;;  %v3380_v18 = vsel %vm3368_vm6, %v3358_v14, %v3361_v42  ;;  %v3381_v0 = vsel %vm3371_vm4, %v3367_v20, 1326507024  ;;  %vm2053_vm7 = vcmp.lt.s32.totalorder %v11447_v39, 0 }
 0x2c5   :  { %v3379_v2 = vsel %vm13710_vm9, %v3376_v30, %v3378_v7  ;;  %v3382_v46 = vsel %vm3370_vm15, %v3364_v40, %v3381_v0  ;;  %v3385_v63 = vand.u32 65535, %v11455_v55  ;;  %v3386_v44 = vshrl.u32 %v11455_v55, 16 }
 0x2c6   :  { %v3383_v6 = vsel %vm13710_vm9, %v3380_v18, %v3382_v46  ;;  %v3409_v28 = vand.u32 65535, %v3379_v2  ;;  %v3410_v60 = vshrl.u32 %v3379_v2, 16  ;;  %v8594_v48 = vadd.s32 4294967169, %v3494_v9 }
 0x2c7   :  { %v3387_v20 = vand.u32 65535, %v3383_v6  ;;  %v3388_v38 = vshrl.u32 %v3383_v6, 16  ;;  %v1907_v30 = vshll.u32 %v11317_v53, %v11434_v62  ;;  %v1908_v40 = vshrl.u32 %v1890_v61, %v1906_v4 }
 0x2c8   :  { %v2055_v7 = vsel %vm2053_vm7, %v2054_v52, %v11447_v39  ;;  %v3412_v0 = vmul.u32 %v3410_v60, %v3385_v63  ;;  %v11487_v29 = vadd.s32 127, %v1910_v16  ;;  %v3352_v18 = vshrl.u32 %v13903_v13, %v3351_v11 }
 0x2c9   :  { %v3373_v2 = vsel %vm3371_vm4, %v3361_v42, 2102212464  ;;  %v3413_v46 = vmul.u32 %v3409_v28, %v3386_v44  ;;  %v3390_v9 = vmul.u32 %v3388_v38, %v3385_v63  ;;  %v3391_v6 = vmul.u32 %v3387_v20, %v3386_v44 }
 0x2ca   :  { %v14018_v57 = vand.u32 2147483647, %v11414_v23  ;;  %v2723_v53 = vand.u32 2139095040, %v11482_v26  ;;  %v2056_v4 = vclz %v2055_v7  ;;  %v3372_v16 = vsel %vm3368_vm6, %v3352_v18, %v3355_v49 }
 0x2cb   :  { %v3415_v61 = vshll.u32 %v3412_v0, 16  ;;  %v3500_v11 = vadd.s32 1, %v8594_v48  ;;  %v3374_v62 = vsel %vm3370_vm15, %v3358_v14, %v3373_v2  ;;  %v3389_v42 = vmul.u32 %v3387_v20, %v3385_v63 }
 0x2cc   :  { %v11495_v59 = vand.u32 8388607, %v14018_v57  ;;  %v3393_v52 = vshll.u32 %v3390_v9, 16  ;;  %v3411_v12 = vmul.u32 %v3409_v28, %v3385_v63  ;;  %v3392_v24 = vmul.u32 %v3388_v38, %v3386_v44 }
 0x2cd   :  { %v3395_v37 = vshll.u32 %v3391_v6, 16  ;;  %v3414_v31 = vmul.u32 %v3410_v60, %v3386_v44  ;;  %v3417_v27 = vshll.u32 %v3413_v46, 16  ;;  %v8565_v7 = vadd.s32 4294967294, %v2056_v4 }
 0x2ce   :  { %vm3397_vm7 = vc.u32 %v3389_v42, %v3393_v52  ;;  %v3399_v57 = vadd.s32 %v3393_v52, %v3389_v42  ;;  %vm3419_vm4 = vc.u32 %v3411_v12, %v3415_v61  ;;  %v3421_v51 = vadd.s32 %v3415_v61, %v3411_v12 }
 0x2cf   :  { %v3398_v21 = vsel %vm3397_vm7, 1, %v13900_v15  ;;  %v3420_v49 = vsel %vm3419_vm4, 1, %v13900_v15  ;;  %vm3501_vm6 = vcmp.gt.s32.totalorder %v3500_v11, 0  ;;  %vm14019_vm11 = vcmp.lt.s32.totalorder %v11442_v8, 2 }
 0x2d0   :  { %v3400_v48 = vadd.s32 %v3398_v21, %v3392_v24  ;;  %vm3401_vm9 = vc.u32 %v3399_v57, %v3395_v37  ;;  %v3422_v14 = vadd.s32 %v3420_v49, %v3414_v31  ;;  %vm3423_vm15 = vc.u32 %v3421_v51, %v3417_v27 }
 0x2d1   :  { %v3375_v38 = vsel %vm14019_vm11, %v3372_v16, %v3374_v62  ;;  %v3402_v63 = vsel %vm3401_vm9, 1, %v13900_v15  ;;  %v3416_v28 = vshrl.u32 %v3412_v0, 16  ;;  %v3424_v60 = vsel %vm3423_vm15, 1, %v13900_v15 }
 0x2d2   :  { %v3394_v44 = vshrl.u32 %v3390_v9, 16  ;;  %v3404_v12 = vadd.s32 %v3402_v63, %v3400_v48  ;;  %v3426_v20 = vadd.s32 %v3424_v60, %v3422_v14  ;;  %v3502_v18 = vsel %vm3501_vm6, %v3500_v11, 0 }
 0x2d3   :  { %v14020_v2 = vxor.u32 2147483648, %v11429_v50  ;;  %vm14021_vm7 = vcmp.lt.s32.totalorder %v10938_v34, 0  ;;  %v11515_v37 = vor.u32 %v1908_v40, %v1907_v30  ;;  %v1912_v21 = vshll.u32 %v11487_v29, 23 }
 0x2d4   :  { %v3504_v31 = vand.u32 31, %v3502_v18  ;;  %v3396_v8 = vshrl.u32 %v3391_v6, 16  ;;  %v3405_v0 = vadd.s32 %v3404_v12, %v3394_v44  ;;  %v3418_v4 = vshrl.u32 %v3413_v46, 16 }
 0x2d5   :  { %v11513_v24 = vsel %vm14021_vm7, %v14020_v2, %v11429_v50  ;;  %v3427_v16 = vadd.s32 %v3426_v20, %v3416_v28  ;;  %v3429_v9 = vmul.u32 %v11455_v55, %v3375_v38  ;;  %v3498_v61 = vor.u32 8388608, %v11495_v59 }
 0x2d6   :  { %v3505_v11 = vsub.s32 32, %v3504_v31  ;;  %v2724_v62 = vshrl.u32 %v2723_v53, 23  ;;  %vm8566_vm9 = vcmp.lt.s32.totalorder %v8565_v7, 0  ;;  %v11520_v42 = vadd.s32 %v3405_v0, %v3396_v8 }
 0x2d7   :  { %v11522_v50 = vadd.s32 %v3421_v51, %v3417_v27  ;;  %v3428_v30 = vadd.s32 %v3427_v16, %v3418_v4  ;;  %v3507_v40 = vshll.u32 %v13903_v13, %v3504_v31  ;;  %v3510_v6 = vshll.u32 %v13890_v5, %v3504_v31 }
 0x2d8   :  { %v3508_v29 = vshrl.u32 %v13890_v5, %v3505_v11  ;;  %v3511_v46 = vshrl.u32 %v13891_v43, %v3505_v11  ;;  %v3503_v59 = vshrl.u32 %v3502_v18, 5  ;;  %v3513_v53 = vshll.u32 %v13891_v43, %v3504_v31 }
 0x2d9   :  { %vm3431_vm11 = vc.u32 %v11520_v42, %v11522_v50  ;;  %v3432_v55 = vadd.s32 1, %v3428_v30  ;;  %v3514_v27 = vshrl.u32 %v13892_v47, %v3505_v11  ;;  %v3516_v51 = vshll.u32 %v13892_v47, %v3504_v31 }
 0x2da   :  { %v3509_v52 = vor.u32 %v3508_v29, %v3507_v40  ;;  %v3512_v57 = vor.u32 %v3511_v46, %v3510_v6  ;;  %v3517_v48 = vshrl.u32 %v13893_v41, %v3505_v11  ;;  %v3519_v14 = vshll.u32 %v13893_v41, %v3504_v31 }
 0x2db   :  { %v3433_v49 = vsel %vm3431_vm11, %v3432_v55, %v3428_v30  ;;  %v3520_v38 = vshrl.u32 %v13869_v45, %v3505_v11  ;;  %v11537_v63 = vsel %vm8566_vm9, 0, %v8565_v7  ;;  %v3515_v60 = vor.u32 %v3514_v27, %v3513_v53 }
 0x2dc   :  { %v3434_v28 = vadd.s32 %v3433_v49, %v3429_v9  ;;  %v11539_v44 = vshll.u32 %v3498_v61, 8  ;;  %v3506_v12 = vshrl.u32 %v13903_v13, %v3505_v11  ;;  %v3518_v20 = vor.u32 %v3517_v48, %v3516_v51 }
 0x2dd   :  { %v3521_v18 = vor.u32 %v3520_v38, %v3519_v14  ;;  %vm3522_vm4 = vcmp.lt.s32.totalorder %v3503_v59, 1  ;;  %vm3524_vm6 = vcmp.lt.s32.totalorder %v3503_v59, 3  ;;  %vm3525_vm15 = vcmp.lt.s32.totalorder %v3503_v59, 4 }
 0x2de   :  { %v3435_v2 = vadd.s32 536870912, %v3434_v28  ;;  %v3530_v8 = vsel %vm3522_vm4, %v3509_v52, %v3512_v57  ;;  %v3527_v0 = vsel %vm3525_vm15, %v3515_v60, 2102212464  ;;  %v3531_v31 = vsel %vm3525_vm15, %v3518_v20, 920167782 }
 0x2df   :  { %v3534_v4 = vsel %vm3522_vm4, %v3512_v57, %v3515_v60  ;;  %v3535_v16 = vsel %vm3525_vm15, %v3521_v18, 1326507024  ;;  %vm3523_vm7 = vcmp.lt.s32.totalorder %v3503_v59, 2  ;;  %v3532_v7 = vsel %vm3524_vm6, %v3515_v60, %v3531_v31 }
 0x2e0   :  { %v11542_v30 = vshrl.u32 %v3435_v2, 30  ;;  %v3536_v9 = vsel %vm3524_vm6, %v3518_v20, %v3535_v16  ;;  %v3526_v61 = vsel %vm3522_vm4, %v3506_v12, %v3509_v52  ;;  %v3533_v11 = vsel %vm3523_vm7, %v3530_v8, %v3532_v7 }
 0x2e1   :  { %v3537_v40 = vsel %vm3523_vm7, %v3534_v4, %v3536_v9  ;;  %v3539_v29 = vand.u32 65535, %v11539_v44  ;;  %v3528_v46 = vsel %vm3524_vm6, %v3512_v57, %v3527_v0  ;;  %v3540_v27 = vshrl.u32 %v11539_v44, 16 }
 0x2e2   :  { %v3437_v6 = vshll.u32 %v11542_v30, 30  ;;  %v3541_v55 = vand.u32 65535, %v3537_v40  ;;  %v3542_v53 = vshrl.u32 %v3537_v40, 16  ;;  %v3563_v51 = vand.u32 65535, %v3533_v11 }
 0x2e3   :  { %v3564_v49 = vshrl.u32 %v3533_v11, 16  ;;  %v13722_v48 = vand.u32 2147483647, %v11482_v26  ;;  %v11553_v14 = vor.u32 4788187, %v1912_v21  ;;  %v2064_v12 = vsub.s32 4294967266, %v11537_v63 }
 0x2e4   :  { %v11556_v38 = vsub.s32 %v3434_v28, %v3437_v6  ;;  %v3544_v60 = vmul.u32 %v3542_v53, %v3539_v29  ;;  %v11560_v20 = vsel %vm3523_vm7, %v3526_v61, %v3528_v46  ;;  %v3545_v57 = vmul.u32 %v3541_v55, %v3540_v27 }
 0x2e5   :  { %v8579_v18 = vadd.s32 4294967169, %v2724_v62  ;;  %v3543_v8 = vmul.u32 %v3541_v55, %v3539_v29  ;;  %v3546_v21 = vmul.u32 %v3542_v53, %v3540_v27  ;;  %v3566_v31 = vmul.u32 %v3564_v49, %v3539_v29 }
 0x2e6   :  { %vm3439_vm9 = vcmp.lt.s32.totalorder %v11556_v38, 0  ;;  %v3440_v2 = vsub.s32 0, %v11556_v38  ;;  %v3547_v0 = vshll.u32 %v3544_v60, 16  ;;  %v3567_v4 = vmul.u32 %v3563_v51, %v3540_v27 }
 0x2e7   :  { %v11566_v28 = vand.u32 8388607, %v13722_v48  ;;  %v3549_v59 = vshll.u32 %v3545_v57, 16  ;;  %v3565_v61 = vmul.u32 %v3563_v51, %v3539_v29  ;;  %v3569_v11 = vshll.u32 %v3566_v31, 16 }
 0x2e8   :  { %v3441_v16 = vsel %vm3439_vm9, %v3440_v2, %v11556_v38  ;;  %vm3551_vm11 = vc.u32 %v3543_v8, %v3547_v0  ;;  %v3553_v7 = vadd.s32 %v3547_v0, %v3543_v8  ;;  %v3568_v6 = vmul.u32 %v3564_v49, %v3540_v27 }
 0x2e9   :  { %v3442_v9 = vclz %v3441_v16  ;;  %v3552_v62 = vsel %vm3551_vm11, 1, %v13900_v15  ;;  %v3571_v46 = vshll.u32 %v3567_v4, 16  ;;  %vm3573_vm6 = vc.u32 %v3565_v61, %v3569_v11 }
 0x2ea   :  { %v3554_v40 = vadd.s32 %v3552_v62, %v3546_v21  ;;  %vm3555_vm4 = vc.u32 %v3553_v7, %v3549_v59  ;;  %v3575_v48 = vadd.s32 %v3569_v11, %v3565_v61  ;;  %v3548_v52 = vshrl.u32 %v3544_v60, 16 }
 0x2eb   :  { %v8592_v55 = vadd.s32 4294967294, %v3442_v9  ;;  %v3556_v53 = vsel %vm3555_vm4, 1, %v13900_v15  ;;  %v3574_v2 = vsel %vm3573_vm6, 1, %v13900_v15  ;;  %v2730_v26 = vadd.s32 1, %v8579_v18 }
 0x2ec   :  { %v3558_v58 = vadd.s32 %v3556_v53, %v3554_v40  ;;  %v3550_v8 = vshrl.u32 %v3545_v57, 16  ;;  %v3576_v0 = vadd.s32 %v3574_v2, %v3568_v6  ;;  %vm3577_vm7 = vc.u32 %v3575_v48, %v3571_v46 }
 0x2ed   :  { %vm8593_vm15 = vcmp.lt.s32.totalorder %v8592_v55, 0  ;;  %v3578_v21 = vsel %vm3577_vm7, 1, %v13900_v15  ;;  %vm2731_vm9 = vcmp.gt.s32.totalorder %v2730_v26, 0  ;;  %v3570_v16 = vshrl.u32 %v3566_v31, 16 }
 0x2ee   :  { %v3445_v29 = vsel %vm8593_vm15, 0, %v8592_v55  ;;  %v3559_v51 = vadd.s32 %v3558_v58, %v3548_v52  ;;  %v3580_v59 = vadd.s32 %v3578_v21, %v3576_v0  ;;  %v2065_v7 = vadd.s32 127, %v2064_v12 }
 0x2ef   :  { %v3446_v27 = vsub.s32 32, %v3445_v29  ;;  %v3450_v49 = vsub.s32 4294967266, %v3445_v29  ;;  %v3430_v60 = vadd.s32 %v11522_v50, %v11520_v42  ;;  %v2732_v18 = vsel %vm2731_vm9, %v2730_v26, 0 }
 0x2f0   :  { %v11575_v9 = vadd.s32 %v3559_v51, %v3550_v8  ;;  %v3572_v57 = vshrl.u32 %v3567_v4, 16  ;;  %v3581_v61 = vadd.s32 %v3580_v59, %v3570_v16  ;;  %v3583_v58 = vmul.u32 %v11539_v44, %v11560_v20 }
 0x2f1   :  { %v3451_v62 = vadd.s32 127, %v3450_v49  ;;  %v3448_v52 = vshrl.u32 %v3430_v60, %v3446_v27  ;;  %v11579_v11 = vadd.s32 %v3575_v48, %v3571_v46  ;;  %v2728_v40 = vor.u32 8388608, %v11566_v28 }
 0x2f2   :  { %v2734_v31 = vand.u32 31, %v2732_v18  ;;  %v3447_v12 = vshll.u32 %v11556_v38, %v3445_v29  ;;  %v3582_v55 = vadd.s32 %v3581_v61, %v3572_v57  ;;  %v11583_v42 = vshrl.u32 %v2732_v18, 5 }
 0x2f3   :  { %v3452_v6 = vshll.u32 %v3451_v62, 23  ;;  %vm3585_vm11 = vc.u32 %v11575_v9, %v11579_v11  ;;  %v2066_v16 = vshll.u32 %v2065_v7, 23  ;;  %vm13728_vm7 = vcmp.lt.s32.totalorder %v11340_v3, 0 }
 0x2f4   :  { %v2735_v26 = vsub.s32 32, %v2734_v31  ;;  %v2737_v50 = vshll.u32 %v13903_v13, %v2734_v31  ;;  %v2740_v44 = vshll.u32 %v13890_v5, %v2734_v31  ;;  %v3586_v48 = vadd.s32 1, %v3582_v55 }
 0x2f5   :  { %v3453_v20 = vor.u32 4788187, %v3452_v6  ;;  %v2743_v4 = vshll.u32 %v13891_v43, %v2734_v31  ;;  %v2746_v28 = vshll.u32 %v13892_v47, %v2734_v31  ;;  %v3449_v46 = vor.u32 %v3448_v52, %v3447_v12 }
 0x2f6   :  { %v2738_v38 = vshrl.u32 %v13890_v5, %v2735_v26  ;;  %v2741_v53 = vshrl.u32 %v13891_v43, %v2735_v26  ;;  %v2744_v2 = vshrl.u32 %v13892_v47, %v2735_v26  ;;  %v3587_v8 = vsel %vm3585_vm11, %v3586_v48, %v3582_v55 }
 0x2f7   :  { %v2747_v0 = vshrl.u32 %v13893_v41, %v2735_v26  ;;  %v2749_v29 = vshll.u32 %v13893_v41, %v2734_v31  ;;  %vm2752_vm4 = vcmp.lt.s32.totalorder %v11583_v42, 1  ;;  %v3454_v51 = vand.u32 2147483647, %v3453_v20 }
 0x2f8   :  { %v3588_v21 = vadd.s32 %v3587_v8, %v3583_v58  ;;  %v2739_v27 = vor.u32 %v2738_v38, %v2737_v50  ;;  %v11597_v49 = vor.u32 %v2741_v53, %v2740_v44  ;;  %v11599_v59 = vor.u32 %v2744_v2, %v2743_v4 }
 0x2f9   :  { %v2748_v60 = vor.u32 %v2747_v0, %v2746_v28  ;;  %v2750_v18 = vshrl.u32 %v13869_v45, %v2735_v26  ;;  %v3456_v62 = vcvt.s32.f32 %v3449_v46  ;;  %vm13729_vm6 = vcmp.lt.s32.totalorder %v11583_v42, 3 }
 0x2fa   :  { %v3589_v57 = vadd.s32 536870912, %v3588_v21  ;;  %vm13726_vm15 = vcmp.lt.s32.totalorder %v11583_v42, 4  ;;  %vm13727_vm9 = vcmp.lt.s32.totalorder %v11583_v42, 2  ;;  %v2760_v7 = vsel %vm2752_vm4, %v2739_v27, %v11597_v49 }
 0x2fb   :  { %v2751_v61 = vor.u32 %v2750_v18, %v2749_v29  ;;  %v11609_v58 = vshll.u32 %v2728_v40, 8  ;;  %v1916_v52 = vcvt.s32.f32 %v11515_v37  ;;  %v3457_v31 = vmul.f32 %v3456_v62, %v3454_v51 }
 0x2fc   :  { %v11612_v12 = vshrl.u32 %v3589_v57, 30  ;;  %v2761_v6 = vsel %vm13726_vm15, %v2748_v60, 920167782  ;;  %v2044_v55 = vadd.s32 %v11372_v22, %v11370_v17  ;;  %v2764_v40 = vsel %vm2752_vm4, %v11597_v49, %v11599_v59 }
 0x2fd   :  { %v2762_v50 = vsel %vm13729_vm6, %v11599_v59, %v2761_v6  ;;  %v2765_v37 = vsel %vm13726_vm15, %v2751_v61, 1326507024  ;;  %v1914_v44 = vand.u32 2147483647, %v11553_v14  ;;  %v2061_v20 = vshll.u32 %v11447_v39, %v11537_v63 }
 0x2fe   :  { %v3591_v48 = vshll.u32 %v11612_v12, 30  ;;  %v2763_v17 = vsel %vm13727_vm9, %v2760_v7, %v2762_v50  ;;  %v14022_v22 = vsub.s32 32, %v11537_v63  ;;  %v11635_v28 = vor.u32 4788187, %v2066_v16 }
 0x2ff   :  { %v14023_v46 = vand.u32 2147483647, %v11340_v3  ;;  %v2766_v14 = vsel %vm13729_vm6, %v2748_v60, %v2765_v37  ;;  %v2769_v39 = vand.u32 65535, %v11609_v58  ;;  %v3458_v53 = vxor.u32 2147483648, %v3457_v31 }
 0x300   :  { %v2062_v4 = vshrl.u32 %v2044_v55, %v14022_v22  ;;  %v11646_v2 = vsub.s32 %v3588_v21, %v3591_v48  ;;  %v2767_v63 = vsel %vm13727_vm9, %v2764_v40, %v2766_v14  ;;  %v2794_v8 = vshrl.u32 %v2763_v17, 16 }
 0x301   :  { %vm11639_vm11 = vcmp.le.f32.partialorder %v14023_v46, 0.7853982  ;;  %v2770_v0 = vshrl.u32 %v11609_v58, 16  ;;  %v2771_v29 = vand.u32 65535, %v2767_v63  ;;  %v2772_v51 = vshrl.u32 %v2767_v63, 16 }
 0x302   :  { %v2793_v16 = vand.u32 65535, %v2763_v17  ;;  %vm3593_vm15 = vcmp.lt.s32.totalorder %v11646_v2, 0  ;;  %v3594_v18 = vsub.s32 0, %v11646_v2  ;;  %v2736_v60 = vshrl.u32 %v13903_v13, %v2735_v26 }
 0x303   :  { %v2796_v62 = vmul.u32 %v2794_v8, %v2769_v39  ;;  %v11654_v57 = vmul.f32 %v1916_v52, %v1914_v44  ;;  %v11656_v21 = vor.u32 %v2062_v4, %v2061_v20  ;;  %v2774_v61 = vmul.u32 %v2772_v51, %v2769_v39 }
 0x304   :  { %v2775_v7 = vmul.u32 %v2771_v29, %v2770_v0  ;;  %v2068_v6 = vand.u32 2147483647, %v11635_v28  ;;  %v3459_v55 = vsel %vm13728_vm7, %v3458_v53, %v3457_v31  ;;  %v3584_v50 = vadd.s32 %v11579_v11, %v11575_v9 }
 0x305   :  { %v3595_v40 = vsel %vm3593_vm15, %v3594_v18, %v11646_v2  ;;  %v2773_v48 = vmul.u32 %v2771_v29, %v2769_v39  ;;  %v2777_v26 = vshll.u32 %v2774_v61, 16  ;;  %v2797_v17 = vmul.u32 %v2793_v16, %v2770_v0 }
 0x306   :  { %v3596_v37 = vclz %v3595_v40  ;;  %v2756_v52 = vsel %vm2752_vm4, %v2736_v60, %v2739_v27  ;;  %v2776_v44 = vmul.u32 %v2772_v51, %v2770_v0  ;;  %v2795_v20 = vmul.u32 %v2793_v16, %v2769_v39 }
 0x307   :  { %v2799_v22 = vshll.u32 %v2796_v62, 16  ;;  %v2779_v28 = vshll.u32 %v2775_v7, 16  ;;  %vm2781_vm9 = vc.u32 %v2773_v48, %v2777_v26  ;;  %v2783_v46 = vadd.s32 %v2777_v26, %v2773_v48  ;;  %v11687_v48 = vpop.f32.mrf.mxu1 }
 0x308   :  { %v8595_v4 = vadd.s32 4294967294, %v3596_v37  ;;  %v11669_v9 = vsel %vm11639_vm11, %v11340_v3, %v3459_v55  ;;  %v2782_v11 = vsel %vm2781_vm9, 1, %v13900_v15  ;;  %v2798_v31 = vmul.u32 %v2794_v8, %v2770_v0  ;;  %14032 = vst [vmem:[#allocation88_spill] sm:$0xff] %v11687_v48 }
 0x309   :  { %vm2803_vm15 = vc.u32 %v2795_v20, %v2799_v22  ;;  %v2784_v14 = vadd.s32 %v2782_v11, %v2776_v44  ;;  %vm2785_vm6 = vc.u32 %v2783_v46, %v2779_v28  ;;  %v2801_v27 = vshll.u32 %v2797_v17, 16 }
 0x30a   :  { %vm8596_vm7 = vcmp.lt.s32.totalorder %v8595_v4, 0  ;;  %v2786_v39 = vsel %vm2785_vm6, 1, %v13900_v15  ;;  %v2804_v63 = vsel %vm2803_vm15, 1, %v13900_v15  ;;  %v2805_v29 = vadd.s32 %v2799_v22, %v2795_v20 }
 0x30b   :  { %v3599_v53 = vsel %vm8596_vm7, 0, %v8595_v4  ;;  %v11676_v51 = vmul.f32 %v11669_v9, %v11669_v9  ;;  %vm14027_vm4 = vcmp.lt.s32.totalorder %v11583_v42, 4  ;;  %v14028_v0 = vand.u32 2147483647, %v10938_v34 }
 0x30c   :  { %v3600_v16 = vsub.s32 32, %v3599_v53  ;;  %v3604_v18 = vsub.s32 4294967266, %v3599_v53  ;;  %v2757_v8 = vsel %vm14027_vm4, %v11599_v59, 2102212464  ;;  %v14029_v60 = vmov 0 }
 0x30d   :  { %14026 = vst [vmem:[#allocation86_spill] sm:$0xff] %v11676_v51  ;;  %vm11683_vm9 = vcmp.le.f32.partialorder %v14028_v0, 0.7853982  ;;  %v2778_v55 = vshrl.u32 %v2774_v61, 16  ;;  %v2788_v40 = vadd.s32 %v2786_v39, %v2784_v14  ;;  %v2806_v37 = vadd.s32 %v2804_v63, %v2798_v31 }
 0x30e   :  { %v14030_v60 = vsel %vm11683_vm9, 4294967295, %v14029_v60  ;;  %vm2807_vm6 = vc.u32 %v2805_v29, %v2801_v27  ;;  %v3601_v26 = vshll.u32 %v11646_v2, %v3599_v53  ;;  %v3602_v44 = vshrl.u32 %v3584_v50, %v3600_v16 }
 0x30f   :  { %14031 = vst [vmem:[#allocation87_spill] sm:$0xff] %v14030_v60  ;;  %v3605_v20 = vadd.s32 127, %v3604_v18  ;;  %v2808_v22 = vsel %vm2807_vm6, 1, %v13900_v15  ;;  %v2780_v59 = vshrl.u32 %v2775_v7, 16  ;;  %v2789_v4 = vadd.s32 %v2788_v40, %v2778_v55 }
 0x310   :  { %v2800_v28 = vshrl.u32 %v2796_v62, 16  ;;  %v2810_v46 = vadd.s32 %v2808_v22, %v2806_v37  ;;  %v3603_v11 = vor.u32 %v3602_v44, %v3601_v26  ;;  %vm14033_vm15 = vcmp.lt.s32.totalorder %v11583_v42, 3 }
 0x311   :  { %v3606_v0 = vshll.u32 %v3605_v20, 23  ;;  %v2758_v61 = vsel %vm14033_vm15, %v11597_v49, %v2757_v8  ;;  %v2877_v31 = vand.u32 2139095040, %v11687_v48  ;;  %v2070_v2 = vcvt.s32.f32 %v11656_v21 }
 0x312   :  { %v11697_v50 = vadd.s32 %v2789_v4, %v2780_v59  ;;  %v2802_v14 = vshrl.u32 %v2797_v17, 16  ;;  %v2811_v53 = vadd.s32 %v2810_v46, %v2800_v28  ;;  %v14034_v39 = vand.u32 2147483647, %v11032_v1 }
 0x313   :  { %v14035_v7 = vmov 0  ;;  %v1918_v62 = vxor.u32 2147483648, %v11654_v57  ;;  %v3607_v63 = vor.u32 4788187, %v3606_v0  ;;  %v11707_v49 = vadd.s32 %v2805_v29, %v2801_v27 }
 0x314   :  { %vm11701_vm4 = vcmp.le.f32.partialorder %v14034_v39, 0.7853982  ;;  %v2878_v16 = vshrl.u32 %v2877_v31, 23  ;;  %v2071_v18 = vmul.f32 %v2070_v2, %v2068_v6  ;;  %v3472_v21 = vmul.f32 -0.00019511016, %v11676_v51  ;;  %v11749_v31 = vpop.f32.mrf.mxu0 }
 0x315   :  { %v14036_v7 = vsel %vm11701_vm4, 4294967295, %v14035_v7  ;;  %vm14038_vm15 = vcmp.lt.s32.totalorder %v11583_v42, 2  ;;  %v2812_v8 = vadd.s32 %v2811_v53, %v2802_v14  ;;  %v3608_v55 = vand.u32 2147483647, %v3607_v63 }
 0x316   :  { %14037 = vst [vmem:[#allocation89_spill] sm:$0xff] %v14036_v7  ;;  %v2759_v17 = vsel %vm14038_vm15, %v2756_v52, %v2758_v61  ;;  %v3610_v40 = vcvt.s32.f32 %v3603_v11  ;;  %vm2815_vm7 = vc.u32 %v11697_v50, %v11707_v49  ;;  %v8582_v37 = vadd.s32 4294967169, %v2878_v16 }
 0x317   :  { %v14039_v26 = vsub.s32 4, %v11034_v56  ;;  %vm14040_vm6 = vcmp.lt.s32.totalorder %v10736_v25, 0  ;;  %v11723_v6 = vmul.f32 %v11425_v36, %v11425_v36  ;;  %v14043_v42 = vsub.s32 4, %v11199_v19 }
 0x318   :  { %vm14044_vm15 = vcmp.lt.s32.totalorder %v10938_v34, 0  ;;  %v2816_v29 = vadd.s32 1, %v2812_v8  ;;  %v11736_v44 = vsel %vm11683_vm9, %v10938_v34, %v11513_v24  ;;  %v2813_v20 = vmul.u32 %v11609_v58, %v2759_v17 }
 0x319   :  { %v11719_v27 = vsel %vm14040_vm6, %v14039_v26, %v11034_v56  ;;  %14042 = vst [vmem:[#allocation91_spill] sm:$0xff] %v11723_v6  ;;  %v11730_v52 = vsel %vm14044_vm15, %v14043_v42, %v11199_v19  ;;  %v3611_v56 = vmul.f32 %v3610_v40, %v3608_v55  ;;  %v2884_v22 = vadd.s32 1, %v8582_v37 }
 0x31a   :  { %14041 = vst [vmem:[#allocation90_spill] sm:$0xff] %v11719_v27  ;;  %v2072_v4 = vxor.u32 2147483648, %v2071_v18  ;;  %v3473_v28 = vadd.f32 0.008332121, %v3472_v21  ;;  %v2817_v46 = vsel %vm2815_vm7, %v2816_v29, %v2812_v8  ;;  %vm14047_vm6 = vcmp.lt.s32.totalorder %v11032_v1, 0 }
 0x31b   :  { %14045 = vst [vmem:[#allocation92_spill] sm:$0xff] %v11730_v52  ;;  %v1919_v19 = vsel %vm14047_vm6, %v1918_v62, %v11654_v57  ;;  %v2818_v11 = vadd.s32 %v2817_v46, %v2813_v20  ;;  %v13731_v0 = vand.u32 2147483647, %v11687_v48  ;;  %vm2885_vm15 = vcmp.gt.s32.totalorder %v2884_v22, 0 }
 0x31c   :  { %14046 = vst [vmem:[#allocation93_spill] sm:$0xff] %v11736_v44  ;;  %v11746_v24 = vmul.f32 %v11736_v44, %v11736_v44  ;;  %vm13736_vm1 = vcmp.lt.s32.totalorder %v11414_v23, 0  ;;  %v3612_v58 = vxor.u32 2147483648, %v3611_v56  ;;  %v2886_v61 = vsel %vm2885_vm15, %v2884_v22, 0 }
 0x31d   :  { %v14049_v14 = vand.u32 2147483647, %v11414_v23  ;;  %v2819_v53 = vadd.s32 536870912, %v2818_v11  ;;  %v2888_v39 = vand.u32 31, %v2886_v61  ;;  %v11761_v62 = vsel %vm11701_vm4, %v11032_v1, %v1919_v19 }
 0x31e   :  { %14048 = vst [vmem:[#allocation94_spill] sm:$0xff] %v11746_v24  ;;  %vm14053_vm6 = vcmp.lt.s32.totalorder %v11173_v35, 0  ;;  %v3460_v16 = vsub.s32 4, %v11542_v30  ;;  %v3474_v21 = vmul.f32 %v3473_v28, %v11676_v51  ;;  %v2881_v8 = vand.u32 8388607, %v13731_v0 }
 0x31f   :  { %vm11754_vm7 = vcmp.le.f32.partialorder %v14049_v14, 0.7853982  ;;  %14052 = vst [vmem:[#allocation95_spill] sm:$0xff] %v11761_v62  ;;  %v11765_v63 = vsel %vm14053_vm6, %v2072_v4, %v2071_v18  ;;  %v11769_v17 = vshrl.u32 %v2819_v53, 30  ;;  %v2889_v55 = vsub.s32 32, %v2888_v39 }
 0x320   :  { %v3647_v40 = vand.u32 2139095040, %v11749_v31  ;;  %v3613_v37 = vsel %vm13736_vm1, %v3612_v58, %v3611_v56  ;;  %v2891_v26 = vshll.u32 %v13903_v13, %v2888_v39  ;;  %v2894_v18 = vshll.u32 %v13890_v5, %v2888_v39 }
 0x321   :  { %v2900_v42 = vshll.u32 %v13892_v47, %v2888_v39  ;;  %v2821_v29 = vshll.u32 %v11769_v17, 30  ;;  %v11780_v20 = vshrl.u32 %v2886_v61, 5  ;;  %v2897_v22 = vshll.u32 %v13891_v43, %v2888_v39 }
 0x322   :  { %v2903_v4 = vshll.u32 %v13893_v41, %v2888_v39  ;;  %v2892_v28 = vshrl.u32 %v13890_v5, %v2889_v55  ;;  %v2895_v46 = vshrl.u32 %v13891_v43, %v2889_v55  ;;  %v2898_v56 = vshrl.u32 %v13892_v47, %v2889_v55 }
 0x323   :  { %v2901_v19 = vshrl.u32 %v13893_v41, %v2889_v55  ;;  %v3475_v58 = vadd.f32 -0.16666654, %v3474_v21  ;;  %v11788_v14 = vsub.s32 %v2818_v11, %v2821_v29  ;;  %v2882_v53 = vor.u32 8388608, %v2881_v8 }
 0x324   :  { %v2904_v2 = vshrl.u32 %v13869_v45, %v2889_v55  ;;  %v2893_v61 = vor.u32 %v2892_v28, %v2891_v26  ;;  %v2896_v59 = vor.u32 %v2895_v46, %v2894_v18  ;;  %v3648_v7 = vshrl.u32 %v3647_v40, 23 }
 0x325   :  { %v2902_v0 = vor.u32 %v2901_v19, %v2900_v42  ;;  %v11794_v39 = vsel %vm11754_vm7, %v11414_v23, %v3613_v37  ;;  %vm2823_vm15 = vcmp.lt.s32.totalorder %v11788_v14, 0  ;;  %v2824_v54 = vsub.s32 0, %v11788_v14 }
 0x326   :  { %v2899_v62 = vor.u32 %v2898_v56, %v2897_v22  ;;  %v2905_v21 = vor.u32 %v2904_v2, %v2903_v4  ;;  %vm2906_vm6 = vcmp.lt.s32.totalorder %v11780_v20, 1  ;;  %vm2908_vm1 = vcmp.lt.s32.totalorder %v11780_v20, 3 }
 0x327   :  { %vm2909_vm4 = vcmp.lt.s32.totalorder %v11780_v20, 4  ;;  %v2825_v11 = vsel %vm2823_vm15, %v2824_v54, %v11788_v14  ;;  %vm13742_vm2 = vcmp.lt.s32.totalorder %v11780_v20, 2  ;;  %v11803_v8 = vshll.u32 %v2882_v53, 8 }
 0x328   :  { %v13739_v40 = vand.u32 2147483647, %v11749_v31  ;;  %v11808_v37 = vmul.f32 %v11794_v39, %v11794_v39  ;;  %v2826_v26 = vclz %v2825_v11  ;;  %v2914_v2 = vsel %vm2906_vm6, %v2893_v61, %v2896_v59 }
 0x329   :  { %v2915_v18 = vsel %vm2909_vm4, %v2902_v0, 920167782  ;;  %vm14054_vm15 = vcmp.lt.s32.totalorder %v11340_v3, 0  ;;  %v3614_v42 = vsub.s32 4, %v11612_v12  ;;  %v2918_v22 = vsel %vm2906_vm6, %v2896_v59, %v2899_v62 }
 0x32a   :  { %v11817_v54 = vsel %vm14054_vm15, %v3460_v16, %v11542_v30  ;;  %v2916_v29 = vsel %vm2908_vm1, %v2899_v62, %v2915_v18  ;;  %v3476_v4 = vmul.f32 %v3475_v58, %v11676_v51  ;;  %v2919_v46 = vsel %vm2909_vm4, %v2905_v21, 1326507024 }
 0x32b   :  { %v2917_v28 = vsel %vm13742_vm2, %v2914_v2, %v2916_v29  ;;  %v8597_v56 = vadd.s32 4294967169, %v3648_v7  ;;  %v8580_v19 = vadd.s32 4294967294, %v2826_v26  ;;  %v2920_v30 = vsel %vm2908_vm1, %v2902_v0, %v2919_v46 }
 0x32c   :  { %v2923_v16 = vand.u32 65535, %v11803_v8  ;;  %v11834_v53 = vand.u32 8388607, %v13739_v40  ;;  %v3626_v11 = vmul.f32 -0.00019511016, %v11808_v37  ;;  %v2921_v58 = vsel %vm13742_vm2, %v2918_v22, %v2920_v30 }
 0x32d   :  { %v2947_v2 = vand.u32 65535, %v2917_v28  ;;  %v2948_v18 = vshrl.u32 %v2917_v28, 16  ;;  %v2890_v21 = vshrl.u32 %v13903_v13, %v2889_v55  ;;  %v2924_v7 = vshrl.u32 %v11803_v8, 16 }
 0x32e   :  { %v2925_v26 = vand.u32 65535, %v2921_v58  ;;  %v2926_v29 = vshrl.u32 %v2921_v58, 16  ;;  %v11841_v0 = vadd.f32 1.0, %v3476_v4  ;;  %vm14055_vm15 = vcmp.lt.s32.totalorder %v11414_v23, 0 }
 0x32f   :  { %v11846_v46 = vsel %vm14055_vm15, %v3614_v42, %v11612_v12  ;;  %v2911_v40 = vsel %vm2909_vm4, %v2899_v62, 2102212464  ;;  %v3654_v1 = vadd.s32 1, %v8597_v56  ;;  %v2814_v22 = vadd.s32 %v11707_v49, %v11697_v50 }
 0x330   :  { %vm8581_vm2 = vcmp.lt.s32.totalorder %v8580_v19, 0  ;;  %v2928_v55 = vmul.u32 %v2926_v29, %v2923_v16  ;;  %v2929_v28 = vmul.u32 %v2925_v26, %v2924_v7  ;;  %v11852_v30 = vadd.f32 0.008332121, %v3626_v11 }
 0x331   :  { %v2950_v58 = vmul.u32 %v2948_v18, %v2923_v16  ;;  %v2951_v4 = vmul.u32 %v2947_v2, %v2924_v7  ;;  %v2910_v12 = vsel %vm2906_vm6, %v2890_v21, %v2893_v61  ;;  %v2912_v42 = vsel %vm2908_vm1, %v2896_v59, %v2911_v40 }
 0x332   :  { %v2927_v62 = vmul.u32 %v2925_v26, %v2923_v16  ;;  %v2931_v56 = vshll.u32 %v2928_v55, 16  ;;  %v11859_v44 = vsel %vm8581_vm2, 0, %v8580_v19  ;;  %v2949_v50 = vmul.u32 %v2947_v2, %v2923_v16 }
 0x333   :  { %v2953_v49 = vshll.u32 %v2950_v58, 16  ;;  %vm3655_vm4 = vcmp.gt.s32.totalorder %v3654_v1, 0  ;;  %v2930_v34 = vmul.u32 %v2926_v29, %v2924_v7  ;;  %v2933_v11 = vshll.u32 %v2929_v28, 16 }
 0x334   :  { %vm2935_vm15 = vc.u32 %v2927_v62, %v2931_v56  ;;  %v2937_v36 = vadd.s32 %v2931_v56, %v2927_v62  ;;  %vm14056_vm14 = vcmp.lt.s32.totalorder %v11780_v20, 2  ;;  %v2952_v61 = vmul.u32 %v2948_v18, %v2924_v7 }
 0x335   :  { %v2913_v32 = vsel %vm14056_vm14, %v2910_v12, %v2912_v42  ;;  %v2936_v25 = vsel %vm2935_vm15, 1, %v13900_v15  ;;  %v2955_v21 = vshll.u32 %v2951_v4, 16  ;;  %vm2957_vm6 = vc.u32 %v2949_v50, %v2953_v49 }
 0x336   :  { %v2938_v60 = vadd.s32 %v2936_v25, %v2930_v34  ;;  %vm2939_vm1 = vc.u32 %v2937_v36, %v2933_v11  ;;  %v2959_v59 = vadd.s32 %v2953_v49, %v2949_v50  ;;  %v2834_v40 = vsub.s32 4294967266, %v11859_v44 }
 0x337   :  { %v2940_v19 = vsel %vm2939_vm1, 1, %v13900_v15  ;;  %v2958_v16 = vsel %vm2957_vm6, 1, %v13900_v15  ;;  %v3656_v2 = vsel %vm3655_vm4, %v3654_v1, 0  ;;  %v2932_v26 = vshrl.u32 %v2928_v55, 16 }
 0x338   :  { %v2942_v29 = vadd.s32 %v2940_v19, %v2938_v60  ;;  %v2960_v20 = vadd.s32 %v2958_v16, %v2952_v61  ;;  %vm2961_vm14 = vc.u32 %v2959_v59, %v2955_v21  ;;  %v2830_v12 = vsub.s32 32, %v11859_v44 }
 0x339   :  { %v2962_v18 = vsel %vm2961_vm14, 1, %v13900_v15  ;;  %v2967_v25 = vmul.u32 %v11803_v8, %v2913_v32  ;;  %v3658_v34 = vand.u32 31, %v3656_v2  ;;  %v2934_v36 = vshrl.u32 %v2929_v28, 16 }
 0x33a   :  { %v2943_v7 = vadd.s32 %v2942_v29, %v2932_v26  ;;  %v2954_v42 = vshrl.u32 %v2950_v58, 16  ;;  %v2964_v62 = vadd.s32 %v2962_v18, %v2960_v20  ;;  %v2835_v56 = vadd.s32 127, %v2834_v40 }
 0x33b   :  { %v3659_v50 = vsub.s32 32, %v3658_v34  ;;  %v3661_v49 = vshll.u32 %v13903_v13, %v3658_v34  ;;  %v3664_v1 = vshll.u32 %v13890_v5, %v3658_v34  ;;  %v2956_v55 = vshrl.u32 %v2951_v4, 16 }
 0x33c   :  { %v11873_v60 = vadd.s32 %v2943_v7, %v2934_v36  ;;  %v11875_v11 = vadd.s32 %v2959_v59, %v2955_v21  ;;  %v2965_v61 = vadd.s32 %v2964_v62, %v2954_v42  ;;  %v11877_v19 = vshrl.u32 %v3656_v2, 5 }
 0x33d   :  { %v3662_v32 = vshrl.u32 %v13890_v5, %v3659_v50  ;;  %v3665_v8 = vshrl.u32 %v13891_v43, %v3659_v50  ;;  %v3667_v28 = vshll.u32 %v13891_v43, %v3658_v34  ;;  %v2831_v58 = vshll.u32 %v11788_v14, %v11859_v44 }
 0x33e   :  { %v2832_v40 = vshrl.u32 %v2814_v22, %v2830_v12  ;;  %v2966_v16 = vadd.s32 %v2965_v61, %v2956_v55  ;;  %v3670_v26 = vshll.u32 %v13892_v47, %v3658_v34  ;;  %vm2969_vm2 = vc.u32 %v11873_v60, %v11875_v11 }
 0x33f   :  { %v3663_v4 = vor.u32 %v3662_v32, %v3661_v49  ;;  %v11887_v21 = vor.u32 %v3665_v8, %v3664_v1  ;;  %v3668_v59 = vshrl.u32 %v13892_v47, %v3659_v50  ;;  %v3671_v29 = vshrl.u32 %v13893_v41, %v3659_v50 }
 0x340   :  { %v2970_v2 = vadd.s32 1, %v2966_v16  ;;  %v3673_v20 = vshll.u32 %v13893_v41, %v3658_v34  ;;  %v3674_v18 = vshrl.u32 %v13869_v45, %v3659_v50  ;;  %v2836_v44 = vshll.u32 %v2835_v56, 23  ;;  %v11904_v56 = vpop.f32.mrf.mxu1 }
 0x341   :  { %v3669_v14 = vor.u32 %v3668_v59, %v3667_v28  ;;  %vm3676_vm4 = vcmp.lt.s32.totalorder %v11877_v19, 1  ;;  %vm3678_vm15 = vcmp.lt.s32.totalorder %v11877_v19, 3  ;;  %v3672_v12 = vor.u32 %v3671_v29, %v3670_v26 }
 0x342   :  { %v2971_v22 = vsel %vm2969_vm2, %v2970_v2, %v2966_v16  ;;  %v3675_v36 = vor.u32 %v3674_v18, %v3673_v20  ;;  %vm3679_vm1 = vcmp.lt.s32.totalorder %v11877_v19, 4  ;;  %vm13756_vm6 = vcmp.lt.s32.totalorder %v11877_v19, 2 }
 0x343   :  { %v2972_v7 = vadd.s32 %v2971_v22, %v2967_v25  ;;  %v3684_v34 = vsel %vm3676_vm4, %v3663_v4, %v11887_v21  ;;  %v14057_v42 = vor.u32 8388608, %v11834_v53  ;;  %v11906_v49 = vor.u32 %v2832_v40, %v2831_v58 }
 0x344   :  { %v3685_v1 = vsel %vm3679_vm1, %v3672_v12, 920167782  ;;  %v3688_v25 = vsel %vm3676_vm4, %v11887_v21, %v3669_v14  ;;  %v3689_v55 = vsel %vm3679_vm1, %v3675_v36, 1326507024  ;;  %v11915_v61 = vor.u32 4788187, %v2836_v44 }
 0x345   :  { %v11902_v62 = vshll.u32 %v14057_v42, 8  ;;  %v2973_v32 = vadd.s32 536870912, %v2972_v7  ;;  %v3686_v53 = vsel %vm3678_vm15, %v3669_v14, %v3685_v1  ;;  %v3690_v8 = vsel %vm3678_vm15, %v3672_v12, %v3689_v55 }
 0x346   :  { %v3660_v28 = vshrl.u32 %v13903_v13, %v3659_v50  ;;  %v3687_v58 = vsel %vm13756_vm6, %v3684_v34, %v3686_v53  ;;  %v3691_v40 = vsel %vm13756_vm6, %v3688_v25, %v3690_v8  ;;  %v3801_v16 = vand.u32 2139095040, %v11904_v56 }
 0x347   :  { %v11927_v26 = vshrl.u32 %v2973_v32, 30  ;;  %v3693_v59 = vand.u32 65535, %v11902_v62  ;;  %v3695_v2 = vand.u32 65535, %v3691_v40  ;;  %v3696_v29 = vshrl.u32 %v3691_v40, 16 }
 0x348   :  { %v11932_v20 = vmul.f32 %v11852_v30, %v11808_v37  ;;  %v3694_v50 = vshrl.u32 %v11902_v62, 16  ;;  %v3717_v18 = vand.u32 65535, %v3687_v58  ;;  %v3718_v44 = vshrl.u32 %v3687_v58, 16 }
 0x349   :  { %14058 = vst [vmem:[#allocation96_spill] sm:$0xff] %v11927_v26  ;;  %v2838_v22 = vand.u32 2147483647, %v11915_v61  ;;  %v2840_v12 = vcvt.s32.f32 %v11906_v49  ;;  %v2975_v36 = vshll.u32 %v11927_v26, 30  ;;  %v3698_v34 = vmul.u32 %v3696_v29, %v3693_v59 }
 0x34a   :  { %v3680_v42 = vsel %vm3676_vm4, %v3660_v28, %v3663_v4  ;;  %v3681_v1 = vsel %vm3679_vm1, %v3669_v14, 2102212464  ;;  %v3699_v25 = vmul.u32 %v3695_v2, %v3694_v50  ;;  %v3720_v30 = vmul.u32 %v3718_v44, %v3693_v59 }
 0x34b   :  { %v11942_v55 = vsub.s32 %v2972_v7, %v2975_v36  ;;  %v3697_v32 = vmul.u32 %v3695_v2, %v3693_v59  ;;  %v3701_v53 = vshll.u32 %v3698_v34, 16  ;;  %v3700_v61 = vmul.u32 %v3696_v29, %v3694_v50 }
 0x34c   :  { %v3703_v58 = vshll.u32 %v3699_v25, 16  ;;  %v3721_v49 = vmul.u32 %v3717_v18, %v3694_v50  ;;  %v3802_v40 = vshrl.u32 %v3801_v16, 23  ;;  %v14059_v52 = vand.u32 2147483647, %v11173_v35 }
 0x34d   :  { %v14060_v24 = vmov 0  ;;  %vm2977_vm2 = vcmp.lt.s32.totalorder %v11942_v55, 0  ;;  %v2978_v4 = vsub.s32 0, %v11942_v55  ;;  %vm3705_vm4 = vc.u32 %v3697_v32, %v3701_v53 }
 0x34e   :  { %vm11947_vm14 = vcmp.le.f32.partialorder %v14059_v52, 0.7853982  ;;  %v3707_v14 = vadd.s32 %v3701_v53, %v3697_v32  ;;  %v3706_v7 = vsel %vm3705_vm4, 1, %v13900_v15  ;;  %v3719_v28 = vmul.u32 %v3717_v18, %v3693_v59 }
 0x34f   :  { %v14061_v24 = vsel %vm11947_vm14, 4294967295, %v14060_v24  ;;  %v3722_v2 = vmul.u32 %v3718_v44, %v3694_v50  ;;  %v3723_v29 = vshll.u32 %v3720_v30, 16  ;;  %v2979_v36 = vsel %vm2977_vm2, %v2978_v4, %v11942_v55 }
 0x350   :  { %14062 = vst [vmem:[#allocation97_spill] sm:$0xff] %v14061_v24  ;;  %v3708_v16 = vadd.s32 %v3706_v7, %v3700_v61  ;;  %vm3709_vm1 = vc.u32 %v3707_v14, %v3703_v58  ;;  %v3725_v8 = vshll.u32 %v3721_v49, 16  ;;  %v2980_v52 = vclz %v2979_v36 }
 0x351   :  { %v3710_v23 = vsel %vm3709_vm1, 1, %v13900_v15  ;;  %vm3727_vm6 = vc.u32 %v3719_v28, %v3723_v29  ;;  %v3729_v27 = vadd.s32 %v3723_v29, %v3719_v28  ;;  %v3702_v6 = vshrl.u32 %v3698_v34, 16 }
 0x352   :  { %v3712_v3 = vadd.s32 %v3710_v23, %v3708_v16  ;;  %v3728_v51 = vsel %vm3727_vm6, 1, %v13900_v15  ;;  %v8600_v32 = vadd.s32 4294967169, %v3802_v40  ;;  %v8583_v53 = vadd.s32 4294967294, %v2980_v52 }
 0x353   :  { %v3704_v26 = vshrl.u32 %v3699_v25, 16  ;;  %v3730_v59 = vadd.s32 %v3728_v51, %v3722_v2  ;;  %vm3731_vm4 = vc.u32 %v3729_v27, %v3725_v8  ;;  %v14063_v44 = vand.u32 2147483647, %v11904_v56 }
 0x354   :  { %v3713_v50 = vadd.s32 %v3712_v3, %v3702_v6  ;;  %v3732_v18 = vsel %vm3731_vm4, 1, %v13900_v15  ;;  %v3808_v58 = vadd.s32 1, %v8600_v32  ;;  %vm8584_vm2 = vcmp.lt.s32.totalorder %v8583_v53, 0 }
 0x355   :  { %v3805_v61 = vand.u32 8388607, %v14063_v44  ;;  %v3682_v34 = vsel %vm3678_vm15, %v11887_v21, %v3681_v1  ;;  %v3724_v23 = vshrl.u32 %v3720_v30, 16  ;;  %v3734_v4 = vadd.s32 %v3732_v18, %v3730_v59 }
 0x356   :  { %v11963_v14 = vmul.f32 %v2840_v12, %v2838_v22  ;;  %v11965_v40 = vsel %vm8584_vm2, 0, %v8583_v53  ;;  %v3714_v51 = vadd.s32 %v3713_v50, %v3704_v26  ;;  %vm3809_vm6 = vcmp.gt.s32.totalorder %v3808_v58, 0 }
 0x357   :  { %v11971_v3 = vsel %vm11947_vm14, %v11173_v35, %v11765_v63  ;;  %v11976_v6 = vsel %vm11639_vm11, 0, %v11817_v54  ;;  %v3726_v21 = vshrl.u32 %v3721_v49, 16  ;;  %v3735_v1 = vadd.s32 %v3734_v4, %v3724_v23 }
 0x358   :  { %14064 = vst [vmem:[#allocation98_spill] sm:$0xff] %v11971_v3  ;;  %vm14066_vm15 = vcmp.lt.s32.totalorder %v11877_v19, 2  ;;  %v3733_v12 = vadd.s32 %v3729_v27, %v3725_v8  ;;  %v3806_v25 = vor.u32 8388608, %v3805_v61  ;;  %v3810_v26 = vsel %vm3809_vm6, %v3808_v58, 0 }
 0x359   :  { %14065 = vst [vmem:[#allocation99_spill] sm:$0xff] %v11976_v6  ;;  %v3683_v22 = vsel %vm14066_vm15, %v3680_v42, %v3682_v34  ;;  %v11982_v30 = vmul.f32 %v11841_v0, %v11669_v9  ;;  %v11987_v63 = vsel %vm11754_vm7, 0, %v11846_v46  ;;  %v2988_v38 = vsub.s32 4294967266, %v11965_v40 }
 0x35a   :  { %14068 = vst [vmem:[#allocation101_spill] sm:$0xff] %v11987_v63  ;;  %v3736_v54 = vadd.s32 %v3735_v1, %v3726_v21  ;;  %v11991_v49 = vadd.f32 -0.16666654, %v11932_v20  ;;  %v2842_v19 = vxor.u32 2147483648, %v11963_v14  ;;  %vm3739_vm11 = vc.u32 %v3714_v51, %v3733_v12 }
 0x35b   :  { %14067 = vst [vmem:[#allocation100_spill] sm:$0xff] %v11982_v30  ;;  %v3812_v27 = vand.u32 31, %v3810_v26  ;;  %v2968_v42 = vadd.s32 %v11875_v11, %v11873_v60  ;;  %v3737_v9 = vmul.u32 %v11902_v62, %v3683_v22  ;;  %v11997_v8 = vshrl.u32 %v3810_v26, 5 }
 0x35c   :  { %v3740_v0 = vadd.s32 1, %v3736_v54  ;;  %v12001_v28 = vshll.u32 %v3806_v25, 8  ;;  %v2989_v20 = vadd.s32 127, %v2988_v38  ;;  %v2984_v60 = vsub.s32 32, %v11965_v40 }
 0x35d   :  { %v3813_v57 = vsub.s32 32, %v3812_v27  ;;  %v3815_v46 = vshll.u32 %v13903_v13, %v3812_v27  ;;  %v3818_v7 = vshll.u32 %v13890_v5, %v3812_v27  ;;  %v3821_v29 = vshll.u32 %v13891_v43, %v3812_v27 }
 0x35e   :  { %v3741_v2 = vsel %vm3739_vm11, %v3740_v0, %v3736_v54  ;;  %v3824_v36 = vshll.u32 %v13892_v47, %v3812_v27  ;;  %v3827_v53 = vshll.u32 %v13893_v41, %v3812_v27  ;;  %vm3830_vm7 = vcmp.lt.s32.totalorder %v11997_v8, 1 }
 0x35f   :  { %v3742_v11 = vadd.s32 %v3741_v2, %v3737_v9  ;;  %v3816_v62 = vshrl.u32 %v13890_v5, %v3813_v57  ;;  %v3819_v16 = vshrl.u32 %v13891_v43, %v3813_v57  ;;  %v3822_v52 = vshrl.u32 %v13892_v47, %v3813_v57 }
 0x360   :  { %v3825_v32 = vshrl.u32 %v13893_v41, %v3813_v57  ;;  %v3828_v44 = vshrl.u32 %v13869_v45, %v3813_v57  ;;  %v2990_v61 = vshll.u32 %v2989_v20, 23  ;;  %v6886_v5 = vadd.s32 3, %v9956_v10 }
 0x361   :  { %v3743_v59 = vadd.s32 536870912, %v3742_v11  ;;  %v3817_v50 = vor.u32 %v3816_v62, %v3815_v46  ;;  %v3820_v18 = vor.u32 %v3819_v16, %v3818_v7  ;;  %v3823_v58 = vor.u32 %v3822_v52, %v3821_v29 }
 0x362   :  { %v3826_v34 = vor.u32 %v3825_v32, %v3824_v36  ;;  %v2985_v43 = vshll.u32 %v11942_v55, %v11965_v40  ;;  %vm3832_vm1 = vcmp.lt.s32.totalorder %v11997_v8, 3  ;;  %vm3833_vm4 = vcmp.lt.s32.totalorder %v11997_v8, 4 }
 0x363   :  { %v12016_v47 = vshrl.u32 %v3743_v59, 30  ;;  %v12020_v41 = vadd.s32 %v3733_v12, %v3714_v51  ;;  %v3829_v23 = vor.u32 %v3828_v44, %v3827_v53  ;;  %vm3831_vm2 = vcmp.lt.s32.totalorder %v11997_v8, 2 }
 0x364   :  { %v3838_v45 = vsel %vm3830_vm7, %v3817_v50, %v3820_v18  ;;  %v2986_v4 = vshrl.u32 %v2968_v42, %v2984_v60  ;;  %v3839_v55 = vsel %vm3833_vm4, %v3826_v34, 920167782  ;;  %v3847_v40 = vand.u32 65535, %v12001_v28 }
 0x365   :  { %v3745_v21 = vshll.u32 %v12016_v47, 30  ;;  %v12029_v1 = vor.u32 4788187, %v2990_v61  ;;  %v3840_v51 = vsel %vm3832_vm1, %v3823_v58, %v3839_v55  ;;  %v3848_v22 = vshrl.u32 %v12001_v28, 16 }
 0x366   :  { %v3157_v12 = vmul.f32 -0.001358992, %v9685_v33  ;;  %v3841_v26 = vsel %vm3831_vm2, %v3838_v45, %v3840_v51  ;;  %v3842_v38 = vsel %vm3830_vm7, %v3820_v18, %v3823_v58  ;;  %v12041_v54 = vand.u32 3, %v6886_v5 }
 0x367   :  { %v12035_v25 = vsub.s32 %v3742_v11, %v3745_v21  ;;  %v3814_v27 = vshrl.u32 %v13903_v13, %v3813_v57  ;;  %v3835_v42 = vsel %vm3833_vm4, %v3823_v58, 2102212464  ;;  %v3843_v9 = vsel %vm3833_vm4, %v3829_v23, 1326507024 }
 0x368   :  { %v3871_v0 = vand.u32 65535, %v3841_v26  ;;  %v3844_v7 = vsel %vm3832_vm1, %v3826_v34, %v3843_v9  ;;  %v3872_v20 = vshrl.u32 %v3841_v26, 16  ;;  %v2987_v2 = vor.u32 %v2986_v4, %v2985_v43  ;;  %v14069_v9 = vld [vmem:[#allocation85_spill] sm:$0xff] }
 0x369   :  { %vm3747_vm6 = vcmp.lt.s32.totalorder %v12035_v25, 0  ;;  %v3748_v46 = vsub.s32 0, %v12035_v25  ;;  %v2992_v29 = vand.u32 2147483647, %v12029_v1  ;;  %v3845_v13 = vsel %vm3831_vm2, %v3842_v38, %v3844_v7 }
 0x36a   :  { %v12055_v57 = vmul.u32 %v3871_v0, %v3848_v22  ;;  %v3849_v60 = vand.u32 65535, %v3845_v13  ;;  %v3850_v11 = vshrl.u32 %v3845_v13, 16  ;;  %v3874_v62 = vmul.u32 %v3872_v20, %v3847_v40 }
 0x36b   :  { %v3749_v36 = vsel %vm3747_vm6, %v3748_v46, %v12035_v25  ;;  %v3834_v52 = vsel %vm3830_vm7, %v3814_v27, %v3817_v50  ;;  %v3836_v32 = vsel %vm3832_vm1, %v3820_v18, %v3835_v42  ;;  %v3873_v53 = vmul.u32 %v3871_v0, %v3847_v40 }
 0x36c   :  { %v3750_v16 = vclz %v3749_v36  ;;  %v3852_v59 = vmul.u32 %v3850_v11, %v3847_v40  ;;  %v3853_v44 = vmul.u32 %v3849_v60, %v3848_v22  ;;  %v3876_v61 = vmul.u32 %v3872_v20, %v3848_v22 }
 0x36d   :  { %v3879_v58 = vshll.u32 %v12055_v57, 16  ;;  %v3851_v5 = vmul.u32 %v3849_v60, %v3847_v40  ;;  %v3877_v43 = vshll.u32 %v3874_v62, 16  ;;  %v3158_v23 = vadd.f32 0.041655596, %v3157_v12 }
 0x36e   :  { %v8598_v34 = vadd.s32 4294967294, %v3750_v16  ;;  %v3854_v45 = vmul.u32 %v3850_v11, %v3848_v22  ;;  %v3855_v4 = vshll.u32 %v3852_v59, 16  ;;  %v3857_v21 = vshll.u32 %v3853_v44, 16 }
 0x36f   :  { %v3878_v55 = vshrl.u32 %v3874_v62, 16  ;;  %vm3881_vm11 = vc.u32 %v3873_v53, %v3877_v43  ;;  %v3883_v50 = vadd.s32 %v3877_v43, %v3873_v53  ;;  %v3159_v1 = vmul.f32 %v3158_v23, %v9685_v33 }
 0x370   :  { %vm8599_vm15 = vcmp.lt.s32.totalorder %v8598_v34, 0  ;;  %vm3859_vm7 = vc.u32 %v3851_v5, %v3855_v4  ;;  %v3861_v51 = vadd.s32 %v3855_v4, %v3851_v5  ;;  %v3882_v26 = vsel %vm3881_vm11, 1, %v13900_v15 }
 0x371   :  { %v3753_v18 = vsel %vm8599_vm15, 0, %v8598_v34  ;;  %v3860_v12 = vsel %vm3859_vm7, 1, %v13900_v15  ;;  %v3884_v42 = vadd.s32 %v3882_v26, %v3876_v61  ;;  %vm3885_vm4 = vc.u32 %v3883_v50, %v3879_v58 }
 0x372   :  { %v3754_v38 = vsub.s32 32, %v3753_v18  ;;  %v3755_v27 = vshll.u32 %v12035_v25, %v3753_v18  ;;  %v3758_v40 = vsub.s32 4294967266, %v3753_v18  ;;  %v3862_v22 = vadd.s32 %v3860_v12, %v3854_v45  ;;  %v14073_v45 = vld [vmem:[#allocation25_spill] sm:$0xff]  ;;  %v14074_v18 = vld [vmem:[#allocation32_spill] sm:$0xff] }
 0x373   :  { %vm3863_vm1 = vc.u32 %v3861_v51, %v3857_v21  ;;  %vm13764_vm6 = vcmp.lt.s32.totalorder %v14069_v9, 0  ;;  %v3886_v20 = vsel %vm3885_vm4, 1, %v13900_v15  ;;  %v3856_v13 = vshrl.u32 %v3852_v59, 16 }
 0x374   :  { %v3756_v0 = vshrl.u32 %v12020_v41, %v3754_v38  ;;  %v3759_v46 = vadd.s32 127, %v3758_v40  ;;  %v3864_v7 = vsel %vm3863_vm1, 1, %v13900_v15  ;;  %v3888_v60 = vadd.s32 %v3886_v20, %v3884_v42  ;;  %v14079_v20 = vld [vmem:[#allocation13_spill] sm:$0xff] }
 0x375   :  { %v3866_v36 = vadd.s32 %v3864_v7, %v3862_v22  ;;  %v3160_v25 = vadd.f32 -0.4999988, %v3159_v1  ;;  %v2994_v11 = vcvt.s32.f32 %v2987_v2  ;;  %v3880_v53 = vshrl.u32 %v12055_v57, 16 }
 0x376   :  { %v3757_v62 = vor.u32 %v3756_v0, %v3755_v27  ;;  %v3760_v16 = vshll.u32 %v3759_v46, 23  ;;  %v3858_v61 = vshrl.u32 %v3853_v44, 16  ;;  %v3889_v5 = vadd.s32 %v3888_v60, %v3878_v55 }
 0x377   :  { %v3867_v34 = vadd.s32 %v3866_v36, %v3856_v13  ;;  %v3161_v41 = vmul.f32 %v3160_v25, %v9685_v33  ;;  %v14070_v43 = vand.u32 2147483647, %v14069_v9  ;;  %v2995_v59 = vmul.f32 %v2994_v11, %v2992_v29 }
 0x378   :  { %v3761_v23 = vor.u32 4788187, %v3760_v16  ;;  %v3837_v2 = vsel %vm3831_vm2, %v3834_v52, %v3836_v32  ;;  %v3311_v57 = vmul.f32 -0.001358992, %v14073_v45  ;;  %v12086_v4 = vadd.s32 %v3883_v50, %v3879_v58 }
 0x379   :  { %vm12076_vm11 = vcmp.le.f32.partialorder %v14070_v43, 0.7853982  ;;  %v12084_v44 = vadd.s32 %v3867_v34, %v3858_v61  ;;  %v3890_v33 = vadd.s32 %v3889_v5, %v3880_v53  ;;  %v12088_v21 = vadd.f32 1.0, %v3161_v41  ;;  %v14082_v53 = vld [vmem:[#allocation30_spill] sm:$0xff] }
 0x37a   :  { %v3630_v55 = vmul.f32 %v11991_v49, %v11808_v37  ;;  %v3762_v1 = vand.u32 2147483647, %v3761_v23  ;;  %v3764_v29 = vcvt.s32.f32 %v3757_v62  ;;  %v13766_v51 = vxor.u32 2147483648, %v14074_v18 }
 0x37b   :  { %vm3893_vm2 = vc.u32 %v12084_v44, %v12086_v4  ;;  %v3894_v8 = vadd.s32 1, %v3890_v33  ;;  %v13765_v52 = vxor.u32 2147483648, %v12088_v21  ;;  %v3312_v32 = vadd.f32 0.041655596, %v3311_v57 }
 0x37c   :  { %v2844_v58 = vsub.s32 4, %v11769_v17  ;;  %v14075_v50 = vand.u32 2147483647, %v11749_v31  ;;  %v3765_v49 = vmul.f32 %v3764_v29, %v3762_v1  ;;  %v3891_v38 = vmul.u32 %v12001_v28, %v3837_v2  ;;  %v14089_v2 = vld [vmem:[#allocation96_spill] sm:$0xff]  ;;  %v14120_v29 = vld [vmem:[#allocation38_spill] sm:$0xff] }
 0x37d   :  { %v2843_v27 = vsel %vm13764_vm6, %v2842_v19, %v11963_v14  ;;  %v2996_v40 = vxor.u32 2147483648, %v2995_v59  ;;  %v3895_v12 = vsel %vm3893_vm2, %v3894_v8, %v3890_v33  ;;  %vm6889_vm4 = vcmp.eq.s32.totalorder %v12041_v54, 0 }
 0x37e   :  { %vm12099_vm1 = vcmp.le.f32.partialorder %v14075_v50, 0.7853982  ;;  %v3766_v22 = vxor.u32 2147483648, %v3765_v49  ;;  %v3896_v42 = vadd.s32 %v3895_v12, %v3891_v38  ;;  %v6891_v0 = vsel %vm6889_vm4, %v12088_v21, %v13766_v51  ;;  %v14094_v50 = vld [vmem:[#allocation52_spill] sm:$0xff] }
 0x37f   :  { %vm6892_vm7 = vcmp.eq.s32.totalorder %v12041_v54, 2  ;;  %v3631_v46 = vadd.f32 1.0, %v3630_v55  ;;  %vm6888_vm15 = vcmp.lt.s32.totalorder %v12041_v54, 2  ;;  %v3313_v14 = vmul.f32 %v3312_v32, %v14073_v45 }
 0x380   :  { %v6894_v28 = vsel %vm6892_vm7, %v13765_v52, %v14074_v18  ;;  %vm14078_vm2 = vcmp.lt.s32.totalorder %v11749_v31, 0  ;;  %v3897_v7 = vadd.s32 536870912, %v3896_v42  ;;  %vm13776_vm6 = vweird.f32 %v14079_v20 }
 0x381   :  { %v3767_v19 = vsel %vm14078_vm2, %v3766_v22, %v3765_v49  ;;  %v6895_v13 = vsel %vm6888_vm15, %v6891_v0, %v6894_v28  ;;  %v12125_v36 = vsel %vm12076_vm11, %v14069_v9, %v2843_v27  ;;  %v3768_v54 = vsub.s32 4, %v12016_v47  ;;  %v14098_v0 = vld [vmem:[#allocation33_spill] sm:$0xff] }
 0x382   :  { %14080 = vst [vmem:[#allocation25_spill] sm:$0xff] %v12125_v36  ;;  %v12131_v60 = vsel %vm12099_vm1, %v11749_v31, %v3767_v19  ;;  %v6896_v25 = vsel %vm13776_vm6, nan, %v6895_v13  ;;  %vm14081_vm7 = vcmp.lt.s32.totalorder %v11687_v48, 0  ;;  %v3898_v16 = vshrl.u32 %v3897_v7, 30 }
 0x383   :  { %v2997_v11 = vsel %vm14081_vm7, %v2996_v40, %v2995_v59  ;;  %v12139_v62 = vmul.f32 %v12131_v60, %v12131_v60  ;;  %7705 = vmatpush.msra.mxu2 %v6896_v25  ;;  %v7041_v61 = vadd.s32 3, %v14082_v53  ;;  %v12143_v34 = vmul.f32 %v3631_v46, %v11794_v39  ;;  %v14110_v46 = vld [vmem:[#allocation34_spill] sm:$0xff] }
 0x384   :  { %vm14084_vm15 = vcmp.lt.s32.totalorder %v14069_v9, 0  ;;  %v14085_v41 = vand.u32 2147483647, %v11687_v48  ;;  %v14086_v43 = vmov 0  ;;  %v3314_v59 = vadd.f32 -0.4999988, %v3313_v14 }
 0x385   :  { %14083 = vst [vmem:[#allocation32_spill] sm:$0xff] %v12143_v34  ;;  %v12148_v5 = vsel %vm14084_vm15, %v2844_v58, %v11769_v17  ;;  %v12158_v23 = vmul.f32 %v12125_v36, %v12125_v36  ;;  %v2998_v57 = vsub.s32 4, %v14089_v2  ;;  %v3780_v39 = vmul.f32 -0.00019511016, %v12139_v62  ;;  %v14115_v36 = vld [vmem:[#allocation58_spill] sm:$0xff] }
 0x386   :  { %vm12152_vm4 = vcmp.le.f32.partialorder %v14085_v41, 0.7853982  ;;  %v3899_v33 = vshll.u32 %v3898_v16, 30  ;;  %v3769_v55 = vsel %vm14078_vm2, %v3768_v54, %v12016_v47  ;;  %v14091_v1 = vand.u32 2147483647, %v11904_v56  ;;  %v14096_v47 = vld [vmem:[#allocation57_spill] sm:$0xff] }
 0x387   :  { %v14087_v43 = vsel %vm12152_vm4, 4294967295, %v14086_v43  ;;  %v12165_v17 = vsel %vm12152_vm4, %v11687_v48, %v2997_v11  ;;  %vm3800_vm15 = vcmp.lt.s32.totalorder %v11904_v56, 0  ;;  %v3781_v8 = vadd.f32 0.008332121, %v3780_v39  ;;  %v14103_v54 = vld [vmem:[#allocation40_spill] sm:$0xff] }
 0x388   :  { %14088 = vst [vmem:[#allocation13_spill] sm:$0xff] %v14087_v43  ;;  %vm12172_vm7 = vcmp.le.f32.partialorder %v14091_v1, 0.7853982  ;;  %v3900_v32 = vsub.s32 %v3896_v42, %v3899_v33  ;;  %v7042_v58 = vand.u32 3, %v7041_v61  ;;  %v12180_v38 = vsel %vm10869_vm0, 0, %v14094_v50  ;;  %v14106_v33 = vld [vmem:[#allocation18_spill] sm:$0xff] }
 0x389   :  { %14090 = vst [vmem:[#allocation30_spill] sm:$0xff] %v12165_v17  ;;  %v3922_v27 = vsub.s32 4, %v3898_v16  ;;  %v3315_v40 = vmul.f32 %v3314_v59, %v14073_v45  ;;  %v12186_v22 = vsel %vm10942_vm8, 0, %v14096_v47  ;;  %v12191_v28 = vsel %vm10169_vm5, 0, %v14098_v0  ;;  %v14109_v50 = vld [vmem:[#allocation62_spill] sm:$0xff]  ;;  %v14132_v43 = vld [vmem:[#allocation24_spill] sm:$0xff] }
 0x38a   :  { %vm14100_vm2 = vcmp.lt.s32.totalorder %v11687_v48, 0  ;;  %v12200_v14 = vmul.f32 %v12165_v17, %v12165_v17  ;;  %vm3901_vm0 = vcmp.lt.s32.totalorder %v3900_v32, 0  ;;  %v3902_v45 = vsub.s32 0, %v3900_v32 }
 0x38b   :  { %v12196_v42 = vsel %vm14100_vm2, %v2998_v57, %v14089_v2  ;;  %v12204_v19 = vsel %vm12099_vm1, 0, %v3769_v55  ;;  %v3892_v7 = vadd.s32 %v12086_v4, %v12084_v44  ;;  %v5956_v13 = vadd.s32 3, %v12180_v38  ;;  %v14105_v44 = vld [vmem:[#allocation14_spill] sm:$0xff] }
 0x38c   :  { %14101 = vst [vmem:[#allocation96_spill] sm:$0xff] %v12196_v42  ;;  %v12212_v11 = vsel %vm10224_vm13, 0, %v14103_v54  ;;  %v3782_v61 = vmul.f32 %v3781_v8, %v12139_v62  ;;  %v3903_v41 = vsel %vm3901_vm0, %v3902_v45, %v3900_v32  ;;  %v6111_v59 = vadd.s32 3, %v12186_v22 }
 0x38d   :  { %14102 = vst [vmem:[#allocation52_spill] sm:$0xff] %v12200_v14  ;;  %v5026_v2 = vadd.s32 3, %v12191_v28  ;;  %v3904_v26 = vclz %v3903_v41  ;;  %v3923_v57 = vsel %vm3800_vm15, %v3922_v27, %v3898_v16  ;;  %v12219_v39 = vadd.f32 1.0, %v3315_v40 }
 0x38e   :  { %vm13775_vm5 = vweird.f32 %v14105_v44  ;;  %vm7043_vm8 = vcmp.lt.s32.totalorder %v7042_v58, 2  ;;  %vm7044_vm1 = vcmp.eq.s32.totalorder %v7042_v58, 0  ;;  %vm7047_vm2 = vcmp.eq.s32.totalorder %v7042_v58, 2 }
 0x38f   :  { %v5181_v4 = vadd.s32 3, %v12212_v11  ;;  %v12226_v1 = vsel %vm9651_vm3, 0, %v14106_v33  ;;  %v8601_v8 = vadd.s32 4294967294, %v3904_v26  ;;  %v2233_v49 = vmul.f32 -0.001358992, %v14109_v50 }
 0x390   :  { %14108 = vst [vmem:[#allocation55_spill] sm:$0xff] %v12226_v1  ;;  %v2240_v47 = vmul.f32 -0.00019511016, %v14109_v50  ;;  %v12230_v16 = vand.u32 3, %v5956_v13  ;;  %v12232_v27 = vadd.f32 -0.16666654, %v3782_v61 }
 0x391   :  { %v12236_v40 = vsel %vm12172_vm7, 0, %v3923_v57  ;;  %v12238_v12 = vand.u32 3, %v6111_v59  ;;  %v12240_v0 = vand.u32 3, %v5026_v2  ;;  %vm8602_vm13 = vcmp.lt.s32.totalorder %v8601_v8, 0  ;;  %v14111_v13 = vld [vmem:[#allocation66_spill] sm:$0xff] }
 0x392   :  { %v13767_v45 = vxor.u32 2147483648, %v14110_v46  ;;  %v13770_v54 = vxor.u32 2147483648, %v12219_v39  ;;  %v2234_v25 = vadd.f32 0.041655596, %v2233_v49  ;;  %v3907_v41 = vsel %vm8602_vm13, 0, %v8601_v8 }
 0x393   :  { %v2241_v26 = vadd.f32 0.008332121, %v2240_v47  ;;  %v2387_v33 = vmul.f32 -0.001358992, %v14111_v13  ;;  %v12245_v61 = vand.u32 3, %v5181_v4  ;;  %v3908_v55 = vsub.s32 32, %v3907_v41 }
 0x394   :  { %v3909_v52 = vshll.u32 %v3900_v32, %v3907_v41  ;;  %v3912_v57 = vsub.s32 4294967266, %v3907_v41  ;;  %v7046_v59 = vsel %vm7044_vm1, %v12219_v39, %v13767_v45  ;;  %v7049_v2 = vsel %vm7047_vm2, %v13770_v54, %v14110_v46 }
 0x395   :  { %v2235_v8 = vmul.f32 %v2234_v25, %v14109_v50  ;;  %v2242_v49 = vmul.f32 %v2241_v26, %v14109_v50  ;;  %v2388_v47 = vadd.f32 0.041655596, %v2387_v33  ;;  %v3910_v4 = vshrl.u32 %v3892_v7, %v3908_v55  ;;  %v14112_v26 = vld [vmem:[#allocation39_spill] sm:$0xff] }
 0x396   :  { %v3913_v51 = vadd.s32 127, %v3912_v57  ;;  %v7050_v32 = vsel %vm7043_vm8, %v7046_v59, %v7049_v2  ;;  %vm5962_vm3 = vcmp.eq.s32.totalorder %v12230_v16, 2  ;;  %v2394_v41 = vmul.f32 -0.00019511016, %v14111_v13 }
 0x397   :  { %v7051_v45 = vsel %vm13775_vm5, nan, %v7050_v32  ;;  %v2236_v24 = vadd.f32 -0.4999988, %v2235_v8  ;;  %v2243_v17 = vadd.f32 -0.16666654, %v2242_v49  ;;  %v2389_v54 = vmul.f32 %v2388_v47, %v14111_v13  ;;  %v14113_v49 = vld [vmem:[#allocation29_spill] sm:$0xff] }
 0x398   :  { %v3911_v48 = vor.u32 %v3910_v4, %v3909_v52  ;;  %v3914_v25 = vshll.u32 %v3913_v51, 23  ;;  %7734 = vmatpush.msra.mxu3 %v7051_v45  ;;  %vm5959_vm0 = vcmp.eq.s32.totalorder %v12230_v16, 0  ;;  %v2395_v7 = vadd.f32 0.008332121, %v2394_v41 }
 0x399   :  { %v1309_v58 = vmul.f32 -0.001358992, %v14112_v26  ;;  %v2237_v33 = vmul.f32 %v2236_v24, %v14109_v50  ;;  %v2244_v55 = vmul.f32 %v2243_v17, %v14109_v50  ;;  %vm5958_vm8 = vcmp.lt.s32.totalorder %v12230_v16, 2 }
 0x39a   :  { %v2390_v57 = vadd.f32 -0.4999988, %v2389_v54  ;;  %v1316_v59 = vmul.f32 -0.00019511016, %v14112_v26  ;;  %v3915_v2 = vor.u32 4788187, %v3914_v25  ;;  %v3918_v8 = vcvt.s32.f32 %v3911_v48 }
 0x39b   :  { %vm2247_vm1 = vweird.f32 %v14113_v49  ;;  %v2396_v51 = vmul.f32 %v2395_v7, %v14111_v13  ;;  %v1310_v52 = vadd.f32 0.041655596, %v1309_v58  ;;  %v12271_v45 = vadd.f32 1.0, %v2237_v33  ;;  %v14114_v54 = vld [vmem:[#allocation41_spill] sm:$0xff] }
 0x39c   :  { %v2245_v47 = vadd.f32 1.0, %v2244_v55  ;;  %v2391_v4 = vmul.f32 %v2390_v57, %v14111_v13  ;;  %v1317_v24 = vadd.f32 0.008332121, %v1316_v59  ;;  %v3916_v32 = vand.u32 2147483647, %v3915_v2  ;;  %v14116_v2 = vld [vmem:[#allocation31_spill] sm:$0xff] }
 0x39d   :  { %v2397_v17 = vadd.f32 -0.16666654, %v2396_v51  ;;  %v1311_v50 = vmul.f32 %v1310_v52, %v14112_v26  ;;  %v1463_v41 = vmul.f32 -0.001358992, %v14114_v54  ;;  %v13777_v48 = vxor.u32 2147483648, %v12271_v45 }
 0x39e   :  { %v12277_v25 = vmul.f32 %v2245_v47, %v14115_v36  ;;  %v12280_v9 = vadd.f32 1.0, %v2391_v4  ;;  %vm6114_vm2 = vcmp.eq.s32.totalorder %v12238_v12, 0  ;;  %v1318_v7 = vmul.f32 %v1317_v24, %v14112_v26 }
 0x39f   :  { %v3919_v58 = vmul.f32 %v3918_v8, %v3916_v32  ;;  %v2398_v33 = vmul.f32 %v2397_v17, %v14111_v13  ;;  %v1312_v55 = vadd.f32 -0.4999988, %v1311_v50  ;;  %v1464_v57 = vadd.f32 0.041655596, %v1463_v41  ;;  %v14117_v50 = vld [vmem:[#allocation27_spill] sm:$0xff] }
 0x3a0   :  { %v13778_v36 = vxor.u32 2147483648, %v12277_v25  ;;  %v5964_v59 = vsel %vm5962_vm3, %v13777_v48, %v12277_v25  ;;  %vm2401_vm6 = vweird.f32 %v14116_v2  ;;  %v1319_v52 = vadd.f32 -0.16666654, %v1318_v7 }
 0x3a1   :  { %v3920_v8 = vxor.u32 2147483648, %v3919_v58  ;;  %v2399_v47 = vadd.f32 1.0, %v2398_v33  ;;  %v1313_v13 = vmul.f32 %v1312_v55, %v14112_v26  ;;  %vm5029_vm5 = vcmp.eq.s32.totalorder %v12240_v0, 0  ;;  %v14118_v55 = vld [vmem:[#allocation63_spill] sm:$0xff] }
 0x3a2   :  { %vm5032_vm13 = vcmp.eq.s32.totalorder %v12240_v0, 2  ;;  %v1465_v4 = vmul.f32 %v1464_v57, %v14114_v54  ;;  %v5961_v24 = vsel %vm5959_vm0, %v12271_v45, %v13778_v36  ;;  %v1320_v32 = vmul.f32 %v1319_v52, %v14112_v26  ;;  %v14119_v36 = vld [vmem:[#allocation15_spill] sm:$0xff] }
 0x3a3   :  { %vm5028_vm3 = vcmp.lt.s32.totalorder %v12240_v0, 2  ;;  %v1470_v17 = vmul.f32 -0.00019511016, %v14114_v54  ;;  %v385_v41 = vmul.f32 -0.001358992, %v14117_v50  ;;  %v3921_v7 = vsel %vm3800_vm15, %v3920_v8, %v3919_v58 }
 0x3a4   :  { %v5965_v33 = vsel %vm5958_vm8, %v5961_v24, %v5964_v59  ;;  %v12313_v57 = vmul.f32 %v2399_v47, %v14118_v55  ;;  %v12315_v48 = vadd.f32 1.0, %v1313_v13  ;;  %vm13787_vm0 = vweird.f32 %v14119_v36 }
 0x3a5   :  { %v12321_v26 = vsel %vm12172_vm7, %v11904_v56, %v3921_v7  ;;  %v5966_v52 = vsel %vm2247_vm1, nan, %v5965_v33  ;;  %v1321_v51 = vadd.f32 1.0, %v1320_v32  ;;  %v1466_v58 = vadd.f32 -0.4999988, %v1465_v4 }
 0x3a6   :  { %v3784_v16 = vmul.f32 %v12232_v27, %v12139_v62  ;;  %v12329_v59 = vmul.f32 %v12321_v26, %v12321_v26  ;;  %7706 = vmatpush.msra.mxu2 %v5966_v52  ;;  %v13780_v8 = vxor.u32 2147483648, %v12313_v57  ;;  %v4096_v47 = vadd.s32 3, %v12226_v1 }
 0x3a7   :  { %v12334_v13 = vmul.f32 %v1321_v51, %v14120_v29  ;;  %v1471_v7 = vadd.f32 0.008332121, %v1470_v17  ;;  %v386_v32 = vadd.f32 0.041655596, %v385_v41  ;;  %v14121_v33 = vxor.u32 2147483648, %v12280_v9  ;;  %v14124_v29 = vld [vmem:[#allocation26_spill] sm:$0xff] }
 0x3a8   :  { %v3934_v4 = vmul.f32 -0.00019511016, %v12329_v59  ;;  %v6116_v27 = vsel %vm6114_vm2, %v12280_v9, %v13780_v8  ;;  %vm14122_vm7 = vcmp.eq.s32.totalorder %v12238_v12, 2  ;;  %v392_v51 = vmul.f32 -0.00019511016, %v14117_v50 }
 0x3a9   :  { %v6119_v55 = vsel %vm14122_vm7, %v14121_v33, %v12313_v57  ;;  %vm14123_vm15 = vcmp.lt.s32.totalorder %v12238_v12, 2  ;;  %v13785_v41 = vxor.u32 2147483648, %v12334_v13  ;;  %v1467_v52 = vmul.f32 %v1466_v58, %v14114_v54 }
 0x3aa   :  { %v6120_v17 = vsel %vm14123_vm15, %v6116_v27, %v6119_v55  ;;  %v12356_v1 = vsel %vm9723_vm10, 0, %v14124_v29  ;;  %v3935_v8 = vadd.f32 0.008332121, %v3934_v4  ;;  %v1472_v33 = vmul.f32 %v1471_v7, %v14114_v54  ;;  %v14128_v29 = vld [vmem:[#allocation28_spill] sm:$0xff] }
 0x3ab   :  { %14126 = vst [vmem:[#allocation57_spill] sm:$0xff] %v12356_v1  ;;  %v6121_v3 = vsel %vm2401_vm6, nan, %v6120_v17  ;;  %v387_v35 = vmul.f32 %v386_v32, %v14117_v50  ;;  %v3785_v14 = vadd.f32 1.0, %v3784_v16  ;;  %v5031_v12 = vsel %vm5029_vm5, %v12315_v48, %v13785_v41 }
 0x3ac   :  { %7735 = vmatpush.msra.mxu3 %v6121_v3  ;;  %v14127_v58 = vxor.u32 2147483648, %v12315_v48  ;;  %v393_v4 = vadd.f32 0.008332121, %v392_v51  ;;  %v3936_v27 = vmul.f32 %v3935_v8, %v12329_v59  ;;  %v1473_v16 = vadd.f32 -0.16666654, %v1472_v33 }
 0x3ad   :  { %v388_v3 = vadd.f32 -0.4999988, %v387_v35  ;;  %vm5184_vm10 = vcmp.eq.s32.totalorder %v12245_v61, 0  ;;  %vm5187_vm5 = vcmp.eq.s32.totalorder %v12245_v61, 2  ;;  %v4097_v17 = vand.u32 3, %v4096_v47 }
 0x3ae   :  { %v5034_v24 = vsel %vm5032_vm13, %v14127_v58, %v12334_v13  ;;  %v394_v55 = vmul.f32 %v393_v4, %v14117_v50  ;;  %v539_v58 = vmul.f32 -0.001358992, %v14128_v29  ;;  %v12381_v51 = vadd.f32 1.0, %v1467_v52 }
 0x3af   :  { %v5035_v7 = vsel %vm5028_vm3, %v5031_v12, %v5034_v24  ;;  %v1474_v0 = vmul.f32 %v1473_v16, %v14114_v54  ;;  %vm5183_vm8 = vcmp.lt.s32.totalorder %v12245_v61, 2  ;;  %v389_v35 = vmul.f32 %v388_v3, %v14117_v50  ;;  %v14129_v12 = vld [vmem:[#allocation16_spill] sm:$0xff]  ;;  %v14131_v3 = vld [vmem:[#allocation86_spill] sm:$0xff] }
 0x3b0   :  { %v5036_v32 = vsel %vm13787_vm0, nan, %v5035_v7  ;;  %v546_v8 = vmul.f32 -0.00019511016, %v14128_v29  ;;  %v3937_v33 = vadd.f32 -0.16666654, %v3936_v27  ;;  %vm1477_vm2 = vweird.f32 %v14129_v12 }
 0x3b1   :  { %7707 = vmatpush.msra.mxu2 %v5036_v32  ;;  %v395_v24 = vadd.f32 -0.16666654, %v394_v55  ;;  %v540_v7 = vadd.f32 0.041655596, %v539_v58  ;;  %v12389_v47 = vmul.f32 %v3785_v14, %v12131_v60  ;;  %v1475_v4 = vadd.f32 1.0, %v1474_v0  ;;  %v14133_v60 = vld [vmem:[#allocation11_spill] sm:$0xff] }
 0x3b2   :  { %v547_v32 = vadd.f32 0.008332121, %v546_v8  ;;  %v4251_v52 = vadd.s32 3, %v12356_v1  ;;  %v12392_v41 = vadd.f32 1.0, %v389_v35  ;;  %vm4098_vm13 = vcmp.lt.s32.totalorder %v4097_v17, 2 }
 0x3b3   :  { %v396_v54 = vmul.f32 %v395_v24, %v14117_v50  ;;  %v541_v16 = vmul.f32 %v540_v7, %v14128_v29  ;;  %v3465_v27 = vmul.f32 -0.001358992, %v14131_v3  ;;  %v12398_v42 = vmul.f32 %v1475_v4, %v14132_v43  ;;  %v14134_v7 = vld [vmem:[#allocation21_spill] sm:$0xff] }
 0x3b4   :  { %14130 = vst [vmem:[#allocation60_spill] sm:$0xff] %v12392_v41  ;;  %vm13853_vm3 = vweird.f32 %v14133_v60  ;;  %vm4099_vm7 = vcmp.eq.s32.totalorder %v4097_v17, 0  ;;  %v548_v14 = vmul.f32 %v547_v32, %v14128_v29  ;;  %v3938_v58 = vmul.f32 %v3937_v33, %v12329_v59 }
 0x3b5   :  { %v397_v0 = vadd.f32 1.0, %v396_v54  ;;  %vm4102_vm15 = vcmp.eq.s32.totalorder %v4097_v17, 2  ;;  %v542_v50 = vadd.f32 -0.4999988, %v541_v16  ;;  %v13789_v35 = vxor.u32 2147483648, %v12398_v42 }
 0x3b6   :  { %v549_v8 = vadd.f32 -0.16666654, %v548_v14  ;;  %v4252_v24 = vand.u32 3, %v4251_v52  ;;  %vm7680_vm0 = vcmask 261120   ;;  %v3466_v1 = vadd.f32 0.041655596, %v3465_v27 }
 0x3b7   :  { %v12406_v43 = vmul.f32 %v397_v0, %v14134_v7  ;;  %v543_v55 = vmul.f32 %v542_v50, %v14128_v29  ;;  %v5186_v33 = vsel %vm5184_vm10, %v12381_v51, %v13789_v35  ;;  %v14136_v32 = vxor.u32 2147483648, %v12381_v51  ;;  %v14138_v7 = vld [vmem:[#allocation12_spill] sm:$0xff] }
 0x3b8   :  { %v550_v54 = vmul.f32 %v549_v8, %v14128_v29  ;;  %v7196_v16 = vadd.s32 3, %v11976_v6  ;;  %v12422_v14 = vadd.f32 1.0, %v3938_v58  ;;  %vm13848_vm10 = vweird.f32 %v14138_v7  ;;  %v14142_v6 = vld [vmem:[#allocation74_spill] sm:$0xff] }
 0x3b9   :  { %14135 = vst [vmem:[#allocation33_spill] sm:$0xff] %v12406_v43  ;;  %v5189_v52 = vsel %vm5187_vm5, %v14136_v32, %v12398_v42  ;;  %v13790_v0 = vxor.u32 2147483648, %v12406_v43  ;;  %v12427_v50 = vadd.f32 1.0, %v543_v55  ;;  %vm4253_vm5 = vcmp.lt.s32.totalorder %v4252_v24, 2 }
 0x3ba   :  { %v5190_v27 = vsel %vm5183_vm8, %v5186_v33, %v5189_v52  ;;  %v551_v4 = vadd.f32 1.0, %v550_v54  ;;  %v3467_v29 = vmul.f32 %v3466_v1, %v14131_v3  ;;  %v14139_v58 = vxor.u32 2147483648, %v12392_v41  ;;  %v14140_v52 = vld [vmem:[#allocation23_spill] sm:$0xff] }
 0x3bb   :  { %14137 = vst [vmem:[#allocation36_spill] sm:$0xff] %v12427_v50  ;;  %v5191_v35 = vsel %vm1477_vm2, nan, %v5190_v27  ;;  %v4101_v61 = vsel %vm4099_vm7, %v12392_v41, %v13790_v0  ;;  %v7197_v8 = vand.u32 3, %v7196_v16  ;;  %v3619_v33 = vmul.f32 -0.001358992, %v11808_v37 }
 0x3bc   :  { %7736 = vmatpush.msra.mxu3 %v5191_v35  ;;  %v4104_v55 = vsel %vm4102_vm15, %v14139_v58, %v12406_v43  ;;  %v12444_v54 = vmul.f32 %v551_v4, %v14140_v52  ;;  %v13802_v1 = vxor.u32 2147483648, %v12427_v50  ;;  %v12447_v35 = vld [vmem:[#allocation2] sm:$0xff]  ;;  %v3468_v27 = vadd.f32 -0.4999988, %v3467_v29 }
 0x3bd   :  { %v4105_v32 = vsel %vm4098_vm13, %v4101_v61, %v4104_v55  ;;  %vm4254_vm8 = vcmp.eq.s32.totalorder %v4252_v24, 0  ;;  %vm4257_vm7 = vcmp.eq.s32.totalorder %v4252_v24, 2  ;;  %vm13834_vm15 = vweird.f32 %v14142_v6  ;;  %v14143_v55 = vld [vmem:[#allocation91_spill] sm:$0xff] }
 0x3be   :  { %14141 = vst [vmem:[#allocation40_spill] sm:$0xff] %v12444_v54  ;;  %v4106_v0 = vsel %vm13853_vm3, nan, %v4105_v32  ;;  %v3620_v16 = vadd.f32 0.041655596, %v3619_v33  ;;  %v13799_v17 = vxor.u32 2147483648, %v12444_v54  ;;  %v3469_v61 = vmul.f32 %v3468_v27, %v14131_v3  ;;  %v14145_v27 = vld [vmem:[#allocation90_spill] sm:$0xff] }
 0x3bf   :  { %7708 = vmatpush.msra.mxu2 %v4106_v0  ;;  %v7351_v58 = vadd.s32 3, %v11987_v63  ;;  %vm7199_vm13 = vcmp.eq.s32.totalorder %v7197_v8, 0  ;;  %v2541_v32 = vmul.f32 -0.001358992, %v14143_v55  ;;  %v2548_v52 = vmul.f32 -0.00019511016, %v14143_v55 }
 0x3c0   :  { %8675 = vmatmul.msk.f32.vlgmr.msra.gmra.mxu2 %vm7680_vm0, %v12447_v35  ;;  %v3621_v29 = vmul.f32 %v3620_v16, %v11808_v37  ;;  %v4256_v0 = vsel %vm4254_vm8, %v12427_v50, %v13799_v17  ;;  %v4259_v3 = vsel %vm4257_vm7, %v13802_v1, %v12444_v54  ;;  %v12467_v33 = vadd.f32 1.0, %v3469_v61  ;;  %v14149_v1 = vld [vmem:[#allocation81_spill] sm:$0xff] }
 0x3c1   :  { %v12472_v63 = vsel %vm11396_vm12, 0, %v14145_v27  ;;  %v4260_v16 = vsel %vm4253_vm5, %v4256_v0, %v4259_v3  ;;  %v2542_v41 = vadd.f32 0.041655596, %v2541_v32  ;;  %v2549_v43 = vadd.f32 0.008332121, %v2548_v52  ;;  %v12487_v32 = vld [vmem:[#allocation2 + $0x8] sm:$0xff] }
 0x3c2   :  { %14144 = vst [vmem:[#allocation37_spill] sm:$0xff] %v12467_v33  ;;  %v3622_v60 = vadd.f32 -0.4999988, %v3621_v29  ;;  %v4261_v12 = vsel %vm13848_vm10, nan, %v4260_v16  ;;  %v13805_v17 = vxor.u32 2147483648, %v12467_v33  ;;  %v14148_v50 = vxor.u32 2147483648, %v11982_v30 }
 0x3c3   :  { %14147 = vst [vmem:[#allocation14_spill] sm:$0xff] %v12472_v63  ;;  %vm13833_vm8 = vweird.f32 %v14149_v1  ;;  %v7352_v54 = vand.u32 3, %v7351_v58  ;;  %7737 = vmatpush.msra.mxu3 %v4261_v12  ;;  %vm7202_vm12 = vcmp.eq.s32.totalorder %v7197_v8, 2  ;;  %v13806_v4 = vxor.u32 2147483648, %v12143_v34  ;;  %v14151_v0 = vld [vmem:[#allocation94_spill] sm:$0xff] }
 0x3c4   :  { %v7201_v61 = vsel %vm7199_vm13, %v12467_v33, %v14148_v50  ;;  %v3623_v24 = vmul.f32 %v3622_v60, %v11808_v37  ;;  %v2543_v29 = vmul.f32 %v2542_v41, %v14143_v55  ;;  %8679 = vmatmul.msk.f32.vlgmr.msra.gmra.mxu3 %vm7680_vm0, %v12447_v35  ;;  %vm7198_vm5 = vcmp.lt.s32.totalorder %v7197_v8, 2  ;;  %v14160_v33 = vld [vmem:[#allocation67_spill] sm:$0xff] }
 0x3c5   :  { %v7204_v50 = vsel %vm7202_vm12, %v13805_v17, %v11982_v30  ;;  %v2550_v58 = vmul.f32 %v2549_v43, %v14143_v55  ;;  %v6266_v12 = vadd.s32 3, %v12472_v63  ;;  %v2695_v41 = vmul.f32 -0.001358992, %v14151_v0  ;;  %v14167_v30 = vld [vmem:[#allocation59_spill] sm:$0xff] }
 0x3c6   :  { %v7205_v52 = vsel %vm7198_vm5, %v7201_v61, %v7204_v50  ;;  %v12494_v37 = vadd.f32 1.0, %v3623_v24  ;;  %v2544_v60 = vadd.f32 -0.4999988, %v2543_v29  ;;  %vm7353_vm7 = vcmp.lt.s32.totalorder %v7352_v54, 2  ;;  %v14152_v24 = vld [vmem:[#allocation92_spill] sm:$0xff] }
 0x3c7   :  { %v7206_v3 = vsel %vm13834_vm15, nan, %v7205_v52  ;;  %vm7354_vm13 = vcmp.eq.s32.totalorder %v7352_v54, 0  ;;  %v2551_v8 = vadd.f32 -0.16666654, %v2550_v58  ;;  %vm7357_vm12 = vcmp.eq.s32.totalorder %v7352_v54, 2  ;;  %v14158_v54 = vld [vmem:[#allocation83_spill] sm:$0xff] }
 0x3c8   :  { %14150 = vst [vmem:[#allocation18_spill] sm:$0xff] %v12494_v37  ;;  %8676 = vmatmul.msk.f32.gmra.mxu2 %vm7680_vm0, %v12487_v32  ;;  %7763 = vmatpush.msra.mxu0 %v7206_v3  ;;  %v13811_v43 = vxor.u32 2147483648, %v12494_v37  ;;  %v7356_v27 = vsel %vm7354_vm13, %v12494_v37, %v13806_v4  ;;  %v2545_v16 = vmul.f32 %v2544_v60, %v14143_v55  ;;  %v12510_v50 = vsel %vm11683_vm9, 0, %v14152_v24  ;;  %v14156_v4 = vld [vmem:[#allocation54_spill] sm:$0xff]  ;;  %v14157_v60 = vld [vmem:[#allocation68_spill] sm:$0xff] }
 0x3c9   :  { %v2552_v61 = vmul.f32 %v2551_v8, %v14143_v55  ;;  %14154 = vst [vmem:[#allocation19_spill] sm:$0xff] %v12510_v50  ;;  %v2696_v58 = vadd.f32 0.041655596, %v2695_v41  ;;  %v2702_v52 = vmul.f32 -0.00019511016, %v14151_v0  ;;  %vm13822_vm5 = vweird.f32 %v14156_v4 }
 0x3ca   :  { %v7359_v3 = vsel %vm7357_vm12, %v13811_v43, %v12143_v34  ;;  %v12516_v17 = vadd.f32 1.0, %v2545_v16  ;;  %v6267_v63 = vand.u32 3, %v6266_v12  ;;  %v1617_v6 = vmul.f32 -0.001358992, %v14157_v60  ;;  %v12528_v12 = vld [vmem:[#allocation2 + $0x10] sm:$0xff] }
 0x3cb   :  { %v7360_v55 = vsel %vm7353_vm7, %v7356_v27, %v7359_v3  ;;  %v2553_v8 = vadd.f32 1.0, %v2552_v61  ;;  %v2697_v24 = vmul.f32 %v2696_v58, %v14151_v0  ;;  %v2703_v29 = vadd.f32 0.008332121, %v2702_v52 }
 0x3cc   :  { %14155 = vst [vmem:[#allocation62_spill] sm:$0xff] %v12516_v17  ;;  %v7361_v41 = vsel %vm13833_vm8, nan, %v7360_v55  ;;  %v6421_v43 = vadd.s32 3, %v12510_v50  ;;  %v1618_v16 = vadd.f32 0.041655596, %v1617_v6  ;;  %8680 = vmatmul.msk.f32.gmra.mxu3 %vm7680_vm0, %v12487_v32  ;;  %vm6268_vm9 = vcmp.lt.s32.totalorder %v6267_v63, 2 }
 0x3cd   :  { %7792 = vmatpush.msra.mxu1 %v7361_v41  ;;  %v12531_v27 = vmul.f32 %v2553_v8, %v14158_v54  ;;  %v2698_v61 = vadd.f32 -0.4999988, %v2697_v24  ;;  %v2704_v58 = vmul.f32 %v2703_v29, %v14151_v0  ;;  %v1624_v52 = vmul.f32 -0.00019511016, %v14157_v60  ;;  %v14161_v50 = vld [vmem:[#allocation61_spill] sm:$0xff] }
 0x3ce   :  { %vm6269_vm7 = vcmp.eq.s32.totalorder %v6267_v63, 0  ;;  %vm6272_vm13 = vcmp.eq.s32.totalorder %v6267_v63, 2  ;;  %v1619_v3 = vmul.f32 %v1618_v16, %v14157_v60  ;;  %vm14162_vm12 = vnez %v14161_v50 }
 0x3cf   :  { %14159 = vst [vmem:[#allocation34_spill] sm:$0xff] %v12531_v27  ;;  %v13821_v6 = vxor.u32 2147483648, %v12531_v27  ;;  %v2699_v55 = vmul.f32 %v2698_v61, %v14151_v0  ;;  %v2705_v41 = vadd.f32 -0.16666654, %v2704_v58  ;;  %v12541_v8 = vsel %vm14162_vm12, 0, %v14160_v33  ;;  %v14166_v33 = vld [vmem:[#allocation77_spill] sm:$0xff] }
 0x3d0   :  { %14163 = vst [vmem:[#allocation66_spill] sm:$0xff] %v12541_v8  ;;  %8677 = vmatmul.msk.f32.gmra.mxu2 %vm7680_vm0, %v12528_v12  ;;  %v14164_v24 = vxor.u32 2147483648, %v12516_v17  ;;  %v6422_v54 = vand.u32 3, %v6421_v43  ;;  %v1620_v1 = vadd.f32 -0.4999988, %v1619_v3  ;;  %vm13847_vm12 = vweird.f32 %v14167_v30 }
 0x3d1   :  { %v1625_v16 = vadd.f32 0.008332121, %v1624_v52  ;;  %v6271_v61 = vsel %vm6269_vm7, %v12516_v17, %v13821_v6  ;;  %v12551_v58 = vadd.f32 1.0, %v2699_v55  ;;  %v2706_v50 = vmul.f32 %v2705_v41, %v14151_v0  ;;  %v14168_v55 = vld [vmem:[#allocation70_spill] sm:$0xff]  ;;  %v14169_v6 = vld [vmem:[#allocation65_spill] sm:$0xff] }
 0x3d2   :  { %v6274_v29 = vsel %vm6272_vm13, %v14164_v24, %v12531_v27  ;;  %v1771_v37 = vmul.f32 -0.001358992, %v14166_v33  ;;  %v1621_v7 = vmul.f32 %v1620_v1, %v14157_v60  ;;  %v5336_v52 = vadd.s32 3, %v12541_v8  ;;  %v12591_v27 = vld [vmem:[#allocation2 + $0x18] sm:$0xff]  ;;  %v14185_v8 = vld [vmem:[#allocation50_spill] sm:$0xff] }
 0x3d3   :  { %14165 = vst [vmem:[#allocation39_spill] sm:$0xff] %v12551_v58  ;;  %v6275_v34 = vsel %vm6268_vm9, %v6271_v61, %v6274_v29  ;;  %v1626_v43 = vmul.f32 %v1625_v16, %v14157_v60  ;;  %v2707_v24 = vadd.f32 1.0, %v2706_v50  ;;  %vm14170_vm7 = vnez %v14169_v6 }
 0x3d4   :  { %v6276_v3 = vsel %vm13822_vm5, nan, %v6275_v34  ;;  %v12565_v0 = vsel %vm14170_vm7, 0, %v14168_v55  ;;  %v1772_v41 = vadd.f32 0.041655596, %v1771_v37  ;;  %v12569_v63 = vmul.f32 %v12422_v14, %v12321_v26  ;;  %8681 = vmatmul.msk.f32.gmra.mxu3 %vm7680_vm0, %v12528_v12  ;;  %v14172_v34 = vld [vmem:[#allocation93_spill] sm:$0xff] }
 0x3d5   :  { %14171 = vst [vmem:[#allocation29_spill] sm:$0xff] %v12565_v0  ;;  %7764 = vmatpush.msra.mxu0 %v6276_v3  ;;  %v13828_v1 = vxor.u32 2147483648, %v12551_v58  ;;  %vm6423_vm9 = vcmp.lt.s32.totalorder %v6422_v54, 2  ;;  %v1627_v29 = vadd.f32 -0.16666654, %v1626_v43  ;;  %v12575_v16 = vmul.f32 %v2707_v24, %v14172_v34  ;;  %v14175_v43 = vld [vmem:[#allocation35_spill] sm:$0xff] }
 0x3d6   :  { %vm6424_vm13 = vcmp.eq.s32.totalorder %v6422_v54, 0  ;;  %v1773_v6 = vmul.f32 %v1772_v41, %v14166_v33  ;;  %v1778_v37 = vmul.f32 -0.00019511016, %v14166_v33  ;;  %vm6427_vm7 = vcmp.eq.s32.totalorder %v6422_v54, 2 }
 0x3d7   :  { %14173 = vst [vmem:[#allocation41_spill] sm:$0xff] %v12575_v16  ;;  %v12579_v61 = vadd.f32 1.0, %v1621_v7  ;;  %v1628_v26 = vmul.f32 %v1627_v29, %v14157_v60  ;;  %v5491_v14 = vadd.s32 3, %v12565_v0  ;;  %v13832_v50 = vxor.u32 2147483648, %v12575_v16  ;;  %v14176_v7 = vld [vmem:[#allocation48_spill] sm:$0xff]  ;;  %v14179_v0 = vld [vmem:[#allocation42_spill] sm:$0xff] }
 0x3d8   :  { %vm13846_vm5 = vweird.f32 %v14175_v43  ;;  %v5337_v3 = vand.u32 3, %v5336_v52  ;;  %v1774_v55 = vadd.f32 -0.4999988, %v1773_v6  ;;  %v1779_v24 = vadd.f32 0.008332121, %v1778_v37  ;;  %8678 = vmatmul.msk.f32.gmra.mxu2 %vm7680_vm0, %v12591_v27 }
 0x3d9   :  { %14174 = vst [vmem:[#allocation58_spill] sm:$0xff] %v12579_v61  ;;  %v6429_v41 = vsel %vm6427_vm7, %v13828_v1, %v12575_v16  ;;  %v1629_v34 = vadd.f32 1.0, %v1628_v26  ;;  %v12588_v4 = vand.u32 3, %v5491_v14  ;;  %v693_v17 = vmul.f32 -0.001358992, %v14176_v7  ;;  %v14177_v26 = vld [vmem:[#allocation64_spill] sm:$0xff] }
 0x3da   :  { %v6426_v60 = vsel %vm6424_vm13, %v12551_v58, %v13832_v50  ;;  %v1775_v52 = vmul.f32 %v1774_v55, %v14166_v33  ;;  %v1780_v29 = vmul.f32 %v1779_v24, %v14166_v33  ;;  %v700_v6 = vmul.f32 -0.00019511016, %v14176_v7  ;;  %v14180_v16 = vld [vmem:[#allocation44_spill] sm:$0xff] }
 0x3db   :  { %v6430_v37 = vsel %vm6423_vm9, %v6426_v60, %v6429_v41  ;;  %v12604_v14 = vmul.f32 %v1629_v34, %v14177_v26  ;;  %v13843_v1 = vxor.u32 2147483648, %v12579_v61  ;;  %vm14181_vm7 = vnez %v14180_v16 }
 0x3dc   :  { %v12610_v50 = vsel %vm14181_vm7, 0, %v14179_v0  ;;  %v6431_v55 = vsel %vm13847_vm12, nan, %v6430_v37  ;;  %vm5338_vm13 = vcmp.lt.s32.totalorder %v5337_v3, 2  ;;  %vm5339_vm8 = vcmp.eq.s32.totalorder %v5337_v3, 0  ;;  %8682 = vmatmul.msk.f32.gmra.mxu3 %vm7680_vm0, %v12591_v27 }
 0x3dd   :  { %14178 = vst [vmem:[#allocation31_spill] sm:$0xff] %v12604_v14  ;;  %v1781_v24 = vadd.f32 -0.16666654, %v1780_v29  ;;  %7793 = vmatpush.msra.mxu1 %v6431_v55  ;;  %v13837_v54 = vxor.u32 2147483648, %v12604_v14  ;;  %vm5342_vm9 = vcmp.eq.s32.totalorder %v5337_v3, 2  ;;  %v12615_v60 = vadd.f32 1.0, %v1775_v52 }
 0x3de   :  { %14182 = vst [vmem:[#allocation27_spill] sm:$0xff] %v12610_v50  ;;  %v694_v41 = vadd.f32 0.041655596, %v693_v17  ;;  %v701_v34 = vadd.f32 0.008332121, %v700_v6  ;;  %vm5493_vm15 = vcmp.lt.s32.totalorder %v12588_v4, 2  ;;  %v5344_v17 = vsel %vm5342_vm9, %v13843_v1, %v12604_v14 }
 0x3df   :  { %v1782_v26 = vmul.f32 %v1781_v24, %v14166_v33  ;;  %v4406_v0 = vadd.s32 3, %v12610_v50  ;;  %v5341_v16 = vsel %vm5339_vm8, %v12579_v61, %v13837_v54  ;;  %v14183_v29 = vld [vmem:[#allocation43_spill] sm:$0xff]  ;;  %v13849_v3 = vxor.u32 2147483648, %v12615_v60 }
 0x3e0   :  { %vm13851_vm7 = vweird.f32 %v14183_v29  ;;  %v695_v52 = vmul.f32 %v694_v41, %v14176_v7  ;;  %v702_v33 = vmul.f32 %v701_v34, %v14176_v7  ;;  %v5345_v6 = vsel %vm5338_vm13, %v5341_v16, %v5344_v17  ;;  %v14184_v24 = vld [vmem:[#allocation51_spill] sm:$0xff] }
 0x3e1   :  { %v1783_v37 = vadd.f32 1.0, %v1782_v26  ;;  %v4407_v55 = vand.u32 3, %v4406_v0  ;;  %v847_v50 = vmul.f32 -0.001358992, %v14184_v24  ;;  %v5346_v30 = vsel %vm13846_vm5, nan, %v5345_v6  ;;  %v14186_v61 = vld [vmem:[#allocation47_spill] sm:$0xff] }
 0x3e2   :  { %v696_v54 = vadd.f32 -0.4999988, %v695_v52  ;;  %v703_v58 = vadd.f32 -0.16666654, %v702_v33  ;;  %vm14187_vm8 = vnez %v14186_v61  ;;  %7765 = vmatpush.msra.mxu0 %v5346_v30  ;;  %v14188_v41 = vld [vmem:[#allocation71_spill] sm:$0xff]  ;;  %vm5494_vm13 = vcmp.eq.s32.totalorder %v12588_v4, 0 }
 0x3e3   :  { %v12638_v1 = vsel %vm14187_vm8, 0, %v14185_v8  ;;  %v12641_v14 = vmul.f32 %v1783_v37, %v14188_v41  ;;  %vm5497_vm9 = vcmp.eq.s32.totalorder %v12588_v4, 2  ;;  %v848_v0 = vadd.f32 0.041655596, %v847_v50  ;;  %v14189_v61 = vld [vmem:[#allocation17_spill] sm:$0xff] }
 0x3e4   :  { %v697_v34 = vmul.f32 %v696_v54, %v14176_v7  ;;  %v704_v26 = vmul.f32 %v703_v58, %v14176_v7  ;;  %v854_v16 = vmul.f32 -0.00019511016, %v14184_v24  ;;  %vm13852_vm8 = vweird.f32 %v14189_v61 }
 0x3e5   :  { %v13858_v8 = vxor.u32 2147483648, %v12641_v14  ;;  %vm4408_vm5 = vcmp.lt.s32.totalorder %v4407_v55, 2  ;;  %v4561_v30 = vadd.s32 3, %v12638_v1  ;;  %v3172_v17 = vand.u32 3, %v9956_v10  ;;  %v14190_v10 = vld [vmem:[#allocation45_spill] sm:$0xff] }
 0x3e6   :  { %v12653_v52 = vadd.f32 1.0, %v697_v34  ;;  %v705_v33 = vadd.f32 1.0, %v704_v26  ;;  %v849_v6 = vmul.f32 %v848_v0, %v14184_v24  ;;  %v855_v54 = vadd.f32 0.008332121, %v854_v16 }
 0x3e7   :  { %v5496_v58 = vsel %vm5494_vm13, %v12615_v60, %v13858_v8  ;;  %v5499_v50 = vsel %vm5497_vm9, %v13849_v3, %v12641_v14  ;;  %vm4409_vm12 = vcmp.eq.s32.totalorder %v4407_v55, 0  ;;  %vm4412_vm10 = vcmp.eq.s32.totalorder %v4407_v55, 2 }
 0x3e8   :  { %v5500_v7 = vsel %vm5493_vm15, %v5496_v58, %v5499_v50  ;;  %v12665_v37 = vmul.f32 %v705_v33, %v14190_v10  ;;  %v13850_v41 = vxor.u32 2147483648, %v12653_v52  ;;  %v850_v34 = vadd.f32 -0.4999988, %v849_v6 }
 0x3e9   :  { %v5501_v26 = vsel %vm13851_vm7, nan, %v5500_v7  ;;  %v856_v0 = vmul.f32 %v855_v54, %v14184_v24  ;;  %v4562_v16 = vand.u32 3, %v4561_v30  ;;  %vm3173_vm13 = vcmp.lt.s32.totalorder %v3172_v17, 2 }
 0x3ea   :  { %7794 = vmatpush.msra.mxu1 %v5501_v26  ;;  %v13857_v3 = vxor.u32 2147483648, %v12665_v37  ;;  %v4414_v4 = vsel %vm4412_vm10, %v13850_v41, %v12665_v37  ;;  %v851_v33 = vmul.f32 %v850_v34, %v14184_v24  ;;  %vm3174_vm15 = vcmp.eq.s32.totalorder %v3172_v17, 0 }
 0x3eb   :  { %v857_v58 = vadd.f32 -0.16666654, %v856_v0  ;;  %v14191_v6 = vxor.u32 2147483648, %v14074_v18  ;;  %vm3177_vm9 = vcmp.eq.s32.totalorder %v3172_v17, 2  ;;  %v3326_v54 = vand.u32 3, %v14082_v53  ;;  %v14195_v17 = vld [vmem:[#allocation49_spill] sm:$0xff] }
 0x3ec   :  { %v4411_v30 = vsel %vm4409_vm12, %v12653_v52, %v13857_v3  ;;  %v12684_v7 = vadd.f32 1.0, %v851_v33  ;;  %v14192_v10 = vxor.u32 2147483648, %v12088_v21  ;;  %v2248_v26 = vand.u32 3, %v12180_v38  ;;  %v14248_v3 = vld [vmem:[#allocation53_spill] sm:$0xff] }
 0x3ed   :  { %v3176_v50 = vsel %vm3174_vm15, %v12088_v21, %v14191_v6  ;;  %v4415_v0 = vsel %vm4408_vm5, %v4411_v30, %v4414_v4  ;;  %v858_v6 = vmul.f32 %v857_v58, %v14184_v24  ;;  %vm4563_vm10 = vcmp.lt.s32.totalorder %v4562_v16, 2 }
 0x3ee   :  { %v3179_v34 = vsel %vm3177_vm9, %v14192_v10, %v14074_v18  ;;  %v4416_v41 = vsel %vm13852_vm8, nan, %v4415_v0  ;;  %vm4564_vm15 = vcmp.eq.s32.totalorder %v4562_v16, 0  ;;  %vm4567_vm12 = vcmp.eq.s32.totalorder %v4562_v16, 2 }
 0x3ef   :  { %v3180_v53 = vsel %vm3173_vm13, %v3176_v50, %v3179_v34  ;;  %vm3328_vm7 = vcmp.eq.s32.totalorder %v3326_v54, 0  ;;  %7766 = vmatpush.msra.mxu0 %v4416_v41  ;;  %v859_v33 = vadd.f32 1.0, %v858_v6  ;;  %v13855_v21 = vxor.u32 2147483648, %v12684_v7 }
 0x3f0   :  { %vm14193_vm9 = vweird.f32 %v14079_v20  ;;  %v14194_v38 = vxor.u32 2147483648, %v14110_v46  ;;  %8683 = vmatmul.msk.f32.vlgmr.msra.gmra.mxu0 %vm7680_vm0, %v12447_v35  ;;  %vm3331_vm5 = vcmp.eq.s32.totalorder %v3326_v54, 2  ;;  %vm2250_vm13 = vcmp.eq.s32.totalorder %v2248_v26, 0 }
 0x3f1   :  { %v3181_v18 = vsel %vm14193_vm9, nan, %v3180_v53  ;;  %vm2253_vm8 = vcmp.eq.s32.totalorder %v2248_v26, 2  ;;  %v2402_v24 = vand.u32 3, %v12186_v22  ;;  %v12705_v41 = vmul.f32 %v859_v33, %v14195_v17 }
 0x3f2   :  { %v3330_v55 = vsel %vm3328_vm7, %v12219_v39, %v14194_v38  ;;  %7891 = vmatpush.msrb.mxu0 %v3181_v18  ;;  %vm2249_vm3 = vcmp.lt.s32.totalorder %v2248_v26, 2  ;;  %v14196_v20 = vxor.u32 2147483648, %v12277_v25  ;;  %v14197_v58 = vxor.u32 2147483648, %v12271_v45  ;;  %v14201_v18 = vld [vmem:[#allocation20_spill] sm:$0xff] }
 0x3f3   :  { %vm3327_vm7 = vcmp.lt.s32.totalorder %v3326_v54, 2  ;;  %v14198_v30 = vxor.u32 2147483648, %v12219_v39  ;;  %vm2404_vm9 = vcmp.eq.s32.totalorder %v2402_v24, 0  ;;  %v13856_v22 = vxor.u32 2147483648, %v12705_v41 }
 0x3f4   :  { %v2252_v4 = vsel %vm2250_vm13, %v12271_v45, %v14196_v20  ;;  %v2255_v50 = vsel %vm2253_vm8, %v14197_v58, %v12277_v25  ;;  %v14199_v6 = vxor.u32 2147483648, %v12313_v57  ;;  %v4569_v45 = vsel %vm4567_vm12, %v13855_v21, %v12705_v41  ;;  %v14246_v21 = vld [vmem:[#allocation56_spill] sm:$0xff] }
 0x3f5   :  { %v3333_v10 = vsel %vm3331_vm5, %v14198_v30, %v14110_v46  ;;  %v2256_v34 = vsel %vm2249_vm3, %v2252_v4, %v2255_v50  ;;  %vm2403_vm8 = vcmp.lt.s32.totalorder %v2402_v24, 2  ;;  %vm2407_vm5 = vcmp.eq.s32.totalorder %v2402_v24, 2 }
 0x3f6   :  { %v3334_v0 = vsel %vm3327_vm7, %v3330_v55, %v3333_v10  ;;  %v2257_v26 = vsel %vm2247_vm1, nan, %v2256_v34  ;;  %v2406_v53 = vsel %vm2404_vm9, %v12280_v9, %v14199_v6  ;;  %v3773_v39 = vmul.f32 -0.001358992, %v12139_v62 }
 0x3f7   :  { %7892 = vmatpush.msrb.mxu0 %v2257_v26  ;;  %v4566_v46 = vsel %vm4564_vm15, %v12684_v7, %v13856_v22  ;;  %v14200_v49 = vxor.u32 2147483648, %v12280_v9  ;;  %v7506_v54 = vadd.s32 3, %v12204_v19  ;;  %v3927_v33 = vmul.f32 -0.001358992, %v12329_v59 }
 0x3f8   :  { %vm13854_vm1 = vweird.f32 %v14201_v18  ;;  %v4570_v38 = vsel %vm4563_vm10, %v4566_v46, %v4569_v45  ;;  %v3774_v24 = vadd.f32 0.041655596, %v3773_v39  ;;  %vm14202_vm3 = vweird.f32 %v14105_v44  ;;  %8684 = vmatmul.msk.f32.gmra.mxu0 %vm7680_vm0, %v12487_v32 }
 0x3f9   :  { %v2409_v25 = vsel %vm2407_vm5, %v14200_v49, %v12313_v57  ;;  %v4571_v17 = vsel %vm13854_vm1, nan, %v4570_v38  ;;  %v3335_v20 = vsel %vm14202_vm3, nan, %v3334_v0  ;;  %v7507_v4 = vand.u32 3, %v7506_v54 }
 0x3fa   :  { %v2410_v55 = vsel %vm2403_vm8, %v2406_v53, %v2409_v25  ;;  %v3928_v58 = vadd.f32 0.041655596, %v3927_v33  ;;  %7795 = vmatpush.msra.mxu1 %v4571_v17  ;;  %v3775_v9 = vmul.f32 %v3774_v24, %v12139_v62  ;;  %v3791_v57 = vxor.u32 2147483648, %v12389_v47 }
 0x3fb   :  { %v7661_v50 = vadd.s32 3, %v12236_v40  ;;  %v1324_v16 = vand.u32 3, %v12191_v28  ;;  %8687 = vmatmul.msk.f32.vlgmr.msra.gmra.mxu1 %vm7680_vm0, %v12447_v35  ;;  %v2411_v44 = vsel %vm2401_vm6, nan, %v2410_v55  ;;  %vm7509_vm10 = vcmp.eq.s32.totalorder %v7507_v4, 0 }
 0x3fc   :  { %v3929_v30 = vmul.f32 %v3928_v58, %v12329_v59  ;;  %v3945_v10 = vxor.u32 2147483648, %v12569_v63  ;;  %7920 = vmatpush.msrb.mxu1 %v3335_v20  ;;  %v3776_v34 = vadd.f32 -0.4999988, %v3775_v9  ;;  %vm7508_vm15 = vcmp.lt.s32.totalorder %v7507_v4, 2 }
 0x3fd   :  { %vm7512_vm12 = vcmp.eq.s32.totalorder %v7507_v4, 2  ;;  %v7662_v0 = vand.u32 3, %v7661_v50  ;;  %vm1326_vm13 = vcmp.eq.s32.totalorder %v1324_v16, 0  ;;  %vm1325_vm9 = vcmp.lt.s32.totalorder %v1324_v16, 2 }
 0x3fe   :  { %v3930_v28 = vadd.f32 -0.4999988, %v3929_v30  ;;  %v14203_v35 = vxor.u32 2147483648, %v12334_v13  ;;  %v1478_v26 = vand.u32 3, %v12212_v11  ;;  %7921 = vmatpush.msrb.mxu1 %v2411_v44  ;;  %v3777_v6 = vmul.f32 %v3776_v34, %v12139_v62 }
 0x3ff   :  { %vm7663_vm8 = vcmp.lt.s32.totalorder %v7662_v0, 2  ;;  %vm7664_vm5 = vcmp.eq.s32.totalorder %v7662_v0, 0  ;;  %vm1329_vm3 = vcmp.eq.s32.totalorder %v1324_v16, 2  ;;  %v14204_v45 = vxor.u32 2147483648, %v12315_v48  ;;  %v14209_v16 = vld [vmem:[#allocation96_spill] sm:$0xff] }
 0x400   :  { %v1328_v2 = vsel %vm1326_vm13, %v12315_v48, %v14203_v35  ;;  %v3931_v53 = vmul.f32 %v3930_v28, %v12329_v59  ;;  %vm1479_vm1 = vcmp.lt.s32.totalorder %v1478_v26, 2  ;;  %vm1480_vm7 = vcmp.eq.s32.totalorder %v1478_v26, 0  ;;  %8685 = vmatmul.msk.f32.gmra.mxu0 %vm7680_vm0, %v12528_v12 }
 0x401   :  { %v1331_v39 = vsel %vm1329_vm3, %v14204_v45, %v12334_v13  ;;  %v12765_v46 = vadd.f32 1.0, %v3777_v6  ;;  %v14205_v11 = vxor.u32 2147483648, %v12398_v42  ;;  %vm1483_vm13 = vcmp.eq.s32.totalorder %v1478_v26, 2  ;;  %v14213_v6 = vld [vmem:[#allocation52_spill] sm:$0xff] }
 0x402   :  { %v1332_v49 = vsel %vm1325_vm9, %v1328_v2, %v1331_v39  ;;  %v12770_v25 = vadd.f32 1.0, %v3931_v53  ;;  %vm14206_vm6 = vweird.f32 %v14119_v36  ;;  %v14207_v59 = vxor.u32 2147483648, %v12381_v51  ;;  %v14214_v39 = vld [vmem:[#allocation73_spill] sm:$0xff] }
 0x403   :  { %v1482_v62 = vsel %vm1480_vm7, %v12381_v51, %v14205_v11  ;;  %v1333_v54 = vsel %vm14206_vm6, nan, %v1332_v49  ;;  %v12780_v13 = vsel %vm12076_vm11, 0, %v12148_v5  ;;  %v3794_v33 = vxor.u32 2147483648, %v12765_v46  ;;  %8688 = vmatmul.msk.f32.gmra.mxu1 %vm7680_vm0, %v12487_v32  ;;  %v14216_v11 = vld [vmem:[#allocation69_spill] sm:$0xff] }
 0x404   :  { %v1485_v48 = vsel %vm1483_vm13, %v14207_v59, %v12398_v42  ;;  %v7511_v38 = vsel %vm7509_vm10, %v12765_v46, %v3791_v57  ;;  %7893 = vmatpush.msrb.mxu0 %v1333_v54  ;;  %v2849_v36 = vmul.f32 -0.001358992, %v12158_v23  ;;  %v3948_v24 = vxor.u32 2147483648, %v12770_v25  ;;  %v14219_v59 = vld [vmem:[#allocation84_spill] sm:$0xff] }
 0x405   :  { %v1486_v55 = vsel %vm1479_vm1, %v1482_v62, %v1485_v48  ;;  %v7666_v15 = vsel %vm7664_vm5, %v12770_v25, %v3945_v10  ;;  %v2856_v51 = vmul.f32 -0.00019511016, %v12158_v23  ;;  %v7514_v17 = vsel %vm7512_vm12, %v3794_v33, %v12389_v47  ;;  %v14218_v62 = vld [vmem:[#allocation95_spill] sm:$0xff] }
 0x406   :  { %v1487_v42 = vsel %vm1477_vm2, nan, %v1486_v55  ;;  %vm7667_vm11 = vcmp.eq.s32.totalorder %v7662_v0, 2  ;;  %v2850_v20 = vadd.f32 0.041655596, %v2849_v36  ;;  %v6576_v58 = vadd.s32 3, %v12780_v13 }
 0x407   :  { %7922 = vmatpush.msrb.mxu1 %v1487_v42  ;;  %v7515_v9 = vsel %vm7508_vm15, %v7511_v38, %v7514_v17  ;;  %v7669_v50 = vsel %vm7667_vm11, %v3948_v24, %v12569_v63  ;;  %v2857_v32 = vadd.f32 0.008332121, %v2856_v51  ;;  %v12812_v30 = vsel %vm12152_vm4, 0, %v14209_v16  ;;  %v14221_v38 = vld [vmem:[#allocation72_spill] sm:$0xff] }
 0x408   :  { %vm14211_vm2 = vweird.f32 %v11749_v31  ;;  %v7670_v28 = vsel %vm7663_vm8, %v7666_v15, %v7669_v50  ;;  %v2851_v35 = vmul.f32 %v2850_v20, %v12158_v23  ;;  %v12818_v2 = vand.u32 3, %v6576_v58  ;;  %v14223_v15 = vld [vmem:[#allocation98_spill] sm:$0xff]  ;;  %8686 = vmatmul.msk.f32.gmra.mxu0 %vm7680_vm0, %v12591_v27 }
 0x409   :  { %v7516_v34 = vsel %vm14211_vm2, nan, %v7515_v9  ;;  %vm14212_vm1 = vweird.f32 %v11904_v56  ;;  %v2858_v26 = vmul.f32 %v2857_v32, %v12158_v23  ;;  %v3003_v53 = vmul.f32 -0.001358992, %v14213_v6  ;;  %v14224_v9 = vld [vmem:[#allocation55_spill] sm:$0xff] }
 0x40a   :  { %7821 = vmatpush.msrb.mxu2 %v7516_v34  ;;  %v7671_v4 = vsel %vm14212_vm1, nan, %v7670_v28  ;;  %v3010_v45 = vmul.f32 -0.00019511016, %v14213_v6  ;;  %v14215_v49 = vsub.s32 4, %v14214_v39  ;;  %vm14217_vm4 = vcmp.lt.s32.totalorder %v14216_v11, 0  ;;  %v14225_v28 = vld [vmem:[#allocation85_spill] sm:$0xff] }
 0x40b   :  { %v12832_v54 = vmul.f32 %v14218_v62, %v14218_v62  ;;  %v14220_v48 = vsub.s32 4, %v14219_v59  ;;  %vm14222_vm10 = vcmp.lt.s32.totalorder %v14221_v38, 0  ;;  %7850 = vmatpush.msrb.mxu3 %v7671_v4  ;;  %v2852_v36 = vadd.f32 -0.4999988, %v2851_v35  ;;  %8689 = vmatmul.msk.f32.gmra.mxu1 %vm7680_vm0, %v12528_v12 }
 0x40c   :  { %v1921_v0 = vsel %vm14217_vm4, %v14215_v49, %v14214_v39  ;;  %v12843_v5 = vmul.f32 %v14223_v15, %v14223_v15  ;;  %v2859_v42 = vadd.f32 -0.16666654, %v2858_v26  ;;  %v3004_v51 = vadd.f32 0.041655596, %v3003_v53  ;;  %v14227_v26 = vld [vmem:[#allocation89_spill] sm:$0xff] }
 0x40d   :  { %v12839_v55 = vsel %vm14222_vm10, %v14220_v48, %v14219_v59  ;;  %v3011_v17 = vadd.f32 0.008332121, %v3010_v45  ;;  %v2853_v20 = vmul.f32 %v2852_v36, %v12158_v23  ;;  %vm6579_vm15 = vcmp.eq.s32.totalorder %v12818_v2, 0  ;;  %v14229_v59 = vld [vmem:[#allocation33_spill] sm:$0xff]  ;;  %v14231_v36 = vld [vmem:[#allocation60_spill] sm:$0xff] }
 0x40e   :  { %v6731_v58 = vadd.s32 3, %v12812_v30  ;;  %v400_v50 = vand.u32 3, %v14224_v9  ;;  %v2860_v32 = vmul.f32 %v2859_v42, %v12158_v23  ;;  %vm6578_vm12 = vcmp.lt.s32.totalorder %v12818_v2, 2  ;;  %v14226_v23 = vld [vmem:[#allocation57_spill] sm:$0xff] }
 0x40f   :  { %vm6582_vm7 = vcmp.eq.s32.totalorder %v12818_v2, 2  ;;  %v3005_v16 = vmul.f32 %v3004_v51, %v14213_v6  ;;  %v3012_v44 = vmul.f32 %v3011_v17, %v14213_v6  ;;  %v12858_v34 = vadd.f32 1.0, %v2853_v20  ;;  %v14232_v51 = vld [vmem:[#allocation25_spill] sm:$0xff] }
 0x410   :  { %vm2863_vm9 = vweird.f32 %v14225_v28  ;;  %v6732_v35 = vand.u32 3, %v6731_v58  ;;  %v554_v4 = vand.u32 3, %v14226_v23  ;;  %vm14228_vm6 = vnez %v14227_v26  ;;  %v14233_v58 = vld [vmem:[#allocation88_spill] sm:$0xff] }
 0x411   :  { %v12864_v53 = vsel %vm14228_vm6, 0, %v1921_v0  ;;  %v2861_v45 = vadd.f32 1.0, %v2860_v32  ;;  %v3006_v39 = vadd.f32 -0.4999988, %v3005_v16  ;;  %v3013_v49 = vadd.f32 -0.16666654, %v3012_v44 }
 0x412   :  { %vm402_vm8 = vcmp.eq.s32.totalorder %v400_v50, 0  ;;  %v2870_v12 = vxor.u32 2147483648, %v12858_v34  ;;  %vm6734_vm5 = vcmp.eq.s32.totalorder %v6732_v35, 0  ;;  %vm401_vm3 = vcmp.lt.s32.totalorder %v400_v50, 2 }
 0x413   :  { %v14230_v48 = vxor.u32 2147483648, %v14229_v59  ;;  %v12871_v17 = vmul.f32 %v2861_v45, %v14232_v51  ;;  %v3007_v20 = vmul.f32 %v3006_v39, %v14213_v6  ;;  %v3014_v0 = vmul.f32 %v3013_v49, %v14213_v6  ;;  %v14235_v45 = vld [vmem:[#allocation40_spill] sm:$0xff]  ;;  %8690 = vmatmul.msk.f32.gmra.mxu1 %vm7680_vm0, %v12591_v27 }
 0x414   :  { %vm6733_vm13 = vcmp.lt.s32.totalorder %v6732_v35, 2  ;;  %vm405_vm11 = vcmp.eq.s32.totalorder %v400_v50, 2  ;;  %vm3017_vm2 = vweird.f32 %v14233_v58  ;;  %v14234_v9 = vxor.u32 2147483648, %v14231_v36  ;;  %v14237_v49 = vld [vmem:[#allocation36_spill] sm:$0xff] }
 0x415   :  { %v404_v42 = vsel %vm402_vm8, %v14231_v36, %v14230_v48  ;;  %vm555_vm1 = vcmp.lt.s32.totalorder %v554_v4, 2  ;;  %vm556_vm4 = vcmp.eq.s32.totalorder %v554_v4, 0  ;;  %vm559_vm10 = vcmp.eq.s32.totalorder %v554_v4, 2 }
 0x416   :  { %v407_v32 = vsel %vm405_vm11, %v14234_v9, %v14229_v59  ;;  %v2867_v16 = vxor.u32 2147483648, %v12871_v17  ;;  %v6584_v44 = vsel %vm6582_vm7, %v2870_v12, %v12871_v17  ;;  %v12885_v6 = vadd.f32 1.0, %v3007_v20  ;;  %v14239_v9 = vld [vmem:[#allocation30_spill] sm:$0xff] }
 0x417   :  { %v3015_v23 = vadd.f32 1.0, %v3014_v0  ;;  %v408_v26 = vsel %vm401_vm3, %v404_v42, %v407_v32  ;;  %v14236_v39 = vxor.u32 2147483648, %v14235_v45  ;;  %v14238_v48 = vxor.u32 2147483648, %v14237_v49  ;;  %v14240_v42 = vld [vmem:[#allocation11_spill] sm:$0xff] }
 0x418   :  { %v1925_v51 = vmul.f32 -0.001358992, %v12832_v54  ;;  %v6581_v20 = vsel %vm6579_vm15, %v12858_v34, %v2867_v16  ;;  %v13859_v50 = vxor.u32 2147483648, %v12885_v6  ;;  %vm14241_vm7 = vweird.f32 %v14240_v42  ;;  %v14242_v42 = vld [vmem:[#allocation12_spill] sm:$0xff] }
 0x419   :  { %v558_v59 = vsel %vm556_vm4, %v14237_v49, %v14236_v39  ;;  %v561_v36 = vsel %vm559_vm10, %v14238_v48, %v14235_v45  ;;  %v12901_v0 = vmul.f32 %v3015_v23, %v14239_v9  ;;  %v409_v32 = vsel %vm14241_vm7, nan, %v408_v26 }
 0x41a   :  { %v6585_v45 = vsel %vm6578_vm12, %v6581_v20, %v6584_v44  ;;  %7894 = vmatpush.msrb.mxu0 %v409_v32  ;;  %v562_v39 = vsel %vm555_vm1, %v558_v59, %v561_v36  ;;  %v1926_v49 = vadd.f32 0.041655596, %v1925_v51  ;;  %v1932_v48 = vmul.f32 -0.00019511016, %v12832_v54 }
 0x41b   :  { %v6586_v23 = vsel %vm2863_vm9, nan, %v6585_v45  ;;  %v13860_v9 = vxor.u32 2147483648, %v12901_v0  ;;  %vm6737_vm15 = vcmp.eq.s32.totalorder %v6732_v35, 2  ;;  %vm14243_vm6 = vweird.f32 %v14242_v42 }
 0x41c   :  { %v563_v26 = vsel %vm14243_vm6, nan, %v562_v39  ;;  %7822 = vmatpush.msrb.mxu2 %v6586_v23  ;;  %v6739_v27 = vsel %vm6737_vm15, %v13859_v50, %v12901_v0  ;;  %v1927_v2 = vmul.f32 %v1926_v49, %v12832_v54  ;;  %v1933_v4 = vadd.f32 0.008332121, %v1932_v48  ;;  %v14245_v23 = vld [vmem:[#allocation80_spill] sm:$0xff]  ;;  %v14251_v50 = vld [vmem:[#allocation78_spill] sm:$0xff] }
 0x41d   :  { %7923 = vmatpush.msrb.mxu1 %v563_v26  ;;  %v5646_v44 = vadd.s32 3, %v12864_v53  ;;  %v6736_v59 = vsel %vm6734_vm5, %v12885_v6, %v13860_v9  ;;  %v12929_v51 = vsel %vm11947_vm14, 0, %v12839_v55  ;;  %v2079_v20 = vmul.f32 -0.001358992, %v12843_v5 }
 0x41e   :  { %v2086_v32 = vmul.f32 -0.00019511016, %v12843_v5  ;;  %v6740_v45 = vsel %vm6733_vm13, %v6736_v59, %v6739_v27  ;;  %v1928_v39 = vadd.f32 -0.4999988, %v1927_v2  ;;  %v1934_v49 = vmul.f32 %v1933_v4, %v12832_v54  ;;  %v14250_v27 = vld [vmem:[#allocation82_spill] sm:$0xff] }
 0x41f   :  { %v5647_v48 = vand.u32 3, %v5646_v44  ;;  %v12937_v42 = vmul.f32 %v14245_v23, %v14245_v23  ;;  %v6741_v26 = vsel %vm3017_vm2, nan, %v6740_v45  ;;  %v2080_v36 = vadd.f32 0.041655596, %v2079_v20 }
 0x420   :  { %v2087_v55 = vadd.f32 0.008332121, %v2086_v32  ;;  %v14247_v22 = vsub.s32 4, %v14246_v21  ;;  %vm14249_vm14 = vcmp.lt.s32.totalorder %v14248_v3, 0  ;;  %v12950_v2 = vmul.f32 %v14250_v27, %v14250_v27  ;;  %7851 = vmatpush.msrb.mxu3 %v6741_v26 }
 0x421   :  { %v1929_v4 = vmul.f32 %v1928_v39, %v12832_v54  ;;  %v1935_v44 = vadd.f32 -0.16666654, %v1934_v49  ;;  %vm5649_vm12 = vcmp.eq.s32.totalorder %v5647_v48, 0  ;;  %v2081_v59 = vmul.f32 %v2080_v36, %v12843_v5 }
 0x422   :  { %v12946_v35 = vsel %vm14249_vm14, %v14247_v22, %v14246_v21  ;;  %v2088_v20 = vmul.f32 %v2087_v55, %v12843_v5  ;;  %v5801_v32 = vadd.s32 3, %v12929_v51  ;;  %vm5648_vm8 = vcmp.lt.s32.totalorder %v5647_v48, 2 }
 0x423   :  { %v12956_v45 = vadd.f32 1.0, %v1929_v4  ;;  %v1936_v21 = vmul.f32 %v1935_v44, %v12832_v54  ;;  %vm5652_vm5 = vcmp.eq.s32.totalorder %v5647_v48, 2  ;;  %v3788_v22 = vand.u32 3, %v12204_v19  ;;  %v14252_v4 = vld [vmem:[#allocation75_spill] sm:$0xff] }
 0x424   :  { %vm1939_vm3 = vweird.f32 %v14216_v11  ;;  %v2082_v26 = vadd.f32 -0.4999988, %v2081_v59  ;;  %v2089_v39 = vadd.f32 -0.16666654, %v2088_v20  ;;  %v5802_v49 = vand.u32 3, %v5801_v32  ;;  %v8803_v11 = vld [vmem:[#allocation2 + $0x8] sm:$0xff] }
 0x425   :  { %v3942_v8 = vand.u32 3, %v12236_v40  ;;  %v1937_v36 = vadd.f32 1.0, %v1936_v21  ;;  %v1946_v55 = vxor.u32 2147483648, %v12956_v45  ;;  %vm3789_vm13 = vcmp.lt.s32.totalorder %v3788_v22, 2 }
 0x426   :  { %vm14253_vm11 = vnez %v14252_v4  ;;  %v2083_v54 = vmul.f32 %v2082_v26, %v12843_v5  ;;  %v2090_v19 = vmul.f32 %v2089_v39, %v12843_v5  ;;  %vm5803_vm1 = vcmp.lt.s32.totalorder %v5802_v49, 2 }
 0x427   :  { %v12966_v9 = vsel %vm14253_vm11, 0, %v14251_v50  ;;  %vm3790_vm4 = vcmp.eq.s32.totalorder %v3788_v22, 0  ;;  %v12971_v44 = vmul.f32 %v1937_v36, %v14218_v62  ;;  %vm13861_vm10 = vweird.f32 %v14221_v38 }
 0x428   :  { %vm5804_vm7 = vcmp.eq.s32.totalorder %v5802_v49, 0  ;;  %v3792_v40 = vsel %vm3790_vm4, %v12765_v46, %v3791_v57  ;;  %vm3793_vm15 = vcmp.eq.s32.totalorder %v3788_v22, 2  ;;  %v12977_v59 = vadd.f32 1.0, %v2083_v54 }
 0x429   :  { %v2091_v50 = vadd.f32 1.0, %v2090_v19  ;;  %vm5807_vm6 = vcmp.eq.s32.totalorder %v5802_v49, 2  ;;  %v3795_v5 = vsel %vm3793_vm15, %v3794_v33, %v12389_v47  ;;  %v1943_v20 = vxor.u32 2147483648, %v12971_v44 }
 0x42a   :  { %v5654_v62 = vsel %vm5652_vm5, %v1946_v55, %v12971_v44  ;;  %v3796_v32 = vsel %vm3789_vm13, %v3792_v40, %v3795_v5  ;;  %vm3944_vm14 = vcmp.eq.s32.totalorder %v3942_v8, 0  ;;  %v2100_v21 = vxor.u32 2147483648, %v12977_v59 }
 0x42b   :  { %v12989_v57 = vmul.f32 %v2091_v50, %v14223_v15  ;;  %vm14254_vm11 = vweird.f32 %v11749_v31  ;;  %v3946_v47 = vsel %vm3944_vm14, %v12770_v25, %v3945_v10  ;;  %v5651_v46 = vsel %vm5649_vm12, %v12956_v45, %v1943_v20  ;;  %v14256_v50 = vld [vmem:[#allocation76_spill] sm:$0xff] }
 0x42c   :  { %v3797_v26 = vsel %vm14254_vm11, nan, %v3796_v32  ;;  %vm3947_vm5 = vcmp.eq.s32.totalorder %v3942_v8, 2  ;;  %v1001_v33 = vmul.f32 -0.001358992, %v12937_v42  ;;  %v1008_v15 = vmul.f32 -0.00019511016, %v12937_v42 }
 0x42d   :  { %8007 = vmatpush.msra.mxu0 %v3797_v26  ;;  %v5655_v22 = vsel %vm5648_vm8, %v5651_v46, %v5654_v62  ;;  %v2097_v31 = vxor.u32 2147483648, %v12989_v57  ;;  %vm3943_vm13 = vcmp.lt.s32.totalorder %v3942_v8, 2  ;;  %v3949_v10 = vsel %vm3947_vm5, %v3948_v24, %v12569_v63 }
 0x42e   :  { %v5656_v39 = vsel %vm1939_vm3, nan, %v5655_v22  ;;  %v3950_v36 = vsel %vm3943_vm13, %v3946_v47, %v3949_v10  ;;  %v1002_v4 = vadd.f32 0.041655596, %v1001_v33  ;;  %v1009_v54 = vadd.f32 0.008332121, %v1008_v15 }
 0x42f   :  { %7823 = vmatpush.msrb.mxu2 %v5656_v39  ;;  %v5806_v48 = vsel %vm5804_vm7, %v12977_v59, %v2097_v31  ;;  %v5809_v8 = vsel %vm5807_vm6, %v2100_v21, %v12989_v57  ;;  %vm14255_vm12 = vweird.f32 %v11904_v56  ;;  %v4716_v25 = vadd.s32 3, %v12966_v9  ;;  %v14258_v39 = vld [vmem:[#allocation46_spill] sm:$0xff] }
 0x430   :  { %v3951_v63 = vsel %vm14255_vm12, nan, %v3950_v36  ;;  %v5810_v24 = vsel %vm5803_vm1, %v5806_v48, %v5809_v8  ;;  %v1003_v19 = vmul.f32 %v1002_v4, %v12937_v42  ;;  %v1010_v40 = vmul.f32 %v1009_v54, %v12937_v42 }
 0x431   :  { %8036 = vmatpush.msra.mxu1 %v3951_v63  ;;  %vm14257_vm8 = vnez %v14256_v50  ;;  %v5811_v62 = vsel %vm13861_vm10, nan, %v5810_v24  ;;  %v4717_v32 = vand.u32 3, %v4716_v25  ;;  %v1155_v56 = vmul.f32 -0.001358992, %v12950_v2  ;;  %v14259_v25 = vld [vmem:[#allocation99_spill] sm:$0xff] }
 0x432   :  { %v13027_v5 = vsel %vm14257_vm8, 0, %v12946_v35  ;;  %v1162_v26 = vmul.f32 -0.00019511016, %v12950_v2  ;;  %7852 = vmatpush.msrb.mxu3 %v5811_v62  ;;  %v1004_v49 = vadd.f32 -0.4999988, %v1003_v19  ;;  %vm1015_vm4 = vweird.f32 %v14258_v39  ;;  %v14291_v39 = vld [vmem:[#allocation31_spill] sm:$0xff] }
 0x433   :  { %v1011_v47 = vadd.f32 -0.16666654, %v1010_v40  ;;  %v4871_v46 = vadd.s32 3, %v13027_v5  ;;  %v1156_v33 = vadd.f32 0.041655596, %v1155_v56  ;;  %vm4718_vm1 = vcmp.lt.s32.totalorder %v4717_v32, 2 }
 0x434   :  { %v1005_v15 = vmul.f32 %v1004_v49, %v12937_v42  ;;  %v1163_v35 = vadd.f32 0.008332121, %v1162_v26  ;;  %vm4719_vm7 = vcmp.eq.s32.totalorder %v4717_v32, 0  ;;  %v2864_v4 = vand.u32 3, %v12780_v13 }
 0x435   :  { %v1012_v22 = vmul.f32 %v1011_v47, %v12937_v42  ;;  %v13036_v10 = vand.u32 3, %v4871_v46  ;;  %v1157_v36 = vmul.f32 %v1156_v33, %v12950_v2  ;;  %v3018_v54 = vand.u32 3, %v12812_v30 }
 0x436   :  { %v13042_v48 = vadd.f32 1.0, %v1005_v15  ;;  %vm4722_vm15 = vcmp.eq.s32.totalorder %v4717_v32, 2  ;;  %v1164_v63 = vmul.f32 %v1163_v35, %v12950_v2  ;;  %vm2865_vm14 = vcmp.lt.s32.totalorder %v2864_v4, 2 }
 0x437   :  { %v1013_v8 = vadd.f32 1.0, %v1012_v22  ;;  %v1158_v42 = vadd.f32 -0.4999988, %v1157_v36  ;;  %vm4877_vm6 = vcmp.eq.s32.totalorder %v13036_v10, 2  ;;  %v3480_v24 = vand.u32 3, %v14259_v25 }
 0x438   :  { %v1022_v40 = vxor.u32 2147483648, %v13042_v48  ;;  %v1165_v13 = vadd.f32 -0.16666654, %v1164_v63  ;;  %vm2866_vm11 = vcmp.eq.s32.totalorder %v2864_v4, 0  ;;  %vm4874_vm5 = vcmp.eq.s32.totalorder %v13036_v10, 0 }
 0x439   :  { %v13048_v19 = vmul.f32 %v1013_v8, %v14245_v23  ;;  %v1159_v30 = vmul.f32 %v1158_v42, %v12950_v2  ;;  %v2868_v50 = vsel %vm2866_vm11, %v12858_v34, %v2867_v16  ;;  %vm2869_vm13 = vcmp.eq.s32.totalorder %v2864_v4, 2  ;;  %v13069_v16 = vld [vmem:[%s13600_s2] sm:$0xff]  ;;  %v14262_v8 = vld [vmem:[#allocation100_spill] sm:$0xff] }
 0x43a   :  { %vm3019_vm12 = vcmp.lt.s32.totalorder %v3018_v54, 2  ;;  %v1166_v56 = vmul.f32 %v1165_v13, %v12950_v2  ;;  %vm4873_vm8 = vcmp.lt.s32.totalorder %v13036_v10, 2  ;;  %v2871_v26 = vsel %vm2869_vm13, %v2870_v12, %v12871_v17  ;;  %8699 = vmatmul.msk.f32.vlgmr.msrb.gmra.mxu0 %vm7680_vm0, %v13069_v16  ;;  %8703 = vmatmul.msk.f32.vlgmr.msrb.gmra.mxu1 %vm7680_vm0, %v13069_v16  ;;  %v14264_v42 = vld [vmem:[#allocation37_spill] sm:$0xff]  ;;  %v8054_v13 = vld [vmem:[%s13602_s4 + $0x8] sm:$0xff] }
 0x43b   :  { %v1019_v62 = vxor.u32 2147483648, %v13048_v19  ;;  %v4724_v23 = vsel %vm4722_vm15, %v1022_v40, %v13048_v19  ;;  %v13071_v49 = vadd.f32 1.0, %v1159_v30  ;;  %vm1169_vm11 = vweird.f32 %v14248_v3  ;;  %8064 = vperm.xlu1 %8752, %v8054_v13  }
 0x43c   :  { %v2872_v47 = vsel %vm2865_vm14, %v2868_v50, %v2871_v26  ;;  %vm3020_vm15 = vcmp.eq.s32.totalorder %v3018_v54, 0  ;;  %vm3023_vm10 = vcmp.eq.s32.totalorder %v3018_v54, 2  ;;  %v1167_v12 = vadd.f32 1.0, %v1166_v56  ;;  %v8802_v54 = vld [vmem:[#allocation2] sm:$0xff]  ;;  %v13122_v56 = vld [vmem:[%s13600_s2 + $0x8] sm:$0xff] }
 0x43d   :  { %v4721_v34 = vsel %vm4719_vm7, %v13042_v48, %v1019_v62  ;;  %v2873_v17 = vsel %vm2863_vm9, nan, %v2872_v47  ;;  %v14260_v2 = vxor.u32 2147483648, %v12901_v0  ;;  %v1176_v15 = vxor.u32 2147483648, %v13071_v49 }
 0x43e   :  { %v4725_v33 = vsel %vm4718_vm1, %v4721_v34, %v4724_v23  ;;  %8008 = vmatpush.msra.mxu0 %v2873_v17  ;;  %v14261_v22 = vxor.u32 2147483648, %v12885_v6  ;;  %vm3481_vm14 = vcmp.lt.s32.totalorder %v3480_v24, 2  ;;  %v13096_v28 = vmul.f32 %v1167_v12, %v14250_v27  ;;  %v14267_v34 = vld [vmem:[#allocation74_spill] sm:$0xff]  ;;  %v14269_v12 = vld [vmem:[#allocation32_spill] sm:$0xff] }
 0x43f   :  { %v3022_v46 = vsel %vm3020_vm15, %v12885_v6, %v14260_v2  ;;  %v4726_v36 = vsel %vm1015_vm4, nan, %v4725_v33  ;;  %vm3482_vm9 = vcmp.eq.s32.totalorder %v3480_v24, 0  ;;  %v14263_v63 = vxor.u32 2147483648, %v14262_v8  ;;  %v14265_v6 = vld [vmem:[#allocation101_spill] sm:$0xff]  ;;  %v14271_v2 = vld [vmem:[#allocation18_spill] sm:$0xff] }
 0x440   :  { %v3025_v35 = vsel %vm3023_vm10, %v14261_v22, %v12901_v0  ;;  %7824 = vmatpush.msrb.mxu2 %v4726_v36  ;;  %vm3485_vm1 = vcmp.eq.s32.totalorder %v3480_v24, 2  ;;  %v3634_v0 = vand.u32 3, %v14265_v6  ;;  %v1173_v27 = vxor.u32 2147483648, %v13096_v28  ;;  %v14276_v6 = vld [vmem:[#allocation19_spill] sm:$0xff] }
 0x441   :  { %v3026_v4 = vsel %vm3019_vm12, %v3022_v46, %v3025_v35  ;;  %v3484_v25 = vsel %vm3482_vm9, %v14264_v42, %v14263_v63  ;;  %v4879_v58 = vsel %vm4877_vm6, %v1176_v15, %v13096_v28  ;;  %8691 = vmatmul.msk.f32.vlgmr.msrb.gmra.mxu2 %vm7680_vm0, %v8802_v54  ;;  %v14266_v30 = vxor.u32 2147483648, %v14264_v42  ;;  %v14275_v42 = vld [vmem:[#allocation14_spill] sm:$0xff] }
 0x442   :  { %v3027_v32 = vsel %vm3017_vm2, nan, %v3026_v4  ;;  %v1940_v23 = vand.u32 3, %v12864_v53  ;;  %vm3635_vm2 = vcmp.lt.s32.totalorder %v3634_v0, 2  ;;  %vm3636_vm10 = vcmp.eq.s32.totalorder %v3634_v0, 0  ;;  %8700 = vmatmul.msk.f32.gmra.mxu0 %vm7680_vm0, %v13122_v56  ;;  %v14273_v4 = vld [vmem:[#allocation81_spill] sm:$0xff]  ;;  %8704 = vmatmul.msk.f32.gmra.mxu1 %vm7680_vm0, %v13122_v56 }
 0x443   :  { %8037 = vmatpush.msra.mxu1 %v3027_v32  ;;  %v3487_v50 = vsel %vm3485_vm1, %v14266_v30, %v14262_v8  ;;  %vm3639_vm7 = vcmp.eq.s32.totalorder %v3634_v0, 2  ;;  %v4876_v47 = vsel %vm4874_vm5, %v13071_v49, %v1173_v27  ;;  %vm14268_vm6 = vweird.f32 %v14267_v34  ;;  %v14277_v30 = vld [vmem:[#allocation66_spill] sm:$0xff]  ;;  %v14283_v34 = vld [vmem:[#allocation41_spill] sm:$0xff] }
 0x444   :  { %v3488_v26 = vsel %vm3481_vm14, %v3484_v25, %v3487_v50  ;;  %v14270_v17 = vxor.u32 2147483648, %v14269_v12  ;;  %v14272_v24 = vxor.u32 2147483648, %v14271_v2  ;;  %v4880_v22 = vsel %vm4873_vm8, %v4876_v47, %v4879_v58 }
 0x445   :  { %v3489_v53 = vsel %vm14268_vm6, nan, %v3488_v26  ;;  %vm1941_vm13 = vcmp.lt.s32.totalorder %v1940_v23, 2  ;;  %vm1942_vm12 = vcmp.eq.s32.totalorder %v1940_v23, 0  ;;  %v4881_v36 = vsel %vm1169_vm11, nan, %v4880_v22  ;;  %v14280_v26 = vld [vmem:[#allocation62_spill] sm:$0xff]  ;;  %v14289_v22 = vld [vmem:[#allocation59_spill] sm:$0xff] }
 0x446   :  { %v3638_v46 = vsel %vm3636_vm10, %v14271_v2, %v14270_v17  ;;  %v3641_v33 = vsel %vm3639_vm7, %v14272_v24, %v14269_v12  ;;  %7949 = vmatpush.msra.mxu2 %v3489_v53  ;;  %vm14274_vm5 = vweird.f32 %v14273_v4  ;;  %v1944_v8 = vsel %vm1942_vm12, %v12956_v45, %v1943_v20  ;;  %7853 = vmatpush.msrb.mxu3 %v4881_v36  ;;  %v14285_v12 = vld [vmem:[#allocation39_spill] sm:$0xff] }
 0x447   :  { %v3642_v35 = vsel %vm3635_vm2, %v3638_v46, %v3641_v33  ;;  %vm1945_vm15 = vcmp.eq.s32.totalorder %v1940_v23, 2  ;;  %v2094_v63 = vand.u32 3, %v12929_v51  ;;  %v2556_v25 = vand.u32 3, %v14275_v42  ;;  %8695 = vmatmul.msk.f32.vlgmr.msrb.gmra.mxu3 %vm7680_vm0, %v8802_v54  ;;  %v8053_v51 = vld [vmem:[%s13602_s4] sm:$0xff]  ;;  %v14278_v54 = vld [vmem:[#allocation34_spill] sm:$0xff] }
 0x448   :  { %v3643_v32 = vsel %vm14274_vm5, nan, %v3642_v35  ;;  %v1947_v10 = vsel %vm1945_vm15, %v1946_v55, %v12971_v44  ;;  %v2710_v0 = vand.u32 3, %v14276_v6  ;;  %v1016_v20 = vand.u32 3, %v12966_v9  ;;  %v13178_v44 = vld [vmem:[%s13600_s2 + $0x10] sm:$0xff]  ;;  %8059 = vperm.xlu1 %8752, %v8053_v51  }
 0x449   :  { %v1948_v13 = vsel %vm1941_vm13, %v1944_v8, %v1947_v10  ;;  %v1170_v58 = vand.u32 3, %v13027_v5  ;;  %v13161_v50 = vand.u32 3, %v14277_v30  ;;  %7978 = vmatpush.msra.mxu3 %v3643_v32  ;;  %vm2095_vm8 = vcmp.lt.s32.totalorder %v2094_v63, 2  ;;  %8692 = vmatmul.msk.f32.gmra.mxu2 %vm7680_vm0, %v8803_v11 }
 0x44a   :  { %v1949_v45 = vsel %vm1939_vm3, nan, %v1948_v13  ;;  %vm2096_vm14 = vcmp.eq.s32.totalorder %v2094_v63, 0  ;;  %vm2099_vm9 = vcmp.eq.s32.totalorder %v2094_v63, 2  ;;  %vm2557_vm1 = vcmp.lt.s32.totalorder %v2556_v25, 2  ;;  %8701 = vmatmul.msk.f32.gmra.mxu0 %vm7680_vm0, %v13178_v44  ;;  %8705 = vmatmul.msk.f32.gmra.mxu1 %vm7680_vm0, %v13178_v44  ;;  %v14293_v63 = vld [vmem:[#allocation58_spill] sm:$0xff]  ;;  %v14296_v13 = vld [vmem:[#allocation27_spill] sm:$0xff] }
 0x44b   :  { %8009 = vmatpush.msra.mxu0 %v1949_v45  ;;  %v2098_v9 = vsel %vm2096_vm14, %v12977_v59, %v2097_v31  ;;  %v2101_v55 = vsel %vm2099_vm9, %v2100_v21, %v12989_v57  ;;  %vm2558_vm2 = vcmp.eq.s32.totalorder %v2556_v25, 0  ;;  %v14279_v23 = vxor.u32 2147483648, %v14278_v54 }
 0x44c   :  { %v2102_v5 = vsel %vm2095_vm8, %v2098_v9, %v2101_v55  ;;  %vm2561_vm3 = vcmp.eq.s32.totalorder %v2556_v25, 2  ;;  %vm2711_vm10 = vcmp.lt.s32.totalorder %v2710_v0, 2  ;;  %vm14281_vm7 = vweird.f32 %v14221_v38  ;;  %v14287_v38 = vld [vmem:[#allocation54_spill] sm:$0xff] }
 0x44d   :  { %v2560_v47 = vsel %vm2558_vm2, %v14280_v26, %v14279_v23  ;;  %v2103_v59 = vsel %vm14281_vm7, nan, %v2102_v5  ;;  %v14282_v57 = vxor.u32 2147483648, %v14280_v26  ;;  %vm2712_vm6 = vcmp.eq.s32.totalorder %v2710_v0, 0 }
 0x44e   :  { %vm2715_vm13 = vcmp.eq.s32.totalorder %v2710_v0, 2  ;;  %8038 = vmatpush.msra.mxu1 %v2103_v59  ;;  %v14284_v53 = vxor.u32 2147483648, %v14283_v34  ;;  %v14286_v2 = vxor.u32 2147483648, %v14285_v12  ;;  %vm1017_vm12 = vcmp.lt.s32.totalorder %v1016_v20, 2 }
 0x44f   :  { %v2563_v21 = vsel %vm2561_vm3, %v14282_v57, %v14278_v54  ;;  %vm14288_vm5 = vweird.f32 %v14287_v38  ;;  %vm1018_vm15 = vcmp.eq.s32.totalorder %v1016_v20, 0  ;;  %vm1021_vm8 = vcmp.eq.s32.totalorder %v1016_v20, 2  ;;  %8696 = vmatmul.msk.f32.gmra.mxu3 %vm7680_vm0, %v8803_v11  ;;  %v8805_v57 = vld [vmem:[#allocation2 + $0x18] sm:$0xff] }
 0x450   :  { %v2564_v31 = vsel %vm2557_vm1, %v2560_v47, %v2563_v21  ;;  %v2714_v17 = vsel %vm2712_vm6, %v14285_v12, %v14284_v53  ;;  %v2717_v46 = vsel %vm2715_vm13, %v14286_v2, %v14283_v34  ;;  %vm14290_vm14 = vweird.f32 %v14289_v22 }
 0x451   :  { %v2565_v24 = vsel %vm14288_vm5, nan, %v2564_v31  ;;  %v2718_v33 = vsel %vm2711_vm10, %v2714_v17, %v2717_v46  ;;  %v1020_v36 = vsel %vm1018_vm15, %v13042_v48, %v1019_v62  ;;  %v1023_v4 = vsel %vm1021_vm8, %v1022_v40, %v13048_v19  ;;  %v8056_v48 = vld [vmem:[%s13602_s4 + $0x18] sm:$0xff] }
 0x452   :  { %7950 = vmatpush.msra.mxu2 %v2565_v24  ;;  %v2719_v35 = vsel %vm14290_vm14, nan, %v2718_v33  ;;  %vm1171_vm9 = vcmp.lt.s32.totalorder %v1170_v58, 2  ;;  %v1024_v32 = vsel %vm1017_vm12, %v1020_v36, %v1023_v4  ;;  %vm1172_vm1 = vcmp.eq.s32.totalorder %v1170_v58, 0  ;;  %8074 = vperm.xlu0 %8751, %v8056_v48  }
 0x453   :  { %7979 = vmatpush.msra.mxu3 %v2719_v35  ;;  %vm1175_vm2 = vcmp.eq.s32.totalorder %v1170_v58, 2  ;;  %vm1633_vm3 = vcmp.lt.s32.totalorder %v13161_v50, 2  ;;  %v1025_v8 = vsel %vm1015_vm4, nan, %v1024_v32  ;;  %v1174_v10 = vsel %vm1172_vm1, %v13071_v49, %v1173_v27  ;;  %v14294_v27 = vld [vmem:[#allocation29_spill] sm:$0xff]  ;;  %v8804_v49 = vld [vmem:[#allocation2 + $0x10] sm:$0xff] }
 0x454   :  { %v1177_v62 = vsel %vm1175_vm2, %v1176_v15, %v13096_v28  ;;  %vm1634_vm10 = vcmp.eq.s32.totalorder %v13161_v50, 0  ;;  %8010 = vmatpush.msra.mxu0 %v1025_v8  ;;  %v14292_v40 = vxor.u32 2147483648, %v14291_v39  ;;  %vm1637_vm4 = vcmp.eq.s32.totalorder %v13161_v50, 2  ;;  %8693 = vmatmul.msk.f32.gmra.mxu2 %vm7680_vm0, %v8804_v49  ;;  %v7675_v15 = vld [vmem:[%s13600_s2 + $0x18] sm:$0xff] }
 0x455   :  { %v1178_v19 = vsel %vm1171_vm9, %v1174_v10, %v1177_v62  ;;  %v1786_v25 = vand.u32 3, %v14294_v27  ;;  %v14295_v6 = vxor.u32 2147483648, %v14293_v63  ;;  %v708_v20 = vand.u32 3, %v14296_v13  ;;  %8702 = vmatmul.msk.f32.gmra.mxu0 %vm7680_vm0, %v7675_v15  ;;  %8706 = vmatmul.msk.f32.gmra.mxu1 %vm7680_vm0, %v7675_v15 }
 0x456   :  { %v1636_v42 = vsel %vm1634_vm10, %v14293_v63, %v14292_v40  ;;  %v1179_v28 = vsel %vm1169_vm11, nan, %v1178_v19  ;;  %v862_v58 = vand.u32 3, %v12638_v1  ;;  %vm14297_vm13 = vweird.f32 %v14175_v43 }
 0x457   :  { %v1639_v0 = vsel %vm1637_vm4, %v14295_v6, %v14291_v39  ;;  %8039 = vmatpush.msra.mxu1 %v1179_v28  ;;  %vm1788_vm7 = vcmp.eq.s32.totalorder %v1786_v25, 0  ;;  %vm1791_vm6 = vcmp.eq.s32.totalorder %v1786_v25, 2  ;;  %vm1787_vm12 = vcmp.lt.s32.totalorder %v1786_v25, 2  ;;  %8697 = vmatmul.msk.f32.gmra.mxu3 %vm7680_vm0, %v8804_v49 }
 0x458   :  { %v1640_v30 = vsel %vm1633_vm3, %v1636_v42, %v1639_v0  ;;  %v14298_v3 = vxor.u32 2147483648, %v12641_v14  ;;  %v14299_v9 = vxor.u32 2147483648, %v12615_v60  ;;  %vm709_vm11 = vcmp.lt.s32.totalorder %v708_v20, 2 }
 0x459   :  { %v1641_v45 = vsel %vm14297_vm13, nan, %v1640_v30  ;;  %vm710_vm5 = vcmp.eq.s32.totalorder %v708_v20, 0  ;;  %vm713_vm15 = vcmp.eq.s32.totalorder %v708_v20, 2  ;;  %vm14300_vm8 = vweird.f32 %v14183_v29 }
 0x45a   :  { %v1790_v51 = vsel %vm1788_vm7, %v12615_v60, %v14298_v3  ;;  %v1793_v55 = vsel %vm1791_vm6, %v14299_v9, %v12641_v14  ;;  %7951 = vmatpush.msra.mxu2 %v1641_v45  ;;  %v14301_v50 = vxor.u32 2147483648, %v12665_v37  ;;  %v14302_v60 = vxor.u32 2147483648, %v12653_v52 }
 0x45b   :  { %v1794_v1 = vsel %vm1787_vm12, %v1790_v51, %v1793_v55  ;;  %vm864_vm14 = vcmp.eq.s32.totalorder %v862_v58, 0  ;;  %v14303_v54 = vxor.u32 2147483648, %v12705_v41  ;;  %vm867_vm9 = vcmp.eq.s32.totalorder %v862_v58, 2 }
 0x45c   :  { %v1795_v43 = vsel %vm14300_vm8, nan, %v1794_v1  ;;  %v712_v11 = vsel %vm710_vm5, %v12653_v52, %v14301_v50  ;;  %v715_v14 = vsel %vm713_vm15, %v14302_v60, %v12665_v37  ;;  %vm14304_vm1 = vweird.f32 %v14189_v61  ;;  %v8055_v52 = vld [vmem:[%s13602_s4 + $0x10] sm:$0xff]  ;;  %8694 = vmatmul.msk.f32.gmra.mxu2 %vm7680_vm0, %v8805_v57 }
 0x45d   :  { %7980 = vmatpush.msra.mxu3 %v1795_v43  ;;  %v716_v5 = vsel %vm709_vm11, %v712_v11, %v715_v14  ;;  %v866_v23 = vsel %vm864_vm14, %v12684_v7, %v14303_v54  ;;  %vm863_vm2 = vcmp.lt.s32.totalorder %v862_v58, 2  ;;  %v14305_v26 = vxor.u32 2147483648, %v12684_v7  ;;  %8069 = vperm.xlu0 %8751, %v8055_v52  }
 0x45e   :  { %v717_v29 = vsel %vm14304_vm1, nan, %v716_v5  ;;  %vm14306_vm3 = vweird.f32 %v14201_v18  ;;  %8715 = vmatmul.msk.f32.vlgmr.msra.gmra.mxu0 %vm7680_vm0, %v13069_v16  ;;  %8719 = vmatmul.msk.f32.vlgmr.msra.gmra.mxu1 %vm7680_vm0, %v13069_v16 }
 0x45f   :  { %v869_v47 = vsel %vm867_vm9, %v14305_v26, %v12705_v41  ;;  %7952 = vmatpush.msra.mxu2 %v717_v29  ;;  %8698 = vmatmul.msk.f32.gmra.mxu3 %vm7680_vm0, %v8805_v57  ;;  %v13304_v41 = vpop.f32.mrf.mxu2 }
 0x460   :  { %v870_v37 = vsel %vm863_vm2, %v866_v23, %v869_v47 }
 0x461   :  { %v871_v59 = vsel %vm14306_vm3, nan, %v870_v37 }
 0x462   :  { %7981 = vmatpush.msra.mxu3 %v871_v59 }
 0x464   :  { %8707 = vmatmul.msk.f32.vlgmr.msra.gmra.mxu2 %vm7680_vm0, %v13069_v16 }
 0x466   :  { %8716 = vmatmul.msk.f32.gmra.mxu0 %vm7680_vm0, %v13122_v56  ;;  %8720 = vmatmul.msk.f32.gmra.mxu1 %vm7680_vm0, %v13122_v56 }
 0x467   :  { %8711 = vmatmul.msk.f32.vlgmr.msra.gmra.mxu3 %vm7680_vm0, %v13069_v16  ;;  %v7713_v21 = vpop.f32.mrf.mxu2 }
 0x46c   :  { %8708 = vmatmul.msk.f32.gmra.mxu2 %vm7680_vm0, %v13122_v56 }
 0x46d   :  { %v7768_v61 = vpop.f32.mrf.mxu0 }
 0x46e   :  { %8717 = vmatmul.msk.f32.gmra.mxu0 %vm7680_vm0, %v13178_v44  ;;  %8721 = vmatmul.msk.f32.gmra.mxu1 %vm7680_vm0, %v13178_v44 }
 0x46f   :  { %8712 = vmatmul.msk.f32.gmra.mxu3 %vm7680_vm0, %v13122_v56  ;;  %v13310_v56 = vpop.f32.mrf.mxu3  ;;  %v7716_v53 = vpop.f32.mrf.mxu2 }
 0x474   :  { %8709 = vmatmul.msk.f32.gmra.mxu2 %vm7680_vm0, %v13178_v44 }
 0x475   :  { %v13306_v18 = vpop.f32.mrf.mxu0 }
 0x476   :  { %8718 = vmatmul.msk.f32.gmra.mxu0 %vm7680_vm0, %v7675_v15  ;;  %8722 = vmatmul.msk.f32.gmra.mxu1 %vm7680_vm0, %v7675_v15 }
 0x477   :  { %8713 = vmatmul.msk.f32.gmra.mxu3 %vm7680_vm0, %v13178_v44  ;;  %v7742_v44 = vpop.f32.mrf.mxu3  ;;  %v7719_v46 = vpop.f32.mrf.mxu2 }
 0x478   :  { %v13302_v7 = vpop.f32.mrf.mxu1 }
 0x47c   :  { %8710 = vmatmul.msk.f32.gmra.mxu2 %vm7680_vm0, %v7675_v15 }
 0x47d   :  { %v13312_v31 = vpop.f32.mrf.mxu0 }
 0x47f   :  { %8714 = vmatmul.msk.f32.gmra.mxu3 %vm7680_vm0, %v7675_v15  ;;  %v7745_v2 = vpop.f32.mrf.mxu3 }
 0x480   :  { %v13308_v16 = vpop.f32.mrf.mxu1 }
 0x485   :  { %v13316_v12 = vpop.f32.mrf.mxu0 }
 0x487   :  { %v7748_v33 = vpop.f32.mrf.mxu3 }
 0x488   :  { %v13314_v34 = vpop.f32.mrf.mxu1 }
 0x490   :  { %v13318_v17 = vpop.f32.mrf.mxu1 }
 0x4ad   :  { %v13340_v6 = vpop.permute.xlu1 %8064 }
 0x4b7   :  { %v7896_v38 = vpop.f32.mrf.mxu0  ;;  %v7925_v24 = vpop.f32.mrf.mxu1 }
 0x4ba   :  { %v8060_v29 = vpop.permute.xlu1 %8059 }
 0x4bf   :  { %v7899_v22 = vpop.f32.mrf.mxu0  ;;  %v7928_v35 = vpop.f32.mrf.mxu1 }
 0x4c0   :  { %v7900_v45 = vadd.f32 %v7899_v22, %v7713_v21  ;;  %v7929_v51 = vadd.f32 %v7928_v35, %v7742_v44  ;;  %v7897_v44 = vadd.f32 %v7896_v38, %v13304_v41 }
 0x4c2   :  { %v13351_v1 = vadd.f32 %v13340_v6, %v7900_v45  ;;  %v13354_v60 = vadd.f32 %v13340_v6, %v7929_v51 }
 0x4c4   :  { %v7826_v36 = vpop.f32.mrf.mxu2  ;;  %v13326_v42 = vpop.permute.xlu0 %8074  ;;  %v8107_v37 = vmul.f32 %v13351_v1, %v13351_v1  ;;  %v8108_v57 = vmul.f32 %v13354_v60, %v13354_v60 }
 0x4c6   :  { %v8131_v35 = vmul.f32 %v8107_v37, %v13351_v1 }
 0x4c7   :  { %v7902_v32 = vpop.f32.mrf.mxu0  ;;  %v7931_v8 = vpop.f32.mrf.mxu1 }
 0x4ca   :  { %v7855_v4 = vpop.f32.mrf.mxu3 }
 0x4cc   :  { %v13320_v10 = vpop.f32.mrf.mxu2 }
 0x4d2   :  { %v13322_v62 = vpop.f32.mrf.mxu3  ;;  %v7905_v19 = vpop.f32.mrf.mxu0 }
 0x4d3   :  { %v7934_v39 = vpop.f32.mrf.mxu1  ;;  %v7906_v40 = vadd.f32 %v7905_v19, %v7719_v46  ;;  %v7903_v46 = vadd.f32 %v7902_v32, %v7716_v53  ;;  %v13375_v19 = vpop.permute.xlu0 %8069 }
 0x4d4   :  { %v7935_v63 = vadd.f32 %v7934_v39, %v7748_v33  ;;  %v7926_v39 = vadd.f32 %v7925_v24, %v13310_v56  ;;  %v8155_v56 = vmul.f32 0.044715, %v8131_v35 }
 0x4d5   :  { %v13329_v27 = vadd.f32 %v13326_v42, %v7906_v40  ;;  %v8132_v40 = vmul.f32 %v8108_v57, %v13354_v60 }
 0x4d6   :  { %v13332_v25 = vadd.f32 %v13326_v42, %v7935_v63 }
 0x4d7   :  { %v13324_v48 = vpop.f32.mrf.mxu2  ;;  %v8119_v49 = vmul.f32 %v13329_v27, %v13329_v27 }
 0x4d8   :  { %v8120_v15 = vmul.f32 %v13332_v25, %v13332_v25 }
 0x4d9   :  { %v8143_v0 = vmul.f32 %v8119_v49, %v13329_v27 }
 0x4da   :  { %v13338_v28 = vpop.f32.mrf.mxu3  ;;  %v8144_v13 = vmul.f32 %v8120_v15, %v13332_v25 }
 0x4db   :  { %v8167_v58 = vmul.f32 0.044715, %v8143_v0  ;;  %v8012_v50 = vpop.f32.mrf.mxu0  ;;  %v8041_v11 = vpop.f32.mrf.mxu1 }
 0x4dc   :  { %v8168_v30 = vmul.f32 0.044715, %v8144_v13  ;;  %v8013_v54 = vadd.f32 %v8012_v50, %v7826_v36  ;;  %v8042_v23 = vadd.f32 %v8041_v11, %v7855_v4  ;;  %v7932_v36 = vadd.f32 %v7931_v8, %v7745_v2 }
 0x4dd   :  { %v8191_v3 = vadd.f32 %v8167_v58, %v13329_v27  ;;  %v13384_v2 = vadd.f32 %v8060_v29, %v7897_v44  ;;  %v13388_v8 = vadd.f32 %v13375_v19, %v7903_v46  ;;  %v13398_v58 = vadd.f32 %v8060_v29, %v7926_v39 }
 0x4de   :  { %v8192_v9 = vadd.f32 %v8168_v30, %v13332_v25  ;;  %v13356_v47 = vadd.f32 %v8060_v29, %v8013_v54  ;;  %v13358_v52 = vadd.f32 %v8060_v29, %v8042_v23  ;;  %v13393_v0 = vadd.f32 %v13375_v19, %v7932_v36 }
 0x4df   :  { %v13344_v20 = vpop.f32.mrf.mxu2  ;;  %v8215_v43 = vmul.f32 0.7978846, %v8191_v3 }
 0x4e0   :  { %v8216_v5 = vmul.f32 0.7978846, %v8192_v9  ;;  %v8105_v21 = vmul.f32 %v13356_v47, %v13356_v47 }
 0x4e1   :  { %8754 = vtanh.f32 %v8215_v43 }
 0x4e2   :  { %v13348_v55 = vpop.f32.mrf.mxu3  ;;  %8756 = vtanh.f32 %v8216_v5  ;;  %v8129_v49 = vmul.f32 %v8105_v21, %v13356_v47  ;;  %v8114_v21 = vmul.f32 %v13393_v0, %v13393_v0 }
 0x4e3   :  { %v8015_v9 = vpop.f32.mrf.mxu0  ;;  %v8044_v43 = vpop.f32.mrf.mxu1 }
 0x4e4   :  { %v13400_v30 = vmul.f32 0.044715, %v8129_v49  ;;  %v8016_v54 = vadd.f32 %v8015_v9, %v13320_v10  ;;  %v8045_v23 = vadd.f32 %v8044_v43, %v13322_v62 }
 0x4e6   :  { %v13418_v44 = vadd.f32 %v13340_v6, %v8016_v54  ;;  %v13421_v46 = vadd.f32 %v13340_v6, %v8045_v23 }
 0x4e7   :  { %v7954_v14 = vpop.f32.mrf.mxu2  ;;  %v8755_v53 = vpop.eup %8754 }
 0x4e8   :  { %v7955_v26 = vadd.f32 %v7954_v14, %v7768_v61  ;;  %v8106_v61 = vmul.f32 %v13358_v52, %v13358_v52  ;;  %v8757_v15 = vpop.eup %8756  ;;  %v8263_v50 = vadd.f32 1.0, %v8755_v53  ;;  %v8111_v36 = vmul.f32 %v13418_v44, %v13418_v44 }
 0x4e9   :  { %v8264_v11 = vadd.f32 1.0, %v8757_v15 }
 0x4ea   :  { %v13362_v59 = vadd.f32 %v8060_v29, %v7955_v26  ;;  %v7983_v22 = vpop.f32.mrf.mxu3  ;;  %v8130_v41 = vmul.f32 %v8106_v61, %v13358_v52  ;;  %v8287_v57 = vmul.f32 0.5, %v8263_v50 }
 0x4eb   :  { %v7984_v4 = vadd.f32 %v7983_v22, %v13302_v7  ;;  %v8288_v10 = vmul.f32 0.5, %v8264_v11 }
 0x4ec   :  { %v8103_v33 = vmul.f32 %v13362_v59, %v13362_v59  ;;  %v13402_v45 = vmul.f32 0.044715, %v8130_v41  ;;  %v8311_v35 = vmul.f32 %v8287_v57, %v13329_v27  ;;  %v8179_v27 = vadd.f32 %v8155_v56, %v13351_v1 }
 0x4ed   :  { %v13381_v38 = vadd.f32 %v8060_v29, %v7984_v4  ;;  %v8113_v29 = vmul.f32 %v13388_v8, %v13388_v8  ;;  %v8112_v4 = vmul.f32 %v13421_v46, %v13421_v46  ;;  %v8312_v39 = vmul.f32 %v8288_v10, %v13332_v25 }
 0x4ee   :  { %v8127_v7 = vmul.f32 %v8103_v33, %v13362_v59  ;;  %8349 = vmatpush.msrb.mxu2 %v8311_v35  ;;  %v8135_v41 = vmul.f32 %v8111_v36, %v13418_v44 }
 0x4ef   :  { %v7957_v63 = vpop.f32.mrf.mxu2  ;;  %v8104_v24 = vmul.f32 %v13381_v38, %v13381_v38  ;;  %v8137_v62 = vmul.f32 %v8113_v29, %v13388_v8  ;;  %v8136_v53 = vmul.f32 %v8112_v4, %v13421_v46  ;;  %8372 = vmatpush.msrb.mxu3 %v8312_v39  ;;  %v8102_v39 = vmul.f32 %v13398_v58, %v13398_v58 }
 0x4f0   :  { %v7958_v32 = vadd.f32 %v7957_v63, %v13306_v18  ;;  %v8156_v18 = vmul.f32 0.044715, %v8132_v40  ;;  %v13407_v14 = vmul.f32 0.044715, %v8127_v7  ;;  %v8018_v7 = vpop.f32.mrf.mxu0  ;;  %v13451_v56 = vmul.f32 0.044715, %v8135_v41 }
 0x4f1   :  { %v8128_v3 = vmul.f32 %v8104_v24, %v13381_v38  ;;  %v8161_v40 = vmul.f32 0.044715, %v8137_v62  ;;  %v8047_v24 = vpop.f32.mrf.mxu1  ;;  %v8019_v43 = vadd.f32 %v8018_v7, %v13324_v48  ;;  %v13458_v23 = vmul.f32 0.044715, %v8136_v53 }
 0x4f2   :  { %v13396_v13 = vadd.f32 %v13340_v6, %v7958_v32  ;;  %v7986_v5 = vpop.f32.mrf.mxu3  ;;  %v8048_v50 = vadd.f32 %v8047_v24, %v13338_v28  ;;  %v8180_v11 = vadd.f32 %v8156_v18, %v13354_v60 }
 0x4f3   :  { %v7987_v37 = vadd.f32 %v7986_v5, %v13308_v16  ;;  %v13424_v33 = vmul.f32 0.044715, %v8128_v3  ;;  %v8185_v25 = vadd.f32 %v8161_v40, %v13388_v8 }
 0x4f4   :  { %v8109_v51 = vmul.f32 %v13396_v13, %v13396_v13  ;;  %v13464_v57 = vadd.f32 %v13375_v19, %v8048_v50  ;;  %v8204_v62 = vmul.f32 0.7978846, %v8180_v11 }
 0x4f5   :  { %v13427_v22 = vadd.f32 %v13340_v6, %v7987_v37  ;;  %v8209_v29 = vmul.f32 0.7978846, %v8185_v25  ;;  %v13461_v37 = vadd.f32 %v13375_v19, %v8019_v43 }
 0x4f6   :  { %v8133_v26 = vmul.f32 %v8109_v51, %v13396_v13  ;;  %v8203_v51 = vmul.f32 0.7978846, %v8179_v27 }
 0x4f7   :  { %v7960_v61 = vpop.f32.mrf.mxu2  ;;  %v8110_v63 = vmul.f32 %v13427_v22, %v13427_v22 }
 0x4f8   :  { %v7961_v16 = vadd.f32 %v7960_v61, %v13312_v31  ;;  %v8138_v31 = vmul.f32 %v8114_v21, %v13393_v0  ;;  %v13443_v6 = vmul.f32 0.044715, %v8133_v26  ;;  %8758 = vtanh.f32 %v8203_v51 }
 0x4f9   :  { %v8134_v32 = vmul.f32 %v8110_v63, %v13427_v22  ;;  %8760 = vtanh.f32 %v8209_v29  ;;  %v8117_v21 = vmul.f32 %v13461_v37, %v13461_v37  ;;  %v8118_v61 = vmul.f32 %v13464_v57, %v13464_v57  ;;  %v8050_v27 = vpop.f32.mrf.mxu1 }
 0x4fa   :  { %v13439_v49 = vadd.f32 %v13375_v19, %v7961_v16  ;;  %v8162_v3 = vmul.f32 0.044715, %v8138_v31  ;;  %v7989_v9 = vpop.f32.mrf.mxu3  ;;  %v8021_v31 = vpop.f32.mrf.mxu0  ;;  %v8051_v24 = vadd.f32 %v8050_v27, %v13348_v55 }
 0x4fb   :  { %v7990_v54 = vadd.f32 %v7989_v9, %v13314_v34  ;;  %v13467_v28 = vmul.f32 0.044715, %v8134_v32  ;;  %v8142_v4 = vmul.f32 %v8118_v61, %v13464_v57  ;;  %v8022_v7 = vadd.f32 %v8021_v31, %v13344_v20 }
 0x4fc   :  { %v8115_v15 = vmul.f32 %v13439_v49, %v13439_v49  ;;  %v8186_v48 = vadd.f32 %v8162_v3, %v13393_v0 }
 0x4fd   :  { %v13470_v18 = vadd.f32 %v13375_v19, %v7990_v54  ;;  %v8101_v19 = vmul.f32 %v13384_v2, %v13384_v2  ;;  %v13504_v54 = vadd.f32 %v13326_v42, %v8051_v24 }
 0x4fe   :  { %v8139_v5 = vmul.f32 %v8115_v15, %v13439_v49  ;;  %v8210_v10 = vmul.f32 0.7978846, %v8186_v48  ;;  %v8759_v53 = vpop.eup %8758  ;;  %v13494_v15 = vmul.f32 0.044715, %v8142_v4  ;;  %v8126_v48 = vmul.f32 %v8102_v39, %v13398_v58 }
 0x4ff   :  { %v7963_v26 = vpop.f32.mrf.mxu2  ;;  %v8116_v35 = vmul.f32 %v13470_v18, %v13470_v18  ;;  %v8125_v41 = vmul.f32 %v8101_v19, %v13384_v2  ;;  %v8761_v3 = vpop.eup %8760  ;;  %v8251_v50 = vadd.f32 1.0, %v8759_v53  ;;  %v8124_v61 = vmul.f32 %v13504_v54, %v13504_v54 }
 0x500   :  { %v7964_v34 = vadd.f32 %v7963_v26, %v13316_v12  ;;  %v8163_v16 = vmul.f32 0.044715, %v8139_v5  ;;  %v8141_v12 = vmul.f32 %v8117_v21, %v13461_v37  ;;  %8762 = vtanh.f32 %v8210_v10 }
 0x501   :  { %v8140_v40 = vmul.f32 %v8116_v35, %v13470_v18  ;;  %8764 = vtanh.f32 %v8204_v62  ;;  %v8257_v11 = vadd.f32 1.0, %v8761_v3  ;;  %v13501_v5 = vadd.f32 %v13326_v42, %v8022_v7 }
 0x502   :  { %v13480_v36 = vadd.f32 %v13326_v42, %v7964_v34  ;;  %v7992_v25 = vpop.f32.mrf.mxu3  ;;  %v13492_v32 = vmul.f32 0.044715, %v8141_v12  ;;  %v8149_v29 = vmul.f32 0.044715, %v8125_v41  ;;  %v8275_v55 = vmul.f32 0.5, %v8251_v50 }
 0x503   :  { %v8164_v51 = vmul.f32 0.044715, %v8140_v40  ;;  %v7993_v43 = vadd.f32 %v7992_v25, %v13318_v17  ;;  %v8281_v21 = vmul.f32 0.5, %v8257_v11  ;;  %v8123_v17 = vmul.f32 %v13501_v5, %v13501_v5 }
 0x504   :  { %v8121_v63 = vmul.f32 %v13480_v36, %v13480_v36  ;;  %v8173_v10 = vadd.f32 %v8149_v29, %v13384_v2  ;;  %v8299_v12 = vmul.f32 %v8275_v55, %v13351_v1  ;;  %v8148_v40 = vmul.f32 %v8124_v61, %v13504_v54 }
 0x505   :  { %v13507_v20 = vadd.f32 %v13326_v42, %v7993_v43  ;;  %v8305_v4 = vmul.f32 %v8281_v21, %v13388_v8  ;;  %v8147_v39 = vmul.f32 %v8123_v17, %v13501_v5  ;;  %v8187_v3 = vadd.f32 %v8163_v16, %v13439_v49 }
 0x506   :  { %v8145_v9 = vmul.f32 %v8121_v63, %v13480_v36  ;;  %v8763_v34 = vpop.eup %8762  ;;  %v8197_v53 = vmul.f32 0.7978846, %v8173_v10  ;;  %v8172_v7 = vmul.f32 0.044715, %v8148_v40  ;;  %v8188_v16 = vadd.f32 %v8164_v51, %v13470_v18 }
 0x507   :  { %v8765_v62 = vpop.eup %8764  ;;  %v8122_v42 = vmul.f32 %v13507_v20, %v13507_v20  ;;  %v8258_v19 = vadd.f32 1.0, %v8763_v34  ;;  %8350 = vmatpush.msrb.mxu2 %v8305_v4  ;;  %v8171_v25 = vmul.f32 0.044715, %v8147_v39  ;;  %v8211_v55 = vmul.f32 0.7978846, %v8187_v3 }
 0x508   :  { %v8169_v26 = vmul.f32 0.044715, %v8145_v9  ;;  %v8252_v63 = vadd.f32 1.0, %v8765_v62  ;;  %v8150_v9 = vmul.f32 0.044715, %v8126_v48  ;;  %v8196_v50 = vadd.f32 %v8172_v7, %v13504_v54 }
 0x509   :  { %v8146_v27 = vmul.f32 %v8122_v42, %v13507_v20  ;;  %v8282_v41 = vmul.f32 0.5, %v8258_v19  ;;  %v8195_v43 = vadd.f32 %v8171_v25, %v13501_v5  ;;  %8351 = vmatpush.msrb.mxu2 %v8299_v12  ;;  %v8182_v48 = vadd.f32 %v13467_v28, %v13427_v22 }
 0x50a   :  { %v8193_v35 = vadd.f32 %v8169_v26, %v13480_v36  ;;  %v8276_v24 = vmul.f32 0.5, %v8252_v63  ;;  %v8174_v26 = vadd.f32 %v8150_v9, %v13398_v58  ;;  %v8220_v21 = vmul.f32 0.7978846, %v8196_v50 }
 0x50b   :  { %v8170_v1 = vmul.f32 0.044715, %v8146_v27  ;;  %v8306_v8 = vmul.f32 %v8282_v41, %v13393_v0  ;;  %v8219_v34 = vmul.f32 0.7978846, %v8195_v43  ;;  %v8181_v0 = vadd.f32 %v13443_v6, %v13396_v13 }
 0x50c   :  { %v8217_v31 = vmul.f32 0.7978846, %v8193_v35  ;;  %v8300_v11 = vmul.f32 %v8276_v24, %v13354_v60  ;;  %v8198_v60 = vmul.f32 0.7978846, %v8174_v26  ;;  %v8212_v61 = vmul.f32 0.7978846, %v8188_v16 }
 0x50d   :  { %v8194_v29 = vadd.f32 %v8170_v1, %v13507_v20  ;;  %8373 = vmatpush.msrb.mxu3 %v8306_v8  ;;  %v8205_v10 = vmul.f32 0.7978846, %v8181_v0  ;;  %v8206_v62 = vmul.f32 0.7978846, %v8182_v48  ;;  %v8175_v35 = vadd.f32 %v13407_v14, %v13362_v59 }
 0x50e   :  { %8766 = vtanh.f32 %v8217_v31  ;;  %v8176_v42 = vadd.f32 %v13424_v33, %v13381_v38  ;;  %v8189_v6 = vadd.f32 %v13492_v32, %v13461_v37  ;;  %v8190_v28 = vadd.f32 %v13494_v15, %v13464_v57 }
 0x50f   :  { %8768 = vtanh.f32 %v8197_v53  ;;  %v8218_v17 = vmul.f32 0.7978846, %v8194_v29  ;;  %8374 = vmatpush.msrb.mxu3 %v8300_v11  ;;  %v8199_v4 = vmul.f32 0.7978846, %v8175_v35  ;;  %v8183_v39 = vadd.f32 %v13451_v56, %v13418_v44  ;;  %v13553_v11 = vld [vmem:[#allocation5] sm:$0xff] }
 0x510   :  { %8770 = vtanh.f32 %v8211_v55  ;;  %v8200_v14 = vmul.f32 0.7978846, %v8176_v42  ;;  %v8213_v63 = vmul.f32 0.7978846, %v8189_v6  ;;  %v8214_v33 = vmul.f32 0.7978846, %v8190_v28 }
 0x511   :  { %8772 = vtanh.f32 %v8219_v34  ;;  %v8207_v27 = vmul.f32 0.7978846, %v8183_v39  ;;  %v8184_v15 = vadd.f32 %v13458_v23, %v13421_v46  ;;  %v8177_v53 = vadd.f32 %v13400_v30, %v13356_v47 }
 0x512   :  { %8774 = vtanh.f32 %v8218_v17  ;;  %v8178_v24 = vadd.f32 %v13402_v45, %v13358_v52 }
 0x513   :  { %8776 = vtanh.f32 %v8220_v21  ;;  %v8208_v9 = vmul.f32 0.7978846, %v8184_v15  ;;  %v8201_v30 = vmul.f32 0.7978846, %v8177_v53  ;;  %v8319_v21 = vld [vmem:[%s13604_s6] sm:$0xff] }
 0x514   :  { %v8767_v51 = vpop.eup %8766  ;;  %8778 = vtanh.f32 %v8198_v60  ;;  %v8202_v55 = vmul.f32 0.7978846, %v8178_v24  ;;  %8323 = vperm.xlu2 %8753, %v8319_v21  }
 0x515   :  { %v8769_v19 = vpop.eup %8768  ;;  %v8265_v12 = vadd.f32 1.0, %v8767_v51  ;;  %8780 = vtanh.f32 %v8212_v61 }
 0x516   :  { %v8245_v40 = vadd.f32 1.0, %v8769_v19  ;;  %v8771_v41 = vpop.eup %8770  ;;  %8782 = vtanh.f32 %v8205_v10 }
 0x517   :  { %v8289_v31 = vmul.f32 0.5, %v8265_v12  ;;  %v8773_v25 = vpop.eup %8772  ;;  %v8259_v7 = vadd.f32 1.0, %v8771_v41  ;;  %8784 = vtanh.f32 %v8206_v62 }
 0x518   :  { %v8269_v32 = vmul.f32 0.5, %v8245_v40  ;;  %v8775_v3 = vpop.eup %8774  ;;  %8786 = vtanh.f32 %v8199_v4  ;;  %v8267_v8 = vadd.f32 1.0, %v8773_v25 }
 0x519   :  { %v8313_v56 = vmul.f32 %v8289_v31, %v13480_v36  ;;  %v8777_v43 = vpop.eup %8776  ;;  %v8266_v50 = vadd.f32 1.0, %v8775_v3  ;;  %v8283_v23 = vmul.f32 0.5, %v8259_v7  ;;  %8788 = vtanh.f32 %v8200_v14 }
 0x51a   :  { %v8293_v1 = vmul.f32 %v8269_v32, %v13384_v2  ;;  %v8779_v29 = vpop.eup %8778  ;;  %v8291_v36 = vmul.f32 0.5, %v8267_v8  ;;  %v8268_v26 = vadd.f32 1.0, %v8777_v43  ;;  %8790 = vtanh.f32 %v8213_v63  ;;  %v8320_v32 = vld [vmem:[%s13604_s6 + $0x8] sm:$0xff]  ;;  %s8895_s6 = smov [#allocation7]  }
 0x51b   :  { %v8781_v45 = vpop.eup %8780  ;;  %v8246_v16 = vadd.f32 1.0, %v8779_v29  ;;  %v8290_v2 = vmul.f32 0.5, %v8266_v50  ;;  %v8307_v34 = vmul.f32 %v8283_v23, %v13439_v49  ;;  %8792 = vtanh.f32 %v8214_v33  ;;  %v8318_v33 = vld [vmem:[#allocation5 + $0x8] sm:$0xff]  ;;  %s8491_s22 = sshll.u32 %s8895_s6, 4  ;;  %s8492_s22 = int_to_ptr.vmem [resolvable:$true] %s8491_s22 }
 0x51c   :  { %8352 = vmatpush.msrb.mxu2 %v8293_v1  ;;  %v8783_v0 = vpop.eup %8782  ;;  %v8260_v48 = vadd.f32 1.0, %v8781_v45  ;;  %v8315_v17 = vmul.f32 %v8291_v36, %v13501_v5  ;;  %v8292_v60 = vmul.f32 0.5, %v8268_v26  ;;  %8794 = vtanh.f32 %v8207_v27  ;;  %8328 = vperm.xlu2 %8753, %v8320_v32  }
 0x51d   :  { %8723 = vmatmul.msk.f32.vlgmr.msrb.gmra.mxu2 %vm7680_vm0, %v13553_v11  ;;  %v8785_v61 = vpop.eup %8784  ;;  %v8270_v10 = vmul.f32 0.5, %v8246_v16  ;;  %v8314_v62 = vmul.f32 %v8290_v2, %v13507_v20  ;;  %v8253_v49 = vadd.f32 1.0, %v8783_v0  ;;  %8796 = vtanh.f32 %v8208_v9 }
 0x51e   :  { %8395 = vmatpush.msra.mxu2 %v8313_v56  ;;  %v8787_v35 = vpop.eup %8786  ;;  %v8284_v51 = vmul.f32 0.5, %v8260_v48  ;;  %v8254_v42 = vadd.f32 1.0, %v8785_v61  ;;  %8441 = vmatpush.msrb.mxu0 %v8315_v17  ;;  %v8316_v6 = vmul.f32 %v8292_v60, %v13504_v54  ;;  %8798 = vtanh.f32 %v8201_v30 }
 0x51f   :  { %v8789_v5 = vpop.eup %8788  ;;  %v8294_v28 = vmul.f32 %v8270_v10, %v13398_v58  ;;  %v8277_v19 = vmul.f32 0.5, %v8253_v49  ;;  %v8247_v12 = vadd.f32 1.0, %v8787_v35  ;;  %8800 = vtanh.f32 %v8202_v55 }
 0x520   :  { %8396 = vmatpush.msra.mxu2 %v8307_v34  ;;  %v8791_v4 = vpop.eup %8790  ;;  %v8278_v39 = vmul.f32 0.5, %v8254_v42  ;;  %v8248_v40 = vadd.f32 1.0, %v8789_v5  ;;  %8464 = vmatpush.msrb.mxu1 %v8316_v6  ;;  %v8308_v54 = vmul.f32 %v8284_v51, %v13470_v18 }
 0x521   :  { %v8793_v20 = vpop.eup %8792  ;;  %8375 = vmatpush.msrb.mxu3 %v8294_v28  ;;  %v8301_v14 = vmul.f32 %v8277_v19, %v13396_v13  ;;  %v8271_v63 = vmul.f32 0.5, %v8247_v12  ;;  %v8261_v31 = vadd.f32 1.0, %v8791_v4 }
 0x522   :  { %v8795_v27 = vpop.eup %8794  ;;  %v8272_v41 = vmul.f32 0.5, %v8248_v40  ;;  %v8262_v58 = vadd.f32 1.0, %v8793_v20  ;;  %8725 = vmatmul.msk.f32.vlgmr.msrb.gmra.mxu3 %vm7680_vm0, %v13553_v11  ;;  %v8302_v7 = vmul.f32 %v8278_v39, %v13427_v22 }
 0x523   :  { %8418 = vmatpush.msra.mxu3 %v8314_v62  ;;  %v8797_v15 = vpop.eup %8796  ;;  %8397 = vmatpush.msra.mxu2 %v8301_v14  ;;  %v8295_v53 = vmul.f32 %v8271_v63, %v13362_v59  ;;  %v8285_v13 = vmul.f32 0.5, %v8261_v31  ;;  %v8255_v25 = vadd.f32 1.0, %v8795_v27 }
 0x524   :  { %v8799_v56 = vpop.eup %8798  ;;  %v8286_v18 = vmul.f32 0.5, %v8262_v58  ;;  %v8256_v24 = vadd.f32 1.0, %v8797_v15  ;;  %v8296_v59 = vmul.f32 %v8272_v41, %v13381_v38 }
 0x525   :  { %8419 = vmatpush.msra.mxu3 %v8308_v54  ;;  %8724 = vmatmul.msk.f32.gmra.mxu2 %vm7680_vm0, %v8318_v33  ;;  %v8801_v3 = vpop.eup %8800  ;;  %v8309_v1 = vmul.f32 %v8285_v13, %v13461_v37  ;;  %v8279_v8 = vmul.f32 0.5, %v8255_v25  ;;  %v8249_v9 = vadd.f32 1.0, %v8799_v56 }
 0x526   :  { %8398 = vmatpush.msra.mxu2 %v8295_v53  ;;  %v8310_v43 = vmul.f32 %v8286_v18, %v13464_v57  ;;  %v8280_v50 = vmul.f32 0.5, %v8256_v24  ;;  %v8250_v23 = vadd.f32 1.0, %v8801_v3 }
 0x527   :  { %8420 = vmatpush.msra.mxu3 %v8302_v7  ;;  %8442 = vmatpush.msrb.mxu0 %v8309_v1  ;;  %v8303_v22 = vmul.f32 %v8279_v8, %v13418_v44  ;;  %v8273_v30 = vmul.f32 0.5, %v8249_v9 }
 0x528   :  { %8465 = vmatpush.msrb.mxu1 %v8310_v43  ;;  %v8304_v29 = vmul.f32 %v8280_v50, %v13421_v46  ;;  %v8274_v36 = vmul.f32 0.5, %v8250_v23 }
 0x529   :  { %8421 = vmatpush.msra.mxu3 %v8296_v59  ;;  %8443 = vmatpush.msrb.mxu0 %v8303_v22  ;;  %v8297_v37 = vmul.f32 %v8273_v30, %v13356_v47 }
 0x52a   :  { %8466 = vmatpush.msrb.mxu1 %v8304_v29  ;;  %v8298_v26 = vmul.f32 %v8274_v36, %v13358_v52  ;;  %8726 = vmatmul.msk.f32.gmra.mxu3 %vm7680_vm0, %v8318_v33 }
 0x52b   :  { %8444 = vmatpush.msrb.mxu0 %v8297_v37 }
 0x52c   :  { %8467 = vmatpush.msrb.mxu1 %v8298_v26  ;;  %8731 = vmatmul.msk.f32.vlgmr.msrb.gmra.mxu0 %vm7680_vm0, %v13553_v11 }
 0x52d   :  { %8727 = vmatmul.msk.f32.vlgmr.msra.gmra.mxu2 %vm7680_vm0, %v13553_v11  ;;  %8733 = vmatmul.msk.f32.vlgmr.msrb.gmra.mxu1 %vm7680_vm0, %v13553_v11 }
 0x532   :  { %8729 = vmatmul.msk.f32.vlgmr.msra.gmra.mxu3 %vm7680_vm0, %v13553_v11 }
 0x534   :  { %8732 = vmatmul.msk.f32.gmra.mxu0 %vm7680_vm0, %v8318_v33 }
 0x535   :  { %8728 = vmatmul.msk.f32.gmra.mxu2 %vm7680_vm0, %v8318_v33  ;;  %8734 = vmatmul.msk.f32.gmra.mxu1 %vm7680_vm0, %v8318_v33 }
 0x53a   :  { %8730 = vmatmul.msk.f32.gmra.mxu3 %vm7680_vm0, %v8318_v33 }
 0x56e   :  { %v8324_v47 = vpop.permute.xlu2 %8323 }
 0x576   :  { %v8329_v44 = vpop.permute.xlu2 %8328 }
 0x5a0   :  { %v8354_v52 = vpop.f32.mrf.mxu2 }
 0x5a1   :  { %v8355_v38 = vadd.f32 %v8354_v52, %v8324_v47 }
 0x5a3   :  { %8475 = vst [vmem:[#allocation7] sm:$0xff] %v8355_v38 }
 0x5a5   :  { %v8377_v46 = vpop.f32.mrf.mxu3 }
 0x5a6   :  { %v8378_v57 = vadd.f32 %v8377_v46, %v8324_v47 }
 0x5a8   :  { %v8357_v55 = vpop.f32.mrf.mxu2  ;;  %8476 = vst [vmem:[#allocation7 + $0x8] sm:$0xff] %v8378_v57 }
 0x5a9   :  { %v8358_v45 = vadd.f32 %v8357_v55, %v8329_v44  ;;  %v8446_v11 = vpop.f32.mrf.mxu0 }
 0x5aa   :  { %v8469_v16 = vpop.f32.mrf.mxu1  ;;  %v8447_v2 = vadd.f32 %v8446_v11, %v8324_v47 }
 0x5ab   :  { %8481 = vst [vmem:[#allocation7 + $0x30] sm:$0xff] %v8358_v45  ;;  %v8470_v34 = vadd.f32 %v8469_v16, %v8324_v47 }
 0x5ac   :  { %8479 = vst [vmem:[#allocation7 + $0x20] sm:$0xff] %v8447_v2 }
 0x5ad   :  { %v8380_v21 = vpop.f32.mrf.mxu3  ;;  %8480 = vst [vmem:[#allocation7 + $0x28] sm:$0xff] %v8470_v34 }
 0x5ae   :  { %v8381_v0 = vadd.f32 %v8380_v21, %v8329_v44 }
 0x5b0   :  { %v8400_v48 = vpop.f32.mrf.mxu2  ;;  %8482 = vst [vmem:[#allocation7 + $0x38] sm:$0xff] %v8381_v0 }
 0x5b1   :  { %v8401_v17 = vadd.f32 %v8400_v48, %v8324_v47  ;;  %v8449_v60 = vpop.f32.mrf.mxu0 }
 0x5b2   :  { %v8472_v61 = vpop.f32.mrf.mxu1  ;;  %v8450_v10 = vadd.f32 %v8449_v60, %v8329_v44 }
 0x5b3   :  { %8477 = vst [vmem:[#allocation7 + $0x10] sm:$0xff] %v8401_v17  ;;  %v8473_v62 = vadd.f32 %v8472_v61, %v8329_v44 }
 0x5b4   :  { %8485 = vst [vmem:[#allocation7 + $0x50] sm:$0xff] %v8450_v10 }
 0x5b5   :  { %v8423_v49 = vpop.f32.mrf.mxu3  ;;  %8486 = vst [vmem:[#allocation7 + $0x58] sm:$0xff] %v8473_v62 }
 0x5b6   :  { %v8424_v35 = vadd.f32 %v8423_v49, %v8324_v47 }
 0x5b8   :  { %v8403_v51 = vpop.f32.mrf.mxu2  ;;  %8478 = vst [vmem:[#allocation7 + $0x18] sm:$0xff] %v8424_v35 }
 0x5b9   :  { %v8404_v42 = vadd.f32 %v8403_v51, %v8329_v44 }
 0x5bb   :  { %8483 = vst [vmem:[#allocation7 + $0x40] sm:$0xff] %v8404_v42 }
 0x5bd   :  { %v8426_v6 = vpop.f32.mrf.mxu3 }
 0x5be   :  { %v8427_v5 = vadd.f32 %v8426_v6, %v8329_v44 }
 0x5c0   :  { %8484 = vst [vmem:[#allocation7 + $0x48] sm:$0xff] %v8427_v5 }
 0x5c1   :  { %8499 = dma.vmem_to_hbm [thread:$0]  %s8492_s22, 1536, %s8494_s25, [#allocation4], %s8896_s26, %s8896_s26, %s8897_s27  }
 0x5c2   :  { %8882 = dma.done.wait [#allocation4], 1536  }
 0x5c3   :  { %8883 = vsyncadd [#allocation4], 4294965760 }
 0x5c4   :  { %8504 = vsyncpa [#allocation3], 1 }
 0x5c5   :  { %8505 = vsyncpa [#allocation6], 1 }
 0x5c6   :  { %8506 = vsyncpa [#allocation4], 1 }

</bundles_post_ra>
